<compile_context>
chip_gen: v7x
topology: tpu7x:2x2x1
jax: 0.10.0
libtpu: 0.0.40
codegen_flags: <defaults>
</compile_context>

<pallas_src>
import math

import jax
import jax.numpy as jnp
from jax.experimental import pallas as pl
from jax.experimental.pallas import tpu as pltpu

EPS = 1e-5
MARGIN = 8            # sublane-aligned zero margin on each side of padded scratch
V_FINAL_BIAS_ROW = 43  # 3 stem rows + 4 blocks * 10 rows


def _pad8(n):
    return ((n + 7) // 8) * 8


# ------------------------------ Fused kernel --------------------------------

def _fused_resnet_kernel(x_ref, w_ref, v_ref, o_ref, xpad_ref):
    N, L, C_in = x_ref.shape
    NL = N * L
    C_out = o_ref.shape[1]

    # Zero the padded scratch once; conv staging only writes interior rows, so
    # the row margins stay zero for every conv in the network.
    xpad_ref[...] = jnp.zeros(xpad_ref.shape, jnp.float32)

    # Static row offsets into the packed parameter slabs.
    stem_rows = 7 * C_in
    blk0_row = _pad8(stem_rows)
    final_w_row = blk0_row + 4 * 160

    def wmat(start, rows):
        return w_ref[pl.ds(start, rows), :]            # (rows, 16)

    def vrow(r):
        return v_ref[pl.ds(r, 1), :]                   # (1, 16)

    def conv(x2d, w, b, K, Cin):
        """'same' Conv1d, stride 1, via im2col: one MXU push per conv."""
        if K == 1:
            return jnp.dot(x2d, w, preferred_element_type=jnp.float32) + b
        p = (K - 1) // 2
        # Stage activation once per conv per batch (sublane-aligned stores).
        for n in range(N):
            xpad_ref[n, pl.ds(MARGIN, L), pl.ds(0, Cin)] = x2d[n * L:(n + 1) * L, :]
        # Build the (N*L, K*Cin) im2col LHS: K shifted reads lane-concatenated,
        # batches folded into the M (sublane) dimension.
        rows = []
        for n in range(N):
            taps = [xpad_ref[n, pl.ds(MARGIN + k - p, L), pl.ds(0, Cin)]
                    for k in range(K)]
            rows.append(jnp.concatenate(taps, axis=1))       # (L, K*Cin)
        lhs = jnp.concatenate(rows, axis=0)                  # (N*L, K*Cin)
        return jnp.dot(lhs, w, preferred_element_type=jnp.float32) + b

    def bn(x2d, g, b):
        """BatchNorm1d training mode, folded to scale/shift (one-pass var)."""
        mean = jnp.mean(x2d, axis=0, keepdims=True)
        mean_sq = jnp.mean(x2d * x2d, axis=0, keepdims=True)
        var = mean_sq - mean * mean
        scale = g * jax.lax.rsqrt(var + EPS)
        shift = b - mean * scale
        return x2d * scale + shift

    # Fold batch into the M dimension (aligned sublane concat).
    x2d = jnp.concatenate([x_ref[n] for n in range(N)], axis=0)   # (N*L, C_in)

    # ---- stem: conv1 (K=7, pad=3) -> norm1 -> ReLU ----
    f = conv(x2d, wmat(0, stem_rows), vrow(0), 7, C_in)
    f = jnp.maximum(bn(f, vrow(1), vrow(2)), 0.0)

    # ---- 4 residual blocks ----
    for bidx in range(4):
        w0 = blk0_row + bidx * 160
        v0 = 3 + bidx * 10
        c4 = conv(f,  wmat(w0,       48), vrow(v0 + 0), 3, 16)   # conv4
        c1 = conv(c4, wmat(w0 + 48,  48), vrow(v0 + 1), 3, 16)   # conv1
        r1 = jnp.maximum(bn(c1, vrow(v0 + 4), vrow(v0 + 5)), 0.0)  # norm1+ReLU1
        c2 = conv(r1, wmat(w0 + 96,  48), vrow(v0 + 2), 3, 16)   # conv2
        c3 = conv(c4, wmat(w0 + 144, 16), vrow(v0 + 3), 1, 16)   # conv3 (1x1)
        f = jnp.maximum(bn(c3, vrow(v0 + 8), vrow(v0 + 9)) +
                        bn(c2, vrow(v0 + 6), vrow(v0 + 7)), 0.0)   # ReLU2

    # ---- final 1x1 conv: single (C_out,16)x(16,N*L) matmul, lane-dense NCL ----
    wf = w_ref[pl.ds(final_w_row, C_out), :]                 # (C_out, 16)
    bf = v_ref[pl.ds(V_FINAL_BIAS_ROW, C_out), pl.ds(0, 1)]  # (C_out, 1)
    res = jax.lax.dot_general(wf, f, (((1,), (1,)), ((), ())),
                              preferred_element_type=jnp.float32) + bf  # (C_out, N*L)
    for n in range(N):
        o_ref[n] = res[:, n * L:(n + 1) * L]


# ------------------------------ Wrapper --------------------------------------

@jax.jit
def resnet_1d_edit_forward(x_ncl, w_slab, v_slab):
    """x_ncl: (N, C_in, L) -> (N, C_out, L).  Slabs from prepare_params()."""
    N, C_in, L = x_ncl.shape
    C_out = v_slab.shape[0] - V_FINAL_BIAS_ROW
    assert MARGIN >= 3, "zero margin must cover the largest conv padding"
    W = max(16, C_in)                                       # scratch lane width >= any Cin

    x_nlc = jnp.transpose(x_ncl, (0, 2, 1)).astype(jnp.float32)  # single layout op

    zero3 = lambda i: (0, 0, 0)
    zero2 = lambda i: (0, 0)

    # Advisory cost estimate so XLA's scheduler sees the real cost.
    flops = 2 * N * L * (7 * C_in) * 16                             # stem
    flops += 4 * (3 * (2 * N * L * 48 * 16) + 2 * N * L * 16 * 16)  # blocks
    flops += 2 * N * L * 16 * C_out                                 # final conv
    bytes_accessed = 4 * (N * L * C_in + int(w_slab.size) + int(v_slab.size)
                          + N * C_out * L)
    cost = pl.CostEstimate(flops=int(flops), transcendentals=13 * 16,
                           bytes_accessed=int(bytes_accessed))

    return pl.pallas_call(
        _fused_resnet_kernel,
        out_shape=jax.ShapeDtypeStruct((N, C_out, L), jnp.float32),
        grid=(1,),
        in_specs=[pl.BlockSpec((N, L, C_in), zero3),
                  pl.BlockSpec(tuple(w_slab.shape), zero2),
                  pl.BlockSpec(tuple(v_slab.shape), zero2)],
        out_specs=pl.BlockSpec((N, C_out, L), zero3),
        scratch_shapes=[pltpu.VMEM((N, L + 2 * MARGIN, W), jnp.float32)],
        compiler_params=pltpu.CompilerParams(dimension_semantics=("arbitrary",)),
        cost_estimate=cost,
    )(x_nlc, w_slab, v_slab)


# ------------------------------ Parameters ------------------------------------

def _kaiming_conv(key, c_out, c_in, k):
    std = math.sqrt(2.0 / (c_in * k))              # kaiming_normal_, fan_in, gain sqrt(2)
    return jax.random.normal(key, (c_out, c_in, k), jnp.float32) * std


def init_params(key, input_channel=1, output_channel=1):
    keys = iter(jax.random.split(key, 64))
    nk = lambda: next(keys)
    bias = lambda n: jax.random.normal(nk(), (n,), jnp.float32) * 0.05
    gamma = lambda: 1.0 + 0.1 * jax.random.normal(nk(), (16,), jnp.float32)
    p = {
        "conv1_w": _kaiming_conv(nk(), 16, input_channel, 7), "conv1_b": bias(16),
        "norm1_g": gamma(), "norm1_b": bias(16),
        "conv2_w": _kaiming_conv(nk(), output_channel, 16, 1),
        "conv2_b": bias(output_channel),
    }
    for i in range(1, 5):
        p[f"block{i}"] = {
            "conv4_w": _kaiming_conv(nk(), 16, 16, 3), "conv4_b": bias(16),
            "conv1_w": _kaiming_conv(nk(), 16, 16, 3), "conv1_b": bias(16),
            "conv2_w": _kaiming_conv(nk(), 16, 16, 3), "conv2_b": bias(16),
            "conv3_w": _kaiming_conv(nk(), 16, 16, 1), "conv3_b": bias(16),
            "norm1_g": gamma(), "norm1_b": bias(16),
            "norm2_g": gamma(), "norm2_b": bias(16),
            "norm3_g": gamma(), "norm3_b": bias(16),
        }
    return p


def prepare_params(p):
    """Pack all parameters into two flat f32 slabs (done once, outside the jit).

    w_slab: (_pad8(7*C_in) + 4*160 + _pad8(C_out), 16)
        stem im2col weight | per block: conv4,conv1,conv2,conv3 | final (C_out,16)
    v_slab: (43 + C_out, 16)
        stem bias,g,b | per block: 4 conv biases + 3x(g,b) | final bias in col 0
    """
    c_in = p["conv1_w"].shape[1]
    c_out = p["conv2_w"].shape[0]

    def im2col_w(w):                       # (Cout, Cin, K) -> (K*Cin, Cout)
        co, ci, k = w.shape
        return jnp.transpose(w, (2, 1, 0)).reshape(k * ci, co).astype(jnp.float32)

    def pad_rows(a, rows):
        return jnp.pad(a, ((0, rows - a.shape[0]), (0, 0)))

    w_parts = [pad_rows(im2col_w(p["conv1_w"]), _pad8(7 * c_in))]
    for i in range(1, 5):
        bp = p[f"block{i}"]
        for name in ("conv4", "conv1", "conv2", "conv3"):
            w_parts.append(im2col_w(bp[f"{name}_w"]))
    wf = p["conv2_w"][:, :, 0].astype(jnp.float32)            # (C_out, 16)
    w_parts.append(pad_rows(wf, _pad8(c_out)))
    w_slab = jnp.concatenate(w_parts, axis=0)

    def row16(v):
        v = v.astype(jnp.float32).reshape(1, -1)
        return jnp.pad(v, ((0, 0), (0, 16 - v.shape[1])))

    v_parts = [row16(p["conv1_b"]), row16(p["norm1_g"]), row16(p["norm1_b"])]
    for i in range(1, 5):
        bp = p[f"block{i}"]
        for name in ("conv4_b", "conv1_b", "conv2_b", "conv3_b",
                     "norm1_g", "norm1_b", "norm2_g", "norm2_b",
                     "norm3_g", "norm3_b"):
            v_parts.append(row16(bp[name]))
    bf = p["conv2_b"].astype(jnp.float32).reshape(c_out, 1)   # bias as a column
    v_parts.append(jnp.pad(bf, ((0, 0), (0, 15))))
    v_slab = jnp.concatenate(v_parts, axis=0)
    return w_slab, v_slab


# --------------------------- Pure-JAX reference --------------------------------

def _conv1d_ref(x, w, b, pad):
    y = jax.lax.conv_general_dilated(
        x, w, window_strides=(1,), padding=[(pad, pad)],
        dimension_numbers=("NCH", "OIH", "NCH"),
        precision=jax.lax.Precision.HIGHEST)
    return y + b[None, :, None]


def _bn_ref(x, g, b):
    mean = jnp.mean(x, axis=(0, 2), keepdims=True)
    var = jnp.mean(jnp.square(x - mean), axis=(0, 2), keepdims=True)
    return (x - mean) * jax.lax.rsqrt(var + EPS) * g[None, :, None] + b[None, :, None]


def reference_forward(x, p):
    f = jnp.maximum(_bn_ref(_conv1d_ref(x, p["conv1_w"], p["conv1_b"], 3),
                            p["norm1_g"], p["norm1_b"]), 0.0)
    for i in range(1, 5):
        bp = p[f"block{i}"]
        c4 = _conv1d_ref(f, bp["conv4_w"], bp["conv4_b"], 1)
        c1 = _conv1d_ref(c4, bp["conv1_w"], bp["conv1_b"], 1)
        r1 = jnp.maximum(_bn_ref(c1, bp["norm1_g"], bp["norm1_b"]), 0.0)
        c2 = _conv1d_ref(r1, bp["conv2_w"], bp["conv2_b"], 1)
        c3 = _conv1d_ref(c4, bp["conv3_w"], bp["conv3_b"], 0)
        f = jnp.maximum(_bn_ref(c3, bp["norm3_g"], bp["norm3_b"]) +
                        _bn_ref(c2, bp["norm2_g"], bp["norm2_b"]), 0.0)
    return _conv1d_ref(f, p["conv2_w"], p["conv2_b"], 0)


# --------------------------------- Main ----------------------------------------

if __name__ == "__main__":
    key = jax.random.PRNGKey(0)
    k_x, k_p = jax.random.split(key)

    N, C_IN, L = 2, 1, 32                       # small shapes consistent with the module
    x = jax.random.normal(k_x, (N, C_IN, L), jnp.float32)
    params = init_params(k_p, input_channel=C_IN, output_channel=1)
    w_slab, v_slab = prepare_params(params)

    out = resnet_1d_edit_forward(x, w_slab, v_slab)
    out = jax.block_until_ready(out)
    assert out.shape == (N, 1, L), out.shape
    assert bool(jnp.all(jnp.isfinite(out)))

    ref = reference_forward(x, params)
    max_err = float(jnp.max(jnp.abs(out - ref)))
    assert bool(jnp.allclose(out, ref, rtol=2e-3, atol=2e-3)), max_err

    print("KERNEL_OK")
</pallas_src>

<mosaic_0001>
module attributes {stable_mosaic.version = 11 : i64} {
  func.func @_fused_resnet_kernel(%arg0: i32, %arg1: memref<2x32x1xf32, #tpu.memory_space<vmem>>, %arg2: memref<656x16xf32, #tpu.memory_space<vmem>>, %arg3: memref<44x16xf32, #tpu.memory_space<vmem>>, %arg4: memref<2x1x32xf32, #tpu.memory_space<vmem>>, %arg5: memref<2x48x16xf32, #tpu.memory_space<vmem>>) attributes {dimension_semantics = [#tpu.dimension_semantics<arbitrary>], iteration_bounds = array<i64: 1>, scalar_prefetch = 0 : i64, scratch_operands = 1 : i64, tpu.core_type = #tpu.core_type<tc>, window_params = [{pipeline_mode = #tpu.pipeline_mode<synchronous>, transform_indices = @transform_0, window_bounds = array<i64: 2, 32, 1>}, {pipeline_mode = #tpu.pipeline_mode<synchronous>, transform_indices = @transform_1, window_bounds = array<i64: 656, 16>}, {pipeline_mode = #tpu.pipeline_mode<synchronous>, transform_indices = @transform_2, window_bounds = array<i64: 44, 16>}, {pipeline_mode = #tpu.pipeline_mode<synchronous>, transform_indices = @transform_3, window_bounds = array<i64: 2, 1, 32>}]} {
    %cst = arith.constant 0.000000e+00 : f32
    %0 = vector.broadcast %cst : f32 to vector<2x48x16xf32>
    %c0 = arith.constant 0 : index
    %c0_0 = arith.constant 0 : index
    %c0_1 = arith.constant 0 : index
    %1 = vector.load %arg5[%c0, %c0_0, %c0_1] : memref<2x48x16xf32, #tpu.memory_space<vmem>>, vector<2x48x16xf32>
    tpu.vector_store %arg5[%c0, %c0_0, %c0_1], %0 {strides = array<i32>} : memref<2x48x16xf32, #tpu.memory_space<vmem>>, vector<2x48x16xf32>,
    %c0_2 = arith.constant 0 : index
    %c0_3 = arith.constant 0 : index
    %c0_4 = arith.constant 0 : index
    %2 = vector.load %arg1[%c0_2, %c0_3, %c0_4] : memref<2x32x1xf32, #tpu.memory_space<vmem>>, vector<1x32x1xf32>
    %3 = vector.shape_cast %2 : vector<1x32x1xf32> to vector<32x1xf32>
    %c1 = arith.constant 1 : index
    %c0_5 = arith.constant 0 : index
    %c0_6 = arith.constant 0 : index
    %4 = vector.load %arg1[%c1, %c0_5, %c0_6] : memref<2x32x1xf32, #tpu.memory_space<vmem>>, vector<1x32x1xf32>
    %5 = vector.shape_cast %4 : vector<1x32x1xf32> to vector<32x1xf32>
    %6 = tpu.concatenate %3, %5 in 0 : vector<32x1xf32>, vector<32x1xf32> -> vector<64x1xf32>
    %c0_7 = arith.constant 0 : index
    %c0_8 = arith.constant 0 : index
    %7 = vector.load %arg2[%c0_7, %c0_8] : memref<656x16xf32, #tpu.memory_space<vmem>>, vector<7x16xf32>
    %c0_9 = arith.constant 0 : index
    %c0_10 = arith.constant 0 : index
    %8 = vector.load %arg3[%c0_9, %c0_10] : memref<44x16xf32, #tpu.memory_space<vmem>>, vector<1x16xf32>
    %9 = vector.extract_strided_slice %6 {offsets = [0, 0], sizes = [32, 1], strides = [1, 1]} : vector<64x1xf32> to vector<32x1xf32>
    %c0_11 = arith.constant 0 : index
    %c8 = arith.constant 8 : index
    %c0_12 = arith.constant 0 : index
    %10 = vector.load %arg5[%c0_11, %c8, %c0_12] : memref<2x48x16xf32, #tpu.memory_space<vmem>>, vector<1x32x1xf32>
    %11 = vector.shape_cast %10 : vector<1x32x1xf32> to vector<32x1xf32>
    %12 = vector.shape_cast %9 : vector<32x1xf32> to vector<1x32x1xf32>
    tpu.vector_store %arg5[%c0_11, %c8, %c0_12], %12 {strides = array<i32>} : memref<2x48x16xf32, #tpu.memory_space<vmem>>, vector<1x32x1xf32>,
    %13 = vector.extract_strided_slice %6 {offsets = [32, 0], sizes = [32, 1], strides = [1, 1]} : vector<64x1xf32> to vector<32x1xf32>
    %c1_13 = arith.constant 1 : index
    %c8_14 = arith.constant 8 : index
    %c0_15 = arith.constant 0 : index
    %14 = vector.load %arg5[%c1_13, %c8_14, %c0_15] : memref<2x48x16xf32, #tpu.memory_space<vmem>>, vector<1x32x1xf32>
    %15 = vector.shape_cast %14 : vector<1x32x1xf32> to vector<32x1xf32>
    %16 = vector.shape_cast %13 : vector<32x1xf32> to vector<1x32x1xf32>
    tpu.vector_store %arg5[%c1_13, %c8_14, %c0_15], %16 {strides = array<i32>} : memref<2x48x16xf32, #tpu.memory_space<vmem>>, vector<1x32x1xf32>,
    %c0_16 = arith.constant 0 : index
    %c5 = arith.constant 5 : index
    %c0_17 = arith.constant 0 : index
    %17 = vector.load %arg5[%c0_16, %c5, %c0_17] : memref<2x48x16xf32, #tpu.memory_space<vmem>>, vector<1x32x1xf32>
    %18 = vector.shape_cast %17 : vector<1x32x1xf32> to vector<32x1xf32>
    %c0_18 = arith.constant 0 : index
    %c6 = arith.constant 6 : index
    %c0_19 = arith.constant 0 : index
    %19 = vector.load %arg5[%c0_18, %c6, %c0_19] : memref<2x48x16xf32, #tpu.memory_space<vmem>>, vector<1x32x1xf32>
    %20 = vector.shape_cast %19 : vector<1x32x1xf32> to vector<32x1xf32>
    %c0_20 = arith.constant 0 : index
    %c7 = arith.constant 7 : index
    %c0_21 = arith.constant 0 : index
    %21 = vector.load %arg5[%c0_20, %c7, %c0_21] : memref<2x48x16xf32, #tpu.memory_space<vmem>>, vector<1x32x1xf32>
    %22 = vector.shape_cast %21 : vector<1x32x1xf32> to vector<32x1xf32>
    %c0_22 = arith.constant 0 : index
    %c8_23 = arith.constant 8 : index
    %c0_24 = arith.constant 0 : index
    %23 = vector.load %arg5[%c0_22, %c8_23, %c0_24] : memref<2x48x16xf32, #tpu.memory_space<vmem>>, vector<1x32x1xf32>
    %24 = vector.shape_cast %23 : vector<1x32x1xf32> to vector<32x1xf32>
    %c0_25 = arith.constant 0 : index
    %c9 = arith.constant 9 : index
    %c0_26 = arith.constant 0 : index
    %25 = vector.load %arg5[%c0_25, %c9, %c0_26] : memref<2x48x16xf32, #tpu.memory_space<vmem>>, vector<1x32x1xf32>
    %26 = vector.shape_cast %25 : vector<1x32x1xf32> to vector<32x1xf32>
    %c0_27 = arith.constant 0 : index
    %c10 = arith.constant 10 : index
    %c0_28 = arith.constant 0 : index
    %27 = vector.load %arg5[%c0_27, %c10, %c0_28] : memref<2x48x16xf32, #tpu.memory_space<vmem>>, vector<1x32x1xf32>
    %28 = vector.shape_cast %27 : vector<1x32x1xf32> to vector<32x1xf32>
    %c0_29 = arith.constant 0 : index
    %c11 = arith.constant 11 : index
    %c0_30 = arith.constant 0 : index
    %29 = vector.load %arg5[%c0_29, %c11, %c0_30] : memref<2x48x16xf32, #tpu.memory_space<vmem>>, vector<1x32x1xf32>
    %30 = vector.shape_cast %29 : vector<1x32x1xf32> to vector<32x1xf32>
    %31 = tpu.concatenate %18, %20, %22, %24, %26, %28, %30 in 1 : vector<32x1xf32>, vector<32x1xf32>, vector<32x1xf32>, vector<32x1xf32>, vector<32x1xf32>, vector<32x1xf32>, vector<32x1xf32> -> vector<32x7xf32>
    %c1_31 = arith.constant 1 : index
    %c5_32 = arith.constant 5 : index
    %c0_33 = arith.constant 0 : index
    %32 = vector.load %arg5[%c1_31, %c5_32, %c0_33] : memref<2x48x16xf32, #tpu.memory_space<vmem>>, vector<1x32x1xf32>
    %33 = vector.shape_cast %32 : vector<1x32x1xf32> to vector<32x1xf32>
    %c1_34 = arith.constant 1 : index
    %c6_35 = arith.constant 6 : index
    %c0_36 = arith.constant 0 : index
    %34 = vector.load %arg5[%c1_34, %c6_35, %c0_36] : memref<2x48x16xf32, #tpu.memory_space<vmem>>, vector<1x32x1xf32>
    %35 = vector.shape_cast %34 : vector<1x32x1xf32> to vector<32x1xf32>
    %c1_37 = arith.constant 1 : index
    %c7_38 = arith.constant 7 : index
    %c0_39 = arith.constant 0 : index
    %36 = vector.load %arg5[%c1_37, %c7_38, %c0_39] : memref<2x48x16xf32, #tpu.memory_space<vmem>>, vector<1x32x1xf32>
    %37 = vector.shape_cast %36 : vector<1x32x1xf32> to vector<32x1xf32>
    %c1_40 = arith.constant 1 : index
    %c8_41 = arith.constant 8 : index
    %c0_42 = arith.constant 0 : index
    %38 = vector.load %arg5[%c1_40, %c8_41, %c0_42] : memref<2x48x16xf32, #tpu.memory_space<vmem>>, vector<1x32x1xf32>
    %39 = vector.shape_cast %38 : vector<1x32x1xf32> to vector<32x1xf32>
    %c1_43 = arith.constant 1 : index
    %c9_44 = arith.constant 9 : index
    %c0_45 = arith.constant 0 : index
    %40 = vector.load %arg5[%c1_43, %c9_44, %c0_45] : memref<2x48x16xf32, #tpu.memory_space<vmem>>, vector<1x32x1xf32>
    %41 = vector.shape_cast %40 : vector<1x32x1xf32> to vector<32x1xf32>
    %c1_46 = arith.constant 1 : index
    %c10_47 = arith.constant 10 : index
    %c0_48 = arith.constant 0 : index
    %42 = vector.load %arg5[%c1_46, %c10_47, %c0_48] : memref<2x48x16xf32, #tpu.memory_space<vmem>>, vector<1x32x1xf32>
    %43 = vector.shape_cast %42 : vector<1x32x1xf32> to vector<32x1xf32>
    %c1_49 = arith.constant 1 : index
    %c11_50 = arith.constant 11 : index
    %c0_51 = arith.constant 0 : index
    %44 = vector.load %arg5[%c1_49, %c11_50, %c0_51] : memref<2x48x16xf32, #tpu.memory_space<vmem>>, vector<1x32x1xf32>
    %45 = vector.shape_cast %44 : vector<1x32x1xf32> to vector<32x1xf32>
    %46 = tpu.concatenate %33, %35, %37, %39, %41, %43, %45 in 1 : vector<32x1xf32>, vector<32x1xf32>, vector<32x1xf32>, vector<32x1xf32>, vector<32x1xf32>, vector<32x1xf32>, vector<32x1xf32> -> vector<32x7xf32>
    %47 = tpu.concatenate %31, %46 in 0 : vector<32x7xf32>, vector<32x7xf32> -> vector<64x7xf32>
    %cst_52 = arith.constant dense<0.000000e+00> : vector<64x16xf32>
    %48 = tpu.matmul %47, %7, %cst_52 {dimension_numbers = #tpu.dot_dimension_numbers<[1], [0], [0], [1], [0, 0, 1, 1], [], []>} : vector<64x7xf32>, vector<7x16xf32>, vector<64x16xf32> -> vector<64x16xf32>
    %49 = vector.broadcast %8 : vector<1x16xf32> to vector<64x16xf32>
    %50 = arith.addf %48, %49 : vector<64x16xf32>
    %c1_53 = arith.constant 1 : index
    %c0_54 = arith.constant 0 : index
    %51 = vector.load %arg3[%c1_53, %c0_54] : memref<44x16xf32, #tpu.memory_space<vmem>>, vector<1x16xf32>
    %c2 = arith.constant 2 : index
    %c0_55 = arith.constant 0 : index
    %52 = vector.load %arg3[%c2, %c0_55] : memref<44x16xf32, #tpu.memory_space<vmem>>, vector<1x16xf32>
    %cst_56 = arith.constant dense<0.000000e+00> : vector<16xf32>
    %53 = vector.multi_reduction <add>, %50, %cst_56 [0] : vector<64x16xf32> to vector<16xf32>
    %54 = vector.shape_cast %53 : vector<16xf32> to vector<1x16xf32>
    %cst_57 = arith.constant 6.400000e+01 : f32
    %55 = vector.broadcast %cst_57 : f32 to vector<1x16xf32>
    %56 = arith.divf %54, %55 : vector<1x16xf32>
    %57 = arith.mulf %50, %50 : vector<64x16xf32>
    %cst_58 = arith.constant dense<0.000000e+00> : vector<16xf32>
    %58 = vector.multi_reduction <add>, %57, %cst_58 [0] : vector<64x16xf32> to vector<16xf32>
    %59 = vector.shape_cast %58 : vector<16xf32> to vector<1x16xf32>
    %cst_59 = arith.constant 6.400000e+01 : f32
    %60 = vector.broadcast %cst_59 : f32 to vector<1x16xf32>
    %61 = arith.divf %59, %60 : vector<1x16xf32>
    %62 = arith.mulf %56, %56 : vector<1x16xf32>
    %63 = arith.subf %61, %62 : vector<1x16xf32>
    %cst_60 = arith.constant 9.99999974E-6 : f32
    %64 = vector.broadcast %cst_60 : f32 to vector<1x16xf32>
    %65 = arith.addf %63, %64 : vector<1x16xf32>
    %66 = math.rsqrt %65 : vector<1x16xf32>
    %67 = arith.mulf %51, %66 : vector<1x16xf32>
    %68 = arith.mulf %56, %67 : vector<1x16xf32>
    %69 = arith.subf %52, %68 : vector<1x16xf32>
    %70 = vector.broadcast %67 : vector<1x16xf32> to vector<64x16xf32>
    %71 = arith.mulf %50, %70 : vector<64x16xf32>
    %72 = vector.broadcast %69 : vector<1x16xf32> to vector<64x16xf32>
    %73 = arith.addf %71, %72 : vector<64x16xf32>
    %cst_61 = arith.constant 0.000000e+00 : f32
    %74 = vector.broadcast %cst_61 : f32 to vector<64x16xf32>
    %75 = arith.maximumf %73, %74 : vector<64x16xf32>
    %c8_62 = arith.constant 8 : index
    %c0_63 = arith.constant 0 : index
    %76 = vector.load %arg2[%c8_62, %c0_63] : memref<656x16xf32, #tpu.memory_space<vmem>>, vector<48x16xf32>
    %c3 = arith.constant 3 : index
    %c0_64 = arith.constant 0 : index
    %77 = vector.load %arg3[%c3, %c0_64] : memref<44x16xf32, #tpu.memory_space<vmem>>, vector<1x16xf32>
    %78 = vector.extract_strided_slice %75 {offsets = [0, 0], sizes = [32, 16], strides = [1, 1]} : vector<64x16xf32> to vector<32x16xf32>
    %c0_65 = arith.constant 0 : index
    %c8_66 = arith.constant 8 : index
    %c0_67 = arith.constant 0 : index
    %79 = vector.load %arg5[%c0_65, %c8_66, %c0_67] : memref<2x48x16xf32, #tpu.memory_space<vmem>>, vector<1x32x16xf32>
    %80 = vector.shape_cast %79 : vector<1x32x16xf32> to vector<32x16xf32>
    %81 = vector.shape_cast %78 : vector<32x16xf32> to vector<1x32x16xf32>
    tpu.vector_store %arg5[%c0_65, %c8_66, %c0_67], %81 {strides = array<i32>} : memref<2x48x16xf32, #tpu.memory_space<vmem>>, vector<1x32x16xf32>,
    %82 = vector.extract_strided_slice %75 {offsets = [32, 0], sizes = [32, 16], strides = [1, 1]} : vector<64x16xf32> to vector<32x16xf32>
    %c1_68 = arith.constant 1 : index
    %c8_69 = arith.constant 8 : index
    %c0_70 = arith.constant 0 : index
    %83 = vector.load %arg5[%c1_68, %c8_69, %c0_70] : memref<2x48x16xf32, #tpu.memory_space<vmem>>, vector<1x32x16xf32>
    %84 = vector.shape_cast %83 : vector<1x32x16xf32> to vector<32x16xf32>
    %85 = vector.shape_cast %82 : vector<32x16xf32> to vector<1x32x16xf32>
    tpu.vector_store %arg5[%c1_68, %c8_69, %c0_70], %85 {strides = array<i32>} : memref<2x48x16xf32, #tpu.memory_space<vmem>>, vector<1x32x16xf32>,
    %c0_71 = arith.constant 0 : index
    %c7_72 = arith.constant 7 : index
    %c0_73 = arith.constant 0 : index
    %86 = vector.load %arg5[%c0_71, %c7_72, %c0_73] : memref<2x48x16xf32, #tpu.memory_space<vmem>>, vector<1x32x16xf32>
    %87 = vector.shape_cast %86 : vector<1x32x16xf32> to vector<32x16xf32>
    %c0_74 = arith.constant 0 : index
    %c8_75 = arith.constant 8 : index
    %c0_76 = arith.constant 0 : index
    %88 = vector.load %arg5[%c0_74, %c8_75, %c0_76] : memref<2x48x16xf32, #tpu.memory_space<vmem>>, vector<1x32x16xf32>
    %89 = vector.shape_cast %88 : vector<1x32x16xf32> to vector<32x16xf32>
    %c0_77 = arith.constant 0 : index
    %c9_78 = arith.constant 9 : index
    %c0_79 = arith.constant 0 : index
    %90 = vector.load %arg5[%c0_77, %c9_78, %c0_79] : memref<2x48x16xf32, #tpu.memory_space<vmem>>, vector<1x32x16xf32>
    %91 = vector.shape_cast %90 : vector<1x32x16xf32> to vector<32x16xf32>
    %92 = tpu.concatenate %87, %89, %91 in 1 : vector<32x16xf32>, vector<32x16xf32>, vector<32x16xf32> -> vector<32x48xf32>
    %c1_80 = arith.constant 1 : index
    %c7_81 = arith.constant 7 : index
    %c0_82 = arith.constant 0 : index
    %93 = vector.load %arg5[%c1_80, %c7_81, %c0_82] : memref<2x48x16xf32, #tpu.memory_space<vmem>>, vector<1x32x16xf32>
    %94 = vector.shape_cast %93 : vector<1x32x16xf32> to vector<32x16xf32>
    %c1_83 = arith.constant 1 : index
    %c8_84 = arith.constant 8 : index
    %c0_85 = arith.constant 0 : index
    %95 = vector.load %arg5[%c1_83, %c8_84, %c0_85] : memref<2x48x16xf32, #tpu.memory_space<vmem>>, vector<1x32x16xf32>
    %96 = vector.shape_cast %95 : vector<1x32x16xf32> to vector<32x16xf32>
    %c1_86 = arith.constant 1 : index
    %c9_87 = arith.constant 9 : index
    %c0_88 = arith.constant 0 : index
    %97 = vector.load %arg5[%c1_86, %c9_87, %c0_88] : memref<2x48x16xf32, #tpu.memory_space<vmem>>, vector<1x32x16xf32>
    %98 = vector.shape_cast %97 : vector<1x32x16xf32> to vector<32x16xf32>
    %99 = tpu.concatenate %94, %96, %98 in 1 : vector<32x16xf32>, vector<32x16xf32>, vector<32x16xf32> -> vector<32x48xf32>
    %100 = tpu.concatenate %92, %99 in 0 : vector<32x48xf32>, vector<32x48xf32> -> vector<64x48xf32>
    %cst_89 = arith.constant dense<0.000000e+00> : vector<64x16xf32>
    %101 = tpu.matmul %100, %76, %cst_89 {dimension_numbers = #tpu.dot_dimension_numbers<[1], [0], [0], [1], [0, 0, 1, 1], [], []>} : vector<64x48xf32>, vector<48x16xf32>, vector<64x16xf32> -> vector<64x16xf32>
    %102 = vector.broadcast %77 : vector<1x16xf32> to vector<64x16xf32>
    %103 = arith.addf %101, %102 : vector<64x16xf32>
    %c56 = arith.constant 56 : index
    %c0_90 = arith.constant 0 : index
    %104 = vector.load %arg2[%c56, %c0_90] : memref<656x16xf32, #tpu.memory_space<vmem>>, vector<48x16xf32>
    %c4 = arith.constant 4 : index
    %c0_91 = arith.constant 0 : index
    %105 = vector.load %arg3[%c4, %c0_91] : memref<44x16xf32, #tpu.memory_space<vmem>>, vector<1x16xf32>
    %106 = vector.extract_strided_slice %103 {offsets = [0, 0], sizes = [32, 16], strides = [1, 1]} : vector<64x16xf32> to vector<32x16xf32>
    %c0_92 = arith.constant 0 : index
    %c8_93 = arith.constant 8 : index
    %c0_94 = arith.constant 0 : index
    %107 = vector.load %arg5[%c0_92, %c8_93, %c0_94] : memref<2x48x16xf32, #tpu.memory_space<vmem>>, vector<1x32x16xf32>
    %108 = vector.shape_cast %107 : vector<1x32x16xf32> to vector<32x16xf32>
    %109 = vector.shape_cast %106 : vector<32x16xf32> to vector<1x32x16xf32>
    tpu.vector_store %arg5[%c0_92, %c8_93, %c0_94], %109 {strides = array<i32>} : memref<2x48x16xf32, #tpu.memory_space<vmem>>, vector<1x32x16xf32>,
    %110 = vector.extract_strided_slice %103 {offsets = [32, 0], sizes = [32, 16], strides = [1, 1]} : vector<64x16xf32> to vector<32x16xf32>
    %c1_95 = arith.constant 1 : index
    %c8_96 = arith.constant 8 : index
    %c0_97 = arith.constant 0 : index
    %111 = vector.load %arg5[%c1_95, %c8_96, %c0_97] : memref<2x48x16xf32, #tpu.memory_space<vmem>>, vector<1x32x16xf32>
    %112 = vector.shape_cast %111 : vector<1x32x16xf32> to vector<32x16xf32>
    %113 = vector.shape_cast %110 : vector<32x16xf32> to vector<1x32x16xf32>
    tpu.vector_store %arg5[%c1_95, %c8_96, %c0_97], %113 {strides = array<i32>} : memref<2x48x16xf32, #tpu.memory_space<vmem>>, vector<1x32x16xf32>,
    %c0_98 = arith.constant 0 : index
    %c7_99 = arith.constant 7 : index
    %c0_100 = arith.constant 0 : index
    %114 = vector.load %arg5[%c0_98, %c7_99, %c0_100] : memref<2x48x16xf32, #tpu.memory_space<vmem>>, vector<1x32x16xf32>
    %115 = vector.shape_cast %114 : vector<1x32x16xf32> to vector<32x16xf32>
    %c0_101 = arith.constant 0 : index
    %c8_102 = arith.constant 8 : index
    %c0_103 = arith.constant 0 : index
    %116 = vector.load %arg5[%c0_101, %c8_102, %c0_103] : memref<2x48x16xf32, #tpu.memory_space<vmem>>, vector<1x32x16xf32>
    %117 = vector.shape_cast %116 : vector<1x32x16xf32> to vector<32x16xf32>
    %c0_104 = arith.constant 0 : index
    %c9_105 = arith.constant 9 : index
    %c0_106 = arith.constant 0 : index
    %118 = vector.load %arg5[%c0_104, %c9_105, %c0_106] : memref<2x48x16xf32, #tpu.memory_space<vmem>>, vector<1x32x16xf32>
    %119 = vector.shape_cast %118 : vector<1x32x16xf32> to vector<32x16xf32>
    %120 = tpu.concatenate %115, %117, %119 in 1 : vector<32x16xf32>, vector<32x16xf32>, vector<32x16xf32> -> vector<32x48xf32>
    %c1_107 = arith.constant 1 : index
    %c7_108 = arith.constant 7 : index
    %c0_109 = arith.constant 0 : index
    %121 = vector.load %arg5[%c1_107, %c7_108, %c0_109] : memref<2x48x16xf32, #tpu.memory_space<vmem>>, vector<1x32x16xf32>
    %122 = vector.shape_cast %121 : vector<1x32x16xf32> to vector<32x16xf32>
    %c1_110 = arith.constant 1 : index
    %c8_111 = arith.constant 8 : index
    %c0_112 = arith.constant 0 : index
    %123 = vector.load %arg5[%c1_110, %c8_111, %c0_112] : memref<2x48x16xf32, #tpu.memory_space<vmem>>, vector<1x32x16xf32>
    %124 = vector.shape_cast %123 : vector<1x32x16xf32> to vector<32x16xf32>
    %c1_113 = arith.constant 1 : index
    %c9_114 = arith.constant 9 : index
    %c0_115 = arith.constant 0 : index
    %125 = vector.load %arg5[%c1_113, %c9_114, %c0_115] : memref<2x48x16xf32, #tpu.memory_space<vmem>>, vector<1x32x16xf32>
    %126 = vector.shape_cast %125 : vector<1x32x16xf32> to vector<32x16xf32>
    %127 = tpu.concatenate %122, %124, %126 in 1 : vector<32x16xf32>, vector<32x16xf32>, vector<32x16xf32> -> vector<32x48xf32>
    %128 = tpu.concatenate %120, %127 in 0 : vector<32x48xf32>, vector<32x48xf32> -> vector<64x48xf32>
    %cst_116 = arith.constant dense<0.000000e+00> : vector<64x16xf32>
    %129 = tpu.matmul %128, %104, %cst_116 {dimension_numbers = #tpu.dot_dimension_numbers<[1], [0], [0], [1], [0, 0, 1, 1], [], []>} : vector<64x48xf32>, vector<48x16xf32>, vector<64x16xf32> -> vector<64x16xf32>
    %130 = vector.broadcast %105 : vector<1x16xf32> to vector<64x16xf32>
    %131 = arith.addf %129, %130 : vector<64x16xf32>
    %c7_117 = arith.constant 7 : index
    %c0_118 = arith.constant 0 : index
    %132 = vector.load %arg3[%c7_117, %c0_118] : memref<44x16xf32, #tpu.memory_space<vmem>>, vector<1x16xf32>
    %c8_119 = arith.constant 8 : index
    %c0_120 = arith.constant 0 : index
    %133 = vector.load %arg3[%c8_119, %c0_120] : memref<44x16xf32, #tpu.memory_space<vmem>>, vector<1x16xf32>
    %cst_121 = arith.constant dense<0.000000e+00> : vector<16xf32>
    %134 = vector.multi_reduction <add>, %131, %cst_121 [0] : vector<64x16xf32> to vector<16xf32>
    %135 = vector.shape_cast %134 : vector<16xf32> to vector<1x16xf32>
    %cst_122 = arith.constant 6.400000e+01 : f32
    %136 = vector.broadcast %cst_122 : f32 to vector<1x16xf32>
    %137 = arith.divf %135, %136 : vector<1x16xf32>
    %138 = arith.mulf %131, %131 : vector<64x16xf32>
    %cst_123 = arith.constant dense<0.000000e+00> : vector<16xf32>
    %139 = vector.multi_reduction <add>, %138, %cst_123 [0] : vector<64x16xf32> to vector<16xf32>
    %140 = vector.shape_cast %139 : vector<16xf32> to vector<1x16xf32>
    %cst_124 = arith.constant 6.400000e+01 : f32
    %141 = vector.broadcast %cst_124 : f32 to vector<1x16xf32>
    %142 = arith.divf %140, %141 : vector<1x16xf32>
    %143 = arith.mulf %137, %137 : vector<1x16xf32>
    %144 = arith.subf %142, %143 : vector<1x16xf32>
    %cst_125 = arith.constant 9.99999974E-6 : f32
    %145 = vector.broadcast %cst_125 : f32 to vector<1x16xf32>
    %146 = arith.addf %144, %145 : vector<1x16xf32>
    %147 = math.rsqrt %146 : vector<1x16xf32>
    %148 = arith.mulf %132, %147 : vector<1x16xf32>
    %149 = arith.mulf %137, %148 : vector<1x16xf32>
    %150 = arith.subf %133, %149 : vector<1x16xf32>
    %151 = vector.broadcast %148 : vector<1x16xf32> to vector<64x16xf32>
    %152 = arith.mulf %131, %151 : vector<64x16xf32>
    %153 = vector.broadcast %150 : vector<1x16xf32> to vector<64x16xf32>
    %154 = arith.addf %152, %153 : vector<64x16xf32>
    %cst_126 = arith.constant 0.000000e+00 : f32
    %155 = vector.broadcast %cst_126 : f32 to vector<64x16xf32>
    %156 = arith.maximumf %154, %155 : vector<64x16xf32>
    %c104 = arith.constant 104 : index
    %c0_127 = arith.constant 0 : index
    %157 = vector.load %arg2[%c104, %c0_127] : memref<656x16xf32, #tpu.memory_space<vmem>>, vector<48x16xf32>
    %c5_128 = arith.constant 5 : index
    %c0_129 = arith.constant 0 : index
    %158 = vector.load %arg3[%c5_128, %c0_129] : memref<44x16xf32, #tpu.memory_space<vmem>>, vector<1x16xf32>
    %159 = vector.extract_strided_slice %156 {offsets = [0, 0], sizes = [32, 16], strides = [1, 1]} : vector<64x16xf32> to vector<32x16xf32>
    %c0_130 = arith.constant 0 : index
    %c8_131 = arith.constant 8 : index
    %c0_132 = arith.constant 0 : index
    %160 = vector.load %arg5[%c0_130, %c8_131, %c0_132] : memref<2x48x16xf32, #tpu.memory_space<vmem>>, vector<1x32x16xf32>
    %161 = vector.shape_cast %160 : vector<1x32x16xf32> to vector<32x16xf32>
    %162 = vector.shape_cast %159 : vector<32x16xf32> to vector<1x32x16xf32>
    tpu.vector_store %arg5[%c0_130, %c8_131, %c0_132], %162 {strides = array<i32>} : memref<2x48x16xf32, #tpu.memory_space<vmem>>, vector<1x32x16xf32>,
    %163 = vector.extract_strided_slice %156 {offsets = [32, 0], sizes = [32, 16], strides = [1, 1]} : vector<64x16xf32> to vector<32x16xf32>
    %c1_133 = arith.constant 1 : index
    %c8_134 = arith.constant 8 : index
    %c0_135 = arith.constant 0 : index
    %164 = vector.load %arg5[%c1_133, %c8_134, %c0_135] : memref<2x48x16xf32, #tpu.memory_space<vmem>>, vector<1x32x16xf32>
    %165 = vector.shape_cast %164 : vector<1x32x16xf32> to vector<32x16xf32>
    %166 = vector.shape_cast %163 : vector<32x16xf32> to vector<1x32x16xf32>
    tpu.vector_store %arg5[%c1_133, %c8_134, %c0_135], %166 {strides = array<i32>} : memref<2x48x16xf32, #tpu.memory_space<vmem>>, vector<1x32x16xf32>,
    %c0_136 = arith.constant 0 : index
    %c7_137 = arith.constant 7 : index
    %c0_138 = arith.constant 0 : index
    %167 = vector.load %arg5[%c0_136, %c7_137, %c0_138] : memref<2x48x16xf32, #tpu.memory_space<vmem>>, vector<1x32x16xf32>
    %168 = vector.shape_cast %167 : vector<1x32x16xf32> to vector<32x16xf32>
    %c0_139 = arith.constant 0 : index
    %c8_140 = arith.constant 8 : index
    %c0_141 = arith.constant 0 : index
    %169 = vector.load %arg5[%c0_139, %c8_140, %c0_141] : memref<2x48x16xf32, #tpu.memory_space<vmem>>, vector<1x32x16xf32>
    %170 = vector.shape_cast %169 : vector<1x32x16xf32> to vector<32x16xf32>
    %c0_142 = arith.constant 0 : index
    %c9_143 = arith.constant 9 : index
    %c0_144 = arith.constant 0 : index
    %171 = vector.load %arg5[%c0_142, %c9_143, %c0_144] : memref<2x48x16xf32, #tpu.memory_space<vmem>>, vector<1x32x16xf32>
    %172 = vector.shape_cast %171 : vector<1x32x16xf32> to vector<32x16xf32>
    %173 = tpu.concatenate %168, %170, %172 in 1 : vector<32x16xf32>, vector<32x16xf32>, vector<32x16xf32> -> vector<32x48xf32>
    %c1_145 = arith.constant 1 : index
    %c7_146 = arith.constant 7 : index
    %c0_147 = arith.constant 0 : index
    %174 = vector.load %arg5[%c1_145, %c7_146, %c0_147] : memref<2x48x16xf32, #tpu.memory_space<vmem>>, vector<1x32x16xf32>
    %175 = vector.shape_cast %174 : vector<1x32x16xf32> to vector<32x16xf32>
    %c1_148 = arith.constant 1 : index
    %c8_149 = arith.constant 8 : index
    %c0_150 = arith.constant 0 : index
    %176 = vector.load %arg5[%c1_148, %c8_149, %c0_150] : memref<2x48x16xf32, #tpu.memory_space<vmem>>, vector<1x32x16xf32>
    %177 = vector.shape_cast %176 : vector<1x32x16xf32> to vector<32x16xf32>
    %c1_151 = arith.constant 1 : index
    %c9_152 = arith.constant 9 : index
    %c0_153 = arith.constant 0 : index
    %178 = vector.load %arg5[%c1_151, %c9_152, %c0_153] : memref<2x48x16xf32, #tpu.memory_space<vmem>>, vector<1x32x16xf32>
    %179 = vector.shape_cast %178 : vector<1x32x16xf32> to vector<32x16xf32>
    %180 = tpu.concatenate %175, %177, %179 in 1 : vector<32x16xf32>, vector<32x16xf32>, vector<32x16xf32> -> vector<32x48xf32>
    %181 = tpu.concatenate %173, %180 in 0 : vector<32x48xf32>, vector<32x48xf32> -> vector<64x48xf32>
    %cst_154 = arith.constant dense<0.000000e+00> : vector<64x16xf32>
    %182 = tpu.matmul %181, %157, %cst_154 {dimension_numbers = #tpu.dot_dimension_numbers<[1], [0], [0], [1], [0, 0, 1, 1], [], []>} : vector<64x48xf32>, vector<48x16xf32>, vector<64x16xf32> -> vector<64x16xf32>
    %183 = vector.broadcast %158 : vector<1x16xf32> to vector<64x16xf32>
    %184 = arith.addf %182, %183 : vector<64x16xf32>
    %c152 = arith.constant 152 : index
    %c0_155 = arith.constant 0 : index
    %185 = vector.load %arg2[%c152, %c0_155] : memref<656x16xf32, #tpu.memory_space<vmem>>, vector<16x16xf32>
    %c6_156 = arith.constant 6 : index
    %c0_157 = arith.constant 0 : index
    %186 = vector.load %arg3[%c6_156, %c0_157] : memref<44x16xf32, #tpu.memory_space<vmem>>, vector<1x16xf32>
    %cst_158 = arith.constant dense<0.000000e+00> : vector<64x16xf32>
    %187 = tpu.matmul %103, %185, %cst_158 {dimension_numbers = #tpu.dot_dimension_numbers<[1], [0], [0], [1], [0, 0, 1, 1], [], []>} : vector<64x16xf32>, vector<16x16xf32>, vector<64x16xf32> -> vector<64x16xf32>
    %188 = vector.broadcast %186 : vector<1x16xf32> to vector<64x16xf32>
    %189 = arith.addf %187, %188 : vector<64x16xf32>
    %c11_159 = arith.constant 11 : index
    %c0_160 = arith.constant 0 : index
    %190 = vector.load %arg3[%c11_159, %c0_160] : memref<44x16xf32, #tpu.memory_space<vmem>>, vector<1x16xf32>
    %c12 = arith.constant 12 : index
    %c0_161 = arith.constant 0 : index
    %191 = vector.load %arg3[%c12, %c0_161] : memref<44x16xf32, #tpu.memory_space<vmem>>, vector<1x16xf32>
    %cst_162 = arith.constant dense<0.000000e+00> : vector<16xf32>
    %192 = vector.multi_reduction <add>, %189, %cst_162 [0] : vector<64x16xf32> to vector<16xf32>
    %193 = vector.shape_cast %192 : vector<16xf32> to vector<1x16xf32>
    %cst_163 = arith.constant 6.400000e+01 : f32
    %194 = vector.broadcast %cst_163 : f32 to vector<1x16xf32>
    %195 = arith.divf %193, %194 : vector<1x16xf32>
    %196 = arith.mulf %189, %189 : vector<64x16xf32>
    %cst_164 = arith.constant dense<0.000000e+00> : vector<16xf32>
    %197 = vector.multi_reduction <add>, %196, %cst_164 [0] : vector<64x16xf32> to vector<16xf32>
    %198 = vector.shape_cast %197 : vector<16xf32> to vector<1x16xf32>
    %cst_165 = arith.constant 6.400000e+01 : f32
    %199 = vector.broadcast %cst_165 : f32 to vector<1x16xf32>
    %200 = arith.divf %198, %199 : vector<1x16xf32>
    %201 = arith.mulf %195, %195 : vector<1x16xf32>
    %202 = arith.subf %200, %201 : vector<1x16xf32>
    %cst_166 = arith.constant 9.99999974E-6 : f32
    %203 = vector.broadcast %cst_166 : f32 to vector<1x16xf32>
    %204 = arith.addf %202, %203 : vector<1x16xf32>
    %205 = math.rsqrt %204 : vector<1x16xf32>
    %206 = arith.mulf %190, %205 : vector<1x16xf32>
    %207 = arith.mulf %195, %206 : vector<1x16xf32>
    %208 = arith.subf %191, %207 : vector<1x16xf32>
    %209 = vector.broadcast %206 : vector<1x16xf32> to vector<64x16xf32>
    %210 = arith.mulf %189, %209 : vector<64x16xf32>
    %211 = vector.broadcast %208 : vector<1x16xf32> to vector<64x16xf32>
    %212 = arith.addf %210, %211 : vector<64x16xf32>
    %c9_167 = arith.constant 9 : index
    %c0_168 = arith.constant 0 : index
    %213 = vector.load %arg3[%c9_167, %c0_168] : memref<44x16xf32, #tpu.memory_space<vmem>>, vector<1x16xf32>
    %c10_169 = arith.constant 10 : index
    %c0_170 = arith.constant 0 : index
    %214 = vector.load %arg3[%c10_169, %c0_170] : memref<44x16xf32, #tpu.memory_space<vmem>>, vector<1x16xf32>
    %cst_171 = arith.constant dense<0.000000e+00> : vector<16xf32>
    %215 = vector.multi_reduction <add>, %184, %cst_171 [0] : vector<64x16xf32> to vector<16xf32>
    %216 = vector.shape_cast %215 : vector<16xf32> to vector<1x16xf32>
    %cst_172 = arith.constant 6.400000e+01 : f32
    %217 = vector.broadcast %cst_172 : f32 to vector<1x16xf32>
    %218 = arith.divf %216, %217 : vector<1x16xf32>
    %219 = arith.mulf %184, %184 : vector<64x16xf32>
    %cst_173 = arith.constant dense<0.000000e+00> : vector<16xf32>
    %220 = vector.multi_reduction <add>, %219, %cst_173 [0] : vector<64x16xf32> to vector<16xf32>
    %221 = vector.shape_cast %220 : vector<16xf32> to vector<1x16xf32>
    %cst_174 = arith.constant 6.400000e+01 : f32
    %222 = vector.broadcast %cst_174 : f32 to vector<1x16xf32>
    %223 = arith.divf %221, %222 : vector<1x16xf32>
    %224 = arith.mulf %218, %218 : vector<1x16xf32>
    %225 = arith.subf %223, %224 : vector<1x16xf32>
    %cst_175 = arith.constant 9.99999974E-6 : f32
    %226 = vector.broadcast %cst_175 : f32 to vector<1x16xf32>
    %227 = arith.addf %225, %226 : vector<1x16xf32>
    %228 = math.rsqrt %227 : vector<1x16xf32>
    %229 = arith.mulf %213, %228 : vector<1x16xf32>
    %230 = arith.mulf %218, %229 : vector<1x16xf32>
    %231 = arith.subf %214, %230 : vector<1x16xf32>
    %232 = vector.broadcast %229 : vector<1x16xf32> to vector<64x16xf32>
    %233 = arith.mulf %184, %232 : vector<64x16xf32>
    %234 = vector.broadcast %231 : vector<1x16xf32> to vector<64x16xf32>
    %235 = arith.addf %233, %234 : vector<64x16xf32>
    %236 = arith.addf %212, %235 : vector<64x16xf32>
    %cst_176 = arith.constant 0.000000e+00 : f32
    %237 = vector.broadcast %cst_176 : f32 to vector<64x16xf32>
    %238 = arith.maximumf %236, %237 : vector<64x16xf32>
    %c168 = arith.constant 168 : index
    %c0_177 = arith.constant 0 : index
    %239 = vector.load %arg2[%c168, %c0_177] : memref<656x16xf32, #tpu.memory_space<vmem>>, vector<48x16xf32>
    %c13 = arith.constant 13 : index
    %c0_178 = arith.constant 0 : index
    %240 = vector.load %arg3[%c13, %c0_178] : memref<44x16xf32, #tpu.memory_space<vmem>>, vector<1x16xf32>
    %241 = vector.extract_strided_slice %238 {offsets = [0, 0], sizes = [32, 16], strides = [1, 1]} : vector<64x16xf32> to vector<32x16xf32>
    %c0_179 = arith.constant 0 : index
    %c8_180 = arith.constant 8 : index
    %c0_181 = arith.constant 0 : index
    %242 = vector.load %arg5[%c0_179, %c8_180, %c0_181] : memref<2x48x16xf32, #tpu.memory_space<vmem>>, vector<1x32x16xf32>
    %243 = vector.shape_cast %242 : vector<1x32x16xf32> to vector<32x16xf32>
    %244 = vector.shape_cast %241 : vector<32x16xf32> to vector<1x32x16xf32>
    tpu.vector_store %arg5[%c0_179, %c8_180, %c0_181], %244 {strides = array<i32>} : memref<2x48x16xf32, #tpu.memory_space<vmem>>, vector<1x32x16xf32>,
    %245 = vector.extract_strided_slice %238 {offsets = [32, 0], sizes = [32, 16], strides = [1, 1]} : vector<64x16xf32> to vector<32x16xf32>
    %c1_182 = arith.constant 1 : index
    %c8_183 = arith.constant 8 : index
    %c0_184 = arith.constant 0 : index
    %246 = vector.load %arg5[%c1_182, %c8_183, %c0_184] : memref<2x48x16xf32, #tpu.memory_space<vmem>>, vector<1x32x16xf32>
    %247 = vector.shape_cast %246 : vector<1x32x16xf32> to vector<32x16xf32>
    %248 = vector.shape_cast %245 : vector<32x16xf32> to vector<1x32x16xf32>
    tpu.vector_store %arg5[%c1_182, %c8_183, %c0_184], %248 {strides = array<i32>} : memref<2x48x16xf32, #tpu.memory_space<vmem>>, vector<1x32x16xf32>,
    %c0_185 = arith.constant 0 : index
    %c7_186 = arith.constant 7 : index
    %c0_187 = arith.constant 0 : index
    %249 = vector.load %arg5[%c0_185, %c7_186, %c0_187] : memref<2x48x16xf32, #tpu.memory_space<vmem>>, vector<1x32x16xf32>
    %250 = vector.shape_cast %249 : vector<1x32x16xf32> to vector<32x16xf32>
    %c0_188 = arith.constant 0 : index
    %c8_189 = arith.constant 8 : index
    %c0_190 = arith.constant 0 : index
    %251 = vector.load %arg5[%c0_188, %c8_189, %c0_190] : memref<2x48x16xf32, #tpu.memory_space<vmem>>, vector<1x32x16xf32>
    %252 = vector.shape_cast %251 : vector<1x32x16xf32> to vector<32x16xf32>
    %c0_191 = arith.constant 0 : index
    %c9_192 = arith.constant 9 : index
    %c0_193 = arith.constant 0 : index
    %253 = vector.load %arg5[%c0_191, %c9_192, %c0_193] : memref<2x48x16xf32, #tpu.memory_space<vmem>>, vector<1x32x16xf32>
    %254 = vector.shape_cast %253 : vector<1x32x16xf32> to vector<32x16xf32>
    %255 = tpu.concatenate %250, %252, %254 in 1 : vector<32x16xf32>, vector<32x16xf32>, vector<32x16xf32> -> vector<32x48xf32>
    %c1_194 = arith.constant 1 : index
    %c7_195 = arith.constant 7 : index
    %c0_196 = arith.constant 0 : index
    %256 = vector.load %arg5[%c1_194, %c7_195, %c0_196] : memref<2x48x16xf32, #tpu.memory_space<vmem>>, vector<1x32x16xf32>
    %257 = vector.shape_cast %256 : vector<1x32x16xf32> to vector<32x16xf32>
    %c1_197 = arith.constant 1 : index
    %c8_198 = arith.constant 8 : index
    %c0_199 = arith.constant 0 : index
    %258 = vector.load %arg5[%c1_197, %c8_198, %c0_199] : memref<2x48x16xf32, #tpu.memory_space<vmem>>, vector<1x32x16xf32>
    %259 = vector.shape_cast %258 : vector<1x32x16xf32> to vector<32x16xf32>
    %c1_200 = arith.constant 1 : index
    %c9_201 = arith.constant 9 : index
    %c0_202 = arith.constant 0 : index
    %260 = vector.load %arg5[%c1_200, %c9_201, %c0_202] : memref<2x48x16xf32, #tpu.memory_space<vmem>>, vector<1x32x16xf32>
    %261 = vector.shape_cast %260 : vector<1x32x16xf32> to vector<32x16xf32>
    %262 = tpu.concatenate %257, %259, %261 in 1 : vector<32x16xf32>, vector<32x16xf32>, vector<32x16xf32> -> vector<32x48xf32>
    %263 = tpu.concatenate %255, %262 in 0 : vector<32x48xf32>, vector<32x48xf32> -> vector<64x48xf32>
    %cst_203 = arith.constant dense<0.000000e+00> : vector<64x16xf32>
    %264 = tpu.matmul %263, %239, %cst_203 {dimension_numbers = #tpu.dot_dimension_numbers<[1], [0], [0], [1], [0, 0, 1, 1], [], []>} : vector<64x48xf32>, vector<48x16xf32>, vector<64x16xf32> -> vector<64x16xf32>
    %265 = vector.broadcast %240 : vector<1x16xf32> to vector<64x16xf32>
    %266 = arith.addf %264, %265 : vector<64x16xf32>
    %c216 = arith.constant 216 : index
    %c0_204 = arith.constant 0 : index
    %267 = vector.load %arg2[%c216, %c0_204] : memref<656x16xf32, #tpu.memory_space<vmem>>, vector<48x16xf32>
    %c14 = arith.constant 14 : index
    %c0_205 = arith.constant 0 : index
    %268 = vector.load %arg3[%c14, %c0_205] : memref<44x16xf32, #tpu.memory_space<vmem>>, vector<1x16xf32>
    %269 = vector.extract_strided_slice %266 {offsets = [0, 0], sizes = [32, 16], strides = [1, 1]} : vector<64x16xf32> to vector<32x16xf32>
    %c0_206 = arith.constant 0 : index
    %c8_207 = arith.constant 8 : index
    %c0_208 = arith.constant 0 : index
    %270 = vector.load %arg5[%c0_206, %c8_207, %c0_208] : memref<2x48x16xf32, #tpu.memory_space<vmem>>, vector<1x32x16xf32>
    %271 = vector.shape_cast %270 : vector<1x32x16xf32> to vector<32x16xf32>
    %272 = vector.shape_cast %269 : vector<32x16xf32> to vector<1x32x16xf32>
    tpu.vector_store %arg5[%c0_206, %c8_207, %c0_208], %272 {strides = array<i32>} : memref<2x48x16xf32, #tpu.memory_space<vmem>>, vector<1x32x16xf32>,
    %273 = vector.extract_strided_slice %266 {offsets = [32, 0], sizes = [32, 16], strides = [1, 1]} : vector<64x16xf32> to vector<32x16xf32>
    %c1_209 = arith.constant 1 : index
    %c8_210 = arith.constant 8 : index
    %c0_211 = arith.constant 0 : index
    %274 = vector.load %arg5[%c1_209, %c8_210, %c0_211] : memref<2x48x16xf32, #tpu.memory_space<vmem>>, vector<1x32x16xf32>
    %275 = vector.shape_cast %274 : vector<1x32x16xf32> to vector<32x16xf32>
    %276 = vector.shape_cast %273 : vector<32x16xf32> to vector<1x32x16xf32>
    tpu.vector_store %arg5[%c1_209, %c8_210, %c0_211], %276 {strides = array<i32>} : memref<2x48x16xf32, #tpu.memory_space<vmem>>, vector<1x32x16xf32>,
    %c0_212 = arith.constant 0 : index
    %c7_213 = arith.constant 7 : index
    %c0_214 = arith.constant 0 : index
    %277 = vector.load %arg5[%c0_212, %c7_213, %c0_214] : memref<2x48x16xf32, #tpu.memory_space<vmem>>, vector<1x32x16xf32>
    %278 = vector.shape_cast %277 : vector<1x32x16xf32> to vector<32x16xf32>
    %c0_215 = arith.constant 0 : index
    %c8_216 = arith.constant 8 : index
    %c0_217 = arith.constant 0 : index
    %279 = vector.load %arg5[%c0_215, %c8_216, %c0_217] : memref<2x48x16xf32, #tpu.memory_space<vmem>>, vector<1x32x16xf32>
    %280 = vector.shape_cast %279 : vector<1x32x16xf32> to vector<32x16xf32>
    %c0_218 = arith.constant 0 : index
    %c9_219 = arith.constant 9 : index
    %c0_220 = arith.constant 0 : index
    %281 = vector.load %arg5[%c0_218, %c9_219, %c0_220] : memref<2x48x16xf32, #tpu.memory_space<vmem>>, vector<1x32x16xf32>
    %282 = vector.shape_cast %281 : vector<1x32x16xf32> to vector<32x16xf32>
    %283 = tpu.concatenate %278, %280, %282 in 1 : vector<32x16xf32>, vector<32x16xf32>, vector<32x16xf32> -> vector<32x48xf32>
    %c1_221 = arith.constant 1 : index
    %c7_222 = arith.constant 7 : index
    %c0_223 = arith.constant 0 : index
    %284 = vector.load %arg5[%c1_221, %c7_222, %c0_223] : memref<2x48x16xf32, #tpu.memory_space<vmem>>, vector<1x32x16xf32>
    %285 = vector.shape_cast %284 : vector<1x32x16xf32> to vector<32x16xf32>
    %c1_224 = arith.constant 1 : index
    %c8_225 = arith.constant 8 : index
    %c0_226 = arith.constant 0 : index
    %286 = vector.load %arg5[%c1_224, %c8_225, %c0_226] : memref<2x48x16xf32, #tpu.memory_space<vmem>>, vector<1x32x16xf32>
    %287 = vector.shape_cast %286 : vector<1x32x16xf32> to vector<32x16xf32>
    %c1_227 = arith.constant 1 : index
    %c9_228 = arith.constant 9 : index
    %c0_229 = arith.constant 0 : index
    %288 = vector.load %arg5[%c1_227, %c9_228, %c0_229] : memref<2x48x16xf32, #tpu.memory_space<vmem>>, vector<1x32x16xf32>
    %289 = vector.shape_cast %288 : vector<1x32x16xf32> to vector<32x16xf32>
    %290 = tpu.concatenate %285, %287, %289 in 1 : vector<32x16xf32>, vector<32x16xf32>, vector<32x16xf32> -> vector<32x48xf32>
    %291 = tpu.concatenate %283, %290 in 0 : vector<32x48xf32>, vector<32x48xf32> -> vector<64x48xf32>
    %cst_230 = arith.constant dense<0.000000e+00> : vector<64x16xf32>
    %292 = tpu.matmul %291, %267, %cst_230 {dimension_numbers = #tpu.dot_dimension_numbers<[1], [0], [0], [1], [0, 0, 1, 1], [], []>} : vector<64x48xf32>, vector<48x16xf32>, vector<64x16xf32> -> vector<64x16xf32>
    %293 = vector.broadcast %268 : vector<1x16xf32> to vector<64x16xf32>
    %294 = arith.addf %292, %293 : vector<64x16xf32>
    %c17 = arith.constant 17 : index
    %c0_231 = arith.constant 0 : index
    %295 = vector.load %arg3[%c17, %c0_231] : memref<44x16xf32, #tpu.memory_space<vmem>>, vector<1x16xf32>
    %c18 = arith.constant 18 : index
    %c0_232 = arith.constant 0 : index
    %296 = vector.load %arg3[%c18, %c0_232] : memref<44x16xf32, #tpu.memory_space<vmem>>, vector<1x16xf32>
    %cst_233 = arith.constant dense<0.000000e+00> : vector<16xf32>
    %297 = vector.multi_reduction <add>, %294, %cst_233 [0] : vector<64x16xf32> to vector<16xf32>
    %298 = vector.shape_cast %297 : vector<16xf32> to vector<1x16xf32>
    %cst_234 = arith.constant 6.400000e+01 : f32
    %299 = vector.broadcast %cst_234 : f32 to vector<1x16xf32>
    %300 = arith.divf %298, %299 : vector<1x16xf32>
    %301 = arith.mulf %294, %294 : vector<64x16xf32>
    %cst_235 = arith.constant dense<0.000000e+00> : vector<16xf32>
    %302 = vector.multi_reduction <add>, %301, %cst_235 [0] : vector<64x16xf32> to vector<16xf32>
    %303 = vector.shape_cast %302 : vector<16xf32> to vector<1x16xf32>
    %cst_236 = arith.constant 6.400000e+01 : f32
    %304 = vector.broadcast %cst_236 : f32 to vector<1x16xf32>
    %305 = arith.divf %303, %304 : vector<1x16xf32>
    %306 = arith.mulf %300, %300 : vector<1x16xf32>
    %307 = arith.subf %305, %306 : vector<1x16xf32>
    %cst_237 = arith.constant 9.99999974E-6 : f32
    %308 = vector.broadcast %cst_237 : f32 to vector<1x16xf32>
    %309 = arith.addf %307, %308 : vector<1x16xf32>
    %310 = math.rsqrt %309 : vector<1x16xf32>
    %311 = arith.mulf %295, %310 : vector<1x16xf32>
    %312 = arith.mulf %300, %311 : vector<1x16xf32>
    %313 = arith.subf %296, %312 : vector<1x16xf32>
    %314 = vector.broadcast %311 : vector<1x16xf32> to vector<64x16xf32>
    %315 = arith.mulf %294, %314 : vector<64x16xf32>
    %316 = vector.broadcast %313 : vector<1x16xf32> to vector<64x16xf32>
    %317 = arith.addf %315, %316 : vector<64x16xf32>
    %cst_238 = arith.constant 0.000000e+00 : f32
    %318 = vector.broadcast %cst_238 : f32 to vector<64x16xf32>
    %319 = arith.maximumf %317, %318 : vector<64x16xf32>
    %c264 = arith.constant 264 : index
    %c0_239 = arith.constant 0 : index
    %320 = vector.load %arg2[%c264, %c0_239] : memref<656x16xf32, #tpu.memory_space<vmem>>, vector<48x16xf32>
    %c15 = arith.constant 15 : index
    %c0_240 = arith.constant 0 : index
    %321 = vector.load %arg3[%c15, %c0_240] : memref<44x16xf32, #tpu.memory_space<vmem>>, vector<1x16xf32>
    %322 = vector.extract_strided_slice %319 {offsets = [0, 0], sizes = [32, 16], strides = [1, 1]} : vector<64x16xf32> to vector<32x16xf32>
    %c0_241 = arith.constant 0 : index
    %c8_242 = arith.constant 8 : index
    %c0_243 = arith.constant 0 : index
    %323 = vector.load %arg5[%c0_241, %c8_242, %c0_243] : memref<2x48x16xf32, #tpu.memory_space<vmem>>, vector<1x32x16xf32>
    %324 = vector.shape_cast %323 : vector<1x32x16xf32> to vector<32x16xf32>
    %325 = vector.shape_cast %322 : vector<32x16xf32> to vector<1x32x16xf32>
    tpu.vector_store %arg5[%c0_241, %c8_242, %c0_243], %325 {strides = array<i32>} : memref<2x48x16xf32, #tpu.memory_space<vmem>>, vector<1x32x16xf32>,
    %326 = vector.extract_strided_slice %319 {offsets = [32, 0], sizes = [32, 16], strides = [1, 1]} : vector<64x16xf32> to vector<32x16xf32>
    %c1_244 = arith.constant 1 : index
    %c8_245 = arith.constant 8 : index
    %c0_246 = arith.constant 0 : index
    %327 = vector.load %arg5[%c1_244, %c8_245, %c0_246] : memref<2x48x16xf32, #tpu.memory_space<vmem>>, vector<1x32x16xf32>
    %328 = vector.shape_cast %327 : vector<1x32x16xf32> to vector<32x16xf32>
    %329 = vector.shape_cast %326 : vector<32x16xf32> to vector<1x32x16xf32>
    tpu.vector_store %arg5[%c1_244, %c8_245, %c0_246], %329 {strides = array<i32>} : memref<2x48x16xf32, #tpu.memory_space<vmem>>, vector<1x32x16xf32>,
    %c0_247 = arith.constant 0 : index
    %c7_248 = arith.constant 7 : index
    %c0_249 = arith.constant 0 : index
    %330 = vector.load %arg5[%c0_247, %c7_248, %c0_249] : memref<2x48x16xf32, #tpu.memory_space<vmem>>, vector<1x32x16xf32>
    %331 = vector.shape_cast %330 : vector<1x32x16xf32> to vector<32x16xf32>
    %c0_250 = arith.constant 0 : index
    %c8_251 = arith.constant 8 : index
    %c0_252 = arith.constant 0 : index
    %332 = vector.load %arg5[%c0_250, %c8_251, %c0_252] : memref<2x48x16xf32, #tpu.memory_space<vmem>>, vector<1x32x16xf32>
    %333 = vector.shape_cast %332 : vector<1x32x16xf32> to vector<32x16xf32>
    %c0_253 = arith.constant 0 : index
    %c9_254 = arith.constant 9 : index
    %c0_255 = arith.constant 0 : index
    %334 = vector.load %arg5[%c0_253, %c9_254, %c0_255] : memref<2x48x16xf32, #tpu.memory_space<vmem>>, vector<1x32x16xf32>
    %335 = vector.shape_cast %334 : vector<1x32x16xf32> to vector<32x16xf32>
    %336 = tpu.concatenate %331, %333, %335 in 1 : vector<32x16xf32>, vector<32x16xf32>, vector<32x16xf32> -> vector<32x48xf32>
    %c1_256 = arith.constant 1 : index
    %c7_257 = arith.constant 7 : index
    %c0_258 = arith.constant 0 : index
    %337 = vector.load %arg5[%c1_256, %c7_257, %c0_258] : memref<2x48x16xf32, #tpu.memory_space<vmem>>, vector<1x32x16xf32>
    %338 = vector.shape_cast %337 : vector<1x32x16xf32> to vector<32x16xf32>
    %c1_259 = arith.constant 1 : index
    %c8_260 = arith.constant 8 : index
    %c0_261 = arith.constant 0 : index
    %339 = vector.load %arg5[%c1_259, %c8_260, %c0_261] : memref<2x48x16xf32, #tpu.memory_space<vmem>>, vector<1x32x16xf32>
    %340 = vector.shape_cast %339 : vector<1x32x16xf32> to vector<32x16xf32>
    %c1_262 = arith.constant 1 : index
    %c9_263 = arith.constant 9 : index
    %c0_264 = arith.constant 0 : index
    %341 = vector.load %arg5[%c1_262, %c9_263, %c0_264] : memref<2x48x16xf32, #tpu.memory_space<vmem>>, vector<1x32x16xf32>
    %342 = vector.shape_cast %341 : vector<1x32x16xf32> to vector<32x16xf32>
    %343 = tpu.concatenate %338, %340, %342 in 1 : vector<32x16xf32>, vector<32x16xf32>, vector<32x16xf32> -> vector<32x48xf32>
    %344 = tpu.concatenate %336, %343 in 0 : vector<32x48xf32>, vector<32x48xf32> -> vector<64x48xf32>
    %cst_265 = arith.constant dense<0.000000e+00> : vector<64x16xf32>
    %345 = tpu.matmul %344, %320, %cst_265 {dimension_numbers = #tpu.dot_dimension_numbers<[1], [0], [0], [1], [0, 0, 1, 1], [], []>} : vector<64x48xf32>, vector<48x16xf32>, vector<64x16xf32> -> vector<64x16xf32>
    %346 = vector.broadcast %321 : vector<1x16xf32> to vector<64x16xf32>
    %347 = arith.addf %345, %346 : vector<64x16xf32>
    %c312 = arith.constant 312 : index
    %c0_266 = arith.constant 0 : index
    %348 = vector.load %arg2[%c312, %c0_266] : memref<656x16xf32, #tpu.memory_space<vmem>>, vector<16x16xf32>
    %c16 = arith.constant 16 : index
    %c0_267 = arith.constant 0 : index
    %349 = vector.load %arg3[%c16, %c0_267] : memref<44x16xf32, #tpu.memory_space<vmem>>, vector<1x16xf32>
    %cst_268 = arith.constant dense<0.000000e+00> : vector<64x16xf32>
    %350 = tpu.matmul %266, %348, %cst_268 {dimension_numbers = #tpu.dot_dimension_numbers<[1], [0], [0], [1], [0, 0, 1, 1], [], []>} : vector<64x16xf32>, vector<16x16xf32>, vector<64x16xf32> -> vector<64x16xf32>
    %351 = vector.broadcast %349 : vector<1x16xf32> to vector<64x16xf32>
    %352 = arith.addf %350, %351 : vector<64x16xf32>
    %c21 = arith.constant 21 : index
    %c0_269 = arith.constant 0 : index
    %353 = vector.load %arg3[%c21, %c0_269] : memref<44x16xf32, #tpu.memory_space<vmem>>, vector<1x16xf32>
    %c22 = arith.constant 22 : index
    %c0_270 = arith.constant 0 : index
    %354 = vector.load %arg3[%c22, %c0_270] : memref<44x16xf32, #tpu.memory_space<vmem>>, vector<1x16xf32>
    %cst_271 = arith.constant dense<0.000000e+00> : vector<16xf32>
    %355 = vector.multi_reduction <add>, %352, %cst_271 [0] : vector<64x16xf32> to vector<16xf32>
    %356 = vector.shape_cast %355 : vector<16xf32> to vector<1x16xf32>
    %cst_272 = arith.constant 6.400000e+01 : f32
    %357 = vector.broadcast %cst_272 : f32 to vector<1x16xf32>
    %358 = arith.divf %356, %357 : vector<1x16xf32>
    %359 = arith.mulf %352, %352 : vector<64x16xf32>
    %cst_273 = arith.constant dense<0.000000e+00> : vector<16xf32>
    %360 = vector.multi_reduction <add>, %359, %cst_273 [0] : vector<64x16xf32> to vector<16xf32>
    %361 = vector.shape_cast %360 : vector<16xf32> to vector<1x16xf32>
    %cst_274 = arith.constant 6.400000e+01 : f32
    %362 = vector.broadcast %cst_274 : f32 to vector<1x16xf32>
    %363 = arith.divf %361, %362 : vector<1x16xf32>
    %364 = arith.mulf %358, %358 : vector<1x16xf32>
    %365 = arith.subf %363, %364 : vector<1x16xf32>
    %cst_275 = arith.constant 9.99999974E-6 : f32
    %366 = vector.broadcast %cst_275 : f32 to vector<1x16xf32>
    %367 = arith.addf %365, %366 : vector<1x16xf32>
    %368 = math.rsqrt %367 : vector<1x16xf32>
    %369 = arith.mulf %353, %368 : vector<1x16xf32>
    %370 = arith.mulf %358, %369 : vector<1x16xf32>
    %371 = arith.subf %354, %370 : vector<1x16xf32>
    %372 = vector.broadcast %369 : vector<1x16xf32> to vector<64x16xf32>
    %373 = arith.mulf %352, %372 : vector<64x16xf32>
    %374 = vector.broadcast %371 : vector<1x16xf32> to vector<64x16xf32>
    %375 = arith.addf %373, %374 : vector<64x16xf32>
    %c19 = arith.constant 19 : index
    %c0_276 = arith.constant 0 : index
    %376 = vector.load %arg3[%c19, %c0_276] : memref<44x16xf32, #tpu.memory_space<vmem>>, vector<1x16xf32>
    %c20 = arith.constant 20 : index
    %c0_277 = arith.constant 0 : index
    %377 = vector.load %arg3[%c20, %c0_277] : memref<44x16xf32, #tpu.memory_space<vmem>>, vector<1x16xf32>
    %cst_278 = arith.constant dense<0.000000e+00> : vector<16xf32>
    %378 = vector.multi_reduction <add>, %347, %cst_278 [0] : vector<64x16xf32> to vector<16xf32>
    %379 = vector.shape_cast %378 : vector<16xf32> to vector<1x16xf32>
    %cst_279 = arith.constant 6.400000e+01 : f32
    %380 = vector.broadcast %cst_279 : f32 to vector<1x16xf32>
    %381 = arith.divf %379, %380 : vector<1x16xf32>
    %382 = arith.mulf %347, %347 : vector<64x16xf32>
    %cst_280 = arith.constant dense<0.000000e+00> : vector<16xf32>
    %383 = vector.multi_reduction <add>, %382, %cst_280 [0] : vector<64x16xf32> to vector<16xf32>
    %384 = vector.shape_cast %383 : vector<16xf32> to vector<1x16xf32>
    %cst_281 = arith.constant 6.400000e+01 : f32
    %385 = vector.broadcast %cst_281 : f32 to vector<1x16xf32>
    %386 = arith.divf %384, %385 : vector<1x16xf32>
    %387 = arith.mulf %381, %381 : vector<1x16xf32>
    %388 = arith.subf %386, %387 : vector<1x16xf32>
    %cst_282 = arith.constant 9.99999974E-6 : f32
    %389 = vector.broadcast %cst_282 : f32 to vector<1x16xf32>
    %390 = arith.addf %388, %389 : vector<1x16xf32>
    %391 = math.rsqrt %390 : vector<1x16xf32>
    %392 = arith.mulf %376, %391 : vector<1x16xf32>
    %393 = arith.mulf %381, %392 : vector<1x16xf32>
    %394 = arith.subf %377, %393 : vector<1x16xf32>
    %395 = vector.broadcast %392 : vector<1x16xf32> to vector<64x16xf32>
    %396 = arith.mulf %347, %395 : vector<64x16xf32>
    %397 = vector.broadcast %394 : vector<1x16xf32> to vector<64x16xf32>
    %398 = arith.addf %396, %397 : vector<64x16xf32>
    %399 = arith.addf %375, %398 : vector<64x16xf32>
    %cst_283 = arith.constant 0.000000e+00 : f32
    %400 = vector.broadcast %cst_283 : f32 to vector<64x16xf32>
    %401 = arith.maximumf %399, %400 : vector<64x16xf32>
    %c328 = arith.constant 328 : index
    %c0_284 = arith.constant 0 : index
    %402 = vector.load %arg2[%c328, %c0_284] : memref<656x16xf32, #tpu.memory_space<vmem>>, vector<48x16xf32>
    %c23 = arith.constant 23 : index
    %c0_285 = arith.constant 0 : index
    %403 = vector.load %arg3[%c23, %c0_285] : memref<44x16xf32, #tpu.memory_space<vmem>>, vector<1x16xf32>
    %404 = vector.extract_strided_slice %401 {offsets = [0, 0], sizes = [32, 16], strides = [1, 1]} : vector<64x16xf32> to vector<32x16xf32>
    %c0_286 = arith.constant 0 : index
    %c8_287 = arith.constant 8 : index
    %c0_288 = arith.constant 0 : index
    %405 = vector.load %arg5[%c0_286, %c8_287, %c0_288] : memref<2x48x16xf32, #tpu.memory_space<vmem>>, vector<1x32x16xf32>
    %406 = vector.shape_cast %405 : vector<1x32x16xf32> to vector<32x16xf32>
    %407 = vector.shape_cast %404 : vector<32x16xf32> to vector<1x32x16xf32>
    tpu.vector_store %arg5[%c0_286, %c8_287, %c0_288], %407 {strides = array<i32>} : memref<2x48x16xf32, #tpu.memory_space<vmem>>, vector<1x32x16xf32>,
    %408 = vector.extract_strided_slice %401 {offsets = [32, 0], sizes = [32, 16], strides = [1, 1]} : vector<64x16xf32> to vector<32x16xf32>
    %c1_289 = arith.constant 1 : index
    %c8_290 = arith.constant 8 : index
    %c0_291 = arith.constant 0 : index
    %409 = vector.load %arg5[%c1_289, %c8_290, %c0_291] : memref<2x48x16xf32, #tpu.memory_space<vmem>>, vector<1x32x16xf32>
    %410 = vector.shape_cast %409 : vector<1x32x16xf32> to vector<32x16xf32>
    %411 = vector.shape_cast %408 : vector<32x16xf32> to vector<1x32x16xf32>
    tpu.vector_store %arg5[%c1_289, %c8_290, %c0_291], %411 {strides = array<i32>} : memref<2x48x16xf32, #tpu.memory_space<vmem>>, vector<1x32x16xf32>,
    %c0_292 = arith.constant 0 : index
    %c7_293 = arith.constant 7 : index
    %c0_294 = arith.constant 0 : index
    %412 = vector.load %arg5[%c0_292, %c7_293, %c0_294] : memref<2x48x16xf32, #tpu.memory_space<vmem>>, vector<1x32x16xf32>
    %413 = vector.shape_cast %412 : vector<1x32x16xf32> to vector<32x16xf32>
    %c0_295 = arith.constant 0 : index
    %c8_296 = arith.constant 8 : index
    %c0_297 = arith.constant 0 : index
    %414 = vector.load %arg5[%c0_295, %c8_296, %c0_297] : memref<2x48x16xf32, #tpu.memory_space<vmem>>, vector<1x32x16xf32>
    %415 = vector.shape_cast %414 : vector<1x32x16xf32> to vector<32x16xf32>
    %c0_298 = arith.constant 0 : index
    %c9_299 = arith.constant 9 : index
    %c0_300 = arith.constant 0 : index
    %416 = vector.load %arg5[%c0_298, %c9_299, %c0_300] : memref<2x48x16xf32, #tpu.memory_space<vmem>>, vector<1x32x16xf32>
    %417 = vector.shape_cast %416 : vector<1x32x16xf32> to vector<32x16xf32>
    %418 = tpu.concatenate %413, %415, %417 in 1 : vector<32x16xf32>, vector<32x16xf32>, vector<32x16xf32> -> vector<32x48xf32>
    %c1_301 = arith.constant 1 : index
    %c7_302 = arith.constant 7 : index
    %c0_303 = arith.constant 0 : index
    %419 = vector.load %arg5[%c1_301, %c7_302, %c0_303] : memref<2x48x16xf32, #tpu.memory_space<vmem>>, vector<1x32x16xf32>
    %420 = vector.shape_cast %419 : vector<1x32x16xf32> to vector<32x16xf32>
    %c1_304 = arith.constant 1 : index
    %c8_305 = arith.constant 8 : index
    %c0_306 = arith.constant 0 : index
    %421 = vector.load %arg5[%c1_304, %c8_305, %c0_306] : memref<2x48x16xf32, #tpu.memory_space<vmem>>, vector<1x32x16xf32>
    %422 = vector.shape_cast %421 : vector<1x32x16xf32> to vector<32x16xf32>
    %c1_307 = arith.constant 1 : index
    %c9_308 = arith.constant 9 : index
    %c0_309 = arith.constant 0 : index
    %423 = vector.load %arg5[%c1_307, %c9_308, %c0_309] : memref<2x48x16xf32, #tpu.memory_space<vmem>>, vector<1x32x16xf32>
    %424 = vector.shape_cast %423 : vector<1x32x16xf32> to vector<32x16xf32>
    %425 = tpu.concatenate %420, %422, %424 in 1 : vector<32x16xf32>, vector<32x16xf32>, vector<32x16xf32> -> vector<32x48xf32>
    %426 = tpu.concatenate %418, %425 in 0 : vector<32x48xf32>, vector<32x48xf32> -> vector<64x48xf32>
    %cst_310 = arith.constant dense<0.000000e+00> : vector<64x16xf32>
    %427 = tpu.matmul %426, %402, %cst_310 {dimension_numbers = #tpu.dot_dimension_numbers<[1], [0], [0], [1], [0, 0, 1, 1], [], []>} : vector<64x48xf32>, vector<48x16xf32>, vector<64x16xf32> -> vector<64x16xf32>
    %428 = vector.broadcast %403 : vector<1x16xf32> to vector<64x16xf32>
    %429 = arith.addf %427, %428 : vector<64x16xf32>
    %c376 = arith.constant 376 : index
    %c0_311 = arith.constant 0 : index
    %430 = vector.load %arg2[%c376, %c0_311] : memref<656x16xf32, #tpu.memory_space<vmem>>, vector<48x16xf32>
    %c24 = arith.constant 24 : index
    %c0_312 = arith.constant 0 : index
    %431 = vector.load %arg3[%c24, %c0_312] : memref<44x16xf32, #tpu.memory_space<vmem>>, vector<1x16xf32>
    %432 = vector.extract_strided_slice %429 {offsets = [0, 0], sizes = [32, 16], strides = [1, 1]} : vector<64x16xf32> to vector<32x16xf32>
    %c0_313 = arith.constant 0 : index
    %c8_314 = arith.constant 8 : index
    %c0_315 = arith.constant 0 : index
    %433 = vector.load %arg5[%c0_313, %c8_314, %c0_315] : memref<2x48x16xf32, #tpu.memory_space<vmem>>, vector<1x32x16xf32>
    %434 = vector.shape_cast %433 : vector<1x32x16xf32> to vector<32x16xf32>
    %435 = vector.shape_cast %432 : vector<32x16xf32> to vector<1x32x16xf32>
    tpu.vector_store %arg5[%c0_313, %c8_314, %c0_315], %435 {strides = array<i32>} : memref<2x48x16xf32, #tpu.memory_space<vmem>>, vector<1x32x16xf32>,
    %436 = vector.extract_strided_slice %429 {offsets = [32, 0], sizes = [32, 16], strides = [1, 1]} : vector<64x16xf32> to vector<32x16xf32>
    %c1_316 = arith.constant 1 : index
    %c8_317 = arith.constant 8 : index
    %c0_318 = arith.constant 0 : index
    %437 = vector.load %arg5[%c1_316, %c8_317, %c0_318] : memref<2x48x16xf32, #tpu.memory_space<vmem>>, vector<1x32x16xf32>
    %438 = vector.shape_cast %437 : vector<1x32x16xf32> to vector<32x16xf32>
    %439 = vector.shape_cast %436 : vector<32x16xf32> to vector<1x32x16xf32>
    tpu.vector_store %arg5[%c1_316, %c8_317, %c0_318], %439 {strides = array<i32>} : memref<2x48x16xf32, #tpu.memory_space<vmem>>, vector<1x32x16xf32>,
    %c0_319 = arith.constant 0 : index
    %c7_320 = arith.constant 7 : index
    %c0_321 = arith.constant 0 : index
    %440 = vector.load %arg5[%c0_319, %c7_320, %c0_321] : memref<2x48x16xf32, #tpu.memory_space<vmem>>, vector<1x32x16xf32>
    %441 = vector.shape_cast %440 : vector<1x32x16xf32> to vector<32x16xf32>
    %c0_322 = arith.constant 0 : index
    %c8_323 = arith.constant 8 : index
    %c0_324 = arith.constant 0 : index
    %442 = vector.load %arg5[%c0_322, %c8_323, %c0_324] : memref<2x48x16xf32, #tpu.memory_space<vmem>>, vector<1x32x16xf32>
    %443 = vector.shape_cast %442 : vector<1x32x16xf32> to vector<32x16xf32>
    %c0_325 = arith.constant 0 : index
    %c9_326 = arith.constant 9 : index
    %c0_327 = arith.constant 0 : index
    %444 = vector.load %arg5[%c0_325, %c9_326, %c0_327] : memref<2x48x16xf32, #tpu.memory_space<vmem>>, vector<1x32x16xf32>
    %445 = vector.shape_cast %444 : vector<1x32x16xf32> to vector<32x16xf32>
    %446 = tpu.concatenate %441, %443, %445 in 1 : vector<32x16xf32>, vector<32x16xf32>, vector<32x16xf32> -> vector<32x48xf32>
    %c1_328 = arith.constant 1 : index
    %c7_329 = arith.constant 7 : index
    %c0_330 = arith.constant 0 : index
    %447 = vector.load %arg5[%c1_328, %c7_329, %c0_330] : memref<2x48x16xf32, #tpu.memory_space<vmem>>, vector<1x32x16xf32>
    %448 = vector.shape_cast %447 : vector<1x32x16xf32> to vector<32x16xf32>
    %c1_331 = arith.constant 1 : index
    %c8_332 = arith.constant 8 : index
    %c0_333 = arith.constant 0 : index
    %449 = vector.load %arg5[%c1_331, %c8_332, %c0_333] : memref<2x48x16xf32, #tpu.memory_space<vmem>>, vector<1x32x16xf32>
    %450 = vector.shape_cast %449 : vector<1x32x16xf32> to vector<32x16xf32>
    %c1_334 = arith.constant 1 : index
    %c9_335 = arith.constant 9 : index
    %c0_336 = arith.constant 0 : index
    %451 = vector.load %arg5[%c1_334, %c9_335, %c0_336] : memref<2x48x16xf32, #tpu.memory_space<vmem>>, vector<1x32x16xf32>
    %452 = vector.shape_cast %451 : vector<1x32x16xf32> to vector<32x16xf32>
    %453 = tpu.concatenate %448, %450, %452 in 1 : vector<32x16xf32>, vector<32x16xf32>, vector<32x16xf32> -> vector<32x48xf32>
    %454 = tpu.concatenate %446, %453 in 0 : vector<32x48xf32>, vector<32x48xf32> -> vector<64x48xf32>
    %cst_337 = arith.constant dense<0.000000e+00> : vector<64x16xf32>
    %455 = tpu.matmul %454, %430, %cst_337 {dimension_numbers = #tpu.dot_dimension_numbers<[1], [0], [0], [1], [0, 0, 1, 1], [], []>} : vector<64x48xf32>, vector<48x16xf32>, vector<64x16xf32> -> vector<64x16xf32>
    %456 = vector.broadcast %431 : vector<1x16xf32> to vector<64x16xf32>
    %457 = arith.addf %455, %456 : vector<64x16xf32>
    %c27 = arith.constant 27 : index
    %c0_338 = arith.constant 0 : index
    %458 = vector.load %arg3[%c27, %c0_338] : memref<44x16xf32, #tpu.memory_space<vmem>>, vector<1x16xf32>
    %c28 = arith.constant 28 : index
    %c0_339 = arith.constant 0 : index
    %459 = vector.load %arg3[%c28, %c0_339] : memref<44x16xf32, #tpu.memory_space<vmem>>, vector<1x16xf32>
    %cst_340 = arith.constant dense<0.000000e+00> : vector<16xf32>
    %460 = vector.multi_reduction <add>, %457, %cst_340 [0] : vector<64x16xf32> to vector<16xf32>
    %461 = vector.shape_cast %460 : vector<16xf32> to vector<1x16xf32>
    %cst_341 = arith.constant 6.400000e+01 : f32
    %462 = vector.broadcast %cst_341 : f32 to vector<1x16xf32>
    %463 = arith.divf %461, %462 : vector<1x16xf32>
    %464 = arith.mulf %457, %457 : vector<64x16xf32>
    %cst_342 = arith.constant dense<0.000000e+00> : vector<16xf32>
    %465 = vector.multi_reduction <add>, %464, %cst_342 [0] : vector<64x16xf32> to vector<16xf32>
    %466 = vector.shape_cast %465 : vector<16xf32> to vector<1x16xf32>
    %cst_343 = arith.constant 6.400000e+01 : f32
    %467 = vector.broadcast %cst_343 : f32 to vector<1x16xf32>
    %468 = arith.divf %466, %467 : vector<1x16xf32>
    %469 = arith.mulf %463, %463 : vector<1x16xf32>
    %470 = arith.subf %468, %469 : vector<1x16xf32>
    %cst_344 = arith.constant 9.99999974E-6 : f32
    %471 = vector.broadcast %cst_344 : f32 to vector<1x16xf32>
    %472 = arith.addf %470, %471 : vector<1x16xf32>
    %473 = math.rsqrt %472 : vector<1x16xf32>
    %474 = arith.mulf %458, %473 : vector<1x16xf32>
    %475 = arith.mulf %463, %474 : vector<1x16xf32>
    %476 = arith.subf %459, %475 : vector<1x16xf32>
    %477 = vector.broadcast %474 : vector<1x16xf32> to vector<64x16xf32>
    %478 = arith.mulf %457, %477 : vector<64x16xf32>
    %479 = vector.broadcast %476 : vector<1x16xf32> to vector<64x16xf32>
    %480 = arith.addf %478, %479 : vector<64x16xf32>
    %cst_345 = arith.constant 0.000000e+00 : f32
    %481 = vector.broadcast %cst_345 : f32 to vector<64x16xf32>
    %482 = arith.maximumf %480, %481 : vector<64x16xf32>
    %c424 = arith.constant 424 : index
    %c0_346 = arith.constant 0 : index
    %483 = vector.load %arg2[%c424, %c0_346] : memref<656x16xf32, #tpu.memory_space<vmem>>, vector<48x16xf32>
    %c25 = arith.constant 25 : index
    %c0_347 = arith.constant 0 : index
    %484 = vector.load %arg3[%c25, %c0_347] : memref<44x16xf32, #tpu.memory_space<vmem>>, vector<1x16xf32>
    %485 = vector.extract_strided_slice %482 {offsets = [0, 0], sizes = [32, 16], strides = [1, 1]} : vector<64x16xf32> to vector<32x16xf32>
    %c0_348 = arith.constant 0 : index
    %c8_349 = arith.constant 8 : index
    %c0_350 = arith.constant 0 : index
    %486 = vector.load %arg5[%c0_348, %c8_349, %c0_350] : memref<2x48x16xf32, #tpu.memory_space<vmem>>, vector<1x32x16xf32>
    %487 = vector.shape_cast %486 : vector<1x32x16xf32> to vector<32x16xf32>
    %488 = vector.shape_cast %485 : vector<32x16xf32> to vector<1x32x16xf32>
    tpu.vector_store %arg5[%c0_348, %c8_349, %c0_350], %488 {strides = array<i32>} : memref<2x48x16xf32, #tpu.memory_space<vmem>>, vector<1x32x16xf32>,
    %489 = vector.extract_strided_slice %482 {offsets = [32, 0], sizes = [32, 16], strides = [1, 1]} : vector<64x16xf32> to vector<32x16xf32>
    %c1_351 = arith.constant 1 : index
    %c8_352 = arith.constant 8 : index
    %c0_353 = arith.constant 0 : index
    %490 = vector.load %arg5[%c1_351, %c8_352, %c0_353] : memref<2x48x16xf32, #tpu.memory_space<vmem>>, vector<1x32x16xf32>
    %491 = vector.shape_cast %490 : vector<1x32x16xf32> to vector<32x16xf32>
    %492 = vector.shape_cast %489 : vector<32x16xf32> to vector<1x32x16xf32>
    tpu.vector_store %arg5[%c1_351, %c8_352, %c0_353], %492 {strides = array<i32>} : memref<2x48x16xf32, #tpu.memory_space<vmem>>, vector<1x32x16xf32>,
    %c0_354 = arith.constant 0 : index
    %c7_355 = arith.constant 7 : index
    %c0_356 = arith.constant 0 : index
    %493 = vector.load %arg5[%c0_354, %c7_355, %c0_356] : memref<2x48x16xf32, #tpu.memory_space<vmem>>, vector<1x32x16xf32>
    %494 = vector.shape_cast %493 : vector<1x32x16xf32> to vector<32x16xf32>
    %c0_357 = arith.constant 0 : index
    %c8_358 = arith.constant 8 : index
    %c0_359 = arith.constant 0 : index
    %495 = vector.load %arg5[%c0_357, %c8_358, %c0_359] : memref<2x48x16xf32, #tpu.memory_space<vmem>>, vector<1x32x16xf32>
    %496 = vector.shape_cast %495 : vector<1x32x16xf32> to vector<32x16xf32>
    %c0_360 = arith.constant 0 : index
    %c9_361 = arith.constant 9 : index
    %c0_362 = arith.constant 0 : index
    %497 = vector.load %arg5[%c0_360, %c9_361, %c0_362] : memref<2x48x16xf32, #tpu.memory_space<vmem>>, vector<1x32x16xf32>
    %498 = vector.shape_cast %497 : vector<1x32x16xf32> to vector<32x16xf32>
    %499 = tpu.concatenate %494, %496, %498 in 1 : vector<32x16xf32>, vector<32x16xf32>, vector<32x16xf32> -> vector<32x48xf32>
    %c1_363 = arith.constant 1 : index
    %c7_364 = arith.constant 7 : index
    %c0_365 = arith.constant 0 : index
    %500 = vector.load %arg5[%c1_363, %c7_364, %c0_365] : memref<2x48x16xf32, #tpu.memory_space<vmem>>, vector<1x32x16xf32>
    %501 = vector.shape_cast %500 : vector<1x32x16xf32> to vector<32x16xf32>
    %c1_366 = arith.constant 1 : index
    %c8_367 = arith.constant 8 : index
    %c0_368 = arith.constant 0 : index
    %502 = vector.load %arg5[%c1_366, %c8_367, %c0_368] : memref<2x48x16xf32, #tpu.memory_space<vmem>>, vector<1x32x16xf32>
    %503 = vector.shape_cast %502 : vector<1x32x16xf32> to vector<32x16xf32>
    %c1_369 = arith.constant 1 : index
    %c9_370 = arith.constant 9 : index
    %c0_371 = arith.constant 0 : index
    %504 = vector.load %arg5[%c1_369, %c9_370, %c0_371] : memref<2x48x16xf32, #tpu.memory_space<vmem>>, vector<1x32x16xf32>
    %505 = vector.shape_cast %504 : vector<1x32x16xf32> to vector<32x16xf32>
    %506 = tpu.concatenate %501, %503, %505 in 1 : vector<32x16xf32>, vector<32x16xf32>, vector<32x16xf32> -> vector<32x48xf32>
    %507 = tpu.concatenate %499, %506 in 0 : vector<32x48xf32>, vector<32x48xf32> -> vector<64x48xf32>
    %cst_372 = arith.constant dense<0.000000e+00> : vector<64x16xf32>
    %508 = tpu.matmul %507, %483, %cst_372 {dimension_numbers = #tpu.dot_dimension_numbers<[1], [0], [0], [1], [0, 0, 1, 1], [], []>} : vector<64x48xf32>, vector<48x16xf32>, vector<64x16xf32> -> vector<64x16xf32>
    %509 = vector.broadcast %484 : vector<1x16xf32> to vector<64x16xf32>
    %510 = arith.addf %508, %509 : vector<64x16xf32>
    %c472 = arith.constant 472 : index
    %c0_373 = arith.constant 0 : index
    %511 = vector.load %arg2[%c472, %c0_373] : memref<656x16xf32, #tpu.memory_space<vmem>>, vector<16x16xf32>
    %c26 = arith.constant 26 : index
    %c0_374 = arith.constant 0 : index
    %512 = vector.load %arg3[%c26, %c0_374] : memref<44x16xf32, #tpu.memory_space<vmem>>, vector<1x16xf32>
    %cst_375 = arith.constant dense<0.000000e+00> : vector<64x16xf32>
    %513 = tpu.matmul %429, %511, %cst_375 {dimension_numbers = #tpu.dot_dimension_numbers<[1], [0], [0], [1], [0, 0, 1, 1], [], []>} : vector<64x16xf32>, vector<16x16xf32>, vector<64x16xf32> -> vector<64x16xf32>
    %514 = vector.broadcast %512 : vector<1x16xf32> to vector<64x16xf32>
    %515 = arith.addf %513, %514 : vector<64x16xf32>
    %c31 = arith.constant 31 : index
    %c0_376 = arith.constant 0 : index
    %516 = vector.load %arg3[%c31, %c0_376] : memref<44x16xf32, #tpu.memory_space<vmem>>, vector<1x16xf32>
    %c32 = arith.constant 32 : index
    %c0_377 = arith.constant 0 : index
    %517 = vector.load %arg3[%c32, %c0_377] : memref<44x16xf32, #tpu.memory_space<vmem>>, vector<1x16xf32>
    %cst_378 = arith.constant dense<0.000000e+00> : vector<16xf32>
    %518 = vector.multi_reduction <add>, %515, %cst_378 [0] : vector<64x16xf32> to vector<16xf32>
    %519 = vector.shape_cast %518 : vector<16xf32> to vector<1x16xf32>
    %cst_379 = arith.constant 6.400000e+01 : f32
    %520 = vector.broadcast %cst_379 : f32 to vector<1x16xf32>
    %521 = arith.divf %519, %520 : vector<1x16xf32>
    %522 = arith.mulf %515, %515 : vector<64x16xf32>
    %cst_380 = arith.constant dense<0.000000e+00> : vector<16xf32>
    %523 = vector.multi_reduction <add>, %522, %cst_380 [0] : vector<64x16xf32> to vector<16xf32>
    %524 = vector.shape_cast %523 : vector<16xf32> to vector<1x16xf32>
    %cst_381 = arith.constant 6.400000e+01 : f32
    %525 = vector.broadcast %cst_381 : f32 to vector<1x16xf32>
    %526 = arith.divf %524, %525 : vector<1x16xf32>
    %527 = arith.mulf %521, %521 : vector<1x16xf32>
    %528 = arith.subf %526, %527 : vector<1x16xf32>
    %cst_382 = arith.constant 9.99999974E-6 : f32
    %529 = vector.broadcast %cst_382 : f32 to vector<1x16xf32>
    %530 = arith.addf %528, %529 : vector<1x16xf32>
    %531 = math.rsqrt %530 : vector<1x16xf32>
    %532 = arith.mulf %516, %531 : vector<1x16xf32>
    %533 = arith.mulf %521, %532 : vector<1x16xf32>
    %534 = arith.subf %517, %533 : vector<1x16xf32>
    %535 = vector.broadcast %532 : vector<1x16xf32> to vector<64x16xf32>
    %536 = arith.mulf %515, %535 : vector<64x16xf32>
    %537 = vector.broadcast %534 : vector<1x16xf32> to vector<64x16xf32>
    %538 = arith.addf %536, %537 : vector<64x16xf32>
    %c29 = arith.constant 29 : index
    %c0_383 = arith.constant 0 : index
    %539 = vector.load %arg3[%c29, %c0_383] : memref<44x16xf32, #tpu.memory_space<vmem>>, vector<1x16xf32>
    %c30 = arith.constant 30 : index
    %c0_384 = arith.constant 0 : index
    %540 = vector.load %arg3[%c30, %c0_384] : memref<44x16xf32, #tpu.memory_space<vmem>>, vector<1x16xf32>
    %cst_385 = arith.constant dense<0.000000e+00> : vector<16xf32>
    %541 = vector.multi_reduction <add>, %510, %cst_385 [0] : vector<64x16xf32> to vector<16xf32>
    %542 = vector.shape_cast %541 : vector<16xf32> to vector<1x16xf32>
    %cst_386 = arith.constant 6.400000e+01 : f32
    %543 = vector.broadcast %cst_386 : f32 to vector<1x16xf32>
    %544 = arith.divf %542, %543 : vector<1x16xf32>
    %545 = arith.mulf %510, %510 : vector<64x16xf32>
    %cst_387 = arith.constant dense<0.000000e+00> : vector<16xf32>
    %546 = vector.multi_reduction <add>, %545, %cst_387 [0] : vector<64x16xf32> to vector<16xf32>
    %547 = vector.shape_cast %546 : vector<16xf32> to vector<1x16xf32>
    %cst_388 = arith.constant 6.400000e+01 : f32
    %548 = vector.broadcast %cst_388 : f32 to vector<1x16xf32>
    %549 = arith.divf %547, %548 : vector<1x16xf32>
    %550 = arith.mulf %544, %544 : vector<1x16xf32>
    %551 = arith.subf %549, %550 : vector<1x16xf32>
    %cst_389 = arith.constant 9.99999974E-6 : f32
    %552 = vector.broadcast %cst_389 : f32 to vector<1x16xf32>
    %553 = arith.addf %551, %552 : vector<1x16xf32>
    %554 = math.rsqrt %553 : vector<1x16xf32>
    %555 = arith.mulf %539, %554 : vector<1x16xf32>
    %556 = arith.mulf %544, %555 : vector<1x16xf32>
    %557 = arith.subf %540, %556 : vector<1x16xf32>
    %558 = vector.broadcast %555 : vector<1x16xf32> to vector<64x16xf32>
    %559 = arith.mulf %510, %558 : vector<64x16xf32>
    %560 = vector.broadcast %557 : vector<1x16xf32> to vector<64x16xf32>
    %561 = arith.addf %559, %560 : vector<64x16xf32>
    %562 = arith.addf %538, %561 : vector<64x16xf32>
    %cst_390 = arith.constant 0.000000e+00 : f32
    %563 = vector.broadcast %cst_390 : f32 to vector<64x16xf32>
    %564 = arith.maximumf %562, %563 : vector<64x16xf32>
    %c488 = arith.constant 488 : index
    %c0_391 = arith.constant 0 : index
    %565 = vector.load %arg2[%c488, %c0_391] : memref<656x16xf32, #tpu.memory_space<vmem>>, vector<48x16xf32>
    %c33 = arith.constant 33 : index
    %c0_392 = arith.constant 0 : index
    %566 = vector.load %arg3[%c33, %c0_392] : memref<44x16xf32, #tpu.memory_space<vmem>>, vector<1x16xf32>
    %567 = vector.extract_strided_slice %564 {offsets = [0, 0], sizes = [32, 16], strides = [1, 1]} : vector<64x16xf32> to vector<32x16xf32>
    %c0_393 = arith.constant 0 : index
    %c8_394 = arith.constant 8 : index
    %c0_395 = arith.constant 0 : index
    %568 = vector.load %arg5[%c0_393, %c8_394, %c0_395] : memref<2x48x16xf32, #tpu.memory_space<vmem>>, vector<1x32x16xf32>
    %569 = vector.shape_cast %568 : vector<1x32x16xf32> to vector<32x16xf32>
    %570 = vector.shape_cast %567 : vector<32x16xf32> to vector<1x32x16xf32>
    tpu.vector_store %arg5[%c0_393, %c8_394, %c0_395], %570 {strides = array<i32>} : memref<2x48x16xf32, #tpu.memory_space<vmem>>, vector<1x32x16xf32>,
    %571 = vector.extract_strided_slice %564 {offsets = [32, 0], sizes = [32, 16], strides = [1, 1]} : vector<64x16xf32> to vector<32x16xf32>
    %c1_396 = arith.constant 1 : index
    %c8_397 = arith.constant 8 : index
    %c0_398 = arith.constant 0 : index
    %572 = vector.load %arg5[%c1_396, %c8_397, %c0_398] : memref<2x48x16xf32, #tpu.memory_space<vmem>>, vector<1x32x16xf32>
    %573 = vector.shape_cast %572 : vector<1x32x16xf32> to vector<32x16xf32>
    %574 = vector.shape_cast %571 : vector<32x16xf32> to vector<1x32x16xf32>
    tpu.vector_store %arg5[%c1_396, %c8_397, %c0_398], %574 {strides = array<i32>} : memref<2x48x16xf32, #tpu.memory_space<vmem>>, vector<1x32x16xf32>,
    %c0_399 = arith.constant 0 : index
    %c7_400 = arith.constant 7 : index
    %c0_401 = arith.constant 0 : index
    %575 = vector.load %arg5[%c0_399, %c7_400, %c0_401] : memref<2x48x16xf32, #tpu.memory_space<vmem>>, vector<1x32x16xf32>
    %576 = vector.shape_cast %575 : vector<1x32x16xf32> to vector<32x16xf32>
    %c0_402 = arith.constant 0 : index
    %c8_403 = arith.constant 8 : index
    %c0_404 = arith.constant 0 : index
    %577 = vector.load %arg5[%c0_402, %c8_403, %c0_404] : memref<2x48x16xf32, #tpu.memory_space<vmem>>, vector<1x32x16xf32>
    %578 = vector.shape_cast %577 : vector<1x32x16xf32> to vector<32x16xf32>
    %c0_405 = arith.constant 0 : index
    %c9_406 = arith.constant 9 : index
    %c0_407 = arith.constant 0 : index
    %579 = vector.load %arg5[%c0_405, %c9_406, %c0_407] : memref<2x48x16xf32, #tpu.memory_space<vmem>>, vector<1x32x16xf32>
    %580 = vector.shape_cast %579 : vector<1x32x16xf32> to vector<32x16xf32>
    %581 = tpu.concatenate %576, %578, %580 in 1 : vector<32x16xf32>, vector<32x16xf32>, vector<32x16xf32> -> vector<32x48xf32>
    %c1_408 = arith.constant 1 : index
    %c7_409 = arith.constant 7 : index
    %c0_410 = arith.constant 0 : index
    %582 = vector.load %arg5[%c1_408, %c7_409, %c0_410] : memref<2x48x16xf32, #tpu.memory_space<vmem>>, vector<1x32x16xf32>
    %583 = vector.shape_cast %582 : vector<1x32x16xf32> to vector<32x16xf32>
    %c1_411 = arith.constant 1 : index
    %c8_412 = arith.constant 8 : index
    %c0_413 = arith.constant 0 : index
    %584 = vector.load %arg5[%c1_411, %c8_412, %c0_413] : memref<2x48x16xf32, #tpu.memory_space<vmem>>, vector<1x32x16xf32>
    %585 = vector.shape_cast %584 : vector<1x32x16xf32> to vector<32x16xf32>
    %c1_414 = arith.constant 1 : index
    %c9_415 = arith.constant 9 : index
    %c0_416 = arith.constant 0 : index
    %586 = vector.load %arg5[%c1_414, %c9_415, %c0_416] : memref<2x48x16xf32, #tpu.memory_space<vmem>>, vector<1x32x16xf32>
    %587 = vector.shape_cast %586 : vector<1x32x16xf32> to vector<32x16xf32>
    %588 = tpu.concatenate %583, %585, %587 in 1 : vector<32x16xf32>, vector<32x16xf32>, vector<32x16xf32> -> vector<32x48xf32>
    %589 = tpu.concatenate %581, %588 in 0 : vector<32x48xf32>, vector<32x48xf32> -> vector<64x48xf32>
    %cst_417 = arith.constant dense<0.000000e+00> : vector<64x16xf32>
    %590 = tpu.matmul %589, %565, %cst_417 {dimension_numbers = #tpu.dot_dimension_numbers<[1], [0], [0], [1], [0, 0, 1, 1], [], []>} : vector<64x48xf32>, vector<48x16xf32>, vector<64x16xf32> -> vector<64x16xf32>
    %591 = vector.broadcast %566 : vector<1x16xf32> to vector<64x16xf32>
    %592 = arith.addf %590, %591 : vector<64x16xf32>
    %c536 = arith.constant 536 : index
    %c0_418 = arith.constant 0 : index
    %593 = vector.load %arg2[%c536, %c0_418] : memref<656x16xf32, #tpu.memory_space<vmem>>, vector<48x16xf32>
    %c34 = arith.constant 34 : index
    %c0_419 = arith.constant 0 : index
    %594 = vector.load %arg3[%c34, %c0_419] : memref<44x16xf32, #tpu.memory_space<vmem>>, vector<1x16xf32>
    %595 = vector.extract_strided_slice %592 {offsets = [0, 0], sizes = [32, 16], strides = [1, 1]} : vector<64x16xf32> to vector<32x16xf32>
    %c0_420 = arith.constant 0 : index
    %c8_421 = arith.constant 8 : index
    %c0_422 = arith.constant 0 : index
    %596 = vector.load %arg5[%c0_420, %c8_421, %c0_422] : memref<2x48x16xf32, #tpu.memory_space<vmem>>, vector<1x32x16xf32>
    %597 = vector.shape_cast %596 : vector<1x32x16xf32> to vector<32x16xf32>
    %598 = vector.shape_cast %595 : vector<32x16xf32> to vector<1x32x16xf32>
    tpu.vector_store %arg5[%c0_420, %c8_421, %c0_422], %598 {strides = array<i32>} : memref<2x48x16xf32, #tpu.memory_space<vmem>>, vector<1x32x16xf32>,
    %599 = vector.extract_strided_slice %592 {offsets = [32, 0], sizes = [32, 16], strides = [1, 1]} : vector<64x16xf32> to vector<32x16xf32>
    %c1_423 = arith.constant 1 : index
    %c8_424 = arith.constant 8 : index
    %c0_425 = arith.constant 0 : index
    %600 = vector.load %arg5[%c1_423, %c8_424, %c0_425] : memref<2x48x16xf32, #tpu.memory_space<vmem>>, vector<1x32x16xf32>
    %601 = vector.shape_cast %600 : vector<1x32x16xf32> to vector<32x16xf32>
    %602 = vector.shape_cast %599 : vector<32x16xf32> to vector<1x32x16xf32>
    tpu.vector_store %arg5[%c1_423, %c8_424, %c0_425], %602 {strides = array<i32>} : memref<2x48x16xf32, #tpu.memory_space<vmem>>, vector<1x32x16xf32>,
    %c0_426 = arith.constant 0 : index
    %c7_427 = arith.constant 7 : index
    %c0_428 = arith.constant 0 : index
    %603 = vector.load %arg5[%c0_426, %c7_427, %c0_428] : memref<2x48x16xf32, #tpu.memory_space<vmem>>, vector<1x32x16xf32>
    %604 = vector.shape_cast %603 : vector<1x32x16xf32> to vector<32x16xf32>
    %c0_429 = arith.constant 0 : index
    %c8_430 = arith.constant 8 : index
    %c0_431 = arith.constant 0 : index
    %605 = vector.load %arg5[%c0_429, %c8_430, %c0_431] : memref<2x48x16xf32, #tpu.memory_space<vmem>>, vector<1x32x16xf32>
    %606 = vector.shape_cast %605 : vector<1x32x16xf32> to vector<32x16xf32>
    %c0_432 = arith.constant 0 : index
    %c9_433 = arith.constant 9 : index
    %c0_434 = arith.constant 0 : index
    %607 = vector.load %arg5[%c0_432, %c9_433, %c0_434] : memref<2x48x16xf32, #tpu.memory_space<vmem>>, vector<1x32x16xf32>
    %608 = vector.shape_cast %607 : vector<1x32x16xf32> to vector<32x16xf32>
    %609 = tpu.concatenate %604, %606, %608 in 1 : vector<32x16xf32>, vector<32x16xf32>, vector<32x16xf32> -> vector<32x48xf32>
    %c1_435 = arith.constant 1 : index
    %c7_436 = arith.constant 7 : index
    %c0_437 = arith.constant 0 : index
    %610 = vector.load %arg5[%c1_435, %c7_436, %c0_437] : memref<2x48x16xf32, #tpu.memory_space<vmem>>, vector<1x32x16xf32>
    %611 = vector.shape_cast %610 : vector<1x32x16xf32> to vector<32x16xf32>
    %c1_438 = arith.constant 1 : index
    %c8_439 = arith.constant 8 : index
    %c0_440 = arith.constant 0 : index
    %612 = vector.load %arg5[%c1_438, %c8_439, %c0_440] : memref<2x48x16xf32, #tpu.memory_space<vmem>>, vector<1x32x16xf32>
    %613 = vector.shape_cast %612 : vector<1x32x16xf32> to vector<32x16xf32>
    %c1_441 = arith.constant 1 : index
    %c9_442 = arith.constant 9 : index
    %c0_443 = arith.constant 0 : index
    %614 = vector.load %arg5[%c1_441, %c9_442, %c0_443] : memref<2x48x16xf32, #tpu.memory_space<vmem>>, vector<1x32x16xf32>
    %615 = vector.shape_cast %614 : vector<1x32x16xf32> to vector<32x16xf32>
    %616 = tpu.concatenate %611, %613, %615 in 1 : vector<32x16xf32>, vector<32x16xf32>, vector<32x16xf32> -> vector<32x48xf32>
    %617 = tpu.concatenate %609, %616 in 0 : vector<32x48xf32>, vector<32x48xf32> -> vector<64x48xf32>
    %cst_444 = arith.constant dense<0.000000e+00> : vector<64x16xf32>
    %618 = tpu.matmul %617, %593, %cst_444 {dimension_numbers = #tpu.dot_dimension_numbers<[1], [0], [0], [1], [0, 0, 1, 1], [], []>} : vector<64x48xf32>, vector<48x16xf32>, vector<64x16xf32> -> vector<64x16xf32>
    %619 = vector.broadcast %594 : vector<1x16xf32> to vector<64x16xf32>
    %620 = arith.addf %618, %619 : vector<64x16xf32>
    %c37 = arith.constant 37 : index
    %c0_445 = arith.constant 0 : index
    %621 = vector.load %arg3[%c37, %c0_445] : memref<44x16xf32, #tpu.memory_space<vmem>>, vector<1x16xf32>
    %c38 = arith.constant 38 : index
    %c0_446 = arith.constant 0 : index
    %622 = vector.load %arg3[%c38, %c0_446] : memref<44x16xf32, #tpu.memory_space<vmem>>, vector<1x16xf32>
    %cst_447 = arith.constant dense<0.000000e+00> : vector<16xf32>
    %623 = vector.multi_reduction <add>, %620, %cst_447 [0] : vector<64x16xf32> to vector<16xf32>
    %624 = vector.shape_cast %623 : vector<16xf32> to vector<1x16xf32>
    %cst_448 = arith.constant 6.400000e+01 : f32
    %625 = vector.broadcast %cst_448 : f32 to vector<1x16xf32>
    %626 = arith.divf %624, %625 : vector<1x16xf32>
    %627 = arith.mulf %620, %620 : vector<64x16xf32>
    %cst_449 = arith.constant dense<0.000000e+00> : vector<16xf32>
    %628 = vector.multi_reduction <add>, %627, %cst_449 [0] : vector<64x16xf32> to vector<16xf32>
    %629 = vector.shape_cast %628 : vector<16xf32> to vector<1x16xf32>
    %cst_450 = arith.constant 6.400000e+01 : f32
    %630 = vector.broadcast %cst_450 : f32 to vector<1x16xf32>
    %631 = arith.divf %629, %630 : vector<1x16xf32>
    %632 = arith.mulf %626, %626 : vector<1x16xf32>
    %633 = arith.subf %631, %632 : vector<1x16xf32>
    %cst_451 = arith.constant 9.99999974E-6 : f32
    %634 = vector.broadcast %cst_451 : f32 to vector<1x16xf32>
    %635 = arith.addf %633, %634 : vector<1x16xf32>
    %636 = math.rsqrt %635 : vector<1x16xf32>
    %637 = arith.mulf %621, %636 : vector<1x16xf32>
    %638 = arith.mulf %626, %637 : vector<1x16xf32>
    %639 = arith.subf %622, %638 : vector<1x16xf32>
    %640 = vector.broadcast %637 : vector<1x16xf32> to vector<64x16xf32>
    %641 = arith.mulf %620, %640 : vector<64x16xf32>
    %642 = vector.broadcast %639 : vector<1x16xf32> to vector<64x16xf32>
    %643 = arith.addf %641, %642 : vector<64x16xf32>
    %cst_452 = arith.constant 0.000000e+00 : f32
    %644 = vector.broadcast %cst_452 : f32 to vector<64x16xf32>
    %645 = arith.maximumf %643, %644 : vector<64x16xf32>
    %c584 = arith.constant 584 : index
    %c0_453 = arith.constant 0 : index
    %646 = vector.load %arg2[%c584, %c0_453] : memref<656x16xf32, #tpu.memory_space<vmem>>, vector<48x16xf32>
    %c35 = arith.constant 35 : index
    %c0_454 = arith.constant 0 : index
    %647 = vector.load %arg3[%c35, %c0_454] : memref<44x16xf32, #tpu.memory_space<vmem>>, vector<1x16xf32>
    %648 = vector.extract_strided_slice %645 {offsets = [0, 0], sizes = [32, 16], strides = [1, 1]} : vector<64x16xf32> to vector<32x16xf32>
    %c0_455 = arith.constant 0 : index
    %c8_456 = arith.constant 8 : index
    %c0_457 = arith.constant 0 : index
    %649 = vector.load %arg5[%c0_455, %c8_456, %c0_457] : memref<2x48x16xf32, #tpu.memory_space<vmem>>, vector<1x32x16xf32>
    %650 = vector.shape_cast %649 : vector<1x32x16xf32> to vector<32x16xf32>
    %651 = vector.shape_cast %648 : vector<32x16xf32> to vector<1x32x16xf32>
    tpu.vector_store %arg5[%c0_455, %c8_456, %c0_457], %651 {strides = array<i32>} : memref<2x48x16xf32, #tpu.memory_space<vmem>>, vector<1x32x16xf32>,
    %652 = vector.extract_strided_slice %645 {offsets = [32, 0], sizes = [32, 16], strides = [1, 1]} : vector<64x16xf32> to vector<32x16xf32>
    %c1_458 = arith.constant 1 : index
    %c8_459 = arith.constant 8 : index
    %c0_460 = arith.constant 0 : index
    %653 = vector.load %arg5[%c1_458, %c8_459, %c0_460] : memref<2x48x16xf32, #tpu.memory_space<vmem>>, vector<1x32x16xf32>
    %654 = vector.shape_cast %653 : vector<1x32x16xf32> to vector<32x16xf32>
    %655 = vector.shape_cast %652 : vector<32x16xf32> to vector<1x32x16xf32>
    tpu.vector_store %arg5[%c1_458, %c8_459, %c0_460], %655 {strides = array<i32>} : memref<2x48x16xf32, #tpu.memory_space<vmem>>, vector<1x32x16xf32>,
    %c0_461 = arith.constant 0 : index
    %c7_462 = arith.constant 7 : index
    %c0_463 = arith.constant 0 : index
    %656 = vector.load %arg5[%c0_461, %c7_462, %c0_463] : memref<2x48x16xf32, #tpu.memory_space<vmem>>, vector<1x32x16xf32>
    %657 = vector.shape_cast %656 : vector<1x32x16xf32> to vector<32x16xf32>
    %c0_464 = arith.constant 0 : index
    %c8_465 = arith.constant 8 : index
    %c0_466 = arith.constant 0 : index
    %658 = vector.load %arg5[%c0_464, %c8_465, %c0_466] : memref<2x48x16xf32, #tpu.memory_space<vmem>>, vector<1x32x16xf32>
    %659 = vector.shape_cast %658 : vector<1x32x16xf32> to vector<32x16xf32>
    %c0_467 = arith.constant 0 : index
    %c9_468 = arith.constant 9 : index
    %c0_469 = arith.constant 0 : index
    %660 = vector.load %arg5[%c0_467, %c9_468, %c0_469] : memref<2x48x16xf32, #tpu.memory_space<vmem>>, vector<1x32x16xf32>
    %661 = vector.shape_cast %660 : vector<1x32x16xf32> to vector<32x16xf32>
    %662 = tpu.concatenate %657, %659, %661 in 1 : vector<32x16xf32>, vector<32x16xf32>, vector<32x16xf32> -> vector<32x48xf32>
    %c1_470 = arith.constant 1 : index
    %c7_471 = arith.constant 7 : index
    %c0_472 = arith.constant 0 : index
    %663 = vector.load %arg5[%c1_470, %c7_471, %c0_472] : memref<2x48x16xf32, #tpu.memory_space<vmem>>, vector<1x32x16xf32>
    %664 = vector.shape_cast %663 : vector<1x32x16xf32> to vector<32x16xf32>
    %c1_473 = arith.constant 1 : index
    %c8_474 = arith.constant 8 : index
    %c0_475 = arith.constant 0 : index
    %665 = vector.load %arg5[%c1_473, %c8_474, %c0_475] : memref<2x48x16xf32, #tpu.memory_space<vmem>>, vector<1x32x16xf32>
    %666 = vector.shape_cast %665 : vector<1x32x16xf32> to vector<32x16xf32>
    %c1_476 = arith.constant 1 : index
    %c9_477 = arith.constant 9 : index
    %c0_478 = arith.constant 0 : index
    %667 = vector.load %arg5[%c1_476, %c9_477, %c0_478] : memref<2x48x16xf32, #tpu.memory_space<vmem>>, vector<1x32x16xf32>
    %668 = vector.shape_cast %667 : vector<1x32x16xf32> to vector<32x16xf32>
    %669 = tpu.concatenate %664, %666, %668 in 1 : vector<32x16xf32>, vector<32x16xf32>, vector<32x16xf32> -> vector<32x48xf32>
    %670 = tpu.concatenate %662, %669 in 0 : vector<32x48xf32>, vector<32x48xf32> -> vector<64x48xf32>
    %cst_479 = arith.constant dense<0.000000e+00> : vector<64x16xf32>
    %671 = tpu.matmul %670, %646, %cst_479 {dimension_numbers = #tpu.dot_dimension_numbers<[1], [0], [0], [1], [0, 0, 1, 1], [], []>} : vector<64x48xf32>, vector<48x16xf32>, vector<64x16xf32> -> vector<64x16xf32>
    %672 = vector.broadcast %647 : vector<1x16xf32> to vector<64x16xf32>
    %673 = arith.addf %671, %672 : vector<64x16xf32>
    %c632 = arith.constant 632 : index
    %c0_480 = arith.constant 0 : index
    %674 = vector.load %arg2[%c632, %c0_480] : memref<656x16xf32, #tpu.memory_space<vmem>>, vector<16x16xf32>
    %c36 = arith.constant 36 : index
    %c0_481 = arith.constant 0 : index
    %675 = vector.load %arg3[%c36, %c0_481] : memref<44x16xf32, #tpu.memory_space<vmem>>, vector<1x16xf32>
    %cst_482 = arith.constant dense<0.000000e+00> : vector<64x16xf32>
    %676 = tpu.matmul %592, %674, %cst_482 {dimension_numbers = #tpu.dot_dimension_numbers<[1], [0], [0], [1], [0, 0, 1, 1], [], []>} : vector<64x16xf32>, vector<16x16xf32>, vector<64x16xf32> -> vector<64x16xf32>
    %677 = vector.broadcast %675 : vector<1x16xf32> to vector<64x16xf32>
    %678 = arith.addf %676, %677 : vector<64x16xf32>
    %c41 = arith.constant 41 : index
    %c0_483 = arith.constant 0 : index
    %679 = vector.load %arg3[%c41, %c0_483] : memref<44x16xf32, #tpu.memory_space<vmem>>, vector<1x16xf32>
    %c42 = arith.constant 42 : index
    %c0_484 = arith.constant 0 : index
    %680 = vector.load %arg3[%c42, %c0_484] : memref<44x16xf32, #tpu.memory_space<vmem>>, vector<1x16xf32>
    %cst_485 = arith.constant dense<0.000000e+00> : vector<16xf32>
    %681 = vector.multi_reduction <add>, %678, %cst_485 [0] : vector<64x16xf32> to vector<16xf32>
    %682 = vector.shape_cast %681 : vector<16xf32> to vector<1x16xf32>
    %cst_486 = arith.constant 6.400000e+01 : f32
    %683 = vector.broadcast %cst_486 : f32 to vector<1x16xf32>
    %684 = arith.divf %682, %683 : vector<1x16xf32>
    %685 = arith.mulf %678, %678 : vector<64x16xf32>
    %cst_487 = arith.constant dense<0.000000e+00> : vector<16xf32>
    %686 = vector.multi_reduction <add>, %685, %cst_487 [0] : vector<64x16xf32> to vector<16xf32>
    %687 = vector.shape_cast %686 : vector<16xf32> to vector<1x16xf32>
    %cst_488 = arith.constant 6.400000e+01 : f32
    %688 = vector.broadcast %cst_488 : f32 to vector<1x16xf32>
    %689 = arith.divf %687, %688 : vector<1x16xf32>
    %690 = arith.mulf %684, %684 : vector<1x16xf32>
    %691 = arith.subf %689, %690 : vector<1x16xf32>
    %cst_489 = arith.constant 9.99999974E-6 : f32
    %692 = vector.broadcast %cst_489 : f32 to vector<1x16xf32>
    %693 = arith.addf %691, %692 : vector<1x16xf32>
    %694 = math.rsqrt %693 : vector<1x16xf32>
    %695 = arith.mulf %679, %694 : vector<1x16xf32>
    %696 = arith.mulf %684, %695 : vector<1x16xf32>
    %697 = arith.subf %680, %696 : vector<1x16xf32>
    %698 = vector.broadcast %695 : vector<1x16xf32> to vector<64x16xf32>
    %699 = arith.mulf %678, %698 : vector<64x16xf32>
    %700 = vector.broadcast %697 : vector<1x16xf32> to vector<64x16xf32>
    %701 = arith.addf %699, %700 : vector<64x16xf32>
    %c39 = arith.constant 39 : index
    %c0_490 = arith.constant 0 : index
    %702 = vector.load %arg3[%c39, %c0_490] : memref<44x16xf32, #tpu.memory_space<vmem>>, vector<1x16xf32>
    %c40 = arith.constant 40 : index
    %c0_491 = arith.constant 0 : index
    %703 = vector.load %arg3[%c40, %c0_491] : memref<44x16xf32, #tpu.memory_space<vmem>>, vector<1x16xf32>
    %cst_492 = arith.constant dense<0.000000e+00> : vector<16xf32>
    %704 = vector.multi_reduction <add>, %673, %cst_492 [0] : vector<64x16xf32> to vector<16xf32>
    %705 = vector.shape_cast %704 : vector<16xf32> to vector<1x16xf32>
    %cst_493 = arith.constant 6.400000e+01 : f32
    %706 = vector.broadcast %cst_493 : f32 to vector<1x16xf32>
    %707 = arith.divf %705, %706 : vector<1x16xf32>
    %708 = arith.mulf %673, %673 : vector<64x16xf32>
    %cst_494 = arith.constant dense<0.000000e+00> : vector<16xf32>
    %709 = vector.multi_reduction <add>, %708, %cst_494 [0] : vector<64x16xf32> to vector<16xf32>
    %710 = vector.shape_cast %709 : vector<16xf32> to vector<1x16xf32>
    %cst_495 = arith.constant 6.400000e+01 : f32
    %711 = vector.broadcast %cst_495 : f32 to vector<1x16xf32>
    %712 = arith.divf %710, %711 : vector<1x16xf32>
    %713 = arith.mulf %707, %707 : vector<1x16xf32>
    %714 = arith.subf %712, %713 : vector<1x16xf32>
    %cst_496 = arith.constant 9.99999974E-6 : f32
    %715 = vector.broadcast %cst_496 : f32 to vector<1x16xf32>
    %716 = arith.addf %714, %715 : vector<1x16xf32>
    %717 = math.rsqrt %716 : vector<1x16xf32>
    %718 = arith.mulf %702, %717 : vector<1x16xf32>
    %719 = arith.mulf %707, %718 : vector<1x16xf32>
    %720 = arith.subf %703, %719 : vector<1x16xf32>
    %721 = vector.broadcast %718 : vector<1x16xf32> to vector<64x16xf32>
    %722 = arith.mulf %673, %721 : vector<64x16xf32>
    %723 = vector.broadcast %720 : vector<1x16xf32> to vector<64x16xf32>
    %724 = arith.addf %722, %723 : vector<64x16xf32>
    %725 = arith.addf %701, %724 : vector<64x16xf32>
    %cst_497 = arith.constant 0.000000e+00 : f32
    %726 = vector.broadcast %cst_497 : f32 to vector<64x16xf32>
    %727 = arith.maximumf %725, %726 : vector<64x16xf32>
    %c648 = arith.constant 648 : index
    %c0_498 = arith.constant 0 : index
    %728 = vector.load %arg2[%c648, %c0_498] : memref<656x16xf32, #tpu.memory_space<vmem>>, vector<1x16xf32>
    %c43 = arith.constant 43 : index
    %c0_499 = arith.constant 0 : index
    %729 = vector.load %arg3[%c43, %c0_499] : memref<44x16xf32, #tpu.memory_space<vmem>>, vector<1x1xf32>
    %cst_500 = arith.constant dense<0.000000e+00> : vector<1x64xf32>
    %730 = tpu.matmul %728, %727, %cst_500 {dimension_numbers = #tpu.dot_dimension_numbers<[1], [1], [0], [0], [0, 0, 1, 0], [], []>} : vector<1x16xf32>, vector<64x16xf32>, vector<1x64xf32> -> vector<1x64xf32>
    %731 = vector.broadcast %729 : vector<1x1xf32> to vector<1x64xf32>
    %732 = arith.addf %730, %731 : vector<1x64xf32>
    %733 = vector.extract_strided_slice %732 {offsets = [0, 0], sizes = [1, 32], strides = [1, 1]} : vector<1x64xf32> to vector<1x32xf32>
    %c0_501 = arith.constant 0 : index
    %c0_502 = arith.constant 0 : index
    %c0_503 = arith.constant 0 : index
    %734 = vector.load %arg4[%c0_501, %c0_502, %c0_503] : memref<2x1x32xf32, #tpu.memory_space<vmem>>, vector<1x1x32xf32>
    %735 = vector.shape_cast %734 : vector<1x1x32xf32> to vector<1x32xf32>
    %736 = vector.shape_cast %733 : vector<1x32xf32> to vector<1x1x32xf32>
    tpu.vector_store %arg4[%c0_501, %c0_502, %c0_503], %736 {strides = array<i32>} : memref<2x1x32xf32, #tpu.memory_space<vmem>>, vector<1x1x32xf32>,
    %737 = vector.extract_strided_slice %732 {offsets = [0, 32], sizes = [1, 32], strides = [1, 1]} : vector<1x64xf32> to vector<1x32xf32>
    %c1_504 = arith.constant 1 : index
    %c0_505 = arith.constant 0 : index
    %c0_506 = arith.constant 0 : index
    %738 = vector.load %arg4[%c1_504, %c0_505, %c0_506] : memref<2x1x32xf32, #tpu.memory_space<vmem>>, vector<1x1x32xf32>
    %739 = vector.shape_cast %738 : vector<1x1x32xf32> to vector<1x32xf32>
    %740 = vector.shape_cast %737 : vector<1x32xf32> to vector<1x1x32xf32>
    tpu.vector_store %arg4[%c1_504, %c0_505, %c0_506], %740 {strides = array<i32>} : memref<2x1x32xf32, #tpu.memory_space<vmem>>, vector<1x1x32xf32>,
    return
  }
  func.func @transform_0(%arg0: i32) -> (i32, i32, i32) {
    %c0_i32 = arith.constant 0 : i32
    %c0_i32_0 = arith.constant 0 : i32
    %c0_i32_1 = arith.constant 0 : i32
    %c0_i32_2 = arith.constant 0 : i32
    return %c0_i32, %c0_i32_0, %c0_i32_1 : i32, i32, i32
  }
  func.func @transform_1(%arg0: i32) -> (i32, i32) {
    %c0_i32 = arith.constant 0 : i32
    %c0_i32_0 = arith.constant 0 : i32
    %c0_i32_1 = arith.constant 0 : i32
    return %c0_i32, %c0_i32_0 : i32, i32
  }
  func.func @transform_2(%arg0: i32) -> (i32, i32) {
    %c0_i32 = arith.constant 0 : i32
    %c0_i32_0 = arith.constant 0 : i32
    %c0_i32_1 = arith.constant 0 : i32
    return %c0_i32, %c0_i32_0 : i32, i32
  }
  func.func @transform_3(%arg0: i32) -> (i32, i32, i32) {
    %c0_i32 = arith.constant 0 : i32
    %c0_i32_0 = arith.constant 0 : i32
    %c0_i32_1 = arith.constant 0 : i32
    %c0_i32_2 = arith.constant 0 : i32
    return %c0_i32, %c0_i32_0, %c0_i32_1 : i32, i32, i32
  }
}

</mosaic_0001>

<bundles_post_ra>
// kernel: resnet_1d_edit_forward.1
= control target key start
LH: loop header
LB: loop body
LE: loop exit
PB: predicated region body
PF: predicated region fallthrough
CT: control target
= control target key end

     0   :  { %vm15_vm0 = vcmask 130048   ;;  %vm39_vm1 = vcmask 7168   ;;  %v6427_v3 = vmov 0.0   ;;  %s8606_s0 = inlined_call_operand.vmem [shape: f32[2,32,1], index: 0, kind: input, shape index: {}]   ;;  %s8607_s1 = inlined_call_operand.vmem [shape: f32[656,16], index: 1, kind: input, shape index: {}]   ;;  %s8608_s2 = inlined_call_operand.vmem [shape: f32[44,16], index: 2, kind: input, shape index: {}]   ;;  %s8609_s3 = inlined_call_operand.hbm [shape: f32[2,1,32], index: 3, kind: output, shape index: {}]  }
   0x1   :  { %v28_v0 = vld [vmem:[%s8606_s0] sm:$0xff]  ;;  %v29_v1 = vld [vmem:[%s8606_s0 + $0x8] sm:$0xff]  ;;  %v30_v2 = vld [vmem:[%s8606_s0 + $0x10] sm:$0xff]  ;;  %16 = vst.msk [vmem:[#allocation2] sm:$0xff] %vm15_vm0, %v6427_v3 }
   0x2   :  { %17 = vst.msk [vmem:[#allocation2 + $0x8] sm:$0xff] %vm15_vm0, %v6427_v3  ;;  %18 = vst.msk [vmem:[#allocation2 + $0x10] sm:$0xff] %vm15_vm0, %v6427_v3  ;;  %v31_v4 = vld [vmem:[%s8606_s0 + $0x18] sm:$0xff]  ;;  %v5398_v5 = vld [vmem:[%s8606_s0 + $0x30] sm:$0xff] }
   0x3   :  { %19 = vst.msk [vmem:[#allocation2 + $0x18] sm:$0xff] %vm15_vm0, %v6427_v3  ;;  %20 = vst.msk [vmem:[#allocation2 + $0x20] sm:$0xff] %vm15_vm0, %v6427_v3  ;;  %v5399_v6 = vld [vmem:[%s8606_s0 + $0x38] sm:$0xff]  ;;  %v5396_v7 = vld [vmem:[%s8606_s0 + $0x20] sm:$0xff] }
   0x4   :  { %25 = vst.msk [vmem:[#allocation2 + $0x48] sm:$0xff] %vm15_vm0, %v6427_v3  ;;  %26 = vst.msk [vmem:[#allocation2 + $0x50] sm:$0xff] %vm15_vm0, %v6427_v3  ;;  %v5397_v8 = vld [vmem:[%s8606_s0 + $0x28] sm:$0xff] }
   0x5   :  { %21 = vst.msk [vmem:[#allocation2 + $0x28] sm:$0xff] %vm15_vm0, %v6427_v3  ;;  %22 = vst.msk [vmem:[#allocation2 + $0x30] sm:$0xff] %vm15_vm0, %v6427_v3 }
   0x6   :  { %23 = vst.msk [vmem:[#allocation2 + $0x38] sm:$0xff] %vm15_vm0, %v6427_v3  ;;  %24 = vst.msk [vmem:[#allocation2 + $0x40] sm:$0xff] %vm15_vm0, %v6427_v3 }
   0x7   :  { %27 = vst.msk [vmem:[#allocation2 + $0x58] sm:$0xff] %vm15_vm0, %v6427_v3 }
   0x8   :  { %40 = vst.msk [vmem:[#allocation2 + $0x8] sm:$0xff] %vm39_vm1, %v28_v0  ;;  %41 = vst.msk [vmem:[#allocation2 + $0x10] sm:$0xff] %vm39_vm1, %v29_v1 }
   0x9   :  { %42 = vst.msk [vmem:[#allocation2 + $0x18] sm:$0xff] %vm39_vm1, %v30_v2  ;;  %43 = vst.msk [vmem:[#allocation2 + $0x20] sm:$0xff] %vm39_vm1, %v31_v4 }
   0xa   :  { %47 = vst.msk [vmem:[#allocation2 + $0x48] sm:$0xff] %vm39_vm1, %v5398_v5  ;;  %48 = vst.msk [vmem:[#allocation2 + $0x50] sm:$0xff] %vm39_vm1, %v5399_v6 }
   0xb   :  { %8 = vsyncpa [#allocation4], 0  ;;  %45 = vst.msk [vmem:[#allocation2 + $0x38] sm:$0xff] %vm39_vm1, %v5396_v7  ;;  %s6428_s28 = smov 2   ;;  %s6429_s29 = smov 1   ;;  %vm379_vm2 = vcmask 1046528  }
   0xc   :  { %46 = vst.msk [vmem:[#allocation2 + $0x40] sm:$0xff] %vm39_vm1, %v5397_v8  ;;  %s6430_s0 = smov 3   ;;  %s6431_s30 = smov 4   ;;  %v37_v20 = vld [vmem:[%s8607_s1] sm:$0x7f]  ;;  %vm177_vm3 = vcmask 15360   ;;  %vm6336_vm12 = vmpackc.low %vm15_vm0, %vm15_vm0 }
   0xd   :  { %s6432_s4 = smov 5   ;;  %5789 = vmatprep.subr.msk.mxu0 %vm379_vm2, %v37_v20  ;;  %s6433_s7 = smov 6   ;;  %vm182_vm4 = vcmask 23552   ;;  %vm187_vm5 = vcmask 31744   ;;  %vm192_vm6 = vcmask 39936   ;;  %vm197_vm7 = vcmask 48128  }
   0xe   :  { %5790 = vmatpush3.msk.msra.mxu0 %vm379_vm2, %v37_v20  ;;  %vm354_vm8 = vcmask 56320   ;;  %s6434_s26 = smov 16   ;;  %s6435_s27 = smov 32   ;;  %vm645_vm9 = vcmask 261120   ;;  %vm706_vm10 = vcmask 392192   ;;  %vm6437_vm11 = vmmov 0  }
   0xf   :  { %v57_v9 = vld [vmem:[#allocation2 + $0x7] sm:$0xff]  ;;  %v58_v10 = vld [vmem:[#allocation2 + $0xf] sm:$0xff]  ;;  %vm5372_vm13 = vcmask 253952   ;;  %s6439_s6 = smov 96  }
  0x10   :  { %97 = vrot.lane.b32.xlu1 %v57_v9, %s6428_s28  ;;  %v53_v11 = vld [vmem:[#allocation2 + $0x6] sm:$0xff]  ;;  %v54_v12 = vld [vmem:[#allocation2 + $0xe] sm:$0xff]  ;;  %v55_v15 = vld [vmem:[#allocation2 + $0x16] sm:$0xff] }
  0x11   :  { %81 = vrot.lane.b32.xlu0 %v53_v11, %s6429_s29  ;;  %v62_v13 = vld [vmem:[#allocation2 + $0x10] sm:$0xff]  ;;  %v61_v14 = vld [vmem:[#allocation2 + $0x8] sm:$0xff]  ;;  %v56_v21 = vld [vmem:[#allocation2 + $0x1e] sm:$0xff] }
  0x12   :  { %v65_v16 = vld [vmem:[#allocation2 + $0x9] sm:$0xff]  ;;  %v66_v18 = vld [vmem:[#allocation2 + $0x11] sm:$0xff]  ;;  %v60_v25 = vld [vmem:[#allocation2 + $0x1f] sm:$0xff] }
  0x13   :  { %v69_v17 = vld [vmem:[#allocation2 + $0xa] sm:$0xff]  ;;  %v59_v19 = vld [vmem:[#allocation2 + $0x17] sm:$0xff]  ;;  %v64_v26 = vld [vmem:[#allocation2 + $0x20] sm:$0xff] }
  0x14   :  { %99 = vrot.lane.b32.xlu1 %v58_v10, %s6428_s28  ;;  %v73_v22 = vld [vmem:[#allocation2 + $0xb] sm:$0xff]  ;;  %v63_v24 = vld [vmem:[#allocation2 + $0x18] sm:$0xff]  ;;  %v68_v28 = vld [vmem:[#allocation2 + $0x21] sm:$0xff] }
  0x15   :  { %83 = vrot.lane.b32.xlu0 %v54_v12, %s6429_s29  ;;  %v70_v23 = vld [vmem:[#allocation2 + $0x12] sm:$0xff]  ;;  %v71_v31 = vld [vmem:[#allocation2 + $0x1a] sm:$0xff]  ;;  %v72_v33 = vld [vmem:[#allocation2 + $0x22] sm:$0xff] }
  0x16   :  { %v74_v27 = vld [vmem:[#allocation2 + $0x13] sm:$0xff]  ;;  %v75_v32 = vld [vmem:[#allocation2 + $0x1b] sm:$0xff]  ;;  %v76_v37 = vld [vmem:[#allocation2 + $0x23] sm:$0xff] }
  0x17   :  { %v67_v29 = vld [vmem:[#allocation2 + $0x19] sm:$0xff]  ;;  %v208_v40 = vld [vmem:[#allocation2 + $0x46] sm:$0xff]  ;;  %v209_v45 = vld [vmem:[#allocation2 + $0x4e] sm:$0xff] }
  0x18   :  { %115 = vrot.lane.b32.xlu1 %v62_v13, %s6430_s0  ;;  %v206_v30 = vld [vmem:[#allocation2 + $0x36] sm:$0xff]  ;;  %v207_v35 = vld [vmem:[#allocation2 + $0x3e] sm:$0xff]  ;;  %v212_v44 = vld [vmem:[#allocation2 + $0x47] sm:$0xff] }
  0x19   :  { %113 = vrot.lane.b32.xlu0 %v61_v14, %s6430_s0  ;;  %v210_v34 = vld [vmem:[#allocation2 + $0x37] sm:$0xff]  ;;  %v211_v36 = vld [vmem:[#allocation2 + $0x3f] sm:$0xff]  ;;  %v216_v48 = vld [vmem:[#allocation2 + $0x48] sm:$0xff] }
  0x1a   :  { %v215_v38 = vld [vmem:[#allocation2 + $0x40] sm:$0xff]  ;;  %v214_v39 = vld [vmem:[#allocation2 + $0x38] sm:$0xff]  ;;  %v213_v49 = vld [vmem:[#allocation2 + $0x4f] sm:$0xff] }
  0x1b   :  { %v218_v41 = vld [vmem:[#allocation2 + $0x39] sm:$0xff]  ;;  %v219_v43 = vld [vmem:[#allocation2 + $0x41] sm:$0xff]  ;;  %v217_v50 = vld [vmem:[#allocation2 + $0x50] sm:$0xff] }
  0x1c   :  { %85 = vrot.lane.b32.xlu1 %v55_v15, %s6429_s29  ;;  %v222_v42 = vld [vmem:[#allocation2 + $0x3a] sm:$0xff]  ;;  %v223_v47 = vld [vmem:[#allocation2 + $0x42] sm:$0xff]  ;;  %v221_v52 = vld [vmem:[#allocation2 + $0x51] sm:$0xff] }
  0x1d   :  { %129 = vrot.lane.b32.xlu0 %v65_v16, %s6431_s30  ;;  %v226_v46 = vld [vmem:[#allocation2 + $0x3b] sm:$0xff]  ;;  %v227_v51 = vld [vmem:[#allocation2 + $0x43] sm:$0xff]  ;;  %v225_v54 = vld [vmem:[#allocation2 + $0x52] sm:$0xff] }
  0x1e   :  { %v220_v53 = vld [vmem:[#allocation2 + $0x49] sm:$0xff]  ;;  %v229_v56 = vld [vmem:[#allocation2 + $0x53] sm:$0xff] }
  0x1f   :  { %v224_v55 = vld [vmem:[#allocation2 + $0x4a] sm:$0xff] }
  0x20   :  { %145 = vrot.lane.b32.xlu1 %v69_v17, %s6432_s4  ;;  %v228_v57 = vld [vmem:[#allocation2 + $0x4b] sm:$0xff] }
  0x21   :  { %131 = vrot.lane.b32.xlu0 %v66_v18, %s6431_s30  ;;  %v49_v2 = vld [vmem:[#allocation2 + $0x5] sm:$0xff]  ;;  %v50_v14 = vld [vmem:[#allocation2 + $0xd] sm:$0xff] }
  0x24   :  { %101 = vrot.lane.b32.xlu1 %v59_v19, %s6428_s28 }
  0x25   :  { %87 = vrot.lane.b32.xlu0 %v56_v21, %s6429_s29 }
  0x28   :  { %161 = vrot.lane.b32.xlu1 %v73_v22, %s6433_s7 }
  0x29   :  { %147 = vrot.lane.b32.xlu0 %v70_v23, %s6432_s4 }
  0x2c   :  { %117 = vrot.lane.b32.xlu1 %v63_v24, %s6430_s0 }
  0x2d   :  { %103 = vrot.lane.b32.xlu0 %v60_v25, %s6428_s28 }
  0x30   :  { %119 = vrot.lane.b32.xlu1 %v64_v26, %s6430_s0 }
  0x31   :  { %163 = vrot.lane.b32.xlu0 %v74_v27, %s6433_s7 }
  0x34   :  { %135 = vrot.lane.b32.xlu1 %v68_v28, %s6431_s30  ;;  %v51_v28 = vld [vmem:[#allocation2 + $0x15] sm:$0xff] }
  0x35   :  { %133 = vrot.lane.b32.xlu0 %v67_v29, %s6431_s30 }
  0x38   :  { %234 = vrot.lane.b32.xlu1 %v206_v30, %s6429_s29 }
  0x39   :  { %149 = vrot.lane.b32.xlu0 %v71_v31, %s6432_s4 }
  0x3c   :  { %165 = vrot.lane.b32.xlu1 %v75_v32, %s6433_s7 }
  0x3d   :  { %151 = vrot.lane.b32.xlu0 %v72_v33, %s6432_s4 }
  0x40   :  { %250 = vrot.lane.b32.xlu1 %v210_v34, %s6428_s28 }
  0x41   :  { %236 = vrot.lane.b32.xlu0 %v207_v35, %s6429_s29 }
  0x44   :  { %252 = vrot.lane.b32.xlu1 %v211_v36, %s6428_s28 }
  0x45   :  { %167 = vrot.lane.b32.xlu0 %v76_v37, %s6433_s7 }
  0x48   :  { %268 = vrot.lane.b32.xlu1 %v215_v38, %s6430_s0 }
  0x49   :  { %266 = vrot.lane.b32.xlu0 %v214_v39, %s6430_s0 }
  0x4c   :  { %238 = vrot.lane.b32.xlu1 %v208_v40, %s6429_s29  ;;  %v52_v40 = vld [vmem:[#allocation2 + $0x1d] sm:$0xff] }
  0x4d   :  { %282 = vrot.lane.b32.xlu0 %v218_v41, %s6431_s30 }
  0x50   :  { %298 = vrot.lane.b32.xlu1 %v222_v42, %s6432_s4 }
  0x51   :  { %284 = vrot.lane.b32.xlu0 %v219_v43, %s6431_s30 }
  0x54   :  { %254 = vrot.lane.b32.xlu1 %v212_v44, %s6428_s28 }
  0x55   :  { %240 = vrot.lane.b32.xlu0 %v209_v45, %s6429_s29 }
  0x58   :  { %314 = vrot.lane.b32.xlu1 %v226_v46, %s6433_s7 }
  0x59   :  { %300 = vrot.lane.b32.xlu0 %v223_v47, %s6432_s4 }
  0x5c   :  { %270 = vrot.lane.b32.xlu1 %v216_v48, %s6430_s0 }
  0x5d   :  { %256 = vrot.lane.b32.xlu0 %v213_v49, %s6428_s28 }
  0x60   :  { %272 = vrot.lane.b32.xlu1 %v217_v50, %s6430_s0 }
  0x61   :  { %316 = vrot.lane.b32.xlu0 %v227_v51, %s6433_s7 }
  0x64   :  { %288 = vrot.lane.b32.xlu1 %v221_v52, %s6431_s30 }
  0x65   :  { %286 = vrot.lane.b32.xlu0 %v220_v53, %s6431_s30 }
  0x68   :  { %304 = vrot.lane.b32.xlu1 %v225_v54, %s6432_s4 }
  0x69   :  { %302 = vrot.lane.b32.xlu0 %v224_v55, %s6432_s4 }
  0x6c   :  { %320 = vrot.lane.b32.xlu1 %v229_v56, %s6433_s7  ;;  %v202_v56 = vld [vmem:[#allocation2 + $0x35] sm:$0xff] }
  0x6d   :  { %318 = vrot.lane.b32.xlu0 %v228_v57, %s6433_s7  ;;  %s6440_s7 = smov [#allocation3]  }
  0x6e   :  { %s5385_s8 = sshll.u32 %s6440_s7, 4  ;;  %s5386_s8 = int_to_ptr.vmem [resolvable:$true] %s5385_s8 }
  0x6f   :  { %s6403_s9 = scalar_lea.vmem %s5386_s8, 32  ;;  %p6408_p1 = scmp.lt.s32.totalorder %s5386_s8, %s5386_s8 }
  0x70   :  { %p6404_p0 = scmp.ne.s32.totalorder %s5386_s8, %s6403_s9  ;;  %p6409_p2 = scmp.lt.s32.totalorder %s6403_s9, %s6403_s9 }
  0x72   :  { %p6410_p3 = por %p6409_p2, %p6408_p1 }
  0x74   :  { %p6411_p4 = pnand %p6410_p3, %p6404_p0 }
  0x82   :  { %v98_v58 = vpop.permute.xlu1 %97 }
  0x83   :  { %v82_v59 = vpop.permute.xlu0 %81 }
  0x84   :  { %v173_v5 = vsel %vm39_vm1, %v49_v2, %v82_v59 }
  0x85   :  { %v178_v8 = vsel %vm177_vm3, %v173_v5, %v98_v58  ;;  %v203_v5 = vld [vmem:[#allocation2 + $0x3d] sm:$0xff] }
  0x86   :  { %v100_v60 = vpop.permute.xlu1 %99 }
  0x87   :  { %v84_v61 = vpop.permute.xlu0 %83 }
  0x88   :  { %v174_v17 = vsel %vm39_vm1, %v50_v14, %v84_v61 }
  0x89   :  { %v179_v20 = vsel %vm177_vm3, %v174_v17, %v100_v60  ;;  %v205_v17 = vld [vmem:[#allocation2 + $0x4d] sm:$0xff] }
  0x8a   :  { %v116_v62 = vpop.permute.xlu1 %115 }
  0x8b   :  { %v114_v63 = vpop.permute.xlu0 %113  ;;  %v184_v21 = vsel %vm182_vm4, %v179_v20, %v116_v62 }
  0x8c   :  { %v183_v9 = vsel %vm182_vm4, %v178_v8, %v114_v63 }
  0x8e   :  { %v86_v0 = vpop.permute.xlu1 %85 }
  0x8f   :  { %v130_v1 = vpop.permute.xlu0 %129  ;;  %v175_v30 = vsel %vm39_vm1, %v51_v28, %v86_v0 }
  0x90   :  { %v188_v11 = vsel %vm187_vm5, %v183_v9, %v130_v1 }
  0x92   :  { %v146_v4 = vpop.permute.xlu1 %145 }
  0x93   :  { %v132_v6 = vpop.permute.xlu0 %131  ;;  %v193_v12 = vsel %vm192_vm6, %v188_v11, %v146_v4 }
  0x94   :  { %v189_v23 = vsel %vm187_vm5, %v184_v21, %v132_v6 }
  0x96   :  { %v102_v7 = vpop.permute.xlu1 %101 }
  0x97   :  { %v88_v10 = vpop.permute.xlu0 %87  ;;  %v180_v32 = vsel %vm177_vm3, %v175_v30, %v102_v7 }
  0x98   :  { %v176_v42 = vsel %vm39_vm1, %v52_v40, %v88_v10 }
  0x9a   :  { %v162_v13 = vpop.permute.xlu1 %161 }
  0x9b   :  { %v198_v15 = vsel %vm197_vm7, %v193_v12, %v162_v13  ;;  %v148_v16 = vpop.permute.xlu0 %147 }
  0x9c   :  { %5791 = vmatprep.mubr.msk.f32.mxu0 %vm354_vm8, %v198_v15  ;;  %v194_v24 = vsel %vm192_vm6, %v189_v23, %v148_v16 }
  0x9e   :  { %v118_v18 = vpop.permute.xlu1 %117 }
  0x9f   :  { %v104_v19 = vpop.permute.xlu0 %103  ;;  %v185_v33 = vsel %vm182_vm4, %v180_v32, %v118_v18 }
  0xa0   :  { %v181_v44 = vsel %vm177_vm3, %v176_v42, %v104_v19  ;;  %v204_v19 = vld [vmem:[#allocation2 + $0x45] sm:$0xff] }
  0xa2   :  { %v120_v22 = vpop.permute.xlu1 %119 }
  0xa3   :  { %v164_v25 = vpop.permute.xlu0 %163  ;;  %v186_v45 = vsel %vm182_vm4, %v181_v44, %v120_v22 }
  0xa4   :  { %v199_v26 = vsel %vm197_vm7, %v194_v24, %v164_v25 }
  0xa5   :  { %5792 = vmatmul.mubr.msk.f32.vlgmr.msra.gmra.mrb[0].mxu0 %vm354_vm8, %v199_v26 }
  0xa6   :  { %v136_v27 = vpop.permute.xlu1 %135 }
  0xa7   :  { %v134_v29 = vpop.permute.xlu0 %133  ;;  %v191_v47 = vsel %vm187_vm5, %v186_v45, %v136_v27 }
  0xa8   :  { %v190_v35 = vsel %vm187_vm5, %v185_v33, %v134_v29 }
  0xaa   :  { %v235_v31 = vpop.permute.xlu1 %234 }
  0xab   :  { %v150_v34 = vpop.permute.xlu0 %149  ;;  %v326_v58 = vsel %vm39_vm1, %v202_v56, %v235_v31 }
  0xac   :  { %v195_v36 = vsel %vm192_vm6, %v190_v35, %v150_v34 }
  0xae   :  { %v166_v37 = vpop.permute.xlu1 %165 }
  0xaf   :  { %v200_v38 = vsel %vm197_vm7, %v195_v36, %v166_v37  ;;  %v152_v39 = vpop.permute.xlu0 %151  ;;  %v5400_v36 = vld [vmem:[%s8608_s2] ss:$0 sm:$0xff] }
  0xb0   :  { %5794 = vmatprep.mubr.msk.f32.mxu0 %vm354_vm8, %v200_v38  ;;  %v196_v48 = vsel %vm192_vm6, %v191_v47, %v152_v39 }
  0xb2   :  { %v251_v41 = vpop.permute.xlu1 %250 }
  0xb3   :  { %v237_v43 = vpop.permute.xlu0 %236  ;;  %v330_v60 = vsel %vm177_vm3, %v326_v58, %v251_v41 }
  0xb4   :  { %v327_v7 = vsel %vm39_vm1, %v203_v5, %v237_v43 }
  0xb6   :  { %v253_v46 = vpop.permute.xlu1 %252 }
  0xb7   :  { %v168_v49 = vpop.permute.xlu0 %167  ;;  %v331_v9 = vsel %vm177_vm3, %v327_v7, %v253_v46 }
  0xb8   :  { %v201_v50 = vsel %vm197_vm7, %v196_v48, %v168_v49 }
  0xb9   :  { %5795 = vmatmul.mubr.msk.f32.gmra.mrb[2].mxu0 %vm354_vm8, %v201_v50 }
  0xba   :  { %v269_v51 = vpop.permute.xlu1 %268 }
  0xbb   :  { %v267_v52 = vpop.permute.xlu0 %266  ;;  %v335_v10 = vsel %vm182_vm4, %v331_v9, %v269_v51 }
  0xbc   :  { %v334_v61 = vsel %vm182_vm4, %v330_v60, %v267_v52 }
  0xbe   :  { %v239_v53 = vpop.permute.xlu1 %238 }
  0xbf   :  { %v283_v54 = vpop.permute.xlu0 %282  ;;  %v328_v22 = vsel %vm39_vm1, %v204_v19, %v239_v53  ;;  %v582_v53 = vld [vmem:[%s8607_s1 + $0x8] sm:$0xff] }
  0xc0   :  { %v338_v63 = vsel %vm187_vm5, %v334_v61, %v283_v54  ;;  %v583_v54 = vld [vmem:[%s8607_s1 + $0x10] sm:$0xff] }
  0xc1   :  { %v6174_v56 = vpack.c.bf16 %v583_v54, %v582_v53 }
  0xc2   :  { %v299_v55 = vpop.permute.xlu1 %298 }
  0xc3   :  { %v285_v57 = vpop.permute.xlu0 %284  ;;  %v342_v0 = vsel %vm192_vm6, %v338_v63, %v299_v55  ;;  %v584_v55 = vld [vmem:[%s8607_s1 + $0x18] sm:$0xff]  ;;  %6175 = vmatprep.subr.bf16.mxu1 %v6174_v56 }
  0xc4   :  { %v339_v12 = vsel %vm187_vm5, %v335_v10, %v285_v57  ;;  %v585_v57 = vld [vmem:[%s8607_s1 + $0x20] sm:$0xff]  ;;  %6177 = vmatpush3.bf16.msra.mxu1 %v6174_v56 }
  0xc5   :  { %v6178_v61 = vpack.c.bf16 %v585_v57, %v584_v55  ;;  %v550_v55 = vlaneseq  ;;  %v488_v57 = vld [vmem:[%s8608_s2 + $0x1] sm:$0x1] }
  0xc6   :  { %v255_v59 = vpop.permute.xlu1 %254 }
  0xc7   :  { %v241_v62 = vpop.permute.xlu0 %240  ;;  %v332_v25 = vsel %vm177_vm3, %v328_v22, %v255_v59  ;;  %6179 = vmatprep.subr.bf16.mxu1 %v6178_v61  ;;  %v551_v56 = vshrl.u32 %v550_v55, 7 }
  0xc8   :  { %v329_v21 = vsel %vm39_vm1, %v205_v17, %v241_v62  ;;  %6181 = vmatpush3.bf16.msra.mxu1 %v6178_v61  ;;  %v489_v61 = vld [vmem:[%s8608_s2 + $0x2] sm:$0x1] }
  0xca   :  { %v315_v1 = vpop.permute.xlu1 %314 }
  0xcb   :  { %v346_v2 = vsel %vm197_vm7, %v342_v0, %v315_v1  ;;  %v301_v4 = vpop.permute.xlu0 %300 }
  0xcc   :  { %5797 = vmatprep.mubr.msk.f32.mxu0 %vm354_vm8, %v346_v2  ;;  %v343_v13 = vsel %vm192_vm6, %v339_v12, %v301_v4 }
  0xce   :  { %v271_v6 = vpop.permute.xlu1 %270 }
  0xcf   :  { %v257_v8 = vpop.permute.xlu0 %256  ;;  %v336_v27 = vsel %vm182_vm4, %v332_v25, %v271_v6 }
  0xd0   :  { %v333_v23 = vsel %vm177_vm3, %v329_v21, %v257_v8 }
  0xd2   :  { %v273_v11 = vpop.permute.xlu1 %272 }
  0xd3   :  { %v317_v14 = vpop.permute.xlu0 %316  ;;  %v337_v26 = vsel %vm182_vm4, %v333_v23, %v273_v11 }
  0xd4   :  { %v347_v15 = vsel %vm197_vm7, %v343_v13, %v317_v14 }
  0xd5   :  { %5798 = vmatmul.mubr.msk.f32.gmra.mrb[4].mxu0 %vm354_vm8, %v347_v15 }
  0xd6   :  { %v289_v16 = vpop.permute.xlu1 %288 }
  0xd7   :  { %v287_v18 = vpop.permute.xlu0 %286  ;;  %v341_v28 = vsel %vm187_vm5, %v337_v26, %v289_v16 }
  0xd8   :  { %v340_v30 = vsel %vm187_vm5, %v336_v27, %v287_v18 }
  0xda   :  { %v305_v20 = vpop.permute.xlu1 %304 }
  0xdb   :  { %v303_v24 = vpop.permute.xlu0 %302  ;;  %v345_v31 = vsel %vm192_vm6, %v341_v28, %v305_v20 }
  0xdc   :  { %v344_v32 = vsel %vm192_vm6, %v340_v30, %v303_v24 }
  0xde   :  { %v321_v29 = vpop.permute.xlu1 %320 }
  0xdf   :  { %v349_v33 = vsel %vm197_vm7, %v345_v31, %v321_v29  ;;  %v319_v34 = vpop.permute.xlu0 %318 }
  0xe0   :  { %v348_v35 = vsel %vm197_vm7, %v344_v32, %v319_v34 }
  0xe1   :  { %5800 = vmatprep.mubr.msk.f32.mxu0 %vm354_vm8, %v348_v35 }
  0xe2   :  { %5801 = vmatmul.mubr.msk.f32.gmra.mrb[6].mxu0 %vm354_vm8, %v349_v33 }
 0x178   :  { %v5793_v37 = vpop.f32.mrb[0].mxu0 }
 0x179   :  { %v6627_v38 = vadd.f32 %v5793_v37, %v5400_v36  ;;  %v449_v39 = vpop.f32.mrb[1].mxu0 }
 0x17a   :  { %v6629_v40 = vadd.f32 %v5400_v36, %v449_v39 }
 0x17b   :  { %v491_v41 = vsel %vm15_vm0, %v6627_v38, 0.0  ;;  %v514_v42 = vmul.f32 %v6627_v38, %v6627_v38 }
 0x17c   :  { %v490_v43 = vsel %vm15_vm0, %v6629_v40, 0.0  ;;  %v513_v44 = vmul.f32 %v6629_v40, %v6629_v40 }
 0x17d   :  { %v522_v45 = vsel %vm15_vm0, %v514_v42, 0.0  ;;  %v492_v46 = vadd.f32 %v491_v41, %v490_v43 }
 0x17e   :  { %v521_v47 = vsel %vm15_vm0, %v513_v44, 0.0 }
 0x17f   :  { %v523_v48 = vadd.f32 %v522_v45, %v521_v47 }
 0x18c   :  { %v5796_v49 = vpop.f32.mrb[2].mxu0 }
 0x18d   :  { %v6641_v50 = vadd.f32 %v5796_v49, %v5400_v36  ;;  %v459_v51 = vpop.f32.mrb[3].mxu0 }
 0x18e   :  { %v6643_v52 = vadd.f32 %v5400_v36, %v459_v51 }
 0x18f   :  { %v516_v58 = vmul.f32 %v6641_v50, %v6641_v50  ;;  %v495_v63 = vsel %vm15_vm0, %v6641_v50, 0.0 }
 0x190   :  { %v493_v59 = vsel %vm15_vm0, %v6643_v52, 0.0  ;;  %v515_v60 = vmul.f32 %v6643_v52, %v6643_v52 }
 0x191   :  { %v494_v62 = vadd.f32 %v493_v59, %v492_v46  ;;  %v526_v4 = vsel %vm15_vm0, %v516_v58, 0.0  ;;  %v6678_v58 = vsub.s32 0, %v551_v56 }
 0x192   :  { %v524_v0 = vsel %vm15_vm0, %v515_v60, 0.0 }
 0x193   :  { %v525_v1 = vadd.f32 %v524_v0, %v523_v48  ;;  %v496_v2 = vadd.f32 %v495_v63, %v494_v62 }
 0x195   :  { %v527_v5 = vadd.f32 %v526_v4, %v525_v1 }
 0x1a8   :  { %v5799_v6 = vpop.f32.mrb[4].mxu0 }
 0x1a9   :  { %v475_v7 = vadd.f32 %v5799_v6, %v5400_v36  ;;  %v469_v8 = vpop.f32.mrb[5].mxu0 }
 0x1aa   :  { %v470_v9 = vadd.f32 %v5400_v36, %v469_v8 }
 0x1ab   :  { %v518_v10 = vmul.f32 %v475_v7, %v475_v7  ;;  %v499_v14 = vsel %vm15_vm0, %v475_v7, 0.0 }
 0x1ac   :  { %v497_v11 = vsel %vm15_vm0, %v470_v9, 0.0  ;;  %v517_v12 = vmul.f32 %v470_v9, %v470_v9 }
 0x1ad   :  { %v498_v13 = vadd.f32 %v497_v11, %v496_v2  ;;  %v530_v18 = vsel %vm15_vm0, %v518_v10, 0.0 }
 0x1ae   :  { %v528_v15 = vsel %vm15_vm0, %v517_v12, 0.0 }
 0x1af   :  { %v529_v16 = vadd.f32 %v528_v15, %v527_v5  ;;  %v500_v17 = vadd.f32 %v499_v14, %v498_v13 }
 0x1b1   :  { %v531_v19 = vadd.f32 %v530_v18, %v529_v16 }
 0x1b5   :  { %v5802_v20 = vpop.f32.mrb[6].mxu0 }
 0x1b6   :  { %v485_v21 = vadd.f32 %v5802_v20, %v5400_v36  ;;  %v479_v22 = vpop.f32.mrb[7].mxu0 }
 0x1b7   :  { %v480_v23 = vadd.f32 %v5400_v36, %v479_v22 }
 0x1b8   :  { %v520_v24 = vmul.f32 %v485_v21, %v485_v21  ;;  %v503_v28 = vsel %vm15_vm0, %v485_v21, 0.0 }
 0x1b9   :  { %v501_v25 = vsel %vm15_vm0, %v480_v23, 0.0  ;;  %v519_v26 = vmul.f32 %v480_v23, %v480_v23 }
 0x1ba   :  { %v502_v27 = vadd.f32 %v501_v25, %v500_v17  ;;  %v534_v32 = vsel %vm15_vm0, %v520_v24, 0.0 }
 0x1bb   :  { %v532_v29 = vsel %vm15_vm0, %v519_v26, 0.0 }
 0x1bc   :  { %v504_v30 = vadd.f32 %v503_v28, %v502_v27  ;;  %v533_v31 = vadd.f32 %v532_v29, %v531_v19 }
 0x1be   :  { %v505_v33 = vrot.slane %v504_v30, 4  ;;  %v535_v34 = vadd.f32 %v534_v32, %v533_v31 }
 0x1c0   :  { %v506_v35 = vadd.f32 %v505_v33, %v504_v30  ;;  %v536_v37 = vrot.slane %v535_v34, 4 }
 0x1c2   :  { %v507_v39 = vrot.slane %v506_v35, 2  ;;  %v537_v41 = vadd.f32 %v536_v37, %v535_v34 }
 0x1c4   :  { %v508_v36 = vadd.f32 %v507_v39, %v506_v35  ;;  %v538_v42 = vrot.slane %v537_v41, 2 }
 0x1c6   :  { %v509_v43 = vrot.slane %v508_v36, 1  ;;  %v539_v44 = vadd.f32 %v538_v42, %v537_v41 }
 0x1c8   :  { %v510_v45 = vadd.f32 %v509_v43, %v508_v36  ;;  %v540_v46 = vrot.slane %v539_v44, 1 }
 0x1ca   :  { %v512_v47 = vmul.f32 0.015625, %v510_v45  ;;  %v541_v48 = vadd.f32 %v540_v46, %v539_v44 }
 0x1cc   :  { %v542_v49 = vmul.f32 0.015625, %v541_v48  ;;  %v543_v51 = vmul.f32 %v512_v47, %v512_v47 }
 0x1ce   :  { %v544_v53 = vsub.f32 %v542_v49, %v543_v51 }
 0x1d0   :  { %v545_v54 = vadd.f32 1e-05, %v544_v53 }
 0x1d2   :  { %6377 = vrsqrt.f32 %v545_v54 }
 0x1dc   :  { %v6378_v59 = vpop.eup %6377 }
 0x1dd   :  { %v547_v60 = vmul.f32 %v6378_v59, %v488_v57 }
 0x1df   :  { %v548_v62 = vmul.f32 %v547_v60, %v512_v47  ;;  %v553_v63 = vrot.slane %v547_v60, %v6678_v58 }
 0x1e1   :  { %v549_v0 = vsub.f32 %v489_v61, %v548_v62  ;;  %v554_v1 = vmul.f32 %v553_v63, %v6629_v40  ;;  %v555_v2 = vmul.f32 %v553_v63, %v6627_v38  ;;  %v556_v4 = vmul.f32 %v553_v63, %v6643_v52  ;;  %v586_v38 = vld [vmem:[%s8607_s1 + $0x28] sm:$0xff] }
 0x1e2   :  { %v557_v5 = vmul.f32 %v553_v63, %v6641_v50  ;;  %v558_v6 = vmul.f32 %v553_v63, %v470_v9  ;;  %v559_v8 = vmul.f32 %v553_v63, %v475_v7  ;;  %v560_v10 = vmul.f32 %v553_v63, %v480_v23  ;;  %v587_v50 = vld [vmem:[%s8607_s1 + $0x30] sm:$0xff] }
 0x1e3   :  { %v561_v11 = vmul.f32 %v553_v63, %v485_v21  ;;  %v565_v12 = vrot.slane %v549_v0, %v6678_v58  ;;  %v6182_v25 = vpack.c.bf16 %v587_v50, %v586_v38 }
 0x1e5   :  { %v566_v13 = vadd.f32 %v565_v12, %v554_v1  ;;  %v567_v14 = vadd.f32 %v565_v12, %v555_v2  ;;  %v568_v15 = vadd.f32 %v565_v12, %v556_v4  ;;  %v569_v16 = vadd.f32 %v565_v12, %v557_v5  ;;  %6183 = vmatprep.subr.bf16.mxu1 %v6182_v25 }
 0x1e6   :  { %v570_v17 = vadd.f32 %v565_v12, %v558_v6  ;;  %v571_v18 = vadd.f32 %v565_v12, %v559_v8  ;;  %v572_v19 = vadd.f32 %v565_v12, %v560_v10  ;;  %v573_v40 = vadd.f32 %v565_v12, %v561_v11  ;;  %6185 = vmatpush3.bf16.msra.mxu1 %v6182_v25 }
 0x1e7   :  { %v574_v52 = vmax.f32 %v566_v13, 0.0  ;;  %v575_v7 = vmax.f32 %v567_v14, 0.0  ;;  %v576_v9 = vmax.f32 %v568_v15, 0.0  ;;  %v577_v20 = vmax.f32 %v569_v16, 0.0 }
 0x1e8   :  { %v578_v21 = vmax.f32 %v570_v17, 0.0  ;;  %v579_v22 = vmax.f32 %v571_v18, 0.0  ;;  %v580_v23 = vmax.f32 %v572_v19, 0.0  ;;  %v581_v24 = vmax.f32 %v573_v40, 0.0 }
 0x1e9   :  { %589 = vst.msk [vmem:[#allocation2 + $0x8] sm:$0xff] %vm15_vm0, %v574_v52  ;;  %590 = vst.msk [vmem:[#allocation2 + $0x10] sm:$0xff] %vm15_vm0, %v575_v7 }
 0x1ea   :  { %591 = vst.msk [vmem:[#allocation2 + $0x18] sm:$0xff] %vm15_vm0, %v576_v9  ;;  %592 = vst.msk [vmem:[#allocation2 + $0x20] sm:$0xff] %vm15_vm0, %v577_v20  ;;  %v5410_v20 = vld [vmem:[%s8608_s2 + $0x3] ss:$0 sm:$0xff] }
 0x1eb   :  { %593 = vst.msk [vmem:[#allocation2 + $0x38] sm:$0xff] %vm15_vm0, %v578_v21  ;;  %594 = vst.msk [vmem:[#allocation2 + $0x40] sm:$0xff] %vm15_vm0, %v579_v22  ;;  %v836_v21 = vld [vmem:[%s8607_s1 + $0x38] sm:$0xff]  ;;  %v837_v22 = vld [vmem:[%s8607_s1 + $0x40] sm:$0xff] }
 0x1ec   :  { %595 = vst.msk [vmem:[#allocation2 + $0x48] sm:$0xff] %vm15_vm0, %v580_v23  ;;  %596 = vst.msk [vmem:[#allocation2 + $0x50] sm:$0xff] %vm15_vm0, %v581_v24  ;;  %v6186_v24 = vpack.c.bf16 %v837_v22, %v836_v21 }
 0x1ee   :  { %6187 = vmatprep.subr.bf16.mxu0 %v6186_v24 }
 0x1ef   :  { %6189 = vmatpush3.bf16.msra.mxu0 %v6186_v24 }
 0x1f0   :  { %v602_v26 = vld [vmem:[#allocation2 + $0x10] sm:$0xff]  ;;  %v601_v27 = vld [vmem:[#allocation2 + $0x8] sm:$0xff] }
 0x1f1   :  { %615 = vrot.lane.b32.xlu1 %v602_v26, %s6434_s26  ;;  %613 = vrot.lane.b32.xlu0 %v601_v27, %s6434_s26  ;;  %v606_v28 = vld [vmem:[#allocation2 + $0x11] sm:$0xff]  ;;  %v605_v29 = vld [vmem:[#allocation2 + $0x9] sm:$0xff]  ;;  %v604_v30 = vld [vmem:[#allocation2 + $0x20] sm:$0xff] }
 0x1f2   :  { %v603_v31 = vld [vmem:[#allocation2 + $0x18] sm:$0xff]  ;;  %v608_v32 = vld [vmem:[#allocation2 + $0x21] sm:$0xff]  ;;  %v598_v46 = vld [vmem:[#allocation2 + $0xf] sm:$0xff] }
 0x1f3   :  { %v607_v33 = vld [vmem:[#allocation2 + $0x19] sm:$0xff]  ;;  %v659_v37 = vld [vmem:[#allocation2 + $0x41] sm:$0xff]  ;;  %v657_v41 = vld [vmem:[#allocation2 + $0x50] sm:$0xff] }
 0x1f4   :  { %v655_v34 = vld [vmem:[#allocation2 + $0x40] sm:$0xff]  ;;  %v654_v35 = vld [vmem:[#allocation2 + $0x38] sm:$0xff]  ;;  %v656_v36 = vld [vmem:[#allocation2 + $0x48] sm:$0xff] }
 0x1f5   :  { %631 = vrot.lane.b32.xlu1 %v606_v28, %s6435_s27  ;;  %629 = vrot.lane.b32.xlu0 %v605_v29, %s6435_s27  ;;  %v658_v39 = vld [vmem:[#allocation2 + $0x39] sm:$0xff]  ;;  %v661_v42 = vld [vmem:[#allocation2 + $0x51] sm:$0xff]  ;;  %v660_v43 = vld [vmem:[#allocation2 + $0x49] sm:$0xff] }
 0x1f6   :  { %v597_v48 = vld [vmem:[#allocation2 + $0x7] sm:$0xff]  ;;  %v600_v59 = vld [vmem:[#allocation2 + $0x1f] sm:$0xff]  ;;  %v599_v60 = vld [vmem:[#allocation2 + $0x17] sm:$0xff] }
 0x1f7   :  { %v651_v6 = vld [vmem:[#allocation2 + $0x3f] sm:$0xff]  ;;  %v650_v10 = vld [vmem:[#allocation2 + $0x37] sm:$0xff]  ;;  %v653_v18 = vld [vmem:[#allocation2 + $0x4f] sm:$0xff] }
 0x1f8   :  { %v652_v19 = vld [vmem:[#allocation2 + $0x47] sm:$0xff]  ;;  %v839_v29 = vld [vmem:[%s8607_s1 + $0x50] sm:$0xff] }
 0x1f9   :  { %619 = vrot.lane.b32.xlu1 %v604_v30, %s6434_s26  ;;  %617 = vrot.lane.b32.xlu0 %v603_v31, %s6434_s26  ;;  %v838_v28 = vld [vmem:[%s8607_s1 + $0x48] sm:$0xff] }
 0x1fa   :  { %v6190_v31 = vpack.c.bf16 %v839_v29, %v838_v28 }
 0x1fc   :  { %6191 = vmatprep.subr.bf16.mxu0 %v6190_v31 }
 0x1fd   :  { %635 = vrot.lane.b32.xlu1 %v608_v32, %s6435_s27  ;;  %633 = vrot.lane.b32.xlu0 %v607_v33, %s6435_s27 }
 0x1fe   :  { %6193 = vmatpush3.bf16.msra.mxu0 %v6190_v31 }
 0x201   :  { %668 = vrot.lane.b32.xlu1 %v655_v34, %s6434_s26  ;;  %666 = vrot.lane.b32.xlu0 %v654_v35, %s6434_s26 }
 0x205   :  { %684 = vrot.lane.b32.xlu1 %v659_v37, %s6435_s27  ;;  %682 = vrot.lane.b32.xlu0 %v658_v39, %s6435_s27  ;;  %v840_v39 = vld [vmem:[%s8607_s1 + $0x58] sm:$0xff] }
 0x209   :  { %672 = vrot.lane.b32.xlu1 %v657_v41, %s6434_s26  ;;  %670 = vrot.lane.b32.xlu0 %v656_v36, %s6434_s26  ;;  %v841_v41 = vld [vmem:[%s8607_s1 + $0x60] sm:$0xff] }
 0x20a   :  { %v6194_v36 = vpack.c.bf16 %v841_v41, %v840_v39 }
 0x20c   :  { %6195 = vmatprep.subr.bf16.mxu0 %v6194_v36 }
 0x20d   :  { %688 = vrot.lane.b32.xlu1 %v661_v42, %s6435_s27  ;;  %686 = vrot.lane.b32.xlu0 %v660_v43, %s6435_s27 }
 0x20e   :  { %6197 = vmatpush3.bf16.msra.mxu0 %v6194_v36 }
 0x263   :  { %v616_v44 = vpop.permute.xlu1 %615  ;;  %v614_v45 = vpop.permute.xlu0 %613 }
 0x264   :  { %v642_v47 = vsel %vm15_vm0, %v598_v46, %v616_v44  ;;  %v641_v51 = vsel %vm15_vm0, %v597_v48, %v614_v45 }
 0x267   :  { %v632_v49 = vpop.permute.xlu1 %631  ;;  %v630_v54 = vpop.permute.xlu0 %629 }
 0x268   :  { %v647_v53 = vsel %vm645_vm9, %v642_v47, %v632_v49  ;;  %v646_v55 = vsel %vm645_vm9, %v641_v51, %v630_v54 }
 0x269   :  { %5815 = vmatprep.mubr.msk.f32.mxu1 %vm706_vm10, %v646_v55 }
 0x26a   :  { %5816 = vmatmul.mubr.msk.f32.vlgmr.msra.gmra.mrb[0].mxu1 %vm706_vm10, %v647_v53 }
 0x26b   :  { %v620_v56 = vpop.permute.xlu1 %619  ;;  %v618_v57 = vpop.permute.xlu0 %617 }
 0x26c   :  { %v644_v61 = vsel %vm15_vm0, %v600_v59, %v620_v56  ;;  %v643_v63 = vsel %vm15_vm0, %v599_v60, %v618_v57 }
 0x26f   :  { %v636_v62 = vpop.permute.xlu1 %635  ;;  %v634_v1 = vpop.permute.xlu0 %633 }
 0x270   :  { %v649_v0 = vsel %vm645_vm9, %v644_v61, %v636_v62  ;;  %v648_v2 = vsel %vm645_vm9, %v643_v63, %v634_v1 }
 0x271   :  { %5818 = vmatprep.mubr.msk.f32.mxu1 %vm706_vm10, %v648_v2 }
 0x272   :  { %5819 = vmatmul.mubr.msk.f32.gmra.mrb[2].mxu1 %vm706_vm10, %v649_v0 }
 0x273   :  { %v669_v4 = vpop.permute.xlu1 %668  ;;  %v667_v5 = vpop.permute.xlu0 %666 }
 0x274   :  { %v695_v8 = vsel %vm15_vm0, %v651_v6, %v669_v4  ;;  %v694_v12 = vsel %vm15_vm0, %v650_v10, %v667_v5 }
 0x277   :  { %v685_v11 = vpop.permute.xlu1 %684  ;;  %v683_v14 = vpop.permute.xlu0 %682 }
 0x278   :  { %v699_v13 = vsel %vm645_vm9, %v695_v8, %v685_v11  ;;  %v698_v15 = vsel %vm645_vm9, %v694_v12, %v683_v14 }
 0x279   :  { %5821 = vmatprep.mubr.msk.f32.mxu1 %vm706_vm10, %v698_v15 }
 0x27a   :  { %5822 = vmatmul.mubr.msk.f32.gmra.mrb[4].mxu1 %vm706_vm10, %v699_v13 }
 0x27b   :  { %v673_v16 = vpop.permute.xlu1 %672  ;;  %v671_v17 = vpop.permute.xlu0 %670 }
 0x27c   :  { %v697_v40 = vsel %vm15_vm0, %v653_v18, %v673_v16  ;;  %v696_v50 = vsel %vm15_vm0, %v652_v19, %v671_v17 }
 0x27f   :  { %v689_v38 = vpop.permute.xlu1 %688  ;;  %v687_v7 = vpop.permute.xlu0 %686 }
 0x280   :  { %v701_v52 = vsel %vm645_vm9, %v697_v40, %v689_v38  ;;  %v700_v9 = vsel %vm645_vm9, %v696_v50, %v687_v7 }
 0x281   :  { %5824 = vmatprep.mubr.msk.f32.mxu1 %vm706_vm10, %v700_v9 }
 0x282   :  { %5825 = vmatmul.mubr.msk.f32.gmra.mrb[6].mxu1 %vm706_vm10, %v701_v52 }
 0x33d   :  { %v5817_v23 = vpop.f32.mrb[0].mxu1 }
 0x33e   :  { %v6752_v25 = vadd.f32 %v5817_v23, %v5410_v20  ;;  %v797_v26 = vpop.f32.mrb[1].mxu1 }
 0x33f   :  { %v6754_v27 = vadd.f32 %v5410_v20, %v797_v26 }
 0x340   :  { %844 = vst.msk [vmem:[#allocation2 + $0x10] sm:$0xff] %vm15_vm0, %v6752_v25 }
 0x341   :  { %843 = vst.msk [vmem:[#allocation2 + $0x8] sm:$0xff] %vm15_vm0, %v6754_v27 }
 0x345   :  { %v5820_v30 = vpop.f32.mrb[2].mxu1 }
 0x346   :  { %v6766_v32 = vadd.f32 %v5820_v30, %v5410_v20  ;;  %v807_v33 = vpop.f32.mrb[3].mxu1 }
 0x347   :  { %v6768_v34 = vadd.f32 %v5410_v20, %v807_v33  ;;  %v856_v35 = vld [vmem:[#allocation2 + $0x10] sm:$0xff] }
 0x348   :  { %846 = vst.msk [vmem:[#allocation2 + $0x20] sm:$0xff] %vm15_vm0, %v6766_v32  ;;  %869 = vrot.lane.b32.xlu1 %v856_v35, %s6434_s26  ;;  %v855_v37 = vld [vmem:[#allocation2 + $0x8] sm:$0xff] }
 0x349   :  { %845 = vst.msk [vmem:[#allocation2 + $0x18] sm:$0xff] %vm15_vm0, %v6768_v34  ;;  %867 = vrot.lane.b32.xlu0 %v855_v37, %s6434_s26  ;;  %v859_v42 = vld [vmem:[#allocation2 + $0x9] sm:$0xff] }
 0x34a   :  { %v851_v6 = vld [vmem:[#allocation2 + $0x7] sm:$0xff]  ;;  %v852_v16 = vld [vmem:[#allocation2 + $0xf] sm:$0xff] }
 0x34d   :  { %v5823_v43 = vpop.f32.mrb[4].mxu1  ;;  %883 = vrot.lane.b32.xlu0 %v859_v42, %s6435_s27 }
 0x34e   :  { %v6783_v44 = vadd.f32 %v5823_v43, %v5410_v20  ;;  %v817_v45 = vpop.f32.mrb[5].mxu1 }
 0x34f   :  { %v6785_v46 = vadd.f32 %v5410_v20, %v817_v45  ;;  %v858_v47 = vld [vmem:[#allocation2 + $0x20] sm:$0xff] }
 0x350   :  { %848 = vst.msk [vmem:[#allocation2 + $0x40] sm:$0xff] %vm15_vm0, %v6783_v44  ;;  %873 = vrot.lane.b32.xlu1 %v858_v47, %s6434_s26  ;;  %v857_v48 = vld [vmem:[#allocation2 + $0x18] sm:$0xff]  ;;  %v862_v49 = vld [vmem:[#allocation2 + $0x21] sm:$0xff] }
 0x351   :  { %847 = vst.msk [vmem:[#allocation2 + $0x38] sm:$0xff] %vm15_vm0, %v6785_v46  ;;  %871 = vrot.lane.b32.xlu0 %v857_v48, %s6434_s26  ;;  %v861_v51 = vld [vmem:[#allocation2 + $0x19] sm:$0xff]  ;;  %v860_v56 = vld [vmem:[#allocation2 + $0x11] sm:$0xff]  ;;  %v1181_v48 = vld [vmem:[%s8607_s1 + $0x68] sm:$0xff] }
 0x352   :  { %v853_v17 = vld [vmem:[#allocation2 + $0x17] sm:$0xff]  ;;  %v854_v7 = vld [vmem:[#allocation2 + $0x1f] sm:$0xff] }
 0x354   :  { %889 = vrot.lane.b32.xlu1 %v862_v49, %s6435_s27  ;;  %v1182_v49 = vld [vmem:[%s8607_s1 + $0x70] sm:$0xff] }
 0x355   :  { %v5826_v53 = vpop.f32.mrb[6].mxu1  ;;  %887 = vrot.lane.b32.xlu0 %v861_v51, %s6435_s27  ;;  %v1183_v51 = vld [vmem:[%s8607_s1 + $0x78] sm:$0xff] }
 0x356   :  { %v6795_v54 = vadd.f32 %v5826_v53, %v5410_v20  ;;  %v827_v55 = vpop.f32.mrb[7].mxu1  ;;  %v6198_v53 = vpack.c.bf16 %v1182_v49, %v1181_v48 }
 0x357   :  { %v6797_v57 = vadd.f32 %v5410_v20, %v827_v55  ;;  %v908_v60 = vld [vmem:[#allocation2 + $0x40] sm:$0xff] }
 0x358   :  { %850 = vst.msk [vmem:[#allocation2 + $0x50] sm:$0xff] %vm15_vm0, %v6795_v54  ;;  %885 = vrot.lane.b32.xlu1 %v860_v56, %s6435_s27  ;;  %v907_v59 = vld [vmem:[#allocation2 + $0x38] sm:$0xff]  ;;  %v1184_v55 = vld [vmem:[%s8607_s1 + $0x80] sm:$0xff]  ;;  %6199 = vmatprep.subr.bf16.mxu0 %v6198_v53 }
 0x359   :  { %849 = vst.msk [vmem:[#allocation2 + $0x48] sm:$0xff] %vm15_vm0, %v6797_v57  ;;  %919 = vrot.lane.b32.xlu0 %v907_v59, %s6434_s26  ;;  %v911_v61 = vld [vmem:[#allocation2 + $0x39] sm:$0xff]  ;;  %v6202_v56 = vpack.c.bf16 %v1184_v55, %v1183_v51  ;;  %6350 = vmatprep.subr.bf16.mxu1 %v6198_v53  ;;  %v5419_v59 = vld [vmem:[%s8608_s2 + $0x4] ss:$0 sm:$0xff] }
 0x35a   :  { %v903_v20 = vld [vmem:[#allocation2 + $0x37] sm:$0xff]  ;;  %v904_v30 = vld [vmem:[#allocation2 + $0x3f] sm:$0xff]  ;;  %6353 = vmatpush3.bf16.msra.mxu1 %v6198_v53 }
 0x35b   :  { %6351 = vmatprep.subr.bf16.mxu1 %v6202_v56 }
 0x35c   :  { %921 = vrot.lane.b32.xlu1 %v908_v60, %s6434_s26 }
 0x35d   :  { %935 = vrot.lane.b32.xlu0 %v911_v61, %s6435_s27 }
 0x35e   :  { %6354 = vmatpush3.bf16.msra.mxu1 %v6202_v56 }
 0x35f   :  { %v910_v62 = vld [vmem:[#allocation2 + $0x50] sm:$0xff] }
 0x360   :  { %925 = vrot.lane.b32.xlu1 %v910_v62, %s6434_s26  ;;  %v909_v63 = vld [vmem:[#allocation2 + $0x48] sm:$0xff]  ;;  %v914_v2 = vld [vmem:[#allocation2 + $0x51] sm:$0xff] }
 0x361   :  { %923 = vrot.lane.b32.xlu0 %v909_v63, %s6434_s26  ;;  %v912_v0 = vld [vmem:[#allocation2 + $0x41] sm:$0xff]  ;;  %v913_v1 = vld [vmem:[#allocation2 + $0x49] sm:$0xff] }
 0x362   :  { %v905_v31 = vld [vmem:[#allocation2 + $0x47] sm:$0xff]  ;;  %v906_v42 = vld [vmem:[#allocation2 + $0x4f] sm:$0xff] }
 0x364   :  { %937 = vrot.lane.b32.xlu1 %v912_v0, %s6435_s27 }
 0x365   :  { %939 = vrot.lane.b32.xlu0 %v913_v1, %s6435_s27 }
 0x368   :  { %941 = vrot.lane.b32.xlu1 %v914_v2, %s6435_s27 }
 0x3ba   :  { %v870_v5 = vpop.permute.xlu1 %869 }
 0x3bb   :  { %v868_v4 = vpop.permute.xlu0 %867  ;;  %v896_v18 = vsel %vm15_vm0, %v852_v16, %v870_v5 }
 0x3bc   :  { %v895_v8 = vsel %vm15_vm0, %v851_v6, %v868_v4 }
 0x3bf   :  { %v884_v10 = vpop.permute.xlu0 %883 }
 0x3c0   :  { %v899_v11 = vsel %vm645_vm9, %v895_v8, %v884_v10 }
 0x3c1   :  { %5839 = vmatprep.mubr.msk.f32.mxu0 %vm706_vm10, %v899_v11 }
 0x3c2   :  { %v874_v12 = vpop.permute.xlu1 %873 }
 0x3c3   :  { %v872_v13 = vpop.permute.xlu0 %871  ;;  %v898_v9 = vsel %vm15_vm0, %v854_v7, %v874_v12 }
 0x3c4   :  { %v897_v40 = vsel %vm15_vm0, %v853_v17, %v872_v13 }
 0x3c6   :  { %v890_v14 = vpop.permute.xlu1 %889 }
 0x3c7   :  { %v888_v15 = vpop.permute.xlu0 %887  ;;  %v902_v22 = vsel %vm645_vm9, %v898_v9, %v890_v14 }
 0x3c8   :  { %v901_v52 = vsel %vm645_vm9, %v897_v40, %v888_v15 }
 0x3ca   :  { %v886_v19 = vpop.permute.xlu1 %885 }
 0x3cb   :  { %v900_v38 = vsel %vm645_vm9, %v896_v18, %v886_v19  ;;  %v920_v50 = vpop.permute.xlu0 %919 }
 0x3cc   :  { %5840 = vmatmul.mubr.msk.f32.vlgmr.msra.gmra.mrb[8].mxu0 %vm706_vm10, %v900_v38  ;;  %v947_v23 = vsel %vm15_vm0, %v903_v20, %v920_v50 }
 0x3cd   :  { %5842 = vmatprep.mubr.msk.f32.mxu0 %vm706_vm10, %v901_v52  ;;  %6201 = vmatpush3.bf16.msra.mxu0 %v6198_v53 }
 0x3ce   :  { %v922_v21 = vpop.permute.xlu1 %921  ;;  %6203 = vmatprep.subr.bf16.mxu0 %v6202_v56 }
 0x3cf   :  { %v936_v24 = vpop.permute.xlu0 %935  ;;  %v948_v33 = vsel %vm15_vm0, %v904_v30, %v922_v21 }
 0x3d0   :  { %v951_v26 = vsel %vm645_vm9, %v947_v23, %v936_v24  ;;  %5843 = vmatmul.mubr.msk.f32.gmra.mrb[10].mxu0 %vm706_vm10, %v902_v22 }
 0x3d1   :  { %5845 = vmatprep.mubr.msk.f32.mxu0 %vm706_vm10, %v951_v26  ;;  %6205 = vmatpush3.bf16.msra.mxu0 %v6202_v56 }
 0x3d2   :  { %v926_v28 = vpop.permute.xlu1 %925 }
 0x3d3   :  { %v924_v29 = vpop.permute.xlu0 %923  ;;  %v950_v43 = vsel %vm15_vm0, %v906_v42, %v926_v28 }
 0x3d4   :  { %v949_v37 = vsel %vm15_vm0, %v905_v31, %v924_v29 }
 0x3d6   :  { %v938_v35 = vpop.permute.xlu1 %937 }
 0x3d7   :  { %v952_v39 = vsel %vm645_vm9, %v948_v33, %v938_v35  ;;  %v940_v41 = vpop.permute.xlu0 %939 }
 0x3d8   :  { %v953_v36 = vsel %vm645_vm9, %v949_v37, %v940_v41  ;;  %5846 = vmatmul.mubr.msk.f32.gmra.mrb[12].mxu0 %vm706_vm10, %v952_v39 }
 0x3d9   :  { %5848 = vmatprep.mubr.msk.f32.mxu0 %vm706_vm10, %v953_v36 }
 0x3da   :  { %v942_v45 = vpop.permute.xlu1 %941 }
 0x3db   :  { %v954_v47 = vsel %vm645_vm9, %v950_v43, %v942_v45 }
 0x3dc   :  { %5849 = vmatmul.mubr.msk.f32.gmra.mrb[14].mxu0 %vm706_vm10, %v954_v47 }
 0x49f   :  { %v5841_v60 = vpop.f32.mrb[8].mxu0 }
 0x4a0   :  { %v6851_v61 = vadd.f32 %v5841_v60, %v5419_v59  ;;  %v1049_v62 = vpop.f32.mrb[9].mxu0 }
 0x4a1   :  { %v6853_v63 = vadd.f32 %v5419_v59, %v1049_v62 }
 0x4a2   :  { %v1091_v0 = vsel %vm15_vm0, %v6851_v61, 0.0  ;;  %v1113_v1 = vmul.f32 %v6851_v61, %v6851_v61 }
 0x4a3   :  { %v1090_v2 = vsel %vm15_vm0, %v6853_v63, 0.0  ;;  %v1112_v4 = vmul.f32 %v6853_v63, %v6853_v63  ;;  %v5844_v5 = vpop.f32.mrb[10].mxu0 }
 0x4a4   :  { %v1121_v6 = vsel %vm15_vm0, %v1113_v1, 0.0  ;;  %v1092_v8 = vadd.f32 %v1091_v0, %v1090_v2  ;;  %v6864_v10 = vadd.f32 %v5844_v5, %v5419_v59  ;;  %v1059_v11 = vpop.f32.mrb[11].mxu0 }
 0x4a5   :  { %v1120_v12 = vsel %vm15_vm0, %v1112_v4, 0.0  ;;  %v6867_v13 = vadd.f32 %v5419_v59, %v1059_v11 }
 0x4a6   :  { %v1122_v14 = vadd.f32 %v1121_v6, %v1120_v12  ;;  %v1115_v15 = vmul.f32 %v6864_v10, %v6864_v10  ;;  %v1095_v19 = vsel %vm15_vm0, %v6864_v10, 0.0 }
 0x4a7   :  { %v1093_v16 = vsel %vm15_vm0, %v6867_v13, 0.0  ;;  %v1114_v17 = vmul.f32 %v6867_v13, %v6867_v13 }
 0x4a8   :  { %v1094_v18 = vadd.f32 %v1093_v16, %v1092_v8  ;;  %v1125_v52 = vsel %vm15_vm0, %v1115_v15, 0.0 }
 0x4a9   :  { %v1123_v40 = vsel %vm15_vm0, %v1114_v17, 0.0 }
 0x4aa   :  { %v1124_v38 = vadd.f32 %v1123_v40, %v1122_v14  ;;  %v1096_v50 = vadd.f32 %v1095_v19, %v1094_v18  ;;  %v1088_v40 = vld [vmem:[%s8608_s2 + $0x7] sm:$0x1] }
 0x4ab   :  { %v5847_v7 = vpop.f32.mrb[12].mxu0 }
 0x4ac   :  { %v1075_v9 = vadd.f32 %v5847_v7, %v5419_v59  ;;  %v1069_v20 = vpop.f32.mrb[13].mxu0  ;;  %v1126_v21 = vadd.f32 %v1125_v52, %v1124_v38  ;;  %v1089_v52 = vld [vmem:[%s8608_s2 + $0x8] sm:$0x1] }
 0x4ad   :  { %v1070_v22 = vadd.f32 %v5419_v59, %v1069_v20 }
 0x4ae   :  { %v1117_v23 = vmul.f32 %v1075_v9, %v1075_v9  ;;  %v1099_v33 = vsel %vm15_vm0, %v1075_v9, 0.0 }
 0x4af   :  { %v1097_v24 = vsel %vm15_vm0, %v1070_v22, 0.0  ;;  %v1116_v26 = vmul.f32 %v1070_v22, %v1070_v22  ;;  %v5850_v28 = vpop.f32.mrb[14].mxu0 }
 0x4b0   :  { %v1098_v29 = vadd.f32 %v1097_v24, %v1096_v50  ;;  %v1085_v30 = vadd.f32 %v5850_v28, %v5419_v59  ;;  %v1079_v31 = vpop.f32.mrb[15].mxu0  ;;  %v1129_v36 = vsel %vm15_vm0, %v1117_v23, 0.0 }
 0x4b1   :  { %v1127_v35 = vsel %vm15_vm0, %v1116_v26, 0.0  ;;  %v1080_v37 = vadd.f32 %v5419_v59, %v1079_v31 }
 0x4b2   :  { %v1128_v39 = vadd.f32 %v1127_v35, %v1126_v21  ;;  %v1100_v41 = vadd.f32 %v1099_v33, %v1098_v29  ;;  %v1119_v42 = vmul.f32 %v1085_v30, %v1085_v30  ;;  %v1103_v49 = vsel %vm15_vm0, %v1085_v30, 0.0 }
 0x4b3   :  { %v1101_v43 = vsel %vm15_vm0, %v1080_v37, 0.0  ;;  %v1118_v45 = vmul.f32 %v1080_v37, %v1080_v37 }
 0x4b4   :  { %v1102_v47 = vadd.f32 %v1101_v43, %v1100_v41  ;;  %v1130_v48 = vadd.f32 %v1129_v36, %v1128_v39  ;;  %v1133_v56 = vsel %vm15_vm0, %v1119_v42, 0.0 }
 0x4b5   :  { %v1131_v51 = vsel %vm15_vm0, %v1118_v45, 0.0 }
 0x4b6   :  { %v1104_v53 = vadd.f32 %v1103_v49, %v1102_v47  ;;  %v1132_v55 = vadd.f32 %v1131_v51, %v1130_v48 }
 0x4b8   :  { %v1105_v60 = vrot.slane %v1104_v53, 4  ;;  %v1134_v59 = vadd.f32 %v1133_v56, %v1132_v55  ;;  %v1433_v56 = vld [vmem:[%s8607_s1 + $0x98] sm:$0xff] }
 0x4ba   :  { %v1106_v62 = vadd.f32 %v1105_v60, %v1104_v53  ;;  %v1135_v0 = vrot.slane %v1134_v59, 4  ;;  %v1434_v60 = vld [vmem:[%s8607_s1 + $0xa0] sm:$0xff] }
 0x4bc   :  { %v1107_v1 = vrot.slane %v1106_v62, 2  ;;  %v1136_v2 = vadd.f32 %v1135_v0, %v1134_v59  ;;  %v6210_v59 = vpack.c.bf16 %v1434_v60, %v1433_v56  ;;  %v1758_v60 = vld [vmem:[%s8607_s1 + $0xc0] sm:$0xff] }
 0x4be   :  { %v1108_v4 = vadd.f32 %v1107_v1, %v1106_v62  ;;  %v1137_v5 = vrot.slane %v1136_v2, 2 }
 0x4c0   :  { %v1109_v6 = vrot.slane %v1108_v4, 1  ;;  %v1138_v8 = vadd.f32 %v1137_v5, %v1136_v2 }
 0x4c2   :  { %v1110_v11 = vadd.f32 %v1109_v6, %v1108_v4  ;;  %v1139_v12 = vrot.slane %v1138_v8, 1 }
 0x4c4   :  { %v1111_v14 = vmul.f32 0.015625, %v1110_v11  ;;  %v1140_v15 = vadd.f32 %v1139_v12, %v1138_v8 }
 0x4c6   :  { %v1141_v16 = vmul.f32 0.015625, %v1140_v15  ;;  %v1142_v17 = vmul.f32 %v1111_v14, %v1111_v14 }
 0x4c8   :  { %v1143_v18 = vsub.f32 %v1141_v16, %v1142_v17 }
 0x4ca   :  { %v1144_v19 = vadd.f32 1e-05, %v1143_v18 }
 0x4cc   :  { %6379 = vrsqrt.f32 %v1144_v19 }
 0x4d6   :  { %v6380_v38 = vpop.eup %6379 }
 0x4d7   :  { %v1146_v50 = vmul.f32 %v6380_v38, %v1088_v40 }
 0x4d9   :  { %v1147_v7 = vmul.f32 %v1146_v50, %v1111_v14  ;;  %v1152_v20 = vrot.slane %v1146_v50, %v6678_v58 }
 0x4db   :  { %v1148_v21 = vsub.f32 %v1089_v52, %v1147_v7  ;;  %v1153_v23 = vmul.f32 %v1152_v20, %v6853_v63  ;;  %v1154_v24 = vmul.f32 %v1152_v20, %v6851_v61  ;;  %v1155_v26 = vmul.f32 %v1152_v20, %v6867_v13  ;;  %v1185_v61 = vld [vmem:[%s8607_s1 + $0x88] sm:$0xff] }
 0x4dc   :  { %v1156_v28 = vmul.f32 %v1152_v20, %v6864_v10  ;;  %v1157_v29 = vmul.f32 %v1152_v20, %v1070_v22  ;;  %v1158_v31 = vmul.f32 %v1152_v20, %v1075_v9  ;;  %v1159_v33 = vmul.f32 %v1152_v20, %v1080_v37  ;;  %v1186_v10 = vld [vmem:[%s8607_s1 + $0x90] sm:$0xff] }
 0x4dd   :  { %v1160_v35 = vmul.f32 %v1152_v20, %v1085_v30  ;;  %v1164_v39 = vrot.slane %v1148_v21, %v6678_v58  ;;  %v6206_v55 = vpack.c.bf16 %v1186_v10, %v1185_v61 }
 0x4df   :  { %v1165_v41 = vadd.f32 %v1164_v39, %v1153_v23  ;;  %v1166_v36 = vadd.f32 %v1164_v39, %v1154_v24  ;;  %v1167_v42 = vadd.f32 %v1164_v39, %v1155_v26  ;;  %v1168_v43 = vadd.f32 %v1164_v39, %v1156_v28  ;;  %6207 = vmatprep.subr.bf16.mxu0 %v6206_v55 }
 0x4e0   :  { %v1169_v45 = vadd.f32 %v1164_v39, %v1157_v29  ;;  %v1170_v47 = vadd.f32 %v1164_v39, %v1158_v31  ;;  %v1171_v48 = vadd.f32 %v1164_v39, %v1159_v33  ;;  %v1172_v63 = vadd.f32 %v1164_v39, %v1160_v35  ;;  %6352 = vmatprep.subr.bf16.mxu1 %v6206_v55 }
 0x4e1   :  { %v1173_v13 = vmax.f32 %v1165_v41, 0.0  ;;  %v1174_v9 = vmax.f32 %v1166_v36, 0.0  ;;  %v1175_v22 = vmax.f32 %v1167_v42, 0.0  ;;  %v1176_v30 = vmax.f32 %v1168_v43, 0.0  ;;  %6209 = vmatpush3.bf16.msra.mxu0 %v6206_v55  ;;  %6355 = vmatpush3.bf16.msra.mxu1 %v6206_v55  ;;  %v1757_v55 = vld [vmem:[%s8607_s1 + $0xb8] sm:$0xff] }
 0x4e2   :  { %v1177_v37 = vmax.f32 %v1169_v45, 0.0  ;;  %v1178_v49 = vmax.f32 %v1170_v47, 0.0  ;;  %v1179_v51 = vmax.f32 %v1171_v48, 0.0  ;;  %v1180_v53 = vmax.f32 %v1172_v63, 0.0  ;;  %6211 = vmatprep.subr.bf16.mxu0 %v6210_v59 }
 0x4e3   :  { %1188 = vst.msk [vmem:[#allocation2 + $0x8] sm:$0xff] %vm15_vm0, %v1173_v13  ;;  %1189 = vst.msk [vmem:[#allocation2 + $0x10] sm:$0xff] %vm15_vm0, %v1174_v9 }
 0x4e4   :  { %1190 = vst.msk [vmem:[#allocation2 + $0x18] sm:$0xff] %vm15_vm0, %v1175_v22  ;;  %1191 = vst.msk [vmem:[#allocation2 + $0x20] sm:$0xff] %vm15_vm0, %v1176_v30 }
 0x4e5   :  { %1192 = vst.msk [vmem:[#allocation2 + $0x38] sm:$0xff] %vm15_vm0, %v1177_v37  ;;  %1193 = vst.msk [vmem:[#allocation2 + $0x40] sm:$0xff] %vm15_vm0, %v1178_v49 }
 0x4e6   :  { %1194 = vst.msk [vmem:[#allocation2 + $0x48] sm:$0xff] %vm15_vm0, %v1179_v51  ;;  %1195 = vst.msk [vmem:[#allocation2 + $0x50] sm:$0xff] %vm15_vm0, %v1180_v53  ;;  %v1756_v53 = vld [vmem:[%s8607_s1 + $0xb0] sm:$0xff] }
 0x4ea   :  { %v1201_v62 = vld [vmem:[#allocation2 + $0x10] sm:$0xff]  ;;  %v1200_v0 = vld [vmem:[#allocation2 + $0x8] sm:$0xff] }
 0x4eb   :  { %1214 = vrot.lane.b32.xlu1 %v1201_v62, %s6434_s26  ;;  %1212 = vrot.lane.b32.xlu0 %v1200_v0, %s6434_s26  ;;  %v1205_v1 = vld [vmem:[#allocation2 + $0x11] sm:$0xff]  ;;  %v1204_v2 = vld [vmem:[#allocation2 + $0x9] sm:$0xff]  ;;  %v1203_v4 = vld [vmem:[#allocation2 + $0x20] sm:$0xff] }
 0x4ec   :  { %v1202_v5 = vld [vmem:[#allocation2 + $0x18] sm:$0xff]  ;;  %v1207_v6 = vld [vmem:[#allocation2 + $0x21] sm:$0xff]  ;;  %v1197_v50 = vld [vmem:[#allocation2 + $0xf] sm:$0xff] }
 0x4ed   :  { %v1206_v8 = vld [vmem:[#allocation2 + $0x19] sm:$0xff]  ;;  %v1257_v14 = vld [vmem:[#allocation2 + $0x41] sm:$0xff]  ;;  %v1255_v16 = vld [vmem:[#allocation2 + $0x50] sm:$0xff] }
 0x4ee   :  { %v1253_v11 = vld [vmem:[#allocation2 + $0x40] sm:$0xff]  ;;  %v1252_v12 = vld [vmem:[#allocation2 + $0x38] sm:$0xff]  ;;  %v1254_v17 = vld [vmem:[#allocation2 + $0x48] sm:$0xff] }
 0x4ef   :  { %1230 = vrot.lane.b32.xlu1 %v1205_v1, %s6435_s27  ;;  %1228 = vrot.lane.b32.xlu0 %v1204_v2, %s6435_s27  ;;  %v1256_v15 = vld [vmem:[#allocation2 + $0x39] sm:$0xff]  ;;  %v1259_v18 = vld [vmem:[#allocation2 + $0x51] sm:$0xff]  ;;  %v1258_v19 = vld [vmem:[#allocation2 + $0x49] sm:$0xff] }
 0x4f0   :  { %v1196_v7 = vld [vmem:[#allocation2 + $0x7] sm:$0xff]  ;;  %v1199_v31 = vld [vmem:[#allocation2 + $0x1f] sm:$0xff]  ;;  %v1198_v33 = vld [vmem:[#allocation2 + $0x17] sm:$0xff] }
 0x4f1   :  { %v1249_v45 = vld [vmem:[#allocation2 + $0x3f] sm:$0xff]  ;;  %v1248_v48 = vld [vmem:[#allocation2 + $0x37] sm:$0xff]  ;;  %v1251_v13 = vld [vmem:[#allocation2 + $0x4f] sm:$0xff] }
 0x4f2   :  { %v1250_v9 = vld [vmem:[#allocation2 + $0x47] sm:$0xff]  ;;  %v6990_v62 = vld [vmem:[%s8608_s2 + $0x5] ss:$0 sm:$0xff] }
 0x4f3   :  { %1218 = vrot.lane.b32.xlu1 %v1203_v4, %s6434_s26  ;;  %1216 = vrot.lane.b32.xlu0 %v1202_v5, %s6434_s26  ;;  %v7001_v5 = vld [vmem:[%s8608_s2 + $0x6] ss:$0 sm:$0xff] }
 0x4f7   :  { %1234 = vrot.lane.b32.xlu1 %v1207_v6, %s6435_s27  ;;  %1232 = vrot.lane.b32.xlu0 %v1206_v8, %s6435_s27 }
 0x4fb   :  { %1266 = vrot.lane.b32.xlu1 %v1253_v11, %s6434_s26  ;;  %1264 = vrot.lane.b32.xlu0 %v1252_v12, %s6434_s26 }
 0x4ff   :  { %1282 = vrot.lane.b32.xlu1 %v1257_v14, %s6435_s27  ;;  %1280 = vrot.lane.b32.xlu0 %v1256_v15, %s6435_s27 }
 0x503   :  { %1270 = vrot.lane.b32.xlu1 %v1255_v16, %s6434_s26  ;;  %1268 = vrot.lane.b32.xlu0 %v1254_v17, %s6434_s26 }
 0x507   :  { %1286 = vrot.lane.b32.xlu1 %v1259_v18, %s6435_s27  ;;  %1284 = vrot.lane.b32.xlu0 %v1258_v19, %s6435_s27 }
 0x55d   :  { %v1215_v40 = vpop.permute.xlu1 %1214  ;;  %v1213_v38 = vpop.permute.xlu0 %1212 }
 0x55e   :  { %v1241_v52 = vsel %vm15_vm0, %v1197_v50, %v1215_v40  ;;  %v1240_v21 = vsel %vm15_vm0, %v1196_v7, %v1213_v38 }
 0x561   :  { %v1231_v20 = vpop.permute.xlu1 %1230  ;;  %v1229_v24 = vpop.permute.xlu0 %1228 }
 0x562   :  { %v1245_v23 = vsel %vm645_vm9, %v1241_v52, %v1231_v20  ;;  %v1244_v26 = vsel %vm645_vm9, %v1240_v21, %v1229_v24 }
 0x563   :  { %5863 = vmatprep.mubr.msk.f32.mxu0 %vm706_vm10, %v1244_v26 }
 0x564   :  { %5864 = vmatmul.mubr.msk.f32.vlgmr.msra.gmra.mrb[16].mxu0 %vm706_vm10, %v1245_v23 }
 0x565   :  { %v1219_v28 = vpop.permute.xlu1 %1218  ;;  %v1217_v29 = vpop.permute.xlu0 %1216  ;;  %6213 = vmatpush3.bf16.msra.mxu0 %v6210_v59  ;;  %5879 = vmatprep.mubr.msk.f32.mxu0 %vm15_vm0, %v6754_v27  ;;  %v6218_v59 = vpack.c.bf16 %v1758_v60, %v1757_v55 }
 0x566   :  { %v1243_v35 = vsel %vm15_vm0, %v1199_v31, %v1219_v28  ;;  %v1242_v41 = vsel %vm15_vm0, %v1198_v33, %v1217_v29 }
 0x568   :  { %5880 = vmatmul.mubr.msk.f32.vlgmr.msra.gmra.mrb[18].mxu0 %vm15_vm0, %v6752_v25 }
 0x569   :  { %v1235_v39 = vpop.permute.xlu1 %1234  ;;  %v1233_v42 = vpop.permute.xlu0 %1232  ;;  %5882 = vmatprep.mubr.msk.f32.mxu0 %vm15_vm0, %v6768_v34 }
 0x56a   :  { %v1247_v36 = vsel %vm645_vm9, %v1243_v35, %v1235_v39  ;;  %v1246_v43 = vsel %vm645_vm9, %v1242_v41, %v1233_v42 }
 0x56b   :  { %5866 = vmatprep.mubr.msk.f32.mxu1 %vm706_vm10, %v1246_v43 }
 0x56c   :  { %5867 = vmatmul.mubr.msk.f32.vlgmr.msra.gmra.mrb[8].mxu1 %vm706_vm10, %v1247_v36  ;;  %5883 = vmatmul.mubr.msk.f32.gmra.mrb[20].mxu0 %vm15_vm0, %v6766_v32 }
 0x56d   :  { %v1267_v27 = vpop.permute.xlu1 %1266  ;;  %v1265_v25 = vpop.permute.xlu0 %1264  ;;  %5885 = vmatprep.mubr.msk.f32.mxu0 %vm15_vm0, %v6785_v46 }
 0x56e   :  { %v1293_v47 = vsel %vm15_vm0, %v1249_v45, %v1267_v27  ;;  %v1292_v63 = vsel %vm15_vm0, %v1248_v48, %v1265_v25 }
 0x570   :  { %5886 = vmatmul.mubr.msk.f32.gmra.mrb[22].mxu0 %vm15_vm0, %v6783_v44 }
 0x571   :  { %v1283_v34 = vpop.permute.xlu1 %1282  ;;  %v1281_v10 = vpop.permute.xlu0 %1280  ;;  %5888 = vmatprep.mubr.msk.f32.mxu0 %vm15_vm0, %v6797_v57 }
 0x572   :  { %v1297_v61 = vsel %vm645_vm9, %v1293_v47, %v1283_v34  ;;  %v1296_v32 = vsel %vm645_vm9, %v1292_v63, %v1281_v10 }
 0x573   :  { %5869 = vmatprep.mubr.msk.f32.mxu1 %vm706_vm10, %v1296_v32 }
 0x574   :  { %5870 = vmatmul.mubr.msk.f32.gmra.mrb[10].mxu1 %vm706_vm10, %v1297_v61  ;;  %5889 = vmatmul.mubr.msk.f32.gmra.mrb[24].mxu0 %vm15_vm0, %v6795_v54  ;;  %v1755_v54 = vld [vmem:[%s8607_s1 + $0xa8] sm:$0xff] }
 0x575   :  { %v1271_v46 = vpop.permute.xlu1 %1270  ;;  %v1269_v44 = vpop.permute.xlu0 %1268  ;;  %v6214_v56 = vpack.c.bf16 %v1756_v53, %v1755_v54 }
 0x576   :  { %v1295_v22 = vsel %vm15_vm0, %v1251_v13, %v1271_v46  ;;  %v1294_v37 = vsel %vm15_vm0, %v1250_v9, %v1269_v44 }
 0x577   :  { %6215 = vmatprep.subr.bf16.mxu1 %v6214_v56 }
 0x578   :  { %6217 = vmatpush3.bf16.msra.mxu1 %v6214_v56 }
 0x579   :  { %v1287_v30 = vpop.permute.xlu1 %1286  ;;  %v1285_v49 = vpop.permute.xlu0 %1284  ;;  %6219 = vmatprep.subr.bf16.mxu1 %v6218_v59 }
 0x57a   :  { %v1299_v57 = vsel %vm645_vm9, %v1295_v22, %v1287_v30  ;;  %v1298_v51 = vsel %vm645_vm9, %v1294_v37, %v1285_v49 }
 0x57b   :  { %5872 = vmatprep.mubr.msk.f32.mxu1 %vm706_vm10, %v1298_v51 }
 0x57c   :  { %5873 = vmatmul.mubr.msk.f32.gmra.mrb[12].mxu1 %vm706_vm10, %v1299_v57 }
 0x57d   :  { %6221 = vmatpush3.bf16.msra.mxu1 %v6218_v59 }
 0x637   :  { %v5865_v0 = vpop.f32.mrb[16].mxu0 }
 0x638   :  { %v6993_v1 = vadd.f32 %v5865_v0, %v6990_v62  ;;  %v1394_v2 = vpop.f32.mrb[17].mxu0 }
 0x639   :  { %v6996_v4 = vadd.f32 %v6990_v62, %v1394_v2 }
 0x63a   :  { %v1657_v6 = vsel %vm15_vm0, %v6993_v1, 0.0  ;;  %v1679_v8 = vmul.f32 %v6993_v1, %v6993_v1 }
 0x63b   :  { %v1656_v11 = vsel %vm15_vm0, %v6996_v4, 0.0  ;;  %v1678_v12 = vmul.f32 %v6996_v4, %v6996_v4  ;;  %v5881_v14 = vpop.f32.mrb[18].mxu0 }
 0x63c   :  { %v1687_v15 = vsel %vm15_vm0, %v1679_v8, 0.0  ;;  %v1658_v16 = vadd.f32 %v1657_v6, %v1656_v11  ;;  %v7013_v17 = vadd.f32 %v5881_v14, %v7001_v5  ;;  %v1530_v18 = vpop.f32.mrb[19].mxu0 }
 0x63d   :  { %v1686_v19 = vsel %vm15_vm0, %v1678_v12, 0.0  ;;  %v7017_v40 = vadd.f32 %v7001_v5, %v1530_v18 }
 0x63e   :  { %v1688_v38 = vadd.f32 %v1687_v15, %v1686_v19  ;;  %v1572_v50 = vsel %vm15_vm0, %v7013_v17, 0.0  ;;  %v1594_v52 = vmul.f32 %v7013_v17, %v7013_v17 }
 0x63f   :  { %v1571_v7 = vsel %vm15_vm0, %v7017_v40, 0.0  ;;  %v1593_v20 = vmul.f32 %v7017_v40, %v7017_v40  ;;  %v5868_v21 = vpop.f32.mrb[8].mxu1  ;;  %v5884_v23 = vpop.f32.mrb[20].mxu0 }
 0x640   :  { %v1602_v24 = vsel %vm15_vm0, %v1594_v52, 0.0  ;;  %v1573_v26 = vadd.f32 %v1572_v50, %v1571_v7  ;;  %v7029_v28 = vadd.f32 %v5868_v21, %v6990_v62  ;;  %v7032_v29 = vadd.f32 %v5884_v23, %v7001_v5  ;;  %v1404_v31 = vpop.f32.mrb[9].mxu1  ;;  %v1540_v33 = vpop.f32.mrb[21].mxu0 }
 0x641   :  { %v1601_v35 = vsel %vm15_vm0, %v1593_v20, 0.0  ;;  %v7036_v39 = vadd.f32 %v6990_v62, %v1404_v31  ;;  %v7039_v41 = vadd.f32 %v7001_v5, %v1540_v33 }
 0x642   :  { %v1603_v36 = vadd.f32 %v1602_v24, %v1601_v35  ;;  %v1681_v42 = vmul.f32 %v7029_v28, %v7029_v28  ;;  %v1596_v43 = vmul.f32 %v7032_v29, %v7032_v29  ;;  %v1661_v48 = vsel %vm15_vm0, %v7029_v28, 0.0 }
 0x643   :  { %v1659_v27 = vsel %vm15_vm0, %v7036_v39, 0.0  ;;  %v1680_v25 = vmul.f32 %v7036_v39, %v7036_v39  ;;  %v1574_v45 = vsel %vm15_vm0, %v7039_v41, 0.0  ;;  %v5887_v47 = vpop.f32.mrb[22].mxu0  ;;  %v1595_v61 = vmul.f32 %v7039_v41, %v7039_v41 }
 0x644   :  { %v1660_v34 = vadd.f32 %v1659_v27, %v1658_v16  ;;  %v1575_v63 = vadd.f32 %v1574_v45, %v1573_v26  ;;  %v1550_v10 = vpop.f32.mrb[23].mxu0  ;;  %v1576_v32 = vsel %vm15_vm0, %v7032_v29, 0.0  ;;  %v7059_v44 = vadd.f32 %v5887_v47, %v7001_v5 }
 0x645   :  { %v1689_v46 = vsel %vm15_vm0, %v1680_v25, 0.0  ;;  %v7062_v13 = vadd.f32 %v7001_v5, %v1550_v10  ;;  %v1604_v22 = vsel %vm15_vm0, %v1595_v61, 0.0  ;;  %v1691_v57 = vsel %vm15_vm0, %v1681_v42, 0.0 }
 0x646   :  { %v1690_v9 = vadd.f32 %v1689_v46, %v1688_v38  ;;  %v1577_v30 = vadd.f32 %v1576_v32, %v1575_v63  ;;  %v1662_v37 = vadd.f32 %v1661_v48, %v1660_v34  ;;  %v1606_v49 = vsel %vm15_vm0, %v1596_v43, 0.0 }
 0x647   :  { %v1605_v51 = vadd.f32 %v1604_v22, %v1603_v36  ;;  %v1578_v54 = vsel %vm15_vm0, %v7062_v13, 0.0  ;;  %v5871_v53 = vpop.f32.mrb[10].mxu1  ;;  %v5890_v55 = vpop.f32.mrb[24].mxu0  ;;  %v1598_v56 = vmul.f32 %v7059_v44, %v7059_v44  ;;  %v1597_v59 = vmul.f32 %v7062_v13, %v7062_v13 }
 0x648   :  { %v1579_v60 = vadd.f32 %v1578_v54, %v1577_v30  ;;  %v7074_v0 = vadd.f32 %v5871_v53, %v6990_v62  ;;  %v1414_v2 = vpop.f32.mrb[11].mxu1  ;;  %v1560_v6 = vpop.f32.mrb[25].mxu0  ;;  %v7077_v11 = vadd.f32 %v5890_v55, %v7001_v5  ;;  %v1692_v14 = vadd.f32 %v1691_v57, %v1690_v9 }
 0x649   :  { %v1607_v8 = vadd.f32 %v1606_v49, %v1605_v51  ;;  %v7080_v12 = vadd.f32 %v6990_v62, %v1414_v2  ;;  %v1580_v15 = vsel %vm15_vm0, %v7059_v44, 0.0  ;;  %v1608_v16 = vsel %vm15_vm0, %v1597_v59, 0.0 }
 0x64a   :  { %v1683_v19 = vmul.f32 %v7074_v0, %v7074_v0  ;;  %v1610_v52 = vsel %vm15_vm0, %v1598_v56, 0.0  ;;  %v7093_v20 = vadd.f32 %v7001_v5, %v1560_v6  ;;  %v1581_v21 = vadd.f32 %v1580_v15, %v1579_v60 }
 0x64b   :  { %v1609_v18 = vadd.f32 %v1608_v16, %v1607_v8  ;;  %v1663_v38 = vsel %vm15_vm0, %v7080_v12, 0.0  ;;  %v1682_v50 = vmul.f32 %v7080_v12, %v7080_v12  ;;  %v1665_v23 = vsel %vm15_vm0, %v7074_v0, 0.0 }
 0x64c   :  { %v1664_v7 = vadd.f32 %v1663_v38, %v1662_v37  ;;  %v1600_v24 = vmul.f32 %v7077_v11, %v7077_v11  ;;  %v1582_v35 = vsel %vm15_vm0, %v7093_v20, 0.0  ;;  %v1599_v36 = vmul.f32 %v7093_v20, %v7093_v20 }
 0x64d   :  { %v1693_v26 = vsel %vm15_vm0, %v1682_v50, 0.0  ;;  %v1611_v31 = vadd.f32 %v1610_v52, %v1609_v18  ;;  %v1695_v5 = vsel %vm15_vm0, %v1683_v19, 0.0  ;;  %v1583_v43 = vadd.f32 %v1582_v35, %v1581_v21 }
 0x64e   :  { %v1694_v33 = vadd.f32 %v1693_v26, %v1692_v14  ;;  %v1666_v42 = vadd.f32 %v1665_v23, %v1664_v7  ;;  %v1584_v25 = vsel %vm15_vm0, %v7077_v11, 0.0  ;;  %v1612_v45 = vsel %vm15_vm0, %v1599_v36, 0.0 }
 0x64f   :  { %v5874_v27 = vpop.f32.mrb[12].mxu1  ;;  %v1585_v63 = vadd.f32 %v1584_v25, %v1583_v43  ;;  %v1613_v61 = vadd.f32 %v1612_v45, %v1611_v31  ;;  %v1614_v32 = vsel %vm15_vm0, %v1600_v24, 0.0 }
 0x650   :  { %v7109_v47 = vadd.f32 %v5874_v27, %v6990_v62  ;;  %v1424_v48 = vpop.f32.mrb[13].mxu1  ;;  %v1696_v34 = vadd.f32 %v1695_v5, %v1694_v33 }
 0x651   :  { %v7112_v10 = vadd.f32 %v6990_v62, %v1424_v48  ;;  %v1586_v9 = vrot.slane %v1585_v63, 4  ;;  %v1615_v22 = vadd.f32 %v1614_v32, %v1613_v61  ;;  %v1569_v32 = vld [vmem:[%s8608_s2 + $0xb] sm:$0x1] }
 0x652   :  { %v1685_v46 = vmul.f32 %v7109_v47, %v7109_v47  ;;  %v1669_v62 = vsel %vm15_vm0, %v7109_v47, 0.0 }
 0x653   :  { %v1667_v30 = vsel %vm15_vm0, %v7112_v10, 0.0  ;;  %v1684_v37 = vmul.f32 %v7112_v10, %v7112_v10  ;;  %v1587_v49 = vadd.f32 %v1586_v9, %v1585_v63  ;;  %v1616_v51 = vrot.slane %v1615_v22, 4 }
 0x654   :  { %v1668_v57 = vadd.f32 %v1667_v30, %v1666_v42  ;;  %v1699_v59 = vsel %vm15_vm0, %v1685_v46, 0.0 }
 0x655   :  { %v1697_v54 = vsel %vm15_vm0, %v1684_v37, 0.0  ;;  %v1588_v56 = vrot.slane %v1587_v49, 2  ;;  %v1617_v60 = vadd.f32 %v1616_v51, %v1615_v22  ;;  %v1570_v22 = vld [vmem:[%s8608_s2 + $0xc] sm:$0x1] }
 0x656   :  { %v1670_v53 = vadd.f32 %v1669_v62, %v1668_v57  ;;  %v1698_v55 = vadd.f32 %v1697_v54, %v1696_v34  ;;  %v1654_v57 = vld [vmem:[%s8608_s2 + $0x9] sm:$0x1] }
 0x657   :  { %v1589_v8 = vadd.f32 %v1588_v56, %v1587_v49  ;;  %v1618_v14 = vrot.slane %v1617_v60, 2 }
 0x658   :  { %v1671_v2 = vrot.slane %v1670_v53, 4  ;;  %v1700_v6 = vadd.f32 %v1699_v59, %v1698_v55 }
 0x659   :  { %v1590_v18 = vrot.slane %v1589_v8, 1  ;;  %v1619_v19 = vadd.f32 %v1618_v14, %v1617_v60 }
 0x65a   :  { %v1672_v15 = vadd.f32 %v1671_v2, %v1670_v53  ;;  %v1701_v16 = vrot.slane %v1700_v6, 4 }
 0x65b   :  { %v1591_v52 = vadd.f32 %v1590_v18, %v1589_v8  ;;  %v1620_v7 = vrot.slane %v1619_v19, 1 }
 0x65c   :  { %v1673_v38 = vrot.slane %v1672_v15, 2  ;;  %v1702_v50 = vadd.f32 %v1701_v16, %v1700_v6 }
 0x65d   :  { %v1592_v24 = vmul.f32 0.015625, %v1591_v52  ;;  %v1621_v26 = vadd.f32 %v1620_v7, %v1619_v19 }
 0x65e   :  { %v1674_v21 = vadd.f32 %v1673_v38, %v1672_v15  ;;  %v1703_v23 = vrot.slane %v1702_v50, 2 }
 0x65f   :  { %v1622_v35 = vmul.f32 0.015625, %v1621_v26  ;;  %v1623_v36 = vmul.f32 %v1592_v24, %v1592_v24 }
 0x660   :  { %v1675_v31 = vrot.slane %v1674_v21, 1  ;;  %v1704_v33 = vadd.f32 %v1703_v23, %v1702_v50 }
 0x661   :  { %v1624_v43 = vsub.f32 %v1622_v35, %v1623_v36 }
 0x662   :  { %v1676_v42 = vadd.f32 %v1675_v31, %v1674_v21  ;;  %v1705_v5 = vrot.slane %v1704_v33, 1 }
 0x663   :  { %v1625_v45 = vadd.f32 1e-05, %v1624_v43 }
 0x664   :  { %v1677_v27 = vmul.f32 0.015625, %v1676_v42  ;;  %v1706_v25 = vadd.f32 %v1705_v5, %v1704_v33 }
 0x665   :  { %6381 = vrsqrt.f32 %v1625_v45  ;;  %v1760_v45 = vld [vmem:[%s8607_s1 + $0xd0] sm:$0xff] }
 0x666   :  { %v1707_v48 = vmul.f32 0.015625, %v1706_v25  ;;  %v1708_v34 = vmul.f32 %v1677_v27, %v1677_v27 }
 0x668   :  { %v1709_v63 = vsub.f32 %v1707_v48, %v1708_v34 }
 0x66a   :  { %v1710_v61 = vadd.f32 1e-05, %v1709_v63 }
 0x66c   :  { %6383 = vrsqrt.f32 %v1710_v61 }
 0x66f   :  { %v6382_v46 = vpop.eup %6381 }
 0x670   :  { %v1627_v9 = vmul.f32 %v6382_v46, %v1569_v32 }
 0x672   :  { %v1628_v30 = vmul.f32 %v1627_v9, %v1592_v24  ;;  %v1633_v37 = vrot.slane %v1627_v9, %v6678_v58 }
 0x674   :  { %v1629_v51 = vsub.f32 %v1570_v22, %v1628_v30  ;;  %v1634_v62 = vmul.f32 %v1633_v37, %v7017_v40  ;;  %v1635_v54 = vmul.f32 %v1633_v37, %v7013_v17  ;;  %v1636_v53 = vmul.f32 %v1633_v37, %v7039_v41 }
 0x675   :  { %v1637_v55 = vmul.f32 %v1633_v37, %v7032_v29  ;;  %v1638_v56 = vmul.f32 %v1633_v37, %v7062_v13  ;;  %v1639_v60 = vmul.f32 %v1633_v37, %v7059_v44  ;;  %v1640_v59 = vmul.f32 %v1633_v37, %v7093_v20  ;;  %v1655_v29 = vld [vmem:[%s8608_s2 + $0xa] sm:$0x1] }
 0x676   :  { %v6384_v49 = vpop.eup %6383  ;;  %v1641_v2 = vmul.f32 %v1633_v37, %v7077_v11  ;;  %v1645_v6 = vrot.slane %v1629_v51, %v6678_v58 }
 0x677   :  { %v1712_v8 = vmul.f32 %v6384_v49, %v1654_v57 }
 0x678   :  { %v1646_v14 = vadd.f32 %v1645_v6, %v1634_v62  ;;  %v1647_v15 = vadd.f32 %v1645_v6, %v1635_v54  ;;  %v1648_v40 = vadd.f32 %v1645_v6, %v1636_v53  ;;  %v1649_v16 = vadd.f32 %v1645_v6, %v1637_v55 }
 0x679   :  { %v1650_v17 = vadd.f32 %v1645_v6, %v1638_v56  ;;  %v1651_v18 = vadd.f32 %v1645_v6, %v1639_v60  ;;  %v1652_v41 = vadd.f32 %v1645_v6, %v1640_v59  ;;  %v1653_v19 = vadd.f32 %v1645_v6, %v1641_v2 }
 0x67a   :  { %v1713_v44 = vmul.f32 %v1712_v8, %v1677_v27  ;;  %v1718_v13 = vrot.slane %v1712_v8, %v6678_v58 }
 0x67c   :  { %v1714_v20 = vsub.f32 %v1655_v29, %v1713_v44  ;;  %v1719_v11 = vmul.f32 %v1718_v13, %v6996_v4  ;;  %v1720_v38 = vmul.f32 %v1718_v13, %v6993_v1  ;;  %v1721_v50 = vmul.f32 %v1718_v13, %v7036_v39 }
 0x67d   :  { %v1722_v52 = vmul.f32 %v1718_v13, %v7029_v28  ;;  %v1723_v7 = vmul.f32 %v1718_v13, %v7080_v12  ;;  %v1724_v21 = vmul.f32 %v1718_v13, %v7074_v0  ;;  %v1725_v23 = vmul.f32 %v1718_v13, %v7112_v10 }
 0x67e   :  { %v1726_v24 = vmul.f32 %v1718_v13, %v7109_v47  ;;  %v1730_v26 = vrot.slane %v1714_v20, %v6678_v58  ;;  %v1759_v47 = vld [vmem:[%s8607_s1 + $0xc8] sm:$0xff] }
 0x67f   :  { %v6222_v30 = vpack.c.bf16 %v1760_v45, %v1759_v47 }
 0x680   :  { %v1731_v31 = vadd.f32 %v1730_v26, %v1719_v11  ;;  %v1732_v33 = vadd.f32 %v1730_v26, %v1720_v38  ;;  %v1733_v35 = vadd.f32 %v1730_v26, %v1721_v50  ;;  %v1734_v4 = vadd.f32 %v1730_v26, %v1722_v52 }
 0x681   :  { %v1735_v36 = vadd.f32 %v1730_v26, %v1723_v7  ;;  %v1736_v1 = vadd.f32 %v1730_v26, %v1724_v21  ;;  %v1737_v42 = vadd.f32 %v1730_v26, %v1725_v23  ;;  %v1738_v39 = vadd.f32 %v1730_v26, %v1726_v24  ;;  %6223 = vmatprep.subr.bf16.mxu1 %v6222_v30 }
 0x682   :  { %v1739_v5 = vadd.f32 %v1731_v31, %v1646_v14  ;;  %v1740_v28 = vadd.f32 %v1732_v33, %v1647_v15  ;;  %v1741_v43 = vadd.f32 %v1733_v35, %v1648_v40  ;;  %v1742_v12 = vadd.f32 %v1734_v4, %v1649_v16  ;;  %6225 = vmatpush3.bf16.msra.mxu1 %v6222_v30 }
 0x683   :  { %v1743_v27 = vadd.f32 %v1735_v36, %v1650_v17  ;;  %v1744_v0 = vadd.f32 %v1736_v1, %v1651_v18  ;;  %v1745_v25 = vadd.f32 %v1737_v42, %v1652_v41  ;;  %v1746_v10 = vadd.f32 %v1738_v39, %v1653_v19 }
 0x684   :  { %v1747_v48 = vmax.f32 %v1739_v5, 0.0  ;;  %v1748_v34 = vmax.f32 %v1740_v28, 0.0  ;;  %v1749_v63 = vmax.f32 %v1741_v43, 0.0  ;;  %v1750_v61 = vmax.f32 %v1742_v12, 0.0 }
 0x685   :  { %v1751_v32 = vmax.f32 %v1743_v27, 0.0  ;;  %v1752_v46 = vmax.f32 %v1744_v0, 0.0  ;;  %v1753_v9 = vmax.f32 %v1745_v25, 0.0  ;;  %v1754_v22 = vmax.f32 %v1746_v10, 0.0 }
 0x686   :  { %1762 = vst.msk [vmem:[#allocation2 + $0x8] sm:$0xff] %vm15_vm0, %v1747_v48  ;;  %1763 = vst.msk [vmem:[#allocation2 + $0x10] sm:$0xff] %vm15_vm0, %v1748_v34 }
 0x687   :  { %1764 = vst.msk [vmem:[#allocation2 + $0x18] sm:$0xff] %vm15_vm0, %v1749_v63  ;;  %1765 = vst.msk [vmem:[#allocation2 + $0x20] sm:$0xff] %vm15_vm0, %v1750_v61  ;;  %v5446_v61 = vld [vmem:[%s8608_s2 + $0xd] ss:$0 sm:$0xff] }
 0x688   :  { %1766 = vst.msk [vmem:[#allocation2 + $0x38] sm:$0xff] %vm15_vm0, %v1751_v32  ;;  %1767 = vst.msk [vmem:[#allocation2 + $0x40] sm:$0xff] %vm15_vm0, %v1752_v46  ;;  %v2007_v32 = vld [vmem:[%s8607_s1 + $0xd8] sm:$0xff]  ;;  %v2008_v46 = vld [vmem:[%s8607_s1 + $0xe0] sm:$0xff] }
 0x689   :  { %1768 = vst.msk [vmem:[#allocation2 + $0x48] sm:$0xff] %vm15_vm0, %v1753_v9  ;;  %1769 = vst.msk [vmem:[#allocation2 + $0x50] sm:$0xff] %vm15_vm0, %v1754_v22  ;;  %v6226_v22 = vpack.c.bf16 %v2008_v46, %v2007_v32 }
 0x68b   :  { %6227 = vmatprep.subr.bf16.mxu0 %v6226_v22 }
 0x68c   :  { %6229 = vmatpush3.bf16.msra.mxu0 %v6226_v22 }
 0x68d   :  { %v1775_v37 = vld [vmem:[#allocation2 + $0x10] sm:$0xff]  ;;  %v1774_v57 = vld [vmem:[#allocation2 + $0x8] sm:$0xff] }
 0x68e   :  { %1788 = vrot.lane.b32.xlu1 %v1775_v37, %s6434_s26  ;;  %1786 = vrot.lane.b32.xlu0 %v1774_v57, %s6434_s26  ;;  %v1779_v49 = vld [vmem:[#allocation2 + $0x11] sm:$0xff]  ;;  %v1778_v51 = vld [vmem:[#allocation2 + $0x9] sm:$0xff]  ;;  %v1777_v62 = vld [vmem:[#allocation2 + $0x20] sm:$0xff] }
 0x68f   :  { %v1776_v54 = vld [vmem:[#allocation2 + $0x18] sm:$0xff]  ;;  %v1781_v53 = vld [vmem:[#allocation2 + $0x21] sm:$0xff]  ;;  %v1771_v17 = vld [vmem:[#allocation2 + $0xf] sm:$0xff] }
 0x690   :  { %v1780_v55 = vld [vmem:[#allocation2 + $0x19] sm:$0xff]  ;;  %v1831_v59 = vld [vmem:[#allocation2 + $0x41] sm:$0xff]  ;;  %v1829_v6 = vld [vmem:[#allocation2 + $0x50] sm:$0xff] }
 0x691   :  { %v1827_v56 = vld [vmem:[#allocation2 + $0x40] sm:$0xff]  ;;  %v1826_v60 = vld [vmem:[#allocation2 + $0x38] sm:$0xff]  ;;  %v1828_v8 = vld [vmem:[#allocation2 + $0x48] sm:$0xff] }
 0x692   :  { %1804 = vrot.lane.b32.xlu1 %v1779_v49, %s6435_s27  ;;  %1802 = vrot.lane.b32.xlu0 %v1778_v51, %s6435_s27  ;;  %v1830_v2 = vld [vmem:[#allocation2 + $0x39] sm:$0xff]  ;;  %v1833_v14 = vld [vmem:[#allocation2 + $0x51] sm:$0xff]  ;;  %v1832_v15 = vld [vmem:[#allocation2 + $0x49] sm:$0xff] }
 0x693   :  { %v1770_v41 = vld [vmem:[#allocation2 + $0x7] sm:$0xff]  ;;  %v1773_v50 = vld [vmem:[#allocation2 + $0x1f] sm:$0xff]  ;;  %v1772_v52 = vld [vmem:[#allocation2 + $0x17] sm:$0xff] }
 0x694   :  { %v1823_v4 = vld [vmem:[#allocation2 + $0x3f] sm:$0xff]  ;;  %v1822_v1 = vld [vmem:[#allocation2 + $0x37] sm:$0xff]  ;;  %v1825_v0 = vld [vmem:[#allocation2 + $0x4f] sm:$0xff] }
 0x695   :  { %v1824_v10 = vld [vmem:[#allocation2 + $0x47] sm:$0xff]  ;;  %v2010_v51 = vld [vmem:[%s8607_s1 + $0xf0] sm:$0xff] }
 0x696   :  { %1792 = vrot.lane.b32.xlu1 %v1777_v62, %s6434_s26  ;;  %1790 = vrot.lane.b32.xlu0 %v1776_v54, %s6434_s26  ;;  %v2009_v49 = vld [vmem:[%s8607_s1 + $0xe8] sm:$0xff] }
 0x697   :  { %v6230_v54 = vpack.c.bf16 %v2010_v51, %v2009_v49 }
 0x699   :  { %6231 = vmatprep.subr.bf16.mxu0 %v6230_v54 }
 0x69a   :  { %1808 = vrot.lane.b32.xlu1 %v1781_v53, %s6435_s27  ;;  %1806 = vrot.lane.b32.xlu0 %v1780_v55, %s6435_s27 }
 0x69b   :  { %6233 = vmatpush3.bf16.msra.mxu0 %v6230_v54 }
 0x69e   :  { %1840 = vrot.lane.b32.xlu1 %v1827_v56, %s6434_s26  ;;  %1838 = vrot.lane.b32.xlu0 %v1826_v60, %s6434_s26 }
 0x6a2   :  { %1856 = vrot.lane.b32.xlu1 %v1831_v59, %s6435_s27  ;;  %1854 = vrot.lane.b32.xlu0 %v1830_v2, %s6435_s27  ;;  %v2011_v2 = vld [vmem:[%s8607_s1 + $0xf8] sm:$0xff] }
 0x6a6   :  { %1844 = vrot.lane.b32.xlu1 %v1829_v6, %s6434_s26  ;;  %1842 = vrot.lane.b32.xlu0 %v1828_v8, %s6434_s26  ;;  %v2012_v6 = vld [vmem:[%s8607_s1 + $0x100] sm:$0xff] }
 0x6a7   :  { %v6234_v8 = vpack.c.bf16 %v2012_v6, %v2011_v2 }
 0x6a9   :  { %6235 = vmatprep.subr.bf16.mxu0 %v6234_v8 }
 0x6aa   :  { %1860 = vrot.lane.b32.xlu1 %v1833_v14, %s6435_s27  ;;  %1858 = vrot.lane.b32.xlu0 %v1832_v15, %s6435_s27 }
 0x6ab   :  { %6237 = vmatpush3.bf16.msra.mxu0 %v6234_v8 }
 0x700   :  { %v1789_v40 = vpop.permute.xlu1 %1788  ;;  %v1787_v16 = vpop.permute.xlu0 %1786 }
 0x701   :  { %v1815_v18 = vsel %vm15_vm0, %v1771_v17, %v1789_v40  ;;  %v1814_v29 = vsel %vm15_vm0, %v1770_v41, %v1787_v16 }
 0x704   :  { %v1805_v19 = vpop.permute.xlu1 %1804  ;;  %v1803_v13 = vpop.permute.xlu0 %1802 }
 0x705   :  { %v1819_v44 = vsel %vm645_vm9, %v1815_v18, %v1805_v19  ;;  %v1818_v20 = vsel %vm645_vm9, %v1814_v29, %v1803_v13 }
 0x706   :  { %5903 = vmatprep.mubr.msk.f32.mxu1 %vm706_vm10, %v1818_v20 }
 0x707   :  { %5904 = vmatmul.mubr.msk.f32.vlgmr.msra.gmra.mrb[14].mxu1 %vm706_vm10, %v1819_v44 }
 0x708   :  { %v1793_v11 = vpop.permute.xlu1 %1792  ;;  %v1791_v38 = vpop.permute.xlu0 %1790 }
 0x709   :  { %v1817_v7 = vsel %vm15_vm0, %v1773_v50, %v1793_v11  ;;  %v1816_v23 = vsel %vm15_vm0, %v1772_v52, %v1791_v38 }
 0x70c   :  { %v1809_v21 = vpop.permute.xlu1 %1808  ;;  %v1807_v26 = vpop.permute.xlu0 %1806 }
 0x70d   :  { %v1821_v24 = vsel %vm645_vm9, %v1817_v7, %v1809_v21  ;;  %v1820_v31 = vsel %vm645_vm9, %v1816_v23, %v1807_v26 }
 0x70e   :  { %5906 = vmatprep.mubr.msk.f32.mxu1 %vm706_vm10, %v1820_v31 }
 0x70f   :  { %5907 = vmatmul.mubr.msk.f32.gmra.mrb[16].mxu1 %vm706_vm10, %v1821_v24 }
 0x710   :  { %v1841_v33 = vpop.permute.xlu1 %1840  ;;  %v1839_v35 = vpop.permute.xlu0 %1838 }
 0x711   :  { %v1867_v36 = vsel %vm15_vm0, %v1823_v4, %v1841_v33  ;;  %v1866_v39 = vsel %vm15_vm0, %v1822_v1, %v1839_v35 }
 0x714   :  { %v1857_v42 = vpop.permute.xlu1 %1856  ;;  %v1855_v28 = vpop.permute.xlu0 %1854 }
 0x715   :  { %v1871_v5 = vsel %vm645_vm9, %v1867_v36, %v1857_v42  ;;  %v1870_v43 = vsel %vm645_vm9, %v1866_v39, %v1855_v28 }
 0x716   :  { %5909 = vmatprep.mubr.msk.f32.mxu1 %vm706_vm10, %v1870_v43 }
 0x717   :  { %5910 = vmatmul.mubr.msk.f32.gmra.mrb[18].mxu1 %vm706_vm10, %v1871_v5 }
 0x718   :  { %v1845_v12 = vpop.permute.xlu1 %1844  ;;  %v1843_v27 = vpop.permute.xlu0 %1842 }
 0x719   :  { %v1869_v25 = vsel %vm15_vm0, %v1825_v0, %v1845_v12  ;;  %v1868_v45 = vsel %vm15_vm0, %v1824_v10, %v1843_v27 }
 0x71c   :  { %v1861_v47 = vpop.permute.xlu1 %1860  ;;  %v1859_v34 = vpop.permute.xlu0 %1858 }
 0x71d   :  { %v1873_v48 = vsel %vm645_vm9, %v1869_v25, %v1861_v47  ;;  %v1872_v63 = vsel %vm645_vm9, %v1868_v45, %v1859_v34 }
 0x71e   :  { %5912 = vmatprep.mubr.msk.f32.mxu1 %vm706_vm10, %v1872_v63 }
 0x71f   :  { %5913 = vmatmul.mubr.msk.f32.gmra.mrb[20].mxu1 %vm706_vm10, %v1873_v48 }
 0x7da   :  { %v5905_v9 = vpop.f32.mrb[14].mxu1 }
 0x7db   :  { %v7220_v30 = vadd.f32 %v5905_v9, %v5446_v61  ;;  %v1968_v37 = vpop.f32.mrb[15].mxu1 }
 0x7dc   :  { %v7222_v57 = vadd.f32 %v5446_v61, %v1968_v37 }
 0x7dd   :  { %2015 = vst.msk [vmem:[#allocation2 + $0x10] sm:$0xff] %vm15_vm0, %v7220_v30 }
 0x7de   :  { %2014 = vst.msk [vmem:[#allocation2 + $0x8] sm:$0xff] %vm15_vm0, %v7222_v57 }
 0x7e2   :  { %v5908_v62 = vpop.f32.mrb[16].mxu1 }
 0x7e3   :  { %v7234_v53 = vadd.f32 %v5908_v62, %v5446_v61  ;;  %v1978_v55 = vpop.f32.mrb[17].mxu1 }
 0x7e4   :  { %v7236_v56 = vadd.f32 %v5446_v61, %v1978_v55  ;;  %v2027_v60 = vld [vmem:[#allocation2 + $0x10] sm:$0xff] }
 0x7e5   :  { %2017 = vst.msk [vmem:[#allocation2 + $0x20] sm:$0xff] %vm15_vm0, %v7234_v53  ;;  %2040 = vrot.lane.b32.xlu1 %v2027_v60, %s6434_s26  ;;  %v2026_v59 = vld [vmem:[#allocation2 + $0x8] sm:$0xff] }
 0x7e6   :  { %2016 = vst.msk [vmem:[#allocation2 + $0x18] sm:$0xff] %vm15_vm0, %v7236_v56  ;;  %2038 = vrot.lane.b32.xlu0 %v2026_v59, %s6434_s26  ;;  %v2030_v14 = vld [vmem:[#allocation2 + $0x9] sm:$0xff] }
 0x7e7   :  { %v2022_v4 = vld [vmem:[#allocation2 + $0x7] sm:$0xff]  ;;  %v2023_v12 = vld [vmem:[#allocation2 + $0xf] sm:$0xff] }
 0x7ea   :  { %v5911_v15 = vpop.f32.mrb[18].mxu1  ;;  %2054 = vrot.lane.b32.xlu0 %v2030_v14, %s6435_s27 }
 0x7eb   :  { %v7251_v40 = vadd.f32 %v5911_v15, %v5446_v61  ;;  %v1988_v16 = vpop.f32.mrb[19].mxu1 }
 0x7ec   :  { %v7253_v17 = vadd.f32 %v5446_v61, %v1988_v16  ;;  %v2029_v18 = vld [vmem:[#allocation2 + $0x20] sm:$0xff] }
 0x7ed   :  { %2019 = vst.msk [vmem:[#allocation2 + $0x40] sm:$0xff] %vm15_vm0, %v7251_v40  ;;  %2044 = vrot.lane.b32.xlu1 %v2029_v18, %s6434_s26  ;;  %v2028_v41 = vld [vmem:[#allocation2 + $0x18] sm:$0xff]  ;;  %v2033_v19 = vld [vmem:[#allocation2 + $0x21] sm:$0xff] }
 0x7ee   :  { %2018 = vst.msk [vmem:[#allocation2 + $0x38] sm:$0xff] %vm15_vm0, %v7253_v17  ;;  %2042 = vrot.lane.b32.xlu0 %v2028_v41, %s6434_s26  ;;  %v2032_v29 = vld [vmem:[#allocation2 + $0x19] sm:$0xff]  ;;  %v2031_v38 = vld [vmem:[#allocation2 + $0x11] sm:$0xff]  ;;  %v2352_v41 = vld [vmem:[%s8607_s1 + $0x108] sm:$0xff] }
 0x7ef   :  { %v2024_v0 = vld [vmem:[#allocation2 + $0x17] sm:$0xff]  ;;  %v2025_v34 = vld [vmem:[#allocation2 + $0x1f] sm:$0xff] }
 0x7f1   :  { %2060 = vrot.lane.b32.xlu1 %v2033_v19, %s6435_s27  ;;  %v2353_v19 = vld [vmem:[%s8607_s1 + $0x110] sm:$0xff] }
 0x7f2   :  { %v5914_v44 = vpop.f32.mrb[20].mxu1  ;;  %2058 = vrot.lane.b32.xlu0 %v2032_v29, %s6435_s27  ;;  %v2354_v29 = vld [vmem:[%s8607_s1 + $0x118] sm:$0xff] }
 0x7f3   :  { %v7263_v13 = vadd.f32 %v5914_v44, %v5446_v61  ;;  %v1998_v20 = vpop.f32.mrb[21].mxu1  ;;  %v6238_v44 = vpack.c.bf16 %v2353_v19, %v2352_v41 }
 0x7f4   :  { %v7265_v11 = vadd.f32 %v5446_v61, %v1998_v20  ;;  %v2079_v52 = vld [vmem:[#allocation2 + $0x40] sm:$0xff] }
 0x7f5   :  { %2021 = vst.msk [vmem:[#allocation2 + $0x50] sm:$0xff] %vm15_vm0, %v7263_v13  ;;  %2056 = vrot.lane.b32.xlu1 %v2031_v38, %s6435_s27  ;;  %v2078_v50 = vld [vmem:[#allocation2 + $0x38] sm:$0xff]  ;;  %v2355_v20 = vld [vmem:[%s8607_s1 + $0x120] sm:$0xff]  ;;  %6239 = vmatprep.subr.bf16.mxu0 %v6238_v44 }
 0x7f6   :  { %2020 = vst.msk [vmem:[#allocation2 + $0x48] sm:$0xff] %vm15_vm0, %v7265_v11  ;;  %2090 = vrot.lane.b32.xlu0 %v2078_v50, %s6434_s26  ;;  %v2082_v7 = vld [vmem:[#allocation2 + $0x39] sm:$0xff]  ;;  %v6242_v38 = vpack.c.bf16 %v2355_v20, %v2354_v29  ;;  %6356 = vmatprep.subr.bf16.mxu1 %v6238_v44  ;;  %v5455_v50 = vld [vmem:[%s8608_s2 + $0xe] ss:$0 sm:$0xff] }
 0x7f7   :  { %v2074_v61 = vld [vmem:[#allocation2 + $0x37] sm:$0xff]  ;;  %v2075_v62 = vld [vmem:[#allocation2 + $0x3f] sm:$0xff]  ;;  %6359 = vmatpush3.bf16.msra.mxu1 %v6238_v44 }
 0x7f8   :  { %6357 = vmatprep.subr.bf16.mxu1 %v6242_v38 }
 0x7f9   :  { %2092 = vrot.lane.b32.xlu1 %v2079_v52, %s6434_s26 }
 0x7fa   :  { %2106 = vrot.lane.b32.xlu0 %v2082_v7, %s6435_s27 }
 0x7fb   :  { %6360 = vmatpush3.bf16.msra.mxu1 %v6242_v38 }
 0x7fc   :  { %v2081_v21 = vld [vmem:[#allocation2 + $0x50] sm:$0xff] }
 0x7fd   :  { %2096 = vrot.lane.b32.xlu1 %v2081_v21, %s6434_s26  ;;  %v2080_v23 = vld [vmem:[#allocation2 + $0x48] sm:$0xff]  ;;  %v2085_v31 = vld [vmem:[#allocation2 + $0x51] sm:$0xff] }
 0x7fe   :  { %2094 = vrot.lane.b32.xlu0 %v2080_v23, %s6434_s26  ;;  %v2083_v24 = vld [vmem:[#allocation2 + $0x41] sm:$0xff]  ;;  %v2084_v26 = vld [vmem:[#allocation2 + $0x49] sm:$0xff] }
 0x7ff   :  { %v2076_v55 = vld [vmem:[#allocation2 + $0x47] sm:$0xff]  ;;  %v2077_v14 = vld [vmem:[#allocation2 + $0x4f] sm:$0xff] }
 0x801   :  { %2108 = vrot.lane.b32.xlu1 %v2083_v24, %s6435_s27 }
 0x802   :  { %2110 = vrot.lane.b32.xlu0 %v2084_v26, %s6435_s27 }
 0x805   :  { %2112 = vrot.lane.b32.xlu1 %v2085_v31, %s6435_s27 }
 0x857   :  { %v2041_v35 = vpop.permute.xlu1 %2040 }
 0x858   :  { %v2039_v33 = vpop.permute.xlu0 %2038  ;;  %v2067_v27 = vsel %vm15_vm0, %v2023_v12, %v2041_v35 }
 0x859   :  { %v2066_v36 = vsel %vm15_vm0, %v2022_v4, %v2039_v33 }
 0x85c   :  { %v2055_v1 = vpop.permute.xlu0 %2054 }
 0x85d   :  { %v2070_v42 = vsel %vm645_vm9, %v2066_v36, %v2055_v1 }
 0x85e   :  { %5927 = vmatprep.mubr.msk.f32.mxu0 %vm706_vm10, %v2070_v42 }
 0x85f   :  { %v2045_v39 = vpop.permute.xlu1 %2044 }
 0x860   :  { %v2043_v5 = vpop.permute.xlu0 %2042  ;;  %v2069_v63 = vsel %vm15_vm0, %v2025_v34, %v2045_v39 }
 0x861   :  { %v2068_v10 = vsel %vm15_vm0, %v2024_v0, %v2043_v5 }
 0x863   :  { %v2061_v28 = vpop.permute.xlu1 %2060 }
 0x864   :  { %v2059_v43 = vpop.permute.xlu0 %2058  ;;  %v2073_v46 = vsel %vm645_vm9, %v2069_v63, %v2061_v28 }
 0x865   :  { %v2072_v48 = vsel %vm645_vm9, %v2068_v10, %v2059_v43 }
 0x867   :  { %v2057_v25 = vpop.permute.xlu1 %2056 }
 0x868   :  { %v2071_v47 = vsel %vm645_vm9, %v2067_v27, %v2057_v25  ;;  %v2091_v45 = vpop.permute.xlu0 %2090 }
 0x869   :  { %5928 = vmatmul.mubr.msk.f32.vlgmr.msra.gmra.mrb[26].mxu0 %vm706_vm10, %v2071_v47  ;;  %v2118_v9 = vsel %vm15_vm0, %v2074_v61, %v2091_v45 }
 0x86a   :  { %5930 = vmatprep.mubr.msk.f32.mxu0 %vm706_vm10, %v2072_v48  ;;  %6241 = vmatpush3.bf16.msra.mxu0 %v6238_v44 }
 0x86b   :  { %v2093_v32 = vpop.permute.xlu1 %2092  ;;  %6243 = vmatprep.subr.bf16.mxu0 %v6242_v38 }
 0x86c   :  { %v2107_v22 = vpop.permute.xlu0 %2106  ;;  %v2119_v54 = vsel %vm15_vm0, %v2075_v62, %v2093_v32 }
 0x86d   :  { %v2122_v37 = vsel %vm645_vm9, %v2118_v9, %v2107_v22  ;;  %5931 = vmatmul.mubr.msk.f32.gmra.mrb[28].mxu0 %vm706_vm10, %v2073_v46 }
 0x86e   :  { %5933 = vmatprep.mubr.msk.f32.mxu0 %vm706_vm10, %v2122_v37  ;;  %6245 = vmatpush3.bf16.msra.mxu0 %v6242_v38 }
 0x86f   :  { %v2097_v49 = vpop.permute.xlu1 %2096 }
 0x870   :  { %v2095_v51 = vpop.permute.xlu0 %2094  ;;  %v2121_v15 = vsel %vm15_vm0, %v2077_v14, %v2097_v49 }
 0x871   :  { %v2120_v59 = vsel %vm15_vm0, %v2076_v55, %v2095_v51 }
 0x873   :  { %v2109_v60 = vpop.permute.xlu1 %2108 }
 0x874   :  { %v2123_v2 = vsel %vm645_vm9, %v2119_v54, %v2109_v60  ;;  %v2111_v6 = vpop.permute.xlu0 %2110 }
 0x875   :  { %v2124_v8 = vsel %vm645_vm9, %v2120_v59, %v2111_v6  ;;  %5934 = vmatmul.mubr.msk.f32.gmra.mrb[30].mxu0 %vm706_vm10, %v2123_v2 }
 0x876   :  { %5936 = vmatprep.mubr.msk.f32.mxu0 %vm706_vm10, %v2124_v8 }
 0x877   :  { %v2113_v16 = vpop.permute.xlu1 %2112 }
 0x878   :  { %v2125_v18 = vsel %vm645_vm9, %v2121_v15, %v2113_v16 }
 0x879   :  { %5937 = vmatmul.mubr.msk.f32.gmra.mrb[32].mxu0 %vm706_vm10, %v2125_v18 }
 0x93c   :  { %v5929_v52 = vpop.f32.mrb[26].mxu0 }
 0x93d   :  { %v7319_v7 = vadd.f32 %v5929_v52, %v5455_v50  ;;  %v2220_v21 = vpop.f32.mrb[27].mxu0 }
 0x93e   :  { %v7321_v23 = vadd.f32 %v5455_v50, %v2220_v21 }
 0x93f   :  { %v2262_v24 = vsel %vm15_vm0, %v7319_v7, 0.0  ;;  %v2284_v26 = vmul.f32 %v7319_v7, %v7319_v7 }
 0x940   :  { %v2261_v31 = vsel %vm15_vm0, %v7321_v23, 0.0  ;;  %v2283_v33 = vmul.f32 %v7321_v23, %v7321_v23  ;;  %v5932_v35 = vpop.f32.mrb[28].mxu0 }
 0x941   :  { %v2292_v4 = vsel %vm15_vm0, %v2284_v26, 0.0  ;;  %v2263_v36 = vadd.f32 %v2262_v24, %v2261_v31  ;;  %v7332_v1 = vadd.f32 %v5932_v35, %v5455_v50  ;;  %v2230_v42 = vpop.f32.mrb[29].mxu0 }
 0x942   :  { %v2291_v39 = vsel %vm15_vm0, %v2283_v33, 0.0  ;;  %v7335_v5 = vadd.f32 %v5455_v50, %v2230_v42 }
 0x943   :  { %v2293_v28 = vadd.f32 %v2292_v4, %v2291_v39  ;;  %v2286_v43 = vmul.f32 %v7332_v1, %v7332_v1  ;;  %v2266_v25 = vsel %vm15_vm0, %v7332_v1, 0.0 }
 0x944   :  { %v2264_v12 = vsel %vm15_vm0, %v7335_v5, 0.0  ;;  %v2285_v27 = vmul.f32 %v7335_v5, %v7335_v5 }
 0x945   :  { %v2265_v0 = vadd.f32 %v2264_v12, %v2263_v36  ;;  %v2296_v48 = vsel %vm15_vm0, %v2286_v43, 0.0 }
 0x946   :  { %v2294_v10 = vsel %vm15_vm0, %v2285_v27, 0.0 }
 0x947   :  { %v2295_v47 = vadd.f32 %v2294_v10, %v2293_v28  ;;  %v2267_v45 = vadd.f32 %v2266_v25, %v2265_v0  ;;  %v2259_v10 = vld [vmem:[%s8608_s2 + $0x11] sm:$0x1] }
 0x948   :  { %v5935_v34 = vpop.f32.mrb[30].mxu0 }
 0x949   :  { %v2246_v63 = vadd.f32 %v5935_v34, %v5455_v50  ;;  %v2240_v61 = vpop.f32.mrb[31].mxu0  ;;  %v2297_v32 = vadd.f32 %v2296_v48, %v2295_v47  ;;  %v2260_v48 = vld [vmem:[%s8608_s2 + $0x12] sm:$0x1] }
 0x94a   :  { %v2241_v46 = vadd.f32 %v5455_v50, %v2240_v61 }
 0x94b   :  { %v2288_v9 = vmul.f32 %v2246_v63, %v2246_v63  ;;  %v2270_v55 = vsel %vm15_vm0, %v2246_v63, 0.0 }
 0x94c   :  { %v2268_v22 = vsel %vm15_vm0, %v2241_v46, 0.0  ;;  %v2287_v37 = vmul.f32 %v2241_v46, %v2241_v46  ;;  %v5938_v49 = vpop.f32.mrb[32].mxu0 }
 0x94d   :  { %v2269_v51 = vadd.f32 %v2268_v22, %v2267_v45  ;;  %v2256_v62 = vadd.f32 %v5938_v49, %v5455_v50  ;;  %v2250_v54 = vpop.f32.mrb[33].mxu0  ;;  %v2300_v8 = vsel %vm15_vm0, %v2288_v9, 0.0 }
 0x94e   :  { %v2298_v60 = vsel %vm15_vm0, %v2287_v37, 0.0  ;;  %v2251_v59 = vadd.f32 %v5455_v50, %v2250_v54 }
 0x94f   :  { %v2299_v2 = vadd.f32 %v2298_v60, %v2297_v32  ;;  %v2271_v6 = vadd.f32 %v2270_v55, %v2269_v51  ;;  %v2290_v14 = vmul.f32 %v2256_v62, %v2256_v62  ;;  %v2274_v19 = vsel %vm15_vm0, %v2256_v62, 0.0 }
 0x950   :  { %v2272_v15 = vsel %vm15_vm0, %v2251_v59, 0.0  ;;  %v2289_v16 = vmul.f32 %v2251_v59, %v2251_v59 }
 0x951   :  { %v2273_v18 = vadd.f32 %v2272_v15, %v2271_v6  ;;  %v2301_v41 = vadd.f32 %v2300_v8, %v2299_v2  ;;  %v2304_v38 = vsel %vm15_vm0, %v2290_v14, 0.0 }
 0x952   :  { %v2302_v29 = vsel %vm15_vm0, %v2289_v16, 0.0 }
 0x953   :  { %v2275_v44 = vadd.f32 %v2274_v19, %v2273_v18  ;;  %v2303_v20 = vadd.f32 %v2302_v29, %v2301_v41 }
 0x955   :  { %v2276_v52 = vrot.slane %v2275_v44, 4  ;;  %v2305_v50 = vadd.f32 %v2304_v38, %v2303_v20  ;;  %v2604_v38 = vld [vmem:[%s8607_s1 + $0x138] sm:$0xff] }
 0x957   :  { %v2277_v21 = vadd.f32 %v2276_v52, %v2275_v44  ;;  %v2306_v24 = vrot.slane %v2305_v50, 4  ;;  %v2605_v52 = vld [vmem:[%s8607_s1 + $0x140] sm:$0xff] }
 0x959   :  { %v2278_v26 = vrot.slane %v2277_v21, 2  ;;  %v2307_v31 = vadd.f32 %v2306_v24, %v2305_v50  ;;  %v6250_v50 = vpack.c.bf16 %v2605_v52, %v2604_v38  ;;  %v2929_v52 = vld [vmem:[%s8607_s1 + $0x160] sm:$0xff] }
 0x95b   :  { %v2279_v33 = vadd.f32 %v2278_v26, %v2277_v21  ;;  %v2308_v35 = vrot.slane %v2307_v31, 2 }
 0x95d   :  { %v2280_v4 = vrot.slane %v2279_v33, 1  ;;  %v2309_v36 = vadd.f32 %v2308_v35, %v2307_v31 }
 0x95f   :  { %v2281_v42 = vadd.f32 %v2280_v4, %v2279_v33  ;;  %v2310_v39 = vrot.slane %v2309_v36, 1 }
 0x961   :  { %v2282_v28 = vmul.f32 0.015625, %v2281_v42  ;;  %v2311_v43 = vadd.f32 %v2310_v39, %v2309_v36 }
 0x963   :  { %v2312_v12 = vmul.f32 0.015625, %v2311_v43  ;;  %v2313_v27 = vmul.f32 %v2282_v28, %v2282_v28 }
 0x965   :  { %v2314_v0 = vsub.f32 %v2312_v12, %v2313_v27 }
 0x967   :  { %v2315_v25 = vadd.f32 1e-05, %v2314_v0 }
 0x969   :  { %6385 = vrsqrt.f32 %v2315_v25 }
 0x973   :  { %v6386_v47 = vpop.eup %6385 }
 0x974   :  { %v2317_v45 = vmul.f32 %v6386_v47, %v2259_v10 }
 0x976   :  { %v2318_v34 = vmul.f32 %v2317_v45, %v2282_v28  ;;  %v2323_v61 = vrot.slane %v2317_v45, %v6678_v58 }
 0x978   :  { %v2319_v32 = vsub.f32 %v2260_v48, %v2318_v34  ;;  %v2324_v9 = vmul.f32 %v2323_v61, %v7321_v23  ;;  %v2325_v22 = vmul.f32 %v2323_v61, %v7319_v7  ;;  %v2326_v37 = vmul.f32 %v2323_v61, %v7335_v5  ;;  %v2356_v7 = vld [vmem:[%s8607_s1 + $0x128] sm:$0xff] }
 0x979   :  { %v2327_v49 = vmul.f32 %v2323_v61, %v7332_v1  ;;  %v2328_v51 = vmul.f32 %v2323_v61, %v2241_v46  ;;  %v2329_v54 = vmul.f32 %v2323_v61, %v2246_v63  ;;  %v2330_v55 = vmul.f32 %v2323_v61, %v2251_v59  ;;  %v2357_v1 = vld [vmem:[%s8607_s1 + $0x130] sm:$0xff] }
 0x97a   :  { %v2331_v60 = vmul.f32 %v2323_v61, %v2256_v62  ;;  %v2335_v2 = vrot.slane %v2319_v32, %v6678_v58  ;;  %v6246_v20 = vpack.c.bf16 %v2357_v1, %v2356_v7 }
 0x97c   :  { %v2336_v6 = vadd.f32 %v2335_v2, %v2324_v9  ;;  %v2337_v8 = vadd.f32 %v2335_v2, %v2325_v22  ;;  %v2338_v14 = vadd.f32 %v2335_v2, %v2326_v37  ;;  %v2339_v15 = vadd.f32 %v2335_v2, %v2327_v49  ;;  %6247 = vmatprep.subr.bf16.mxu0 %v6246_v20 }
 0x97d   :  { %v2340_v16 = vadd.f32 %v2335_v2, %v2328_v51  ;;  %v2341_v18 = vadd.f32 %v2335_v2, %v2329_v54  ;;  %v2342_v41 = vadd.f32 %v2335_v2, %v2330_v55  ;;  %v2343_v23 = vadd.f32 %v2335_v2, %v2331_v60  ;;  %6358 = vmatprep.subr.bf16.mxu1 %v6246_v20 }
 0x97e   :  { %v2344_v5 = vmax.f32 %v2336_v6, 0.0  ;;  %v2345_v63 = vmax.f32 %v2337_v8, 0.0  ;;  %v2346_v46 = vmax.f32 %v2338_v14, 0.0  ;;  %v2347_v62 = vmax.f32 %v2339_v15, 0.0  ;;  %6249 = vmatpush3.bf16.msra.mxu0 %v6246_v20  ;;  %6361 = vmatpush3.bf16.msra.mxu1 %v6246_v20  ;;  %v2928_v20 = vld [vmem:[%s8607_s1 + $0x158] sm:$0xff] }
 0x97f   :  { %v2348_v59 = vmax.f32 %v2340_v16, 0.0  ;;  %v2349_v19 = vmax.f32 %v2341_v18, 0.0  ;;  %v2350_v29 = vmax.f32 %v2342_v41, 0.0  ;;  %v2351_v44 = vmax.f32 %v2343_v23, 0.0  ;;  %6251 = vmatprep.subr.bf16.mxu0 %v6250_v50 }
 0x980   :  { %2359 = vst.msk [vmem:[#allocation2 + $0x8] sm:$0xff] %vm15_vm0, %v2344_v5  ;;  %2360 = vst.msk [vmem:[#allocation2 + $0x10] sm:$0xff] %vm15_vm0, %v2345_v63 }
 0x981   :  { %2361 = vst.msk [vmem:[#allocation2 + $0x18] sm:$0xff] %vm15_vm0, %v2346_v46  ;;  %2362 = vst.msk [vmem:[#allocation2 + $0x20] sm:$0xff] %vm15_vm0, %v2347_v62 }
 0x982   :  { %2363 = vst.msk [vmem:[#allocation2 + $0x38] sm:$0xff] %vm15_vm0, %v2348_v59  ;;  %2364 = vst.msk [vmem:[#allocation2 + $0x40] sm:$0xff] %vm15_vm0, %v2349_v19 }
 0x983   :  { %2365 = vst.msk [vmem:[#allocation2 + $0x48] sm:$0xff] %vm15_vm0, %v2350_v29  ;;  %2366 = vst.msk [vmem:[#allocation2 + $0x50] sm:$0xff] %vm15_vm0, %v2351_v44  ;;  %v2927_v44 = vld [vmem:[%s8607_s1 + $0x150] sm:$0xff] }
 0x987   :  { %v2372_v21 = vld [vmem:[#allocation2 + $0x10] sm:$0xff]  ;;  %v2371_v24 = vld [vmem:[#allocation2 + $0x8] sm:$0xff] }
 0x988   :  { %2385 = vrot.lane.b32.xlu1 %v2372_v21, %s6434_s26  ;;  %2383 = vrot.lane.b32.xlu0 %v2371_v24, %s6434_s26  ;;  %v2376_v26 = vld [vmem:[#allocation2 + $0x11] sm:$0xff]  ;;  %v2375_v31 = vld [vmem:[#allocation2 + $0x9] sm:$0xff]  ;;  %v2374_v33 = vld [vmem:[#allocation2 + $0x20] sm:$0xff] }
 0x989   :  { %v2373_v35 = vld [vmem:[#allocation2 + $0x18] sm:$0xff]  ;;  %v2378_v4 = vld [vmem:[#allocation2 + $0x21] sm:$0xff]  ;;  %v2368_v45 = vld [vmem:[#allocation2 + $0xf] sm:$0xff] }
 0x98a   :  { %v2377_v36 = vld [vmem:[#allocation2 + $0x19] sm:$0xff]  ;;  %v2428_v28 = vld [vmem:[#allocation2 + $0x41] sm:$0xff]  ;;  %v2426_v12 = vld [vmem:[#allocation2 + $0x50] sm:$0xff] }
 0x98b   :  { %v2424_v42 = vld [vmem:[#allocation2 + $0x40] sm:$0xff]  ;;  %v2423_v39 = vld [vmem:[#allocation2 + $0x38] sm:$0xff]  ;;  %v2425_v27 = vld [vmem:[#allocation2 + $0x48] sm:$0xff] }
 0x98c   :  { %2401 = vrot.lane.b32.xlu1 %v2376_v26, %s6435_s27  ;;  %2399 = vrot.lane.b32.xlu0 %v2375_v31, %s6435_s27  ;;  %v2427_v43 = vld [vmem:[#allocation2 + $0x39] sm:$0xff]  ;;  %v2430_v0 = vld [vmem:[#allocation2 + $0x51] sm:$0xff]  ;;  %v2429_v25 = vld [vmem:[#allocation2 + $0x49] sm:$0xff] }
 0x98d   :  { %v2367_v48 = vld [vmem:[#allocation2 + $0x7] sm:$0xff]  ;;  %v2370_v54 = vld [vmem:[#allocation2 + $0x1f] sm:$0xff]  ;;  %v2369_v55 = vld [vmem:[#allocation2 + $0x17] sm:$0xff] }
 0x98e   :  { %v2420_v16 = vld [vmem:[#allocation2 + $0x3f] sm:$0xff]  ;;  %v2419_v18 = vld [vmem:[#allocation2 + $0x37] sm:$0xff]  ;;  %v2422_v5 = vld [vmem:[#allocation2 + $0x4f] sm:$0xff] }
 0x98f   :  { %v2421_v63 = vld [vmem:[#allocation2 + $0x47] sm:$0xff]  ;;  %v7458_v21 = vld [vmem:[%s8608_s2 + $0xf] ss:$0 sm:$0xff] }
 0x990   :  { %2389 = vrot.lane.b32.xlu1 %v2374_v33, %s6434_s26  ;;  %2387 = vrot.lane.b32.xlu0 %v2373_v35, %s6434_s26  ;;  %v7469_v35 = vld [vmem:[%s8608_s2 + $0x10] ss:$0 sm:$0xff] }
 0x994   :  { %2405 = vrot.lane.b32.xlu1 %v2378_v4, %s6435_s27  ;;  %2403 = vrot.lane.b32.xlu0 %v2377_v36, %s6435_s27 }
 0x998   :  { %2437 = vrot.lane.b32.xlu1 %v2424_v42, %s6434_s26  ;;  %2435 = vrot.lane.b32.xlu0 %v2423_v39, %s6434_s26 }
 0x99c   :  { %2453 = vrot.lane.b32.xlu1 %v2428_v28, %s6435_s27  ;;  %2451 = vrot.lane.b32.xlu0 %v2427_v43, %s6435_s27 }
 0x9a0   :  { %2441 = vrot.lane.b32.xlu1 %v2426_v12, %s6434_s26  ;;  %2439 = vrot.lane.b32.xlu0 %v2425_v27, %s6434_s26 }
 0x9a4   :  { %2457 = vrot.lane.b32.xlu1 %v2430_v0, %s6435_s27  ;;  %2455 = vrot.lane.b32.xlu0 %v2429_v25, %s6435_s27 }
 0x9fa   :  { %v2386_v10 = vpop.permute.xlu1 %2385  ;;  %v2384_v47 = vpop.permute.xlu0 %2383 }
 0x9fb   :  { %v2412_v34 = vsel %vm15_vm0, %v2368_v45, %v2386_v10  ;;  %v2411_v61 = vsel %vm15_vm0, %v2367_v48, %v2384_v47 }
 0x9fe   :  { %v2402_v32 = vpop.permute.xlu1 %2401  ;;  %v2400_v9 = vpop.permute.xlu0 %2399 }
 0x9ff   :  { %v2416_v22 = vsel %vm645_vm9, %v2412_v34, %v2402_v32  ;;  %v2415_v37 = vsel %vm645_vm9, %v2411_v61, %v2400_v9 }
 0xa00   :  { %5951 = vmatprep.mubr.msk.f32.mxu0 %vm706_vm10, %v2415_v37 }
 0xa01   :  { %5952 = vmatmul.mubr.msk.f32.vlgmr.msra.gmra.mrb[34].mxu0 %vm706_vm10, %v2416_v22 }
 0xa02   :  { %v2390_v49 = vpop.permute.xlu1 %2389  ;;  %v2388_v51 = vpop.permute.xlu0 %2387  ;;  %6253 = vmatpush3.bf16.msra.mxu0 %v6250_v50  ;;  %5967 = vmatprep.mubr.msk.f32.mxu0 %vm15_vm0, %v7222_v57  ;;  %v6258_v50 = vpack.c.bf16 %v2929_v52, %v2928_v20 }
 0xa03   :  { %v2414_v60 = vsel %vm15_vm0, %v2370_v54, %v2390_v49  ;;  %v2413_v2 = vsel %vm15_vm0, %v2369_v55, %v2388_v51 }
 0xa05   :  { %5968 = vmatmul.mubr.msk.f32.vlgmr.msra.gmra.mrb[36].mxu0 %vm15_vm0, %v7220_v30 }
 0xa06   :  { %v2406_v6 = vpop.permute.xlu1 %2405  ;;  %v2404_v8 = vpop.permute.xlu0 %2403  ;;  %5970 = vmatprep.mubr.msk.f32.mxu0 %vm15_vm0, %v7236_v56 }
 0xa07   :  { %v2418_v14 = vsel %vm645_vm9, %v2414_v60, %v2406_v6  ;;  %v2417_v15 = vsel %vm645_vm9, %v2413_v2, %v2404_v8 }
 0xa08   :  { %5954 = vmatprep.mubr.msk.f32.mxu1 %vm706_vm10, %v2417_v15 }
 0xa09   :  { %5955 = vmatmul.mubr.msk.f32.vlgmr.msra.gmra.mrb[22].mxu1 %vm706_vm10, %v2418_v14  ;;  %5971 = vmatmul.mubr.msk.f32.gmra.mrb[38].mxu0 %vm15_vm0, %v7234_v53 }
 0xa0a   :  { %v2438_v30 = vpop.permute.xlu1 %2437  ;;  %v2436_v57 = vpop.permute.xlu0 %2435  ;;  %5973 = vmatprep.mubr.msk.f32.mxu0 %vm15_vm0, %v7253_v17 }
 0xa0b   :  { %v2464_v56 = vsel %vm15_vm0, %v2420_v16, %v2438_v30  ;;  %v2463_v41 = vsel %vm15_vm0, %v2419_v18, %v2436_v57 }
 0xa0d   :  { %5974 = vmatmul.mubr.msk.f32.gmra.mrb[40].mxu0 %vm15_vm0, %v7251_v40 }
 0xa0e   :  { %v2454_v23 = vpop.permute.xlu1 %2453  ;;  %v2452_v7 = vpop.permute.xlu0 %2451  ;;  %5976 = vmatprep.mubr.msk.f32.mxu0 %vm15_vm0, %v7265_v11 }
 0xa0f   :  { %v2468_v53 = vsel %vm645_vm9, %v2464_v56, %v2454_v23  ;;  %v2467_v1 = vsel %vm645_vm9, %v2463_v41, %v2452_v7 }
 0xa10   :  { %5957 = vmatprep.mubr.msk.f32.mxu1 %vm706_vm10, %v2467_v1 }
 0xa11   :  { %5958 = vmatmul.mubr.msk.f32.gmra.mrb[24].mxu1 %vm706_vm10, %v2468_v53  ;;  %5977 = vmatmul.mubr.msk.f32.gmra.mrb[42].mxu0 %vm15_vm0, %v7263_v13  ;;  %v2926_v13 = vld [vmem:[%s8607_s1 + $0x148] sm:$0xff] }
 0xa12   :  { %v2442_v40 = vpop.permute.xlu1 %2441  ;;  %v2440_v17 = vpop.permute.xlu0 %2439  ;;  %v6254_v38 = vpack.c.bf16 %v2927_v44, %v2926_v13 }
 0xa13   :  { %v2466_v46 = vsel %vm15_vm0, %v2422_v5, %v2442_v40  ;;  %v2465_v62 = vsel %vm15_vm0, %v2421_v63, %v2440_v17 }
 0xa14   :  { %6255 = vmatprep.subr.bf16.mxu1 %v6254_v38 }
 0xa15   :  { %6257 = vmatpush3.bf16.msra.mxu1 %v6254_v38 }
 0xa16   :  { %v2458_v11 = vpop.permute.xlu1 %2457  ;;  %v2456_v59 = vpop.permute.xlu0 %2455  ;;  %6259 = vmatprep.subr.bf16.mxu1 %v6258_v50 }
 0xa17   :  { %v2470_v19 = vsel %vm645_vm9, %v2466_v46, %v2458_v11  ;;  %v2469_v29 = vsel %vm645_vm9, %v2465_v62, %v2456_v59 }
 0xa18   :  { %5960 = vmatprep.mubr.msk.f32.mxu1 %vm706_vm10, %v2469_v29 }
 0xa19   :  { %5961 = vmatmul.mubr.msk.f32.gmra.mrb[26].mxu1 %vm706_vm10, %v2470_v19 }
 0xa1a   :  { %6261 = vmatpush3.bf16.msra.mxu1 %v6258_v50 }
 0xad4   :  { %v5953_v24 = vpop.f32.mrb[34].mxu0 }
 0xad5   :  { %v7461_v26 = vadd.f32 %v5953_v24, %v7458_v21  ;;  %v2565_v31 = vpop.f32.mrb[35].mxu0 }
 0xad6   :  { %v7464_v33 = vadd.f32 %v7458_v21, %v2565_v31 }
 0xad7   :  { %v2828_v4 = vsel %vm15_vm0, %v7461_v26, 0.0  ;;  %v2850_v36 = vmul.f32 %v7461_v26, %v7461_v26 }
 0xad8   :  { %v2827_v42 = vsel %vm15_vm0, %v7464_v33, 0.0  ;;  %v2849_v39 = vmul.f32 %v7464_v33, %v7464_v33  ;;  %v5969_v28 = vpop.f32.mrb[36].mxu0 }
 0xad9   :  { %v2858_v43 = vsel %vm15_vm0, %v2850_v36, 0.0  ;;  %v2829_v12 = vadd.f32 %v2828_v4, %v2827_v42  ;;  %v7481_v27 = vadd.f32 %v5969_v28, %v7469_v35  ;;  %v2701_v0 = vpop.f32.mrb[37].mxu0 }
 0xada   :  { %v2857_v25 = vsel %vm15_vm0, %v2849_v39, 0.0  ;;  %v7485_v10 = vadd.f32 %v7469_v35, %v2701_v0 }
 0xadb   :  { %v2859_v47 = vadd.f32 %v2858_v43, %v2857_v25  ;;  %v2743_v45 = vsel %vm15_vm0, %v7481_v27, 0.0  ;;  %v2765_v48 = vmul.f32 %v7481_v27, %v7481_v27 }
 0xadc   :  { %v2742_v34 = vsel %vm15_vm0, %v7485_v10, 0.0  ;;  %v2764_v61 = vmul.f32 %v7485_v10, %v7485_v10  ;;  %v5956_v32 = vpop.f32.mrb[22].mxu1  ;;  %v5972_v9 = vpop.f32.mrb[38].mxu0 }
 0xadd   :  { %v2773_v22 = vsel %vm15_vm0, %v2765_v48, 0.0  ;;  %v2744_v37 = vadd.f32 %v2743_v45, %v2742_v34  ;;  %v7497_v49 = vadd.f32 %v5956_v32, %v7458_v21  ;;  %v7500_v51 = vadd.f32 %v5972_v9, %v7469_v35  ;;  %v2575_v54 = vpop.f32.mrb[23].mxu1  ;;  %v2711_v55 = vpop.f32.mrb[39].mxu0 }
 0xade   :  { %v2772_v60 = vsel %vm15_vm0, %v2764_v61, 0.0  ;;  %v7504_v2 = vadd.f32 %v7458_v21, %v2575_v54  ;;  %v7507_v6 = vadd.f32 %v7469_v35, %v2711_v55 }
 0xadf   :  { %v2774_v8 = vadd.f32 %v2773_v22, %v2772_v60  ;;  %v2852_v14 = vmul.f32 %v7497_v49, %v7497_v49  ;;  %v2767_v15 = vmul.f32 %v7500_v51, %v7500_v51  ;;  %v2832_v56 = vsel %vm15_vm0, %v7497_v49, 0.0 }
 0xae0   :  { %v2830_v30 = vsel %vm15_vm0, %v7504_v2, 0.0  ;;  %v2851_v57 = vmul.f32 %v7504_v2, %v7504_v2  ;;  %v2745_v16 = vsel %vm15_vm0, %v7507_v6, 0.0  ;;  %v5975_v18 = vpop.f32.mrb[40].mxu0  ;;  %v2766_v7 = vmul.f32 %v7507_v6, %v7507_v6 }
 0xae1   :  { %v2831_v41 = vadd.f32 %v2830_v30, %v2829_v12  ;;  %v2746_v23 = vadd.f32 %v2745_v16, %v2744_v37  ;;  %v2721_v53 = vpop.f32.mrb[41].mxu0  ;;  %v2747_v1 = vsel %vm15_vm0, %v7500_v51, 0.0  ;;  %v7527_v17 = vadd.f32 %v5975_v18, %v7469_v35 }
 0xae2   :  { %v2860_v40 = vsel %vm15_vm0, %v2851_v57, 0.0  ;;  %v7530_v5 = vadd.f32 %v7469_v35, %v2721_v53  ;;  %v2775_v46 = vsel %vm15_vm0, %v2766_v7, 0.0  ;;  %v2862_v59 = vsel %vm15_vm0, %v2852_v14, 0.0 }
 0xae3   :  { %v2861_v63 = vadd.f32 %v2860_v40, %v2859_v47  ;;  %v2748_v62 = vadd.f32 %v2747_v1, %v2746_v23  ;;  %v2833_v11 = vadd.f32 %v2832_v56, %v2831_v41  ;;  %v2777_v19 = vsel %vm15_vm0, %v2767_v15, 0.0 }
 0xae4   :  { %v2776_v29 = vadd.f32 %v2775_v46, %v2774_v8  ;;  %v2749_v13 = vsel %vm15_vm0, %v7530_v5, 0.0  ;;  %v5959_v44 = vpop.f32.mrb[24].mxu1  ;;  %v5978_v20 = vpop.f32.mrb[42].mxu0  ;;  %v2769_v38 = vmul.f32 %v7527_v17, %v7527_v17  ;;  %v2768_v50 = vmul.f32 %v7530_v5, %v7530_v5 }
 0xae5   :  { %v2750_v52 = vadd.f32 %v2749_v13, %v2748_v62  ;;  %v7542_v24 = vadd.f32 %v5959_v44, %v7458_v21  ;;  %v2585_v31 = vpop.f32.mrb[25].mxu1  ;;  %v2731_v4 = vpop.f32.mrb[43].mxu0  ;;  %v7545_v42 = vadd.f32 %v5978_v20, %v7469_v35  ;;  %v2863_v28 = vadd.f32 %v2862_v59, %v2861_v63 }
 0xae6   :  { %v2778_v36 = vadd.f32 %v2777_v19, %v2776_v29  ;;  %v7548_v39 = vadd.f32 %v7458_v21, %v2585_v31  ;;  %v2751_v43 = vsel %vm15_vm0, %v7527_v17, 0.0  ;;  %v2779_v12 = vsel %vm15_vm0, %v2768_v50, 0.0 }
 0xae7   :  { %v2854_v25 = vmul.f32 %v7542_v24, %v7542_v24  ;;  %v2781_v48 = vsel %vm15_vm0, %v2769_v38, 0.0  ;;  %v7561_v61 = vadd.f32 %v7469_v35, %v2731_v4  ;;  %v2752_v32 = vadd.f32 %v2751_v43, %v2750_v52 }
 0xae8   :  { %v2780_v0 = vadd.f32 %v2779_v12, %v2778_v36  ;;  %v2834_v47 = vsel %vm15_vm0, %v7548_v39, 0.0  ;;  %v2853_v45 = vmul.f32 %v7548_v39, %v7548_v39  ;;  %v2836_v9 = vsel %vm15_vm0, %v7542_v24, 0.0 }
 0xae9   :  { %v2835_v34 = vadd.f32 %v2834_v47, %v2833_v11  ;;  %v2771_v22 = vmul.f32 %v7545_v42, %v7545_v42  ;;  %v2753_v60 = vsel %vm15_vm0, %v7561_v61, 0.0  ;;  %v2770_v8 = vmul.f32 %v7561_v61, %v7561_v61 }
 0xaea   :  { %v2864_v37 = vsel %vm15_vm0, %v2853_v45, 0.0  ;;  %v2782_v54 = vadd.f32 %v2781_v48, %v2780_v0  ;;  %v2866_v35 = vsel %vm15_vm0, %v2854_v25, 0.0  ;;  %v2754_v15 = vadd.f32 %v2753_v60, %v2752_v32 }
 0xaeb   :  { %v2865_v55 = vadd.f32 %v2864_v37, %v2863_v28  ;;  %v2837_v14 = vadd.f32 %v2836_v9, %v2835_v34  ;;  %v2755_v57 = vsel %vm15_vm0, %v7545_v42, 0.0  ;;  %v2783_v16 = vsel %vm15_vm0, %v2770_v8, 0.0 }
 0xaec   :  { %v5962_v30 = vpop.f32.mrb[26].mxu1  ;;  %v2756_v23 = vadd.f32 %v2755_v57, %v2754_v15  ;;  %v2784_v7 = vadd.f32 %v2783_v16, %v2782_v54  ;;  %v2785_v1 = vsel %vm15_vm0, %v2771_v22, 0.0 }
 0xaed   :  { %v7577_v18 = vadd.f32 %v5962_v30, %v7458_v21  ;;  %v2595_v56 = vpop.f32.mrb[27].mxu1  ;;  %v2867_v41 = vadd.f32 %v2866_v35, %v2865_v55 }
 0xaee   :  { %v7580_v53 = vadd.f32 %v7458_v21, %v2595_v56  ;;  %v2757_v63 = vrot.slane %v2756_v23, 4  ;;  %v2786_v46 = vadd.f32 %v2785_v1, %v2784_v7  ;;  %v2740_v1 = vld [vmem:[%s8608_s2 + $0x15] sm:$0x1] }
 0xaef   :  { %v2856_v40 = vmul.f32 %v7577_v18, %v7577_v18  ;;  %v2840_v21 = vsel %vm15_vm0, %v7577_v18, 0.0 }
 0xaf0   :  { %v2838_v62 = vsel %vm15_vm0, %v7580_v53, 0.0  ;;  %v2855_v11 = vmul.f32 %v7580_v53, %v7580_v53  ;;  %v2758_v19 = vadd.f32 %v2757_v63, %v2756_v23  ;;  %v2787_v29 = vrot.slane %v2786_v46, 4 }
 0xaf1   :  { %v2839_v59 = vadd.f32 %v2838_v62, %v2837_v14  ;;  %v2870_v50 = vsel %vm15_vm0, %v2856_v40, 0.0 }
 0xaf2   :  { %v2868_v13 = vsel %vm15_vm0, %v2855_v11, 0.0  ;;  %v2759_v38 = vrot.slane %v2758_v19, 2  ;;  %v2788_v52 = vadd.f32 %v2787_v29, %v2786_v46  ;;  %v2741_v46 = vld [vmem:[%s8608_s2 + $0x16] sm:$0x1] }
 0xaf3   :  { %v2841_v44 = vadd.f32 %v2840_v21, %v2839_v59  ;;  %v2869_v20 = vadd.f32 %v2868_v13, %v2867_v41  ;;  %v2825_v59 = vld [vmem:[%s8608_s2 + $0x13] sm:$0x1] }
 0xaf4   :  { %v2760_v36 = vadd.f32 %v2759_v38, %v2758_v19  ;;  %v2789_v28 = vrot.slane %v2788_v52, 2 }
 0xaf5   :  { %v2842_v31 = vrot.slane %v2841_v44, 4  ;;  %v2871_v4 = vadd.f32 %v2870_v50, %v2869_v20 }
 0xaf6   :  { %v2761_v0 = vrot.slane %v2760_v36, 1  ;;  %v2790_v25 = vadd.f32 %v2789_v28, %v2788_v52 }
 0xaf7   :  { %v2843_v43 = vadd.f32 %v2842_v31, %v2841_v44  ;;  %v2872_v12 = vrot.slane %v2871_v4, 4 }
 0xaf8   :  { %v2762_v48 = vadd.f32 %v2761_v0, %v2760_v36  ;;  %v2791_v34 = vrot.slane %v2790_v25, 1 }
 0xaf9   :  { %v2844_v47 = vrot.slane %v2843_v43, 2  ;;  %v2873_v45 = vadd.f32 %v2872_v12, %v2871_v4 }
 0xafa   :  { %v2763_v22 = vmul.f32 0.015625, %v2762_v48  ;;  %v2792_v37 = vadd.f32 %v2791_v34, %v2790_v25 }
 0xafb   :  { %v2845_v32 = vadd.f32 %v2844_v47, %v2843_v43  ;;  %v2874_v9 = vrot.slane %v2873_v45, 2 }
 0xafc   :  { %v2793_v60 = vmul.f32 0.015625, %v2792_v37  ;;  %v2794_v8 = vmul.f32 %v2763_v22, %v2763_v22 }
 0xafd   :  { %v2846_v54 = vrot.slane %v2845_v32, 1  ;;  %v2875_v55 = vadd.f32 %v2874_v9, %v2873_v45 }
 0xafe   :  { %v2795_v15 = vsub.f32 %v2793_v60, %v2794_v8 }
 0xaff   :  { %v2847_v14 = vadd.f32 %v2846_v54, %v2845_v32  ;;  %v2876_v35 = vrot.slane %v2875_v55, 1 }
 0xb00   :  { %v2796_v16 = vadd.f32 1e-05, %v2795_v15 }
 0xb01   :  { %v2848_v30 = vmul.f32 0.015625, %v2847_v14  ;;  %v2877_v57 = vadd.f32 %v2876_v35, %v2875_v55 }
 0xb02   :  { %6387 = vrsqrt.f32 %v2796_v16  ;;  %v2931_v16 = vld [vmem:[%s8607_s1 + $0x170] sm:$0xff] }
 0xb03   :  { %v2878_v56 = vmul.f32 0.015625, %v2877_v57  ;;  %v2879_v41 = vmul.f32 %v2848_v30, %v2848_v30 }
 0xb05   :  { %v2880_v23 = vsub.f32 %v2878_v56, %v2879_v41 }
 0xb07   :  { %v2881_v7 = vadd.f32 1e-05, %v2880_v23 }
 0xb09   :  { %6389 = vrsqrt.f32 %v2881_v7 }
 0xb0c   :  { %v6388_v40 = vpop.eup %6387 }
 0xb0d   :  { %v2798_v63 = vmul.f32 %v6388_v40, %v2740_v1 }
 0xb0f   :  { %v2799_v62 = vmul.f32 %v2798_v63, %v2763_v22  ;;  %v2804_v11 = vrot.slane %v2798_v63, %v6678_v58 }
 0xb11   :  { %v2800_v29 = vsub.f32 %v2741_v46, %v2799_v62  ;;  %v2805_v21 = vmul.f32 %v2804_v11, %v7485_v10  ;;  %v2806_v13 = vmul.f32 %v2804_v11, %v7481_v27  ;;  %v2807_v44 = vmul.f32 %v2804_v11, %v7507_v6 }
 0xb12   :  { %v2808_v20 = vmul.f32 %v2804_v11, %v7500_v51  ;;  %v2809_v38 = vmul.f32 %v2804_v11, %v7530_v5  ;;  %v2810_v52 = vmul.f32 %v2804_v11, %v7527_v17  ;;  %v2811_v50 = vmul.f32 %v2804_v11, %v7561_v61  ;;  %v2826_v51 = vld [vmem:[%s8608_s2 + $0x14] sm:$0x1] }
 0xb13   :  { %v6390_v19 = vpop.eup %6389  ;;  %v2812_v31 = vmul.f32 %v2804_v11, %v7545_v42  ;;  %v2816_v4 = vrot.slane %v2800_v29, %v6678_v58 }
 0xb14   :  { %v2883_v36 = vmul.f32 %v6390_v19, %v2825_v59 }
 0xb15   :  { %v2817_v28 = vadd.f32 %v2816_v4, %v2805_v21  ;;  %v2818_v43 = vadd.f32 %v2816_v4, %v2806_v13  ;;  %v2819_v10 = vadd.f32 %v2816_v4, %v2807_v44  ;;  %v2820_v12 = vadd.f32 %v2816_v4, %v2808_v20 }
 0xb16   :  { %v2821_v27 = vadd.f32 %v2816_v4, %v2809_v38  ;;  %v2822_v0 = vadd.f32 %v2816_v4, %v2810_v52  ;;  %v2823_v6 = vadd.f32 %v2816_v4, %v2811_v50  ;;  %v2824_v25 = vadd.f32 %v2816_v4, %v2812_v31 }
 0xb17   :  { %v2884_v17 = vmul.f32 %v2883_v36, %v2848_v30  ;;  %v2889_v5 = vrot.slane %v2883_v36, %v6678_v58 }
 0xb19   :  { %v2885_v61 = vsub.f32 %v2826_v51, %v2884_v17  ;;  %v2890_v42 = vmul.f32 %v2889_v5, %v7464_v33  ;;  %v2891_v47 = vmul.f32 %v2889_v5, %v7461_v26  ;;  %v2892_v45 = vmul.f32 %v2889_v5, %v7504_v2 }
 0xb1a   :  { %v2893_v48 = vmul.f32 %v2889_v5, %v7497_v49  ;;  %v2894_v34 = vmul.f32 %v2889_v5, %v7548_v39  ;;  %v2895_v32 = vmul.f32 %v2889_v5, %v7542_v24  ;;  %v2896_v9 = vmul.f32 %v2889_v5, %v7580_v53 }
 0xb1b   :  { %v2897_v22 = vmul.f32 %v2889_v5, %v7577_v18  ;;  %v2901_v37 = vrot.slane %v2885_v61, %v6678_v58  ;;  %v2930_v18 = vld [vmem:[%s8607_s1 + $0x168] sm:$0xff] }
 0xb1c   :  { %v6262_v62 = vpack.c.bf16 %v2931_v16, %v2930_v18 }
 0xb1d   :  { %v2902_v54 = vadd.f32 %v2901_v37, %v2890_v42  ;;  %v2903_v55 = vadd.f32 %v2901_v37, %v2891_v47  ;;  %v2904_v60 = vadd.f32 %v2901_v37, %v2892_v45  ;;  %v2905_v33 = vadd.f32 %v2901_v37, %v2893_v48 }
 0xb1e   :  { %v2906_v8 = vadd.f32 %v2901_v37, %v2894_v34  ;;  %v2907_v26 = vadd.f32 %v2901_v37, %v2895_v32  ;;  %v2908_v14 = vadd.f32 %v2901_v37, %v2896_v9  ;;  %v2909_v2 = vadd.f32 %v2901_v37, %v2897_v22  ;;  %6263 = vmatprep.subr.bf16.mxu1 %v6262_v62 }
 0xb1f   :  { %v2910_v35 = vadd.f32 %v2902_v54, %v2817_v28  ;;  %v2911_v49 = vadd.f32 %v2903_v55, %v2818_v43  ;;  %v2912_v15 = vadd.f32 %v2904_v60, %v2819_v10  ;;  %v2913_v39 = vadd.f32 %v2905_v33, %v2820_v12  ;;  %6265 = vmatpush3.bf16.msra.mxu1 %v6262_v62 }
 0xb20   :  { %v2914_v30 = vadd.f32 %v2906_v8, %v2821_v27  ;;  %v2915_v24 = vadd.f32 %v2907_v26, %v2822_v0  ;;  %v2916_v57 = vadd.f32 %v2908_v14, %v2823_v6  ;;  %v2917_v53 = vadd.f32 %v2909_v2, %v2824_v25 }
 0xb21   :  { %v2918_v56 = vmax.f32 %v2910_v35, 0.0  ;;  %v2919_v41 = vmax.f32 %v2911_v49, 0.0  ;;  %v2920_v23 = vmax.f32 %v2912_v15, 0.0  ;;  %v2921_v7 = vmax.f32 %v2913_v39, 0.0 }
 0xb22   :  { %v2922_v1 = vmax.f32 %v2914_v30, 0.0  ;;  %v2923_v40 = vmax.f32 %v2915_v24, 0.0  ;;  %v2924_v63 = vmax.f32 %v2916_v57, 0.0  ;;  %v2925_v46 = vmax.f32 %v2917_v53, 0.0 }
 0xb23   :  { %2933 = vst.msk [vmem:[#allocation2 + $0x8] sm:$0xff] %vm15_vm0, %v2918_v56  ;;  %2934 = vst.msk [vmem:[#allocation2 + $0x10] sm:$0xff] %vm15_vm0, %v2919_v41 }
 0xb24   :  { %2935 = vst.msk [vmem:[#allocation2 + $0x18] sm:$0xff] %vm15_vm0, %v2920_v23  ;;  %2936 = vst.msk [vmem:[#allocation2 + $0x20] sm:$0xff] %vm15_vm0, %v2921_v7  ;;  %v5482_v7 = vld [vmem:[%s8608_s2 + $0x17] ss:$0 sm:$0xff] }
 0xb25   :  { %2937 = vst.msk [vmem:[#allocation2 + $0x38] sm:$0xff] %vm15_vm0, %v2922_v1  ;;  %2938 = vst.msk [vmem:[#allocation2 + $0x40] sm:$0xff] %vm15_vm0, %v2923_v40  ;;  %v3178_v1 = vld [vmem:[%s8607_s1 + $0x178] sm:$0xff]  ;;  %v3179_v40 = vld [vmem:[%s8607_s1 + $0x180] sm:$0xff] }
 0xb26   :  { %2939 = vst.msk [vmem:[#allocation2 + $0x48] sm:$0xff] %vm15_vm0, %v2924_v63  ;;  %2940 = vst.msk [vmem:[#allocation2 + $0x50] sm:$0xff] %vm15_vm0, %v2925_v46  ;;  %v6266_v46 = vpack.c.bf16 %v3179_v40, %v3178_v1 }
 0xb28   :  { %6267 = vmatprep.subr.bf16.mxu0 %v6266_v46 }
 0xb29   :  { %6269 = vmatpush3.bf16.msra.mxu0 %v6266_v46 }
 0xb2a   :  { %v2946_v11 = vld [vmem:[#allocation2 + $0x10] sm:$0xff]  ;;  %v2945_v59 = vld [vmem:[#allocation2 + $0x8] sm:$0xff] }
 0xb2b   :  { %2959 = vrot.lane.b32.xlu1 %v2946_v11, %s6434_s26  ;;  %2957 = vrot.lane.b32.xlu0 %v2945_v59, %s6434_s26  ;;  %v2950_v19 = vld [vmem:[#allocation2 + $0x11] sm:$0xff]  ;;  %v2949_v29 = vld [vmem:[#allocation2 + $0x9] sm:$0xff]  ;;  %v2948_v21 = vld [vmem:[#allocation2 + $0x20] sm:$0xff] }
 0xb2c   :  { %v2947_v13 = vld [vmem:[#allocation2 + $0x18] sm:$0xff]  ;;  %v2952_v44 = vld [vmem:[#allocation2 + $0x21] sm:$0xff]  ;;  %v2942_v27 = vld [vmem:[#allocation2 + $0xf] sm:$0xff] }
 0xb2d   :  { %v2951_v20 = vld [vmem:[#allocation2 + $0x19] sm:$0xff]  ;;  %v3002_v50 = vld [vmem:[#allocation2 + $0x41] sm:$0xff]  ;;  %v3000_v4 = vld [vmem:[#allocation2 + $0x50] sm:$0xff] }
 0xb2e   :  { %v2998_v38 = vld [vmem:[#allocation2 + $0x40] sm:$0xff]  ;;  %v2997_v52 = vld [vmem:[#allocation2 + $0x38] sm:$0xff]  ;;  %v2999_v36 = vld [vmem:[#allocation2 + $0x48] sm:$0xff] }
 0xb2f   :  { %2975 = vrot.lane.b32.xlu1 %v2950_v19, %s6435_s27  ;;  %2973 = vrot.lane.b32.xlu0 %v2949_v29, %s6435_s27  ;;  %v3001_v31 = vld [vmem:[#allocation2 + $0x39] sm:$0xff]  ;;  %v3004_v28 = vld [vmem:[#allocation2 + $0x51] sm:$0xff]  ;;  %v3003_v43 = vld [vmem:[#allocation2 + $0x49] sm:$0xff] }
 0xb30   :  { %v2941_v0 = vld [vmem:[#allocation2 + $0x7] sm:$0xff]  ;;  %v2944_v45 = vld [vmem:[#allocation2 + $0x1f] sm:$0xff]  ;;  %v2943_v48 = vld [vmem:[#allocation2 + $0x17] sm:$0xff] }
 0xb31   :  { %v2994_v33 = vld [vmem:[#allocation2 + $0x3f] sm:$0xff]  ;;  %v2993_v8 = vld [vmem:[#allocation2 + $0x37] sm:$0xff]  ;;  %v2996_v24 = vld [vmem:[#allocation2 + $0x4f] sm:$0xff] }
 0xb32   :  { %v2995_v57 = vld [vmem:[#allocation2 + $0x47] sm:$0xff]  ;;  %v3181_v29 = vld [vmem:[%s8607_s1 + $0x190] sm:$0xff] }
 0xb33   :  { %2963 = vrot.lane.b32.xlu1 %v2948_v21, %s6434_s26  ;;  %2961 = vrot.lane.b32.xlu0 %v2947_v13, %s6434_s26  ;;  %v3180_v19 = vld [vmem:[%s8607_s1 + $0x188] sm:$0xff] }
 0xb34   :  { %v6270_v13 = vpack.c.bf16 %v3181_v29, %v3180_v19 }
 0xb36   :  { %6271 = vmatprep.subr.bf16.mxu0 %v6270_v13 }
 0xb37   :  { %2979 = vrot.lane.b32.xlu1 %v2952_v44, %s6435_s27  ;;  %2977 = vrot.lane.b32.xlu0 %v2951_v20, %s6435_s27 }
 0xb38   :  { %6273 = vmatpush3.bf16.msra.mxu0 %v6270_v13 }
 0xb3b   :  { %3011 = vrot.lane.b32.xlu1 %v2998_v38, %s6434_s26  ;;  %3009 = vrot.lane.b32.xlu0 %v2997_v52, %s6434_s26 }
 0xb3f   :  { %3027 = vrot.lane.b32.xlu1 %v3002_v50, %s6435_s27  ;;  %3025 = vrot.lane.b32.xlu0 %v3001_v31, %s6435_s27  ;;  %v3182_v31 = vld [vmem:[%s8607_s1 + $0x198] sm:$0xff] }
 0xb43   :  { %3015 = vrot.lane.b32.xlu1 %v3000_v4, %s6434_s26  ;;  %3013 = vrot.lane.b32.xlu0 %v2999_v36, %s6434_s26  ;;  %v3183_v4 = vld [vmem:[%s8607_s1 + $0x1a0] sm:$0xff] }
 0xb44   :  { %v6274_v36 = vpack.c.bf16 %v3183_v4, %v3182_v31 }
 0xb46   :  { %6275 = vmatprep.subr.bf16.mxu0 %v6274_v36 }
 0xb47   :  { %3031 = vrot.lane.b32.xlu1 %v3004_v28, %s6435_s27  ;;  %3029 = vrot.lane.b32.xlu0 %v3003_v43, %s6435_s27 }
 0xb48   :  { %6277 = vmatpush3.bf16.msra.mxu0 %v6274_v36 }
 0xb9d   :  { %v2960_v10 = vpop.permute.xlu1 %2959  ;;  %v2958_v12 = vpop.permute.xlu0 %2957 }
 0xb9e   :  { %v2986_v6 = vsel %vm15_vm0, %v2942_v27, %v2960_v10  ;;  %v2985_v25 = vsel %vm15_vm0, %v2941_v0, %v2958_v12 }
 0xba1   :  { %v2976_v51 = vpop.permute.xlu1 %2975  ;;  %v2974_v17 = vpop.permute.xlu0 %2973 }
 0xba2   :  { %v2990_v5 = vsel %vm645_vm9, %v2986_v6, %v2976_v51  ;;  %v2989_v61 = vsel %vm645_vm9, %v2985_v25, %v2974_v17 }
 0xba3   :  { %5991 = vmatprep.mubr.msk.f32.mxu1 %vm706_vm10, %v2989_v61 }
 0xba4   :  { %5992 = vmatmul.mubr.msk.f32.vlgmr.msra.gmra.mrb[28].mxu1 %vm706_vm10, %v2990_v5 }
 0xba5   :  { %v2964_v42 = vpop.permute.xlu1 %2963  ;;  %v2962_v47 = vpop.permute.xlu0 %2961 }
 0xba6   :  { %v2988_v34 = vsel %vm15_vm0, %v2944_v45, %v2964_v42  ;;  %v2987_v32 = vsel %vm15_vm0, %v2943_v48, %v2962_v47 }
 0xba9   :  { %v2980_v9 = vpop.permute.xlu1 %2979  ;;  %v2978_v22 = vpop.permute.xlu0 %2977 }
 0xbaa   :  { %v2992_v37 = vsel %vm645_vm9, %v2988_v34, %v2980_v9  ;;  %v2991_v54 = vsel %vm645_vm9, %v2987_v32, %v2978_v22  ;;  %v3775_v32 = vld [vmem:[%s8607_s1 + $0x1d8] sm:$0xff]  ;;  %v3776_v9 = vld [vmem:[%s8607_s1 + $0x1e0] sm:$0xff] }
 0xbab   :  { %5994 = vmatprep.mubr.msk.f32.mxu1 %vm706_vm10, %v2991_v54  ;;  %v6290_v22 = vpack.c.bf16 %v3776_v9, %v3775_v32 }
 0xbac   :  { %5995 = vmatmul.mubr.msk.f32.gmra.mrb[30].mxu1 %vm706_vm10, %v2992_v37 }
 0xbad   :  { %v3012_v55 = vpop.permute.xlu1 %3011  ;;  %v3010_v60 = vpop.permute.xlu0 %3009  ;;  %6291 = vmatprep.subr.bf16.mxu0 %v6290_v22 }
 0xbae   :  { %v3038_v26 = vsel %vm15_vm0, %v2994_v33, %v3012_v55  ;;  %v3037_v14 = vsel %vm15_vm0, %v2993_v8, %v3010_v60 }
 0xbb1   :  { %v3028_v2 = vpop.permute.xlu1 %3027  ;;  %v3026_v35 = vpop.permute.xlu0 %3025 }
 0xbb2   :  { %v3042_v49 = vsel %vm645_vm9, %v3038_v26, %v3028_v2  ;;  %v3041_v15 = vsel %vm645_vm9, %v3037_v14, %v3026_v35 }
 0xbb3   :  { %5997 = vmatprep.mubr.msk.f32.mxu1 %vm706_vm10, %v3041_v15 }
 0xbb4   :  { %5998 = vmatmul.mubr.msk.f32.gmra.mrb[32].mxu1 %vm706_vm10, %v3042_v49 }
 0xbb5   :  { %v3016_v39 = vpop.permute.xlu1 %3015  ;;  %v3014_v30 = vpop.permute.xlu0 %3013 }
 0xbb6   :  { %v3040_v53 = vsel %vm15_vm0, %v2996_v24, %v3016_v39  ;;  %v3039_v18 = vsel %vm15_vm0, %v2995_v57, %v3014_v30 }
 0xbb9   :  { %v3032_v16 = vpop.permute.xlu1 %3031  ;;  %v3030_v56 = vpop.permute.xlu0 %3029 }
 0xbba   :  { %v3044_v41 = vsel %vm645_vm9, %v3040_v53, %v3032_v16  ;;  %v3043_v23 = vsel %vm645_vm9, %v3039_v18, %v3030_v56 }
 0xbbb   :  { %6000 = vmatprep.mubr.msk.f32.mxu1 %vm706_vm10, %v3043_v23 }
 0xbbc   :  { %6001 = vmatmul.mubr.msk.f32.gmra.mrb[34].mxu1 %vm706_vm10, %v3044_v41 }
 0xc77   :  { %v5993_v63 = vpop.f32.mrb[28].mxu1 }
 0xc78   :  { %v7688_v62 = vadd.f32 %v5993_v63, %v5482_v7  ;;  %v3139_v11 = vpop.f32.mrb[29].mxu1 }
 0xc79   :  { %v7690_v59 = vadd.f32 %v5482_v7, %v3139_v11 }
 0xc7a   :  { %3186 = vst.msk [vmem:[#allocation2 + $0x10] sm:$0xff] %vm15_vm0, %v7688_v62 }
 0xc7b   :  { %3185 = vst.msk [vmem:[#allocation2 + $0x8] sm:$0xff] %vm15_vm0, %v7690_v59 }
 0xc7f   :  { %v5996_v21 = vpop.f32.mrb[30].mxu1 }
 0xc80   :  { %v7702_v44 = vadd.f32 %v5996_v21, %v5482_v7  ;;  %v3149_v20 = vpop.f32.mrb[31].mxu1 }
 0xc81   :  { %v7704_v38 = vadd.f32 %v5482_v7, %v3149_v20  ;;  %v3198_v52 = vld [vmem:[#allocation2 + $0x10] sm:$0xff] }
 0xc82   :  { %3188 = vst.msk [vmem:[#allocation2 + $0x20] sm:$0xff] %vm15_vm0, %v7702_v44  ;;  %3211 = vrot.lane.b32.xlu1 %v3198_v52, %s6434_s26  ;;  %v3197_v50 = vld [vmem:[#allocation2 + $0x8] sm:$0xff] }
 0xc83   :  { %3187 = vst.msk [vmem:[#allocation2 + $0x18] sm:$0xff] %vm15_vm0, %v7704_v38  ;;  %3209 = vrot.lane.b32.xlu0 %v3197_v50, %s6434_s26  ;;  %v3201_v28 = vld [vmem:[#allocation2 + $0x9] sm:$0xff] }
 0xc84   :  { %v3193_v14 = vld [vmem:[#allocation2 + $0x7] sm:$0xff]  ;;  %v3194_v57 = vld [vmem:[#allocation2 + $0xf] sm:$0xff] }
 0xc87   :  { %v5999_v43 = vpop.f32.mrb[32].mxu1  ;;  %3225 = vrot.lane.b32.xlu0 %v3201_v28, %s6435_s27 }
 0xc88   :  { %v7719_v10 = vadd.f32 %v5999_v43, %v5482_v7  ;;  %v3159_v12 = vpop.f32.mrb[33].mxu1 }
 0xc89   :  { %v7721_v27 = vadd.f32 %v5482_v7, %v3159_v12  ;;  %v3200_v0 = vld [vmem:[#allocation2 + $0x20] sm:$0xff] }
 0xc8a   :  { %3190 = vst.msk [vmem:[#allocation2 + $0x40] sm:$0xff] %vm15_vm0, %v7719_v10  ;;  %3215 = vrot.lane.b32.xlu1 %v3200_v0, %s6434_s26  ;;  %v3199_v6 = vld [vmem:[#allocation2 + $0x18] sm:$0xff]  ;;  %v3204_v25 = vld [vmem:[#allocation2 + $0x21] sm:$0xff] }
 0xc8b   :  { %3189 = vst.msk [vmem:[#allocation2 + $0x38] sm:$0xff] %vm15_vm0, %v7721_v27  ;;  %3213 = vrot.lane.b32.xlu0 %v3199_v6, %s6434_s26  ;;  %v3203_v51 = vld [vmem:[#allocation2 + $0x19] sm:$0xff]  ;;  %v3202_v47 = vld [vmem:[#allocation2 + $0x11] sm:$0xff] }
 0xc8c   :  { %v3195_v18 = vld [vmem:[#allocation2 + $0x17] sm:$0xff]  ;;  %v3196_v1 = vld [vmem:[#allocation2 + $0x1f] sm:$0xff] }
 0xc8e   :  { %3231 = vrot.lane.b32.xlu1 %v3204_v25, %s6435_s27 }
 0xc8f   :  { %v6002_v17 = vpop.f32.mrb[34].mxu1  ;;  %3229 = vrot.lane.b32.xlu0 %v3203_v51, %s6435_s27 }
 0xc90   :  { %v7731_v5 = vadd.f32 %v6002_v17, %v5482_v7  ;;  %v3169_v61 = vpop.f32.mrb[35].mxu1  ;;  %v5491_v17 = vld [vmem:[%s8608_s2 + $0x18] ss:$0 sm:$0xff] }
 0xc91   :  { %v7733_v42 = vadd.f32 %v5482_v7, %v3169_v61  ;;  %v3250_v48 = vld [vmem:[#allocation2 + $0x40] sm:$0xff] }
 0xc92   :  { %3192 = vst.msk [vmem:[#allocation2 + $0x50] sm:$0xff] %vm15_vm0, %v7731_v5  ;;  %3227 = vrot.lane.b32.xlu1 %v3202_v47, %s6435_s27  ;;  %v3249_v45 = vld [vmem:[#allocation2 + $0x38] sm:$0xff] }
 0xc93   :  { %3191 = vst.msk [vmem:[#allocation2 + $0x48] sm:$0xff] %vm15_vm0, %v7733_v42  ;;  %3261 = vrot.lane.b32.xlu0 %v3249_v45, %s6434_s26  ;;  %v3253_v34 = vld [vmem:[#allocation2 + $0x39] sm:$0xff] }
 0xc94   :  { %v3245_v63 = vld [vmem:[#allocation2 + $0x37] sm:$0xff]  ;;  %v3246_v52 = vld [vmem:[#allocation2 + $0x3f] sm:$0xff] }
 0xc96   :  { %3263 = vrot.lane.b32.xlu1 %v3250_v48, %s6434_s26 }
 0xc97   :  { %3277 = vrot.lane.b32.xlu0 %v3253_v34, %s6435_s27 }
 0xc99   :  { %v3252_v37 = vld [vmem:[#allocation2 + $0x50] sm:$0xff] }
 0xc9a   :  { %3267 = vrot.lane.b32.xlu1 %v3252_v37, %s6434_s26  ;;  %v3251_v54 = vld [vmem:[#allocation2 + $0x48] sm:$0xff]  ;;  %v3256_v33 = vld [vmem:[#allocation2 + $0x51] sm:$0xff] }
 0xc9b   :  { %3265 = vrot.lane.b32.xlu0 %v3251_v54, %s6434_s26  ;;  %v3254_v55 = vld [vmem:[#allocation2 + $0x41] sm:$0xff]  ;;  %v3255_v60 = vld [vmem:[#allocation2 + $0x49] sm:$0xff] }
 0xc9c   :  { %v3247_v31 = vld [vmem:[#allocation2 + $0x47] sm:$0xff]  ;;  %v3248_v0 = vld [vmem:[#allocation2 + $0x4f] sm:$0xff] }
 0xc9e   :  { %3279 = vrot.lane.b32.xlu1 %v3254_v55, %s6435_s27 }
 0xc9f   :  { %3281 = vrot.lane.b32.xlu0 %v3255_v60, %s6435_s27 }
 0xca2   :  { %3283 = vrot.lane.b32.xlu1 %v3256_v33, %s6435_s27 }
 0xcf4   :  { %v3212_v26 = vpop.permute.xlu1 %3211 }
 0xcf5   :  { %v3210_v8 = vpop.permute.xlu0 %3209  ;;  %v3238_v53 = vsel %vm15_vm0, %v3194_v57, %v3212_v26 }
 0xcf6   :  { %v3237_v2 = vsel %vm15_vm0, %v3193_v14, %v3210_v8 }
 0xcf9   :  { %v3226_v35 = vpop.permute.xlu0 %3225 }
 0xcfa   :  { %v3241_v49 = vsel %vm645_vm9, %v3237_v2, %v3226_v35 }
 0xcfb   :  { %6015 = vmatprep.mubr.msk.f32.mxu0 %vm706_vm10, %v3241_v49 }
 0xcfc   :  { %v3216_v15 = vpop.permute.xlu1 %3215 }
 0xcfd   :  { %v3214_v39 = vpop.permute.xlu0 %3213  ;;  %v3240_v40 = vsel %vm15_vm0, %v3196_v1, %v3216_v15 }
 0xcfe   :  { %v3239_v56 = vsel %vm15_vm0, %v3195_v18, %v3214_v39 }
 0xd00   :  { %v3232_v30 = vpop.permute.xlu1 %3231 }
 0xd01   :  { %v3230_v24 = vpop.permute.xlu0 %3229  ;;  %v3244_v11 = vsel %vm645_vm9, %v3240_v40, %v3232_v30 }
 0xd02   :  { %v3243_v7 = vsel %vm645_vm9, %v3239_v56, %v3230_v24 }
 0xd04   :  { %v3228_v16 = vpop.permute.xlu1 %3227 }
 0xd05   :  { %v3242_v41 = vsel %vm645_vm9, %v3238_v53, %v3228_v16  ;;  %v3262_v23 = vpop.permute.xlu0 %3261 }
 0xd06   :  { %6016 = vmatmul.mubr.msk.f32.vlgmr.msra.gmra.mrb[44].mxu0 %vm706_vm10, %v3242_v41  ;;  %v3289_v19 = vsel %vm15_vm0, %v3245_v63, %v3262_v23 }
 0xd07   :  { %6018 = vmatprep.mubr.msk.f32.mxu0 %vm706_vm10, %v3243_v7  ;;  %6293 = vmatpush3.bf16.msra.mxu0 %v6290_v22 }
 0xd08   :  { %v3264_v46 = vpop.permute.xlu1 %3263 }
 0xd09   :  { %v3278_v29 = vpop.permute.xlu0 %3277  ;;  %v3290_v50 = vsel %vm15_vm0, %v3246_v52, %v3264_v46 }
 0xd0a   :  { %v3293_v21 = vsel %vm645_vm9, %v3289_v19, %v3278_v29  ;;  %6019 = vmatmul.mubr.msk.f32.gmra.mrb[46].mxu0 %vm706_vm10, %v3244_v11 }
 0xd0b   :  { %6021 = vmatprep.mubr.msk.f32.mxu0 %vm706_vm10, %v3293_v21  ;;  %v7857_v21 = vld [vmem:[%s8608_s2 + $0x1a] ss:$0 sm:$0xff] }
 0xd0c   :  { %v3268_v13 = vpop.permute.xlu1 %3267 }
 0xd0d   :  { %v3266_v20 = vpop.permute.xlu0 %3265  ;;  %v3292_v6 = vsel %vm15_vm0, %v3248_v0, %v3268_v13 }
 0xd0e   :  { %v3291_v36 = vsel %vm15_vm0, %v3247_v31, %v3266_v20 }
 0xd10   :  { %v3280_v4 = vpop.permute.xlu1 %3279 }
 0xd11   :  { %v3294_v28 = vsel %vm645_vm9, %v3290_v50, %v3280_v4  ;;  %v3282_v43 = vpop.permute.xlu0 %3281 }
 0xd12   :  { %v3295_v12 = vsel %vm645_vm9, %v3291_v36, %v3282_v43  ;;  %6022 = vmatmul.mubr.msk.f32.gmra.mrb[48].mxu0 %vm706_vm10, %v3294_v28 }
 0xd13   :  { %6024 = vmatprep.mubr.msk.f32.mxu0 %vm706_vm10, %v3295_v12 }
 0xd14   :  { %v3284_v25 = vpop.permute.xlu1 %3283 }
 0xd15   :  { %v3296_v51 = vsel %vm645_vm9, %v3292_v6, %v3284_v25 }
 0xd16   :  { %6025 = vmatmul.mubr.msk.f32.gmra.mrb[50].mxu0 %vm706_vm10, %v3296_v51 }
 0xd17   :  { %6055 = vmatprep.mubr.msk.f32.mxu0 %vm15_vm0, %v7690_v59  ;;  %v3524_v59 = vld [vmem:[%s8607_s1 + $0x1b0] sm:$0xff] }
 0xd1a   :  { %6056 = vmatmul.mubr.msk.f32.vlgmr.msra.gmra.mrb[52].mxu0 %vm15_vm0, %v7688_v62  ;;  %v3523_v62 = vld [vmem:[%s8607_s1 + $0x1a8] sm:$0xff] }
 0xd1b   :  { %6058 = vmatprep.mubr.msk.f32.mxu0 %vm15_vm0, %v7704_v38  ;;  %v6278_v38 = vpack.c.bf16 %v3524_v59, %v3523_v62 }
 0xd1d   :  { %6279 = vmatprep.subr.bf16.mxu1 %v6278_v38 }
 0xd1e   :  { %6059 = vmatmul.mubr.msk.f32.gmra.mrb[54].mxu0 %vm15_vm0, %v7702_v44  ;;  %v3525_v44 = vld [vmem:[%s8607_s1 + $0x1b8] sm:$0xff]  ;;  %6281 = vmatpush3.bf16.msra.mxu1 %v6278_v38 }
 0xd1f   :  { %6061 = vmatprep.mubr.msk.f32.mxu0 %vm15_vm0, %v7721_v27 }
 0xd22   :  { %6062 = vmatmul.mubr.msk.f32.gmra.mrb[56].mxu0 %vm15_vm0, %v7719_v10  ;;  %v3526_v10 = vld [vmem:[%s8607_s1 + $0x1c0] sm:$0xff] }
 0xd23   :  { %6064 = vmatprep.mubr.msk.f32.mxu0 %vm15_vm0, %v7733_v42  ;;  %v6282_v27 = vpack.c.bf16 %v3526_v10, %v3525_v44 }
 0xd25   :  { %6283 = vmatprep.subr.bf16.mxu1 %v6282_v27 }
 0xd26   :  { %6065 = vmatmul.mubr.msk.f32.gmra.mrb[58].mxu0 %vm15_vm0, %v7731_v5  ;;  %6285 = vmatpush3.bf16.msra.mxu1 %v6282_v27 }
 0xdd9   :  { %v6017_v5 = vpop.f32.mrb[44].mxu0 }
 0xdda   :  { %v7809_v61 = vadd.f32 %v6017_v5, %v5491_v17  ;;  %v3391_v42 = vpop.f32.mrb[45].mxu0 }
 0xddb   :  { %v7811_v47 = vadd.f32 %v5491_v17, %v3391_v42 }
 0xddc   :  { %v3433_v45 = vsel %vm15_vm0, %v7809_v61, 0.0  ;;  %v3455_v48 = vmul.f32 %v7809_v61, %v7809_v61 }
 0xddd   :  { %v3432_v34 = vsel %vm15_vm0, %v7811_v47, 0.0  ;;  %v3454_v32 = vmul.f32 %v7811_v47, %v7811_v47  ;;  %v6020_v9 = vpop.f32.mrb[46].mxu0 }
 0xdde   :  { %v3463_v22 = vsel %vm15_vm0, %v3455_v48, 0.0  ;;  %v3434_v37 = vadd.f32 %v3433_v45, %v3432_v34  ;;  %v7822_v54 = vadd.f32 %v6020_v9, %v5491_v17  ;;  %v3401_v55 = vpop.f32.mrb[47].mxu0 }
 0xddf   :  { %v3462_v60 = vsel %vm15_vm0, %v3454_v32, 0.0  ;;  %v7825_v33 = vadd.f32 %v5491_v17, %v3401_v55 }
 0xde0   :  { %v3464_v8 = vadd.f32 %v3463_v22, %v3462_v60  ;;  %v3457_v26 = vmul.f32 %v7822_v54, %v7822_v54  ;;  %v3437_v49 = vsel %vm15_vm0, %v7822_v54, 0.0 }
 0xde1   :  { %v3435_v14 = vsel %vm15_vm0, %v7825_v33, 0.0  ;;  %v3456_v2 = vmul.f32 %v7825_v33, %v7825_v33 }
 0xde2   :  { %v3436_v35 = vadd.f32 %v3435_v14, %v3434_v37  ;;  %v3467_v24 = vsel %vm15_vm0, %v3457_v26, 0.0 }
 0xde3   :  { %v3465_v15 = vsel %vm15_vm0, %v3456_v2, 0.0 }
 0xde4   :  { %v3466_v39 = vadd.f32 %v3465_v15, %v3464_v8  ;;  %v3438_v30 = vadd.f32 %v3437_v49, %v3436_v35 }
 0xde5   :  { %v6023_v57 = vpop.f32.mrb[48].mxu0 }
 0xde6   :  { %v7837_v53 = vadd.f32 %v6023_v57, %v5491_v17  ;;  %v3411_v18 = vpop.f32.mrb[49].mxu0  ;;  %v3468_v16 = vadd.f32 %v3467_v24, %v3466_v39 }
 0xde7   :  { %v7839_v56 = vadd.f32 %v5491_v17, %v3411_v18 }
 0xde8   :  { %v3459_v41 = vmul.f32 %v7837_v53, %v7837_v53  ;;  %v3441_v11 = vsel %vm15_vm0, %v7837_v53, 0.0 }
 0xde9   :  { %v3439_v23 = vsel %vm15_vm0, %v7839_v56, 0.0  ;;  %v3458_v7 = vmul.f32 %v7839_v56, %v7839_v56  ;;  %v6026_v1 = vpop.f32.mrb[50].mxu0 }
 0xdea   :  { %v3440_v40 = vadd.f32 %v3439_v23, %v3438_v30  ;;  %v7847_v63 = vadd.f32 %v6026_v1, %v5491_v17  ;;  %v3421_v46 = vpop.f32.mrb[51].mxu0  ;;  %v3471_v52 = vsel %vm15_vm0, %v3459_v41, 0.0 }
 0xdeb   :  { %v3469_v19 = vsel %vm15_vm0, %v3458_v7, 0.0  ;;  %v7852_v29 = vadd.f32 %v5491_v17, %v3421_v46 }
 0xdec   :  { %v3470_v13 = vadd.f32 %v3469_v19, %v3468_v16  ;;  %v3442_v20 = vadd.f32 %v3441_v11, %v3440_v40  ;;  %v3461_v50 = vmul.f32 %v7847_v63, %v7847_v63  ;;  %v3445_v6 = vsel %vm15_vm0, %v7847_v63, 0.0 }
 0xded   :  { %v3443_v31 = vsel %vm15_vm0, %v7852_v29, 0.0  ;;  %v3460_v4 = vmul.f32 %v7852_v29, %v7852_v29  ;;  %v6057_v36 = vpop.f32.mrb[52].mxu0 }
 0xdee   :  { %v3444_v28 = vadd.f32 %v3443_v31, %v3442_v20  ;;  %v3472_v43 = vadd.f32 %v3471_v52, %v3470_v13  ;;  %v7867_v12 = vadd.f32 %v6057_v36, %v7857_v21  ;;  %v3872_v0 = vpop.f32.mrb[53].mxu0  ;;  %v3475_v10 = vsel %vm15_vm0, %v3461_v50, 0.0 }
 0xdef   :  { %v3473_v25 = vsel %vm15_vm0, %v3460_v4, 0.0  ;;  %v7873_v51 = vadd.f32 %v7857_v21, %v3872_v0 }
 0xdf0   :  { %v3446_v62 = vadd.f32 %v3445_v6, %v3444_v28  ;;  %v3474_v59 = vadd.f32 %v3473_v25, %v3472_v43  ;;  %v3914_v44 = vsel %vm15_vm0, %v7867_v12, 0.0  ;;  %v3936_v38 = vmul.f32 %v7867_v12, %v7867_v12 }
 0xdf1   :  { %v3913_v27 = vsel %vm15_vm0, %v7873_v51, 0.0  ;;  %v3935_v17 = vmul.f32 %v7873_v51, %v7873_v51  ;;  %v6060_v5 = vpop.f32.mrb[54].mxu0 }
 0xdf2   :  { %v3447_v42 = vrot.slane %v3446_v62, 4  ;;  %v3476_v45 = vadd.f32 %v3475_v10, %v3474_v59  ;;  %v3944_v48 = vsel %vm15_vm0, %v3936_v38, 0.0  ;;  %v3915_v34 = vadd.f32 %v3914_v44, %v3913_v27  ;;  %v3882_v32 = vpop.f32.mrb[55].mxu0 }
 0xdf3   :  { %v3943_v9 = vsel %vm15_vm0, %v3935_v17, 0.0  ;;  %v7887_v22 = vadd.f32 %v6060_v5, %v7857_v21  ;;  %v7890_v37 = vadd.f32 %v7857_v21, %v3882_v32 }
 0xdf4   :  { %v3448_v55 = vadd.f32 %v3447_v42, %v3446_v62  ;;  %v3477_v60 = vrot.slane %v3476_v45, 4  ;;  %v3945_v8 = vadd.f32 %v3944_v48, %v3943_v9 }
 0xdf5   :  { %v3938_v26 = vmul.f32 %v7887_v22, %v7887_v22  ;;  %v3916_v14 = vsel %vm15_vm0, %v7890_v37, 0.0  ;;  %v3937_v2 = vmul.f32 %v7890_v37, %v7890_v37  ;;  %v6063_v35 = vpop.f32.mrb[56].mxu0  ;;  %v3918_v57 = vsel %vm15_vm0, %v7887_v22, 0.0 }
 0xdf6   :  { %v3449_v49 = vrot.slane %v3448_v55, 2  ;;  %v3478_v15 = vadd.f32 %v3477_v60, %v3476_v45  ;;  %v3917_v39 = vadd.f32 %v3916_v14, %v3915_v34  ;;  %v7899_v30 = vadd.f32 %v6063_v35, %v7857_v21  ;;  %v3892_v24 = vpop.f32.mrb[57].mxu0 }
 0xdf7   :  { %v3946_v18 = vsel %vm15_vm0, %v3937_v2, 0.0  ;;  %v7905_v16 = vadd.f32 %v7857_v21, %v3892_v24  ;;  %v3948_v7 = vsel %vm15_vm0, %v3938_v26, 0.0 }
 0xdf8   :  { %v3450_v41 = vadd.f32 %v3449_v49, %v3448_v55  ;;  %v3479_v23 = vrot.slane %v3478_v15, 2  ;;  %v3947_v1 = vadd.f32 %v3946_v18, %v3945_v8  ;;  %v3940_v40 = vmul.f32 %v7899_v30, %v7899_v30 }
 0xdf9   :  { %v3919_v46 = vadd.f32 %v3918_v57, %v3917_v39  ;;  %v3920_v11 = vsel %vm15_vm0, %v7905_v16, 0.0  ;;  %v3939_v19 = vmul.f32 %v7905_v16, %v7905_v16  ;;  %v6066_v13 = vpop.f32.mrb[58].mxu0  ;;  %v3922_v36 = vsel %vm15_vm0, %v7899_v30, 0.0 }
 0xdfa   :  { %v3451_v20 = vrot.slane %v3450_v41, 1  ;;  %v3480_v52 = vadd.f32 %v3479_v23, %v3478_v15  ;;  %v3949_v50 = vadd.f32 %v3948_v7, %v3947_v1  ;;  %v7915_v31 = vadd.f32 %v6066_v13, %v7857_v21  ;;  %v3902_v4 = vpop.f32.mrb[59].mxu0  ;;  %v3430_v1 = vld [vmem:[%s8608_s2 + $0x1b] sm:$0x1] }
 0xdfb   :  { %v3921_v28 = vadd.f32 %v3920_v11, %v3919_v46  ;;  %v3950_v43 = vsel %vm15_vm0, %v3939_v19, 0.0  ;;  %v7921_v0 = vadd.f32 %v7857_v21, %v3902_v4  ;;  %v3952_v62 = vsel %vm15_vm0, %v3940_v40, 0.0 }
 0xdfc   :  { %v3452_v6 = vadd.f32 %v3451_v20, %v3450_v41  ;;  %v3481_v25 = vrot.slane %v3480_v52, 1  ;;  %v3951_v59 = vadd.f32 %v3950_v43, %v3949_v50  ;;  %v3942_v44 = vmul.f32 %v7915_v31, %v7915_v31 }
 0xdfd   :  { %v3923_v38 = vadd.f32 %v3922_v36, %v3921_v28  ;;  %v3924_v10 = vsel %vm15_vm0, %v7921_v0, 0.0  ;;  %v3941_v27 = vmul.f32 %v7921_v0, %v7921_v0  ;;  %v3926_v32 = vsel %vm15_vm0, %v7915_v31, 0.0 }
 0xdfe   :  { %v3453_v17 = vmul.f32 0.015625, %v3452_v6  ;;  %v3482_v5 = vadd.f32 %v3481_v25, %v3480_v52  ;;  %v3953_v42 = vadd.f32 %v3952_v62, %v3951_v59  ;;  %v3956_v55 = vsel %vm15_vm0, %v3942_v44, 0.0  ;;  %v3431_v52 = vld [vmem:[%s8608_s2 + $0x1c] sm:$0x1] }
 0xdff   :  { %v3925_v21 = vadd.f32 %v3924_v10, %v3923_v38  ;;  %v3954_v45 = vsel %vm15_vm0, %v3941_v27, 0.0 }
 0xe00   :  { %v3483_v48 = vmul.f32 0.015625, %v3482_v5  ;;  %v3484_v34 = vmul.f32 %v3453_v17, %v3453_v17  ;;  %v3955_v9 = vadd.f32 %v3954_v45, %v3953_v42 }
 0xe01   :  { %v3927_v60 = vadd.f32 %v3926_v32, %v3925_v21 }
 0xe02   :  { %v3485_v8 = vsub.f32 %v3483_v48, %v3484_v34  ;;  %v3957_v26 = vadd.f32 %v3956_v55, %v3955_v9 }
 0xe03   :  { %v3928_v14 = vrot.slane %v3927_v60, 4 }
 0xe04   :  { %v3486_v2 = vadd.f32 1e-05, %v3485_v8  ;;  %v3958_v35 = vrot.slane %v3957_v26, 4 }
 0xe05   :  { %v3929_v49 = vadd.f32 %v3928_v14, %v3927_v60 }
 0xe06   :  { %6391 = vrsqrt.f32 %v3486_v2  ;;  %v3959_v15 = vadd.f32 %v3958_v35, %v3957_v26  ;;  %v3911_v2 = vld [vmem:[%s8608_s2 + $0x1f] sm:$0x1] }
 0xe07   :  { %v3930_v39 = vrot.slane %v3929_v49, 2 }
 0xe08   :  { %v3960_v24 = vrot.slane %v3959_v15, 2 }
 0xe09   :  { %v3931_v57 = vadd.f32 %v3930_v39, %v3929_v49 }
 0xe0a   :  { %v3961_v18 = vadd.f32 %v3960_v24, %v3959_v15  ;;  %v3912_v24 = vld [vmem:[%s8608_s2 + $0x20] sm:$0x1] }
 0xe0b   :  { %v3932_v41 = vrot.slane %v3931_v57, 1 }
 0xe0c   :  { %v3962_v23 = vrot.slane %v3961_v18, 1 }
 0xe0d   :  { %v3933_v7 = vadd.f32 %v3932_v41, %v3931_v57 }
 0xe0e   :  { %v3963_v40 = vadd.f32 %v3962_v23, %v3961_v18 }
 0xe0f   :  { %v3934_v46 = vmul.f32 0.015625, %v3933_v7 }
 0xe10   :  { %v6392_v11 = vpop.eup %6391  ;;  %v3964_v19 = vmul.f32 0.015625, %v3963_v40 }
 0xe11   :  { %v3488_v13 = vmul.f32 %v6392_v11, %v3430_v1  ;;  %v3965_v20 = vmul.f32 %v3934_v46, %v3934_v46 }
 0xe13   :  { %v3489_v50 = vmul.f32 %v3488_v13, %v3453_v17  ;;  %v3494_v4 = vrot.slane %v3488_v13, %v6678_v58  ;;  %v3966_v36 = vsub.f32 %v3964_v19, %v3965_v20 }
 0xe15   :  { %v3490_v28 = vsub.f32 %v3431_v52, %v3489_v50  ;;  %v3495_v43 = vmul.f32 %v3494_v4, %v7811_v47  ;;  %v3496_v6 = vmul.f32 %v3494_v4, %v7809_v61  ;;  %v3497_v25 = vmul.f32 %v3494_v4, %v7825_v33 }
 0xe16   :  { %v3498_v62 = vmul.f32 %v3494_v4, %v7822_v54  ;;  %v3499_v59 = vmul.f32 %v3494_v4, %v7839_v56  ;;  %v3500_v44 = vmul.f32 %v3494_v4, %v7837_v53  ;;  %v3501_v38 = vmul.f32 %v3494_v4, %v7852_v29  ;;  %v3527_v54 = vld [vmem:[%s8607_s1 + $0x1c8] sm:$0xff]  ;;  %v3528_v53 = vld [vmem:[%s8607_s1 + $0x1d0] sm:$0xff] }
 0xe17   :  { %v3502_v10 = vmul.f32 %v3494_v4, %v7847_v63  ;;  %v3506_v27 = vrot.slane %v3490_v28, %v6678_v58  ;;  %v3967_v17 = vadd.f32 1e-05, %v3966_v36  ;;  %v6286_v8 = vpack.c.bf16 %v3528_v53, %v3527_v54 }
 0xe19   :  { %v3507_v5 = vadd.f32 %v3506_v27, %v3495_v43  ;;  %v3508_v42 = vadd.f32 %v3506_v27, %v3496_v6  ;;  %v3509_v47 = vadd.f32 %v3506_v27, %v3497_v25  ;;  %v3510_v21 = vadd.f32 %v3506_v27, %v3498_v62  ;;  %6287 = vmatprep.subr.bf16.mxu1 %v6286_v8 }
 0xe1a   :  { %v3511_v61 = vadd.f32 %v3506_v27, %v3499_v59  ;;  %v3512_v45 = vadd.f32 %v3506_v27, %v3500_v44  ;;  %v3513_v33 = vadd.f32 %v3506_v27, %v3501_v38  ;;  %v3514_v48 = vadd.f32 %v3506_v27, %v3502_v10  ;;  %6289 = vmatpush3.bf16.msra.mxu1 %v6286_v8 }
 0xe1b   :  { %v3515_v56 = vmax.f32 %v3507_v5, 0.0  ;;  %v3516_v63 = vmax.f32 %v3508_v42, 0.0  ;;  %v3517_v29 = vmax.f32 %v3509_v47, 0.0  ;;  %v3518_v34 = vmax.f32 %v3510_v21, 0.0 }
 0xe1c   :  { %v3519_v32 = vmax.f32 %v3511_v61, 0.0  ;;  %v3520_v9 = vmax.f32 %v3512_v45, 0.0  ;;  %v3521_v55 = vmax.f32 %v3513_v33, 0.0  ;;  %v3522_v60 = vmax.f32 %v3514_v48, 0.0 }
 0xe1d   :  { %3530 = vst.msk [vmem:[#allocation2 + $0x8] sm:$0xff] %vm15_vm0, %v3515_v56  ;;  %3531 = vst.msk [vmem:[#allocation2 + $0x10] sm:$0xff] %vm15_vm0, %v3516_v63  ;;  %6393 = vrsqrt.f32 %v3967_v17 }
 0xe1e   :  { %3532 = vst.msk [vmem:[#allocation2 + $0x18] sm:$0xff] %vm15_vm0, %v3517_v29  ;;  %3533 = vst.msk [vmem:[#allocation2 + $0x20] sm:$0xff] %vm15_vm0, %v3518_v34 }
 0xe1f   :  { %3534 = vst.msk [vmem:[#allocation2 + $0x38] sm:$0xff] %vm15_vm0, %v3519_v32  ;;  %3535 = vst.msk [vmem:[#allocation2 + $0x40] sm:$0xff] %vm15_vm0, %v3520_v9 }
 0xe20   :  { %3536 = vst.msk [vmem:[#allocation2 + $0x48] sm:$0xff] %vm15_vm0, %v3521_v55  ;;  %3537 = vst.msk [vmem:[#allocation2 + $0x50] sm:$0xff] %vm15_vm0, %v3522_v60 }
 0xe24   :  { %v3543_v26 = vld [vmem:[#allocation2 + $0x10] sm:$0xff]  ;;  %v3542_v14 = vld [vmem:[#allocation2 + $0x8] sm:$0xff] }
 0xe25   :  { %3556 = vrot.lane.b32.xlu1 %v3543_v26, %s6434_s26  ;;  %3554 = vrot.lane.b32.xlu0 %v3542_v14, %s6434_s26  ;;  %v3547_v15 = vld [vmem:[#allocation2 + $0x11] sm:$0xff]  ;;  %v3546_v39 = vld [vmem:[#allocation2 + $0x9] sm:$0xff]  ;;  %v3545_v40 = vld [vmem:[#allocation2 + $0x20] sm:$0xff] }
 0xe26   :  { %v3548_v36 = vld [vmem:[#allocation2 + $0x19] sm:$0xff]  ;;  %v3539_v17 = vld [vmem:[#allocation2 + $0xf] sm:$0xff]  ;;  %v3538_v5 = vld [vmem:[#allocation2 + $0x7] sm:$0xff] }
 0xe27   :  { %v6394_v35 = vpop.eup %6393  ;;  %v3595_v28 = vld [vmem:[#allocation2 + $0x40] sm:$0xff]  ;;  %v3594_v43 = vld [vmem:[#allocation2 + $0x38] sm:$0xff]  ;;  %v3597_v62 = vld [vmem:[#allocation2 + $0x50] sm:$0xff] }
 0xe28   :  { %v3969_v49 = vmul.f32 %v6394_v35, %v3911_v2  ;;  %v3599_v6 = vld [vmem:[#allocation2 + $0x41] sm:$0xff]  ;;  %v3598_v25 = vld [vmem:[#allocation2 + $0x39] sm:$0xff]  ;;  %v3601_v44 = vld [vmem:[#allocation2 + $0x51] sm:$0xff] }
 0xe29   :  { %3572 = vrot.lane.b32.xlu1 %v3547_v15, %s6435_s27  ;;  %3570 = vrot.lane.b32.xlu0 %v3546_v39, %s6435_s27  ;;  %v3596_v59 = vld [vmem:[#allocation2 + $0x48] sm:$0xff]  ;;  %v3541_v53 = vld [vmem:[#allocation2 + $0x1f] sm:$0xff]  ;;  %v3540_v63 = vld [vmem:[#allocation2 + $0x17] sm:$0xff] }
 0xe2a   :  { %v3970_v57 = vmul.f32 %v3969_v49, %v3934_v46  ;;  %v3975_v18 = vrot.slane %v3969_v49, %v6678_v58  ;;  %v3544_v46 = vld [vmem:[#allocation2 + $0x18] sm:$0xff]  ;;  %v3600_v38 = vld [vmem:[#allocation2 + $0x49] sm:$0xff] }
 0xe2b   :  { %v3591_v26 = vld [vmem:[#allocation2 + $0x3f] sm:$0xff]  ;;  %v3590_v2 = vld [vmem:[#allocation2 + $0x37] sm:$0xff] }
 0xe2c   :  { %v3971_v41 = vsub.f32 %v3912_v24, %v3970_v57  ;;  %v3976_v23 = vmul.f32 %v3975_v18, %v7873_v51  ;;  %v3977_v7 = vmul.f32 %v3975_v18, %v7867_v12  ;;  %v3978_v1 = vmul.f32 %v3975_v18, %v7890_v37 }
 0xe2d   :  { %v3979_v11 = vmul.f32 %v3975_v18, %v7887_v22  ;;  %v3980_v19 = vmul.f32 %v3975_v18, %v7905_v16  ;;  %v3981_v13 = vmul.f32 %v3975_v18, %v7899_v30  ;;  %v3982_v20 = vmul.f32 %v3975_v18, %v7921_v0  ;;  %3560 = vrot.lane.b32.xlu1 %v3545_v40, %s6434_s26  ;;  %v3549_v30 = vld [vmem:[#allocation2 + $0x21] sm:$0xff] }
 0xe2e   :  { %v3983_v52 = vmul.f32 %v3975_v18, %v7915_v31  ;;  %v3987_v51 = vrot.slane %v3971_v41, %v6678_v58  ;;  %3558 = vrot.lane.b32.xlu0 %v3544_v46, %s6434_s26  ;;  %v3593_v41 = vld [vmem:[#allocation2 + $0x4f] sm:$0xff] }
 0xe2f   :  { %v4098_v46 = vld [vmem:[%s8607_s1 + $0x1f0] sm:$0xff] }
 0xe30   :  { %v7986_v12 = vadd.f32 %v3987_v51, %v3976_v23  ;;  %v7988_v37 = vadd.f32 %v3987_v51, %v3977_v7  ;;  %v7990_v22 = vadd.f32 %v3987_v51, %v3978_v1  ;;  %v7992_v16 = vadd.f32 %v3987_v51, %v3979_v11  ;;  %v3592_v7 = vld [vmem:[#allocation2 + $0x47] sm:$0xff] }
 0xe31   :  { %v7994_v50 = vadd.f32 %v3987_v51, %v3980_v19  ;;  %v7996_v0 = vadd.f32 %v3987_v51, %v3981_v13  ;;  %v7998_v4 = vadd.f32 %v3987_v51, %v3982_v20  ;;  %v8000_v31 = vadd.f32 %v3987_v51, %v3983_v52  ;;  %3576 = vrot.lane.b32.xlu1 %v3549_v30, %s6435_s27  ;;  %v4097_v20 = vld [vmem:[%s8607_s1 + $0x1e8] sm:$0xff]  ;;  %v4099_v52 = vld [vmem:[%s8607_s1 + $0x1f8] sm:$0xff]  ;;  %v4100_v30 = vld [vmem:[%s8607_s1 + $0x200] sm:$0xff] }
 0xe32   :  { %3574 = vrot.lane.b32.xlu0 %v3548_v36, %s6435_s27  ;;  %v6294_v51 = vpack.c.bf16 %v4098_v46, %v4097_v20  ;;  %v6298_v36 = vpack.c.bf16 %v4100_v30, %v4099_v52 }
 0xe34   :  { %6295 = vmatprep.subr.bf16.mxu1 %v6294_v51 }
 0xe35   :  { %3608 = vrot.lane.b32.xlu1 %v3595_v28, %s6434_s26  ;;  %v5500_v28 = vld [vmem:[%s8608_s2 + $0x19] ss:$0 sm:$0xff] }
 0xe36   :  { %3606 = vrot.lane.b32.xlu0 %v3594_v43, %s6434_s26 }
 0xe39   :  { %3624 = vrot.lane.b32.xlu1 %v3599_v6, %s6435_s27 }
 0xe3a   :  { %3622 = vrot.lane.b32.xlu0 %v3598_v25, %s6435_s27 }
 0xe3d   :  { %3612 = vrot.lane.b32.xlu1 %v3597_v62, %s6434_s26 }
 0xe3e   :  { %3610 = vrot.lane.b32.xlu0 %v3596_v59, %s6434_s26 }
 0xe41   :  { %3628 = vrot.lane.b32.xlu1 %v3601_v44, %s6435_s27 }
 0xe42   :  { %3626 = vrot.lane.b32.xlu0 %v3600_v38, %s6435_s27 }
 0xe97   :  { %v3557_v10 = vpop.permute.xlu1 %3556  ;;  %v3555_v27 = vpop.permute.xlu0 %3554 }
 0xe98   :  { %v3583_v42 = vsel %vm15_vm0, %v3539_v17, %v3557_v10  ;;  %v3582_v47 = vsel %vm15_vm0, %v3538_v5, %v3555_v27 }
 0xe9b   :  { %v3573_v21 = vpop.permute.xlu1 %3572  ;;  %v3571_v61 = vpop.permute.xlu0 %3570 }
 0xe9c   :  { %v3587_v45 = vsel %vm645_vm9, %v3583_v42, %v3573_v21  ;;  %v3586_v33 = vsel %vm645_vm9, %v3582_v47, %v3571_v61 }
 0xe9d   :  { %6039 = vmatprep.mubr.msk.f32.mxu1 %vm706_vm10, %v3586_v33 }
 0xe9e   :  { %6040 = vmatmul.mubr.msk.f32.vlgmr.msra.gmra.mrb[36].mxu1 %vm706_vm10, %v3587_v45 }
 0xe9f   :  { %v3561_v48 = vpop.permute.xlu1 %3560  ;;  %6297 = vmatpush3.bf16.msra.mxu1 %v6294_v51 }
 0xea0   :  { %v3559_v54 = vpop.permute.xlu0 %3558  ;;  %v3585_v56 = vsel %vm15_vm0, %v3541_v53, %v3561_v48  ;;  %6299 = vmatprep.subr.bf16.mxu1 %v6298_v36 }
 0xea1   :  { %v3584_v34 = vsel %vm15_vm0, %v3540_v63, %v3559_v54 }
 0xea3   :  { %v3577_v29 = vpop.permute.xlu1 %3576  ;;  %6301 = vmatpush3.bf16.msra.mxu1 %v6298_v36 }
 0xea4   :  { %v3589_v32 = vsel %vm645_vm9, %v3585_v56, %v3577_v29  ;;  %v3575_v9 = vpop.permute.xlu0 %3574 }
 0xea5   :  { %v3588_v55 = vsel %vm645_vm9, %v3584_v34, %v3575_v9 }
 0xea6   :  { %6042 = vmatprep.mubr.msk.f32.mxu1 %vm706_vm10, %v3588_v55 }
 0xea7   :  { %6043 = vmatmul.mubr.msk.f32.gmra.mrb[38].mxu1 %vm706_vm10, %v3589_v32  ;;  %v3609_v60 = vpop.permute.xlu1 %3608 }
 0xea8   :  { %v3607_v8 = vpop.permute.xlu0 %3606  ;;  %v3635_v14 = vsel %vm15_vm0, %v3591_v26, %v3609_v60 }
 0xea9   :  { %v3634_v49 = vsel %vm15_vm0, %v3590_v2, %v3607_v8 }
 0xeab   :  { %v3625_v35 = vpop.permute.xlu1 %3624 }
 0xeac   :  { %v3639_v15 = vsel %vm645_vm9, %v3635_v14, %v3625_v35  ;;  %v3623_v39 = vpop.permute.xlu0 %3622 }
 0xead   :  { %v3638_v24 = vsel %vm645_vm9, %v3634_v49, %v3623_v39 }
 0xeae   :  { %6045 = vmatprep.mubr.msk.f32.mxu1 %vm706_vm10, %v3638_v24 }
 0xeaf   :  { %6046 = vmatmul.mubr.msk.f32.gmra.mrb[40].mxu1 %vm706_vm10, %v3639_v15  ;;  %v3613_v57 = vpop.permute.xlu1 %3612 }
 0xeb0   :  { %v3611_v18 = vpop.permute.xlu0 %3610  ;;  %v3637_v23 = vsel %vm15_vm0, %v3593_v41, %v3613_v57 }
 0xeb1   :  { %v3636_v40 = vsel %vm15_vm0, %v3592_v7, %v3611_v18 }
 0xeb3   :  { %v3629_v1 = vpop.permute.xlu1 %3628 }
 0xeb4   :  { %v3641_v11 = vsel %vm645_vm9, %v3637_v23, %v3629_v1  ;;  %v3627_v19 = vpop.permute.xlu0 %3626 }
 0xeb5   :  { %v3640_v13 = vsel %vm645_vm9, %v3636_v40, %v3627_v19 }
 0xeb6   :  { %6048 = vmatprep.mubr.msk.f32.mxu1 %vm706_vm10, %v3640_v13 }
 0xeb7   :  { %6049 = vmatmul.mubr.msk.f32.gmra.mrb[42].mxu1 %vm706_vm10, %v3641_v11 }
 0xf71   :  { %v6041_v43 = vpop.f32.mrb[36].mxu1 }
 0xf72   :  { %v8051_v6 = vadd.f32 %v6041_v43, %v5500_v28  ;;  %v3736_v25 = vpop.f32.mrb[37].mxu1 }
 0xf73   :  { %v8053_v62 = vadd.f32 %v5500_v28, %v3736_v25 }
 0xf74   :  { %v3999_v59 = vsel %vm15_vm0, %v8051_v6, 0.0  ;;  %v4021_v44 = vmul.f32 %v8051_v6, %v8051_v6 }
 0xf75   :  { %v3998_v38 = vsel %vm15_vm0, %v8053_v62, 0.0  ;;  %v4020_v10 = vmul.f32 %v8053_v62, %v8053_v62 }
 0xf76   :  { %v4029_v27 = vsel %vm15_vm0, %v4021_v44, 0.0  ;;  %v4000_v17 = vadd.f32 %v3999_v59, %v3998_v38 }
 0xf77   :  { %v4028_v5 = vsel %vm15_vm0, %v4020_v10, 0.0 }
 0xf78   :  { %v4030_v42 = vadd.f32 %v4029_v27, %v4028_v5 }
 0xf7a   :  { %v6044_v47 = vpop.f32.mrb[38].mxu1 }
 0xf7b   :  { %v8065_v21 = vadd.f32 %v6044_v47, %v5500_v28  ;;  %v3746_v61 = vpop.f32.mrb[39].mxu1 }
 0xf7c   :  { %v8067_v45 = vadd.f32 %v5500_v28, %v3746_v61 }
 0xf7d   :  { %v4023_v33 = vmul.f32 %v8065_v21, %v8065_v21  ;;  %v4003_v56 = vsel %vm15_vm0, %v8065_v21, 0.0 }
 0xf7e   :  { %v4001_v48 = vsel %vm15_vm0, %v8067_v45, 0.0  ;;  %v4022_v54 = vmul.f32 %v8067_v45, %v8067_v45 }
 0xf7f   :  { %v4002_v53 = vadd.f32 %v4001_v48, %v4000_v17  ;;  %v4033_v32 = vsel %vm15_vm0, %v4023_v33, 0.0 }
 0xf80   :  { %v4031_v63 = vsel %vm15_vm0, %v4022_v54, 0.0 }
 0xf81   :  { %v4032_v29 = vadd.f32 %v4031_v63, %v4030_v42  ;;  %v4004_v34 = vadd.f32 %v4003_v56, %v4002_v53  ;;  %v3996_v63 = vld [vmem:[%s8608_s2 + $0x1d] sm:$0x1] }
 0xf82   :  { %v6047_v9 = vpop.f32.mrb[40].mxu1 }
 0xf83   :  { %v3762_v55 = vadd.f32 %v6047_v9, %v5500_v28  ;;  %v3756_v60 = vpop.f32.mrb[41].mxu1  ;;  %v4034_v8 = vadd.f32 %v4033_v32, %v4032_v29  ;;  %v3997_v32 = vld [vmem:[%s8608_s2 + $0x1e] sm:$0x1] }
 0xf84   :  { %v3757_v26 = vadd.f32 %v5500_v28, %v3756_v60 }
 0xf85   :  { %v4025_v14 = vmul.f32 %v3762_v55, %v3762_v55  ;;  %v4007_v15 = vsel %vm15_vm0, %v3762_v55, 0.0 }
 0xf86   :  { %v4005_v2 = vsel %vm15_vm0, %v3757_v26, 0.0  ;;  %v4024_v35 = vmul.f32 %v3757_v26, %v3757_v26 }
 0xf87   :  { %v4006_v49 = vadd.f32 %v4005_v2, %v4004_v34  ;;  %v4037_v18 = vsel %vm15_vm0, %v4025_v14, 0.0 }
 0xf88   :  { %v4035_v39 = vsel %vm15_vm0, %v4024_v35, 0.0 }
 0xf89   :  { %v4036_v24 = vadd.f32 %v4035_v39, %v4034_v8  ;;  %v4008_v57 = vadd.f32 %v4007_v15, %v4006_v49 }
 0xf8a   :  { %v6050_v41 = vpop.f32.mrb[42].mxu1 }
 0xf8b   :  { %v3772_v23 = vadd.f32 %v6050_v41, %v5500_v28  ;;  %v3766_v7 = vpop.f32.mrb[43].mxu1  ;;  %v4038_v1 = vadd.f32 %v4037_v18, %v4036_v24 }
 0xf8c   :  { %v3767_v40 = vadd.f32 %v5500_v28, %v3766_v7 }
 0xf8d   :  { %v4027_v11 = vmul.f32 %v3772_v23, %v3772_v23  ;;  %v4011_v46 = vsel %vm15_vm0, %v3772_v23, 0.0 }
 0xf8e   :  { %v4009_v19 = vsel %vm15_vm0, %v3767_v40, 0.0  ;;  %v4026_v13 = vmul.f32 %v3767_v40, %v3767_v40 }
 0xf8f   :  { %v4010_v20 = vadd.f32 %v4009_v19, %v4008_v57  ;;  %v4041_v36 = vsel %vm15_vm0, %v4027_v11, 0.0 }
 0xf90   :  { %v4039_v52 = vsel %vm15_vm0, %v4026_v13, 0.0 }
 0xf91   :  { %v4012_v51 = vadd.f32 %v4011_v46, %v4010_v20  ;;  %v4040_v30 = vadd.f32 %v4039_v52, %v4038_v1  ;;  %v4101_v52 = vld [vmem:[%s8607_s1 + $0x208] sm:$0xff] }
 0xf93   :  { %v4013_v43 = vrot.slane %v4012_v51, 4  ;;  %v4042_v25 = vadd.f32 %v4041_v36, %v4040_v30 }
 0xf95   :  { %v4014_v59 = vadd.f32 %v4013_v43, %v4012_v51  ;;  %v4043_v44 = vrot.slane %v4042_v25, 4 }
 0xf97   :  { %v4015_v38 = vrot.slane %v4014_v59, 2  ;;  %v4044_v10 = vadd.f32 %v4043_v44, %v4042_v25 }
 0xf99   :  { %v4016_v28 = vadd.f32 %v4015_v38, %v4014_v59  ;;  %v4045_v27 = vrot.slane %v4044_v10, 2 }
 0xf9b   :  { %v4017_v17 = vrot.slane %v4016_v28, 1  ;;  %v4046_v5 = vadd.f32 %v4045_v27, %v4044_v10 }
 0xf9d   :  { %v4018_v42 = vadd.f32 %v4017_v17, %v4016_v28  ;;  %v4047_v47 = vrot.slane %v4046_v5, 1 }
 0xf9f   :  { %v4019_v61 = vmul.f32 0.015625, %v4018_v42  ;;  %v4048_v33 = vadd.f32 %v4047_v47, %v4046_v5 }
 0xfa1   :  { %v4049_v48 = vmul.f32 0.015625, %v4048_v33  ;;  %v4050_v54 = vmul.f32 %v4019_v61, %v4019_v61 }
 0xfa3   :  { %v4051_v53 = vsub.f32 %v4049_v48, %v4050_v54 }
 0xfa5   :  { %v4052_v56 = vadd.f32 1e-05, %v4051_v53 }
 0xfa7   :  { %6395 = vrsqrt.f32 %v4052_v56 }
 0xfb1   :  { %v6396_v29 = vpop.eup %6395 }
 0xfb2   :  { %v4054_v34 = vmul.f32 %v6396_v29, %v3996_v63 }
 0xfb4   :  { %v4055_v9 = vmul.f32 %v4054_v34, %v4019_v61  ;;  %v4060_v60 = vrot.slane %v4054_v34, %v6678_v58 }
 0xfb6   :  { %v4056_v8 = vsub.f32 %v3997_v32, %v4055_v9  ;;  %v4061_v14 = vmul.f32 %v4060_v60, %v8053_v62  ;;  %v4062_v2 = vmul.f32 %v4060_v60, %v8051_v6  ;;  %v4063_v35 = vmul.f32 %v4060_v60, %v8067_v45 }
 0xfb7   :  { %v4064_v49 = vmul.f32 %v4060_v60, %v8065_v21  ;;  %v4065_v15 = vmul.f32 %v4060_v60, %v3757_v26  ;;  %v4066_v39 = vmul.f32 %v4060_v60, %v3762_v55  ;;  %v4067_v24 = vmul.f32 %v4060_v60, %v3767_v40 }
 0xfb8   :  { %v4068_v57 = vmul.f32 %v4060_v60, %v3772_v23  ;;  %v4072_v18 = vrot.slane %v4056_v8, %v6678_v58 }
 0xfba   :  { %v4073_v41 = vadd.f32 %v4072_v18, %v4061_v14  ;;  %v4074_v7 = vadd.f32 %v4072_v18, %v4062_v2  ;;  %v4075_v1 = vadd.f32 %v4072_v18, %v4063_v35  ;;  %v4076_v11 = vadd.f32 %v4072_v18, %v4064_v49 }
 0xfbb   :  { %v4077_v19 = vadd.f32 %v4072_v18, %v4065_v15  ;;  %v4078_v13 = vadd.f32 %v4072_v18, %v4066_v39  ;;  %v4079_v20 = vadd.f32 %v4072_v18, %v4067_v24  ;;  %v4080_v62 = vadd.f32 %v4072_v18, %v4068_v57 }
 0xfbc   :  { %v4081_v6 = vadd.f32 %v4073_v41, %v7986_v12  ;;  %v4082_v45 = vadd.f32 %v4074_v7, %v7988_v37  ;;  %v4083_v21 = vadd.f32 %v4075_v1, %v7990_v22  ;;  %v4084_v55 = vadd.f32 %v4076_v11, %v7992_v16  ;;  %v4102_v12 = vld [vmem:[%s8607_s1 + $0x210] sm:$0xff] }
 0xfbd   :  { %v4085_v26 = vadd.f32 %v4077_v19, %v7994_v50  ;;  %v4086_v23 = vadd.f32 %v4078_v13, %v7996_v0  ;;  %v4087_v40 = vadd.f32 %v4079_v20, %v7998_v4  ;;  %v4088_v46 = vadd.f32 %v4080_v62, %v8000_v31 }
 0xfbe   :  { %v4089_v37 = vmax.f32 %v4081_v6, 0.0  ;;  %v4090_v22 = vmax.f32 %v4082_v45, 0.0  ;;  %v4091_v51 = vmax.f32 %v4083_v21, 0.0  ;;  %v4092_v16 = vmax.f32 %v4084_v55, 0.0 }
 0xfbf   :  { %v4093_v30 = vmax.f32 %v4085_v26, 0.0  ;;  %v4094_v50 = vmax.f32 %v4086_v23, 0.0  ;;  %v4095_v36 = vmax.f32 %v4087_v40, 0.0  ;;  %v4096_v0 = vmax.f32 %v4088_v46, 0.0 }
 0xfc0   :  { %4104 = vst.msk [vmem:[#allocation2 + $0x8] sm:$0xff] %vm15_vm0, %v4089_v37  ;;  %4105 = vst.msk [vmem:[#allocation2 + $0x10] sm:$0xff] %vm15_vm0, %v4090_v22  ;;  %v6302_v4 = vpack.c.bf16 %v4102_v12, %v4101_v52 }
 0xfc1   :  { %4106 = vst.msk [vmem:[#allocation2 + $0x18] sm:$0xff] %vm15_vm0, %v4091_v51  ;;  %4107 = vst.msk [vmem:[#allocation2 + $0x20] sm:$0xff] %vm15_vm0, %v4092_v16  ;;  %v5518_v16 = vld [vmem:[%s8608_s2 + $0x21] ss:$0 sm:$0xff] }
 0xfc2   :  { %4108 = vst.msk [vmem:[#allocation2 + $0x38] sm:$0xff] %vm15_vm0, %v4093_v30  ;;  %4109 = vst.msk [vmem:[#allocation2 + $0x40] sm:$0xff] %vm15_vm0, %v4094_v50  ;;  %6303 = vmatprep.subr.bf16.mxu1 %v6302_v4  ;;  %v4349_v30 = vld [vmem:[%s8607_s1 + $0x218] sm:$0xff]  ;;  %v4350_v50 = vld [vmem:[%s8607_s1 + $0x220] sm:$0xff] }
 0xfc3   :  { %4110 = vst.msk [vmem:[#allocation2 + $0x48] sm:$0xff] %vm15_vm0, %v4095_v36  ;;  %4111 = vst.msk [vmem:[#allocation2 + $0x50] sm:$0xff] %vm15_vm0, %v4096_v0  ;;  %6305 = vmatpush3.bf16.msra.mxu1 %v6302_v4  ;;  %v6306_v0 = vpack.c.bf16 %v4350_v50, %v4349_v30 }
 0xfc5   :  { %6307 = vmatprep.subr.bf16.mxu0 %v6306_v0 }
 0xfc6   :  { %6309 = vmatpush3.bf16.msra.mxu0 %v6306_v0 }
 0xfc7   :  { %v4117_v31 = vld [vmem:[#allocation2 + $0x10] sm:$0xff]  ;;  %v4116_v43 = vld [vmem:[#allocation2 + $0x8] sm:$0xff] }
 0xfc8   :  { %4130 = vrot.lane.b32.xlu1 %v4117_v31, %s6434_s26  ;;  %4128 = vrot.lane.b32.xlu0 %v4116_v43, %s6434_s26  ;;  %v4121_v25 = vld [vmem:[#allocation2 + $0x11] sm:$0xff]  ;;  %v4120_v59 = vld [vmem:[#allocation2 + $0x9] sm:$0xff]  ;;  %v4119_v44 = vld [vmem:[#allocation2 + $0x20] sm:$0xff] }
 0xfc9   :  { %v4118_v38 = vld [vmem:[#allocation2 + $0x18] sm:$0xff]  ;;  %v4123_v10 = vld [vmem:[#allocation2 + $0x21] sm:$0xff]  ;;  %v4113_v56 = vld [vmem:[#allocation2 + $0xf] sm:$0xff] }
 0xfca   :  { %v4122_v28 = vld [vmem:[#allocation2 + $0x19] sm:$0xff]  ;;  %v4173_v5 = vld [vmem:[#allocation2 + $0x41] sm:$0xff]  ;;  %v4171_v47 = vld [vmem:[#allocation2 + $0x50] sm:$0xff] }
 0xfcb   :  { %v4169_v27 = vld [vmem:[#allocation2 + $0x40] sm:$0xff]  ;;  %v4168_v17 = vld [vmem:[#allocation2 + $0x38] sm:$0xff]  ;;  %v4170_v61 = vld [vmem:[#allocation2 + $0x48] sm:$0xff] }
 0xfcc   :  { %4146 = vrot.lane.b32.xlu1 %v4121_v25, %s6435_s27  ;;  %4144 = vrot.lane.b32.xlu0 %v4120_v59, %s6435_s27  ;;  %v4172_v42 = vld [vmem:[#allocation2 + $0x39] sm:$0xff]  ;;  %v4175_v33 = vld [vmem:[#allocation2 + $0x51] sm:$0xff]  ;;  %v4174_v48 = vld [vmem:[#allocation2 + $0x49] sm:$0xff] }
 0xfcd   :  { %v4112_v63 = vld [vmem:[#allocation2 + $0x7] sm:$0xff]  ;;  %v4115_v35 = vld [vmem:[#allocation2 + $0x1f] sm:$0xff]  ;;  %v4114_v49 = vld [vmem:[#allocation2 + $0x17] sm:$0xff] }
 0xfce   :  { %v4165_v11 = vld [vmem:[#allocation2 + $0x3f] sm:$0xff]  ;;  %v4164_v19 = vld [vmem:[#allocation2 + $0x37] sm:$0xff]  ;;  %v4167_v23 = vld [vmem:[#allocation2 + $0x4f] sm:$0xff] }
 0xfcf   :  { %v4166_v40 = vld [vmem:[#allocation2 + $0x47] sm:$0xff]  ;;  %v4352_v59 = vld [vmem:[%s8607_s1 + $0x230] sm:$0xff] }
 0xfd0   :  { %4134 = vrot.lane.b32.xlu1 %v4119_v44, %s6434_s26  ;;  %4132 = vrot.lane.b32.xlu0 %v4118_v38, %s6434_s26  ;;  %v4351_v25 = vld [vmem:[%s8607_s1 + $0x228] sm:$0xff] }
 0xfd1   :  { %v6310_v38 = vpack.c.bf16 %v4352_v59, %v4351_v25 }
 0xfd3   :  { %6311 = vmatprep.subr.bf16.mxu0 %v6310_v38 }
 0xfd4   :  { %4150 = vrot.lane.b32.xlu1 %v4123_v10, %s6435_s27  ;;  %4148 = vrot.lane.b32.xlu0 %v4122_v28, %s6435_s27 }
 0xfd5   :  { %6313 = vmatpush3.bf16.msra.mxu0 %v6310_v38 }
 0xfd8   :  { %4182 = vrot.lane.b32.xlu1 %v4169_v27, %s6434_s26  ;;  %4180 = vrot.lane.b32.xlu0 %v4168_v17, %s6434_s26 }
 0xfdc   :  { %4198 = vrot.lane.b32.xlu1 %v4173_v5, %s6435_s27  ;;  %4196 = vrot.lane.b32.xlu0 %v4172_v42, %s6435_s27  ;;  %v4353_v42 = vld [vmem:[%s8607_s1 + $0x238] sm:$0xff] }
 0xfe0   :  { %4186 = vrot.lane.b32.xlu1 %v4171_v47, %s6434_s26  ;;  %4184 = vrot.lane.b32.xlu0 %v4170_v61, %s6434_s26  ;;  %v4354_v47 = vld [vmem:[%s8607_s1 + $0x240] sm:$0xff] }
 0xfe1   :  { %v6314_v61 = vpack.c.bf16 %v4354_v47, %v4353_v42 }
 0xfe3   :  { %6315 = vmatprep.subr.bf16.mxu0 %v6314_v61 }
 0xfe4   :  { %4202 = vrot.lane.b32.xlu1 %v4175_v33, %s6435_s27  ;;  %4200 = vrot.lane.b32.xlu0 %v4174_v48, %s6435_s27 }
 0xfe5   :  { %6317 = vmatpush3.bf16.msra.mxu0 %v6314_v61 }
0x103a   :  { %v4131_v54 = vpop.permute.xlu1 %4130  ;;  %v4129_v53 = vpop.permute.xlu0 %4128 }
0x103b   :  { %v4157_v29 = vsel %vm15_vm0, %v4113_v56, %v4131_v54  ;;  %v4156_v34 = vsel %vm15_vm0, %v4112_v63, %v4129_v53 }
0x103e   :  { %v4147_v32 = vpop.permute.xlu1 %4146  ;;  %v4145_v9 = vpop.permute.xlu0 %4144 }
0x103f   :  { %v4161_v60 = vsel %vm645_vm9, %v4157_v29, %v4147_v32  ;;  %v4160_v8 = vsel %vm645_vm9, %v4156_v34, %v4145_v9 }
0x1040   :  { %6079 = vmatprep.mubr.msk.f32.mxu1 %vm706_vm10, %v4160_v8 }
0x1041   :  { %6080 = vmatmul.mubr.msk.f32.vlgmr.msra.gmra.mrb[44].mxu1 %vm706_vm10, %v4161_v60 }
0x1042   :  { %v4135_v14 = vpop.permute.xlu1 %4134  ;;  %v4133_v2 = vpop.permute.xlu0 %4132 }
0x1043   :  { %v4159_v15 = vsel %vm15_vm0, %v4115_v35, %v4135_v14  ;;  %v4158_v39 = vsel %vm15_vm0, %v4114_v49, %v4133_v2 }
0x1046   :  { %v4151_v24 = vpop.permute.xlu1 %4150  ;;  %v4149_v57 = vpop.permute.xlu0 %4148 }
0x1047   :  { %v4163_v18 = vsel %vm645_vm9, %v4159_v15, %v4151_v24  ;;  %v4162_v41 = vsel %vm645_vm9, %v4158_v39, %v4149_v57  ;;  %v4946_v39 = vld [vmem:[%s8607_s1 + $0x278] sm:$0xff]  ;;  %v4947_v24 = vld [vmem:[%s8607_s1 + $0x280] sm:$0xff] }
0x1048   :  { %6082 = vmatprep.mubr.msk.f32.mxu1 %vm706_vm10, %v4162_v41  ;;  %v6330_v57 = vpack.c.bf16 %v4947_v24, %v4946_v39 }
0x1049   :  { %6083 = vmatmul.mubr.msk.f32.gmra.mrb[46].mxu1 %vm706_vm10, %v4163_v18 }
0x104a   :  { %v4183_v7 = vpop.permute.xlu1 %4182  ;;  %v4181_v1 = vpop.permute.xlu0 %4180  ;;  %6331 = vmatprep.subr.bf16.mxu0 %v6330_v57 }
0x104b   :  { %v4209_v13 = vsel %vm15_vm0, %v4165_v11, %v4183_v7  ;;  %v4208_v20 = vsel %vm15_vm0, %v4164_v19, %v4181_v1 }
0x104e   :  { %v4199_v62 = vpop.permute.xlu1 %4198  ;;  %v4197_v6 = vpop.permute.xlu0 %4196 }
0x104f   :  { %v4213_v45 = vsel %vm645_vm9, %v4209_v13, %v4199_v62  ;;  %v4212_v21 = vsel %vm645_vm9, %v4208_v20, %v4197_v6 }
0x1050   :  { %6085 = vmatprep.mubr.msk.f32.mxu1 %vm706_vm10, %v4212_v21 }
0x1051   :  { %6086 = vmatmul.mubr.msk.f32.gmra.mrb[48].mxu1 %vm706_vm10, %v4213_v45 }
0x1052   :  { %v4187_v55 = vpop.permute.xlu1 %4186  ;;  %v4185_v26 = vpop.permute.xlu0 %4184 }
0x1053   :  { %v4211_v46 = vsel %vm15_vm0, %v4167_v23, %v4187_v55  ;;  %v4210_v52 = vsel %vm15_vm0, %v4166_v40, %v4185_v26 }
0x1056   :  { %v4203_v12 = vpop.permute.xlu1 %4202  ;;  %v4201_v37 = vpop.permute.xlu0 %4200 }
0x1057   :  { %v4215_v22 = vsel %vm645_vm9, %v4211_v46, %v4203_v12  ;;  %v4214_v51 = vsel %vm645_vm9, %v4210_v52, %v4201_v37 }
0x1058   :  { %6088 = vmatprep.mubr.msk.f32.mxu1 %vm706_vm10, %v4214_v51 }
0x1059   :  { %6089 = vmatmul.mubr.msk.f32.gmra.mrb[50].mxu1 %vm706_vm10, %v4215_v22 }
0x1114   :  { %v6081_v36 = vpop.f32.mrb[44].mxu1 }
0x1115   :  { %v8170_v4 = vadd.f32 %v6081_v36, %v5518_v16  ;;  %v4310_v31 = vpop.f32.mrb[45].mxu1 }
0x1116   :  { %v8172_v43 = vadd.f32 %v5518_v16, %v4310_v31 }
0x1117   :  { %4357 = vst.msk [vmem:[#allocation2 + $0x10] sm:$0xff] %vm15_vm0, %v8170_v4 }
0x1118   :  { %4356 = vst.msk [vmem:[#allocation2 + $0x8] sm:$0xff] %vm15_vm0, %v8172_v43 }
0x111c   :  { %v6084_v44 = vpop.f32.mrb[46].mxu1 }
0x111d   :  { %v8184_v10 = vadd.f32 %v6084_v44, %v5518_v16  ;;  %v4320_v28 = vpop.f32.mrb[47].mxu1 }
0x111e   :  { %v8186_v27 = vadd.f32 %v5518_v16, %v4320_v28  ;;  %v4369_v17 = vld [vmem:[#allocation2 + $0x10] sm:$0xff] }
0x111f   :  { %4359 = vst.msk [vmem:[#allocation2 + $0x20] sm:$0xff] %vm15_vm0, %v8184_v10  ;;  %4382 = vrot.lane.b32.xlu1 %v4369_v17, %s6434_s26  ;;  %v4368_v5 = vld [vmem:[#allocation2 + $0x8] sm:$0xff] }
0x1120   :  { %4358 = vst.msk [vmem:[#allocation2 + $0x18] sm:$0xff] %vm15_vm0, %v8186_v27  ;;  %4380 = vrot.lane.b32.xlu0 %v4368_v5, %s6434_s26  ;;  %v4372_v33 = vld [vmem:[#allocation2 + $0x9] sm:$0xff] }
0x1121   :  { %v4364_v20 = vld [vmem:[#allocation2 + $0x7] sm:$0xff]  ;;  %v4365_v40 = vld [vmem:[#allocation2 + $0xf] sm:$0xff] }
0x1124   :  { %v6087_v48 = vpop.f32.mrb[48].mxu1  ;;  %4396 = vrot.lane.b32.xlu0 %v4372_v33, %s6435_s27 }
0x1125   :  { %v8201_v54 = vadd.f32 %v6087_v48, %v5518_v16  ;;  %v4330_v53 = vpop.f32.mrb[49].mxu1 }
0x1126   :  { %v8203_v56 = vadd.f32 %v5518_v16, %v4330_v53  ;;  %v4371_v63 = vld [vmem:[#allocation2 + $0x20] sm:$0xff] }
0x1127   :  { %4361 = vst.msk [vmem:[#allocation2 + $0x40] sm:$0xff] %vm15_vm0, %v8201_v54  ;;  %4386 = vrot.lane.b32.xlu1 %v4371_v63, %s6434_s26  ;;  %v4370_v29 = vld [vmem:[#allocation2 + $0x18] sm:$0xff]  ;;  %v4375_v34 = vld [vmem:[#allocation2 + $0x21] sm:$0xff] }
0x1128   :  { %4360 = vst.msk [vmem:[#allocation2 + $0x38] sm:$0xff] %vm15_vm0, %v8203_v56  ;;  %4384 = vrot.lane.b32.xlu0 %v4370_v29, %s6434_s26  ;;  %v4374_v32 = vld [vmem:[#allocation2 + $0x19] sm:$0xff]  ;;  %v4373_v2 = vld [vmem:[#allocation2 + $0x11] sm:$0xff] }
0x1129   :  { %v4366_v52 = vld [vmem:[#allocation2 + $0x17] sm:$0xff]  ;;  %v4367_v30 = vld [vmem:[#allocation2 + $0x1f] sm:$0xff] }
0x112b   :  { %4402 = vrot.lane.b32.xlu1 %v4375_v34, %s6435_s27 }
0x112c   :  { %v6090_v9 = vpop.f32.mrb[50].mxu1  ;;  %4400 = vrot.lane.b32.xlu0 %v4374_v32, %s6435_s27 }
0x112d   :  { %v8213_v60 = vadd.f32 %v6090_v9, %v5518_v16  ;;  %v4340_v8 = vpop.f32.mrb[51].mxu1  ;;  %v5527_v9 = vld [vmem:[%s8608_s2 + $0x22] ss:$0 sm:$0xff] }
0x112e   :  { %v8215_v14 = vadd.f32 %v5518_v16, %v4340_v8  ;;  %v4421_v49 = vld [vmem:[#allocation2 + $0x40] sm:$0xff] }
0x112f   :  { %4363 = vst.msk [vmem:[#allocation2 + $0x50] sm:$0xff] %vm15_vm0, %v8213_v60  ;;  %4398 = vrot.lane.b32.xlu1 %v4373_v2, %s6435_s27  ;;  %v4420_v35 = vld [vmem:[#allocation2 + $0x38] sm:$0xff] }
0x1130   :  { %4362 = vst.msk [vmem:[#allocation2 + $0x48] sm:$0xff] %vm15_vm0, %v8215_v14  ;;  %4432 = vrot.lane.b32.xlu0 %v4420_v35, %s6434_s26  ;;  %v4424_v15 = vld [vmem:[#allocation2 + $0x39] sm:$0xff] }
0x1131   :  { %v4416_v36 = vld [vmem:[#allocation2 + $0x37] sm:$0xff]  ;;  %v4417_v17 = vld [vmem:[#allocation2 + $0x3f] sm:$0xff] }
0x1133   :  { %4434 = vrot.lane.b32.xlu1 %v4421_v49, %s6434_s26 }
0x1134   :  { %4448 = vrot.lane.b32.xlu0 %v4424_v15, %s6435_s27 }
0x1136   :  { %v4423_v18 = vld [vmem:[#allocation2 + $0x50] sm:$0xff] }
0x1137   :  { %4438 = vrot.lane.b32.xlu1 %v4423_v18, %s6434_s26  ;;  %v4422_v41 = vld [vmem:[#allocation2 + $0x48] sm:$0xff]  ;;  %v4427_v11 = vld [vmem:[#allocation2 + $0x51] sm:$0xff] }
0x1138   :  { %4436 = vrot.lane.b32.xlu0 %v4422_v41, %s6434_s26  ;;  %v4425_v7 = vld [vmem:[#allocation2 + $0x41] sm:$0xff]  ;;  %v4426_v1 = vld [vmem:[#allocation2 + $0x49] sm:$0xff] }
0x1139   :  { %v4418_v42 = vld [vmem:[#allocation2 + $0x47] sm:$0xff]  ;;  %v4419_v63 = vld [vmem:[#allocation2 + $0x4f] sm:$0xff] }
0x113b   :  { %4450 = vrot.lane.b32.xlu1 %v4425_v7, %s6435_s27 }
0x113c   :  { %4452 = vrot.lane.b32.xlu0 %v4426_v1, %s6435_s27 }
0x113f   :  { %4454 = vrot.lane.b32.xlu1 %v4427_v11, %s6435_s27 }
0x1191   :  { %v4383_v13 = vpop.permute.xlu1 %4382 }
0x1192   :  { %v4381_v19 = vpop.permute.xlu0 %4380  ;;  %v4409_v46 = vsel %vm15_vm0, %v4365_v40, %v4383_v13 }
0x1193   :  { %v4408_v62 = vsel %vm15_vm0, %v4364_v20, %v4381_v19 }
0x1196   :  { %v4397_v6 = vpop.permute.xlu0 %4396 }
0x1197   :  { %v4412_v45 = vsel %vm645_vm9, %v4408_v62, %v4397_v6 }
0x1198   :  { %6103 = vmatprep.mubr.msk.f32.mxu0 %vm706_vm10, %v4412_v45 }
0x1199   :  { %v4387_v21 = vpop.permute.xlu1 %4386 }
0x119a   :  { %v4385_v55 = vpop.permute.xlu0 %4384  ;;  %v4411_v50 = vsel %vm15_vm0, %v4367_v30, %v4387_v21 }
0x119b   :  { %v4410_v37 = vsel %vm15_vm0, %v4366_v52, %v4385_v55 }
0x119d   :  { %v4403_v26 = vpop.permute.xlu1 %4402 }
0x119e   :  { %v4401_v23 = vpop.permute.xlu0 %4400  ;;  %v4415_v31 = vsel %vm645_vm9, %v4411_v50, %v4403_v26 }
0x119f   :  { %v4414_v16 = vsel %vm645_vm9, %v4410_v37, %v4401_v23 }
0x11a1   :  { %v4399_v12 = vpop.permute.xlu1 %4398 }
0x11a2   :  { %v4413_v22 = vsel %vm645_vm9, %v4409_v46, %v4399_v12  ;;  %v4433_v51 = vpop.permute.xlu0 %4432 }
0x11a3   :  { %6104 = vmatmul.mubr.msk.f32.vlgmr.msra.gmra.mrb[60].mxu0 %vm706_vm10, %v4413_v22  ;;  %v4460_v25 = vsel %vm15_vm0, %v4416_v36, %v4433_v51 }
0x11a4   :  { %6106 = vmatprep.mubr.msk.f32.mxu0 %vm706_vm10, %v4414_v16  ;;  %6333 = vmatpush3.bf16.msra.mxu0 %v6330_v57 }
0x11a5   :  { %v4435_v0 = vpop.permute.xlu1 %4434 }
0x11a6   :  { %v4449_v59 = vpop.permute.xlu0 %4448  ;;  %v4461_v5 = vsel %vm15_vm0, %v4417_v17, %v4435_v0 }
0x11a7   :  { %v4464_v44 = vsel %vm645_vm9, %v4460_v25, %v4449_v59  ;;  %6107 = vmatmul.mubr.msk.f32.gmra.mrb[62].mxu0 %vm706_vm10, %v4415_v31 }
0x11a8   :  { %6109 = vmatprep.mubr.msk.f32.mxu0 %vm706_vm10, %v4464_v44  ;;  %v8339_v44 = vld [vmem:[%s8608_s2 + $0x24] ss:$0 sm:$0xff] }
0x11a9   :  { %v4439_v38 = vpop.permute.xlu1 %4438 }
0x11aa   :  { %v4437_v28 = vpop.permute.xlu0 %4436  ;;  %v4463_v29 = vsel %vm15_vm0, %v4419_v63, %v4439_v38 }
0x11ab   :  { %v4462_v61 = vsel %vm15_vm0, %v4418_v42, %v4437_v28 }
0x11ad   :  { %v4451_v47 = vpop.permute.xlu1 %4450 }
0x11ae   :  { %v4465_v33 = vsel %vm645_vm9, %v4461_v5, %v4451_v47  ;;  %v4453_v48 = vpop.permute.xlu0 %4452 }
0x11af   :  { %v4466_v53 = vsel %vm645_vm9, %v4462_v61, %v4453_v48  ;;  %6110 = vmatmul.mubr.msk.f32.gmra.mrb[64].mxu0 %vm706_vm10, %v4465_v33 }
0x11b0   :  { %6112 = vmatprep.mubr.msk.f32.mxu0 %vm706_vm10, %v4466_v53 }
0x11b1   :  { %v4455_v34 = vpop.permute.xlu1 %4454 }
0x11b2   :  { %v4467_v32 = vsel %vm645_vm9, %v4463_v29, %v4455_v34 }
0x11b3   :  { %6113 = vmatmul.mubr.msk.f32.gmra.mrb[66].mxu0 %vm706_vm10, %v4467_v32 }
0x11b4   :  { %6143 = vmatprep.mubr.msk.f32.mxu0 %vm15_vm0, %v8172_v43  ;;  %v4695_v43 = vld [vmem:[%s8607_s1 + $0x250] sm:$0xff] }
0x11b7   :  { %6144 = vmatmul.mubr.msk.f32.vlgmr.msra.gmra.mrb[68].mxu0 %vm15_vm0, %v8170_v4  ;;  %v4694_v4 = vld [vmem:[%s8607_s1 + $0x248] sm:$0xff] }
0x11b8   :  { %6146 = vmatprep.mubr.msk.f32.mxu0 %vm15_vm0, %v8186_v27  ;;  %v6318_v27 = vpack.c.bf16 %v4695_v43, %v4694_v4 }
0x11ba   :  { %6319 = vmatprep.subr.bf16.mxu1 %v6318_v27 }
0x11bb   :  { %6147 = vmatmul.mubr.msk.f32.gmra.mrb[70].mxu0 %vm15_vm0, %v8184_v10  ;;  %v4696_v10 = vld [vmem:[%s8607_s1 + $0x258] sm:$0xff]  ;;  %6321 = vmatpush3.bf16.msra.mxu1 %v6318_v27 }
0x11bc   :  { %6149 = vmatprep.mubr.msk.f32.mxu0 %vm15_vm0, %v8203_v56 }
0x11bf   :  { %6150 = vmatmul.mubr.msk.f32.gmra.mrb[72].mxu0 %vm15_vm0, %v8201_v54  ;;  %v4697_v54 = vld [vmem:[%s8607_s1 + $0x260] sm:$0xff] }
0x11c0   :  { %6152 = vmatprep.mubr.msk.f32.mxu0 %vm15_vm0, %v8215_v14  ;;  %v6322_v56 = vpack.c.bf16 %v4697_v54, %v4696_v10 }
0x11c2   :  { %6323 = vmatprep.subr.bf16.mxu1 %v6322_v56 }
0x11c3   :  { %6153 = vmatmul.mubr.msk.f32.gmra.mrb[74].mxu0 %vm15_vm0, %v8213_v60  ;;  %6325 = vmatpush3.bf16.msra.mxu1 %v6322_v56 }
0x1276   :  { %v6105_v60 = vpop.f32.mrb[60].mxu0 }
0x1277   :  { %v8291_v8 = vadd.f32 %v6105_v60, %v5527_v9  ;;  %v4562_v14 = vpop.f32.mrb[61].mxu0 }
0x1278   :  { %v8293_v2 = vadd.f32 %v5527_v9, %v4562_v14 }
0x1279   :  { %v4604_v35 = vsel %vm15_vm0, %v8291_v8, 0.0  ;;  %v4626_v49 = vmul.f32 %v8291_v8, %v8291_v8 }
0x127a   :  { %v4603_v15 = vsel %vm15_vm0, %v8293_v2, 0.0  ;;  %v4625_v39 = vmul.f32 %v8293_v2, %v8293_v2  ;;  %v6108_v24 = vpop.f32.mrb[62].mxu0 }
0x127b   :  { %v4634_v57 = vsel %vm15_vm0, %v4626_v49, 0.0  ;;  %v4605_v18 = vadd.f32 %v4604_v35, %v4603_v15  ;;  %v8304_v41 = vadd.f32 %v6108_v24, %v5527_v9  ;;  %v4572_v7 = vpop.f32.mrb[63].mxu0 }
0x127c   :  { %v4633_v1 = vsel %vm15_vm0, %v4625_v39, 0.0  ;;  %v8307_v11 = vadd.f32 %v5527_v9, %v4572_v7 }
0x127d   :  { %v4635_v19 = vadd.f32 %v4634_v57, %v4633_v1  ;;  %v4628_v13 = vmul.f32 %v8304_v41, %v8304_v41  ;;  %v4608_v45 = vsel %vm15_vm0, %v8304_v41, 0.0 }
0x127e   :  { %v4606_v20 = vsel %vm15_vm0, %v8307_v11, 0.0  ;;  %v4627_v62 = vmul.f32 %v8307_v11, %v8307_v11 }
0x127f   :  { %v4607_v6 = vadd.f32 %v4606_v20, %v4605_v18  ;;  %v4638_v23 = vsel %vm15_vm0, %v4628_v13, 0.0 }
0x1280   :  { %v4636_v21 = vsel %vm15_vm0, %v4627_v62, 0.0 }
0x1281   :  { %v4637_v55 = vadd.f32 %v4636_v21, %v4635_v19  ;;  %v4609_v26 = vadd.f32 %v4608_v45, %v4607_v6 }
0x1282   :  { %v6111_v40 = vpop.f32.mrb[64].mxu0 }
0x1283   :  { %v8319_v46 = vadd.f32 %v6111_v40, %v5527_v9  ;;  %v4582_v52 = vpop.f32.mrb[65].mxu0  ;;  %v4639_v12 = vadd.f32 %v4638_v23, %v4637_v55 }
0x1284   :  { %v8321_v37 = vadd.f32 %v5527_v9, %v4582_v52 }
0x1285   :  { %v4630_v22 = vmul.f32 %v8319_v46, %v8319_v46  ;;  %v4612_v31 = vsel %vm15_vm0, %v8319_v46, 0.0 }
0x1286   :  { %v4610_v51 = vsel %vm15_vm0, %v8321_v37, 0.0  ;;  %v4629_v16 = vmul.f32 %v8321_v37, %v8321_v37  ;;  %v6114_v30 = vpop.f32.mrb[66].mxu0 }
0x1287   :  { %v4611_v50 = vadd.f32 %v4610_v51, %v4609_v26  ;;  %v8329_v36 = vadd.f32 %v6114_v30, %v5527_v9  ;;  %v4592_v0 = vpop.f32.mrb[67].mxu0  ;;  %v4642_v17 = vsel %vm15_vm0, %v4630_v22, 0.0 }
0x1288   :  { %v4640_v25 = vsel %vm15_vm0, %v4629_v16, 0.0  ;;  %v8334_v59 = vadd.f32 %v5527_v9, %v4592_v0 }
0x1289   :  { %v4641_v38 = vadd.f32 %v4640_v25, %v4639_v12  ;;  %v4613_v28 = vadd.f32 %v4612_v31, %v4611_v50  ;;  %v4632_v5 = vmul.f32 %v8329_v36, %v8329_v36  ;;  %v4616_v29 = vsel %vm15_vm0, %v8329_v36, 0.0 }
0x128a   :  { %v4614_v42 = vsel %vm15_vm0, %v8334_v59, 0.0  ;;  %v4631_v47 = vmul.f32 %v8334_v59, %v8334_v59  ;;  %v6145_v61 = vpop.f32.mrb[68].mxu0 }
0x128b   :  { %v4615_v33 = vadd.f32 %v4614_v42, %v4613_v28  ;;  %v4643_v48 = vadd.f32 %v4642_v17, %v4641_v38  ;;  %v8349_v53 = vadd.f32 %v6145_v61, %v8339_v44  ;;  %v5043_v63 = vpop.f32.mrb[69].mxu0  ;;  %v4646_v54 = vsel %vm15_vm0, %v4632_v5, 0.0 }
0x128c   :  { %v4644_v34 = vsel %vm15_vm0, %v4631_v47, 0.0  ;;  %v8355_v32 = vadd.f32 %v8339_v44, %v5043_v63 }
0x128d   :  { %v4617_v4 = vadd.f32 %v4616_v29, %v4615_v33  ;;  %v4645_v43 = vadd.f32 %v4644_v34, %v4643_v48  ;;  %v5085_v10 = vsel %vm15_vm0, %v8349_v53, 0.0  ;;  %v5107_v27 = vmul.f32 %v8349_v53, %v8349_v53 }
0x128e   :  { %v5084_v56 = vsel %vm15_vm0, %v8355_v32, 0.0  ;;  %v5106_v9 = vmul.f32 %v8355_v32, %v8355_v32  ;;  %v6148_v60 = vpop.f32.mrb[70].mxu0 }
0x128f   :  { %v4618_v14 = vrot.slane %v4617_v4, 4  ;;  %v4647_v35 = vadd.f32 %v4646_v54, %v4645_v43  ;;  %v5115_v49 = vsel %vm15_vm0, %v5107_v27, 0.0  ;;  %v5086_v15 = vadd.f32 %v5085_v10, %v5084_v56  ;;  %v5053_v39 = vpop.f32.mrb[71].mxu0 }
0x1290   :  { %v5114_v24 = vsel %vm15_vm0, %v5106_v9, 0.0  ;;  %v8369_v57 = vadd.f32 %v6148_v60, %v8339_v44  ;;  %v8372_v18 = vadd.f32 %v8339_v44, %v5053_v39 }
0x1291   :  { %v4619_v7 = vadd.f32 %v4618_v14, %v4617_v4  ;;  %v4648_v1 = vrot.slane %v4647_v35, 4  ;;  %v5116_v19 = vadd.f32 %v5115_v49, %v5114_v24 }
0x1292   :  { %v5109_v13 = vmul.f32 %v8369_v57, %v8369_v57  ;;  %v5087_v20 = vsel %vm15_vm0, %v8372_v18, 0.0  ;;  %v5108_v62 = vmul.f32 %v8372_v18, %v8372_v18  ;;  %v6151_v6 = vpop.f32.mrb[72].mxu0  ;;  %v5089_v40 = vsel %vm15_vm0, %v8369_v57, 0.0 }
0x1293   :  { %v4620_v45 = vrot.slane %v4619_v7, 2  ;;  %v4649_v21 = vadd.f32 %v4648_v1, %v4647_v35  ;;  %v5088_v55 = vadd.f32 %v5087_v20, %v5086_v15  ;;  %v8381_v26 = vadd.f32 %v6151_v6, %v8339_v44  ;;  %v5063_v23 = vpop.f32.mrb[73].mxu0 }
0x1294   :  { %v5117_v52 = vsel %vm15_vm0, %v5108_v62, 0.0  ;;  %v8387_v12 = vadd.f32 %v8339_v44, %v5063_v23  ;;  %v5119_v16 = vsel %vm15_vm0, %v5109_v13, 0.0 }
0x1295   :  { %v4621_v22 = vadd.f32 %v4620_v45, %v4619_v7  ;;  %v4650_v51 = vrot.slane %v4649_v21, 2  ;;  %v5118_v30 = vadd.f32 %v5117_v52, %v5116_v19  ;;  %v5111_v50 = vmul.f32 %v8381_v26, %v8381_v26 }
0x1296   :  { %v5090_v0 = vadd.f32 %v5089_v40, %v5088_v55  ;;  %v5091_v31 = vsel %vm15_vm0, %v8387_v12, 0.0  ;;  %v5110_v25 = vmul.f32 %v8387_v12, %v8387_v12  ;;  %v6154_v38 = vpop.f32.mrb[74].mxu0  ;;  %v5093_v61 = vsel %vm15_vm0, %v8381_v26, 0.0 }
0x1297   :  { %v4622_v28 = vrot.slane %v4621_v22, 1  ;;  %v4651_v17 = vadd.f32 %v4650_v51, %v4649_v21  ;;  %v5120_v5 = vadd.f32 %v5119_v16, %v5118_v30  ;;  %v8397_v42 = vadd.f32 %v6154_v38, %v8339_v44  ;;  %v5073_v47 = vpop.f32.mrb[75].mxu0  ;;  %v4601_v30 = vld [vmem:[%s8608_s2 + $0x25] sm:$0x1] }
0x1298   :  { %v5092_v33 = vadd.f32 %v5091_v31, %v5090_v0  ;;  %v5121_v48 = vsel %vm15_vm0, %v5110_v25, 0.0  ;;  %v8403_v63 = vadd.f32 %v8339_v44, %v5073_v47  ;;  %v5123_v4 = vsel %vm15_vm0, %v5111_v50, 0.0 }
0x1299   :  { %v4623_v29 = vadd.f32 %v4622_v28, %v4621_v22  ;;  %v4652_v34 = vrot.slane %v4651_v17, 1  ;;  %v5122_v43 = vadd.f32 %v5121_v48, %v5120_v5  ;;  %v5113_v10 = vmul.f32 %v8397_v42, %v8397_v42 }
0x129a   :  { %v5094_v27 = vadd.f32 %v5093_v61, %v5092_v33  ;;  %v5095_v54 = vsel %vm15_vm0, %v8403_v63, 0.0  ;;  %v5112_v56 = vmul.f32 %v8403_v63, %v8403_v63  ;;  %v5097_v39 = vsel %vm15_vm0, %v8397_v42, 0.0 }
0x129b   :  { %v4624_v9 = vmul.f32 0.015625, %v4623_v29  ;;  %v4653_v60 = vadd.f32 %v4652_v34, %v4651_v17  ;;  %v5124_v14 = vadd.f32 %v5123_v4, %v5122_v43  ;;  %v5127_v7 = vsel %vm15_vm0, %v5113_v10, 0.0  ;;  %v4602_v17 = vld [vmem:[%s8608_s2 + $0x26] sm:$0x1] }
0x129c   :  { %v5096_v44 = vadd.f32 %v5095_v54, %v5094_v27  ;;  %v5125_v35 = vsel %vm15_vm0, %v5112_v56, 0.0 }
0x129d   :  { %v4654_v49 = vmul.f32 0.015625, %v4653_v60  ;;  %v4655_v15 = vmul.f32 %v4624_v9, %v4624_v9  ;;  %v5126_v24 = vadd.f32 %v5125_v35, %v5124_v14 }
0x129e   :  { %v5098_v1 = vadd.f32 %v5097_v39, %v5096_v44 }
0x129f   :  { %v4656_v19 = vsub.f32 %v4654_v49, %v4655_v15  ;;  %v5128_v13 = vadd.f32 %v5127_v7, %v5126_v24 }
0x12a0   :  { %v5099_v20 = vrot.slane %v5098_v1, 4 }
0x12a1   :  { %v4657_v62 = vadd.f32 1e-05, %v4656_v19  ;;  %v5129_v6 = vrot.slane %v5128_v13, 4 }
0x12a2   :  { %v5100_v45 = vadd.f32 %v5099_v20, %v5098_v1 }
0x12a3   :  { %6397 = vrsqrt.f32 %v4657_v62  ;;  %v5130_v21 = vadd.f32 %v5129_v6, %v5128_v13  ;;  %v5082_v62 = vld [vmem:[%s8608_s2 + $0x29] sm:$0x1] }
0x12a4   :  { %v5101_v55 = vrot.slane %v5100_v45, 2 }
0x12a5   :  { %v5131_v23 = vrot.slane %v5130_v21, 2 }
0x12a6   :  { %v5102_v40 = vadd.f32 %v5101_v55, %v5100_v45 }
0x12a7   :  { %v5132_v52 = vadd.f32 %v5131_v23, %v5130_v21  ;;  %v5083_v23 = vld [vmem:[%s8608_s2 + $0x2a] sm:$0x1] }
0x12a8   :  { %v5103_v22 = vrot.slane %v5102_v40, 1 }
0x12a9   :  { %v5133_v51 = vrot.slane %v5132_v52, 1 }
0x12aa   :  { %v5104_v16 = vadd.f32 %v5103_v22, %v5102_v40 }
0x12ab   :  { %v5134_v50 = vadd.f32 %v5133_v51, %v5132_v52 }
0x12ac   :  { %v5105_v0 = vmul.f32 0.015625, %v5104_v16 }
0x12ad   :  { %v6398_v31 = vpop.eup %6397  ;;  %v5135_v25 = vmul.f32 0.015625, %v5134_v50 }
0x12ae   :  { %v4659_v38 = vmul.f32 %v6398_v31, %v4601_v30  ;;  %v5136_v28 = vmul.f32 %v5105_v0, %v5105_v0 }
0x12b0   :  { %v4660_v5 = vmul.f32 %v4659_v38, %v4624_v9  ;;  %v4665_v47 = vrot.slane %v4659_v38, %v6678_v58  ;;  %v5137_v61 = vsub.f32 %v5135_v25, %v5136_v28 }
0x12b2   :  { %v4661_v33 = vsub.f32 %v4602_v17, %v4660_v5  ;;  %v4666_v48 = vmul.f32 %v4665_v47, %v8293_v2  ;;  %v4667_v29 = vmul.f32 %v4665_v47, %v8291_v8  ;;  %v4668_v34 = vmul.f32 %v4665_v47, %v8307_v11 }
0x12b3   :  { %v4669_v4 = vmul.f32 %v4665_v47, %v8304_v41  ;;  %v4670_v43 = vmul.f32 %v4665_v47, %v8321_v37  ;;  %v4671_v10 = vmul.f32 %v4665_v47, %v8319_v46  ;;  %v4672_v27 = vmul.f32 %v4665_v47, %v8334_v59  ;;  %v4698_v41 = vld [vmem:[%s8607_s1 + $0x268] sm:$0xff]  ;;  %v4699_v46 = vld [vmem:[%s8607_s1 + $0x270] sm:$0xff] }
0x12b4   :  { %v4673_v54 = vmul.f32 %v4665_v47, %v8329_v36  ;;  %v4677_v56 = vrot.slane %v4661_v33, %v6678_v58  ;;  %v5138_v9 = vadd.f32 1e-05, %v5137_v61  ;;  %v6326_v19 = vpack.c.bf16 %v4699_v46, %v4698_v41 }
0x12b6   :  { %v4678_v60 = vadd.f32 %v4677_v56, %v4666_v48  ;;  %v4679_v14 = vadd.f32 %v4677_v56, %v4667_v29  ;;  %v4680_v2 = vadd.f32 %v4677_v56, %v4668_v34  ;;  %v4681_v44 = vadd.f32 %v4677_v56, %v4669_v4  ;;  %6327 = vmatprep.subr.bf16.mxu1 %v6326_v19 }
0x12b7   :  { %v4682_v8 = vadd.f32 %v4677_v56, %v4670_v43  ;;  %v4683_v35 = vadd.f32 %v4677_v56, %v4671_v10  ;;  %v4684_v11 = vadd.f32 %v4677_v56, %v4672_v27  ;;  %v4685_v49 = vadd.f32 %v4677_v56, %v4673_v54  ;;  %6329 = vmatpush3.bf16.msra.mxu1 %v6326_v19 }
0x12b8   :  { %v4686_v37 = vmax.f32 %v4678_v60, 0.0  ;;  %v4687_v36 = vmax.f32 %v4679_v14, 0.0  ;;  %v4688_v59 = vmax.f32 %v4680_v2, 0.0  ;;  %v4689_v15 = vmax.f32 %v4681_v44, 0.0 }
0x12b9   :  { %v4690_v39 = vmax.f32 %v4682_v8, 0.0  ;;  %v4691_v24 = vmax.f32 %v4683_v35, 0.0  ;;  %v4692_v7 = vmax.f32 %v4684_v11, 0.0  ;;  %v4693_v1 = vmax.f32 %v4685_v49, 0.0 }
0x12ba   :  { %4701 = vst.msk [vmem:[#allocation2 + $0x8] sm:$0xff] %vm15_vm0, %v4686_v37  ;;  %4702 = vst.msk [vmem:[#allocation2 + $0x10] sm:$0xff] %vm15_vm0, %v4687_v36  ;;  %6399 = vrsqrt.f32 %v5138_v9 }
0x12bb   :  { %4703 = vst.msk [vmem:[#allocation2 + $0x18] sm:$0xff] %vm15_vm0, %v4688_v59  ;;  %4704 = vst.msk [vmem:[#allocation2 + $0x20] sm:$0xff] %vm15_vm0, %v4689_v15 }
0x12bc   :  { %4705 = vst.msk [vmem:[#allocation2 + $0x38] sm:$0xff] %vm15_vm0, %v4690_v39  ;;  %4706 = vst.msk [vmem:[#allocation2 + $0x40] sm:$0xff] %vm15_vm0, %v4691_v24 }
0x12bd   :  { %4707 = vst.msk [vmem:[#allocation2 + $0x48] sm:$0xff] %vm15_vm0, %v4692_v7  ;;  %4708 = vst.msk [vmem:[#allocation2 + $0x50] sm:$0xff] %vm15_vm0, %v4693_v1 }
0x12c1   :  { %v4714_v13 = vld [vmem:[#allocation2 + $0x10] sm:$0xff]  ;;  %v4713_v20 = vld [vmem:[#allocation2 + $0x8] sm:$0xff] }
0x12c2   :  { %4727 = vrot.lane.b32.xlu1 %v4714_v13, %s6434_s26  ;;  %4725 = vrot.lane.b32.xlu0 %v4713_v20, %s6434_s26  ;;  %v4718_v21 = vld [vmem:[#allocation2 + $0x11] sm:$0xff]  ;;  %v4717_v55 = vld [vmem:[#allocation2 + $0x9] sm:$0xff]  ;;  %v4716_v16 = vld [vmem:[#allocation2 + $0x20] sm:$0xff] }
0x12c3   :  { %v4715_v30 = vld [vmem:[#allocation2 + $0x18] sm:$0xff]  ;;  %v4710_v9 = vld [vmem:[#allocation2 + $0xf] sm:$0xff]  ;;  %v4709_v60 = vld [vmem:[#allocation2 + $0x7] sm:$0xff] }
0x12c4   :  { %v6400_v6 = vpop.eup %6399  ;;  %v4765_v48 = vld [vmem:[#allocation2 + $0x38] sm:$0xff]  ;;  %v4770_v29 = vld [vmem:[#allocation2 + $0x41] sm:$0xff]  ;;  %v4768_v4 = vld [vmem:[#allocation2 + $0x50] sm:$0xff] }
0x12c5   :  { %v5140_v45 = vmul.f32 %v6400_v6, %v5082_v62  ;;  %v4769_v34 = vld [vmem:[#allocation2 + $0x39] sm:$0xff]  ;;  %v4767_v43 = vld [vmem:[#allocation2 + $0x48] sm:$0xff]  ;;  %v4772_v10 = vld [vmem:[#allocation2 + $0x51] sm:$0xff] }
0x12c6   :  { %4743 = vrot.lane.b32.xlu1 %v4718_v21, %s6435_s27  ;;  %4741 = vrot.lane.b32.xlu0 %v4717_v55, %s6435_s27  ;;  %v4771_v27 = vld [vmem:[#allocation2 + $0x49] sm:$0xff]  ;;  %v4712_v46 = vld [vmem:[#allocation2 + $0x1f] sm:$0xff]  ;;  %v4711_v37 = vld [vmem:[#allocation2 + $0x17] sm:$0xff] }
0x12c7   :  { %v5141_v40 = vmul.f32 %v5140_v45, %v5105_v0  ;;  %v5146_v52 = vrot.slane %v5140_v45, %v6678_v58  ;;  %v4762_v13 = vld [vmem:[#allocation2 + $0x3f] sm:$0xff]  ;;  %v4761_v20 = vld [vmem:[#allocation2 + $0x37] sm:$0xff] }
0x12c9   :  { %v5142_v22 = vsub.f32 %v5083_v23, %v5141_v40  ;;  %v5153_v51 = vmul.f32 %v5146_v52, %v8403_v63  ;;  %v5154_v50 = vmul.f32 %v5146_v52, %v8397_v42  ;;  %v5147_v31 = vmul.f32 %v5146_v52, %v8355_v32  ;;  %v4720_v42 = vld [vmem:[#allocation2 + $0x21] sm:$0xff]  ;;  %v4719_v32 = vld [vmem:[#allocation2 + $0x19] sm:$0xff] }
0x12ca   :  { %4731 = vrot.lane.b32.xlu1 %v4716_v16, %s6434_s26  ;;  %4729 = vrot.lane.b32.xlu0 %v4715_v30, %s6434_s26  ;;  %v5148_v25 = vmul.f32 %v5146_v52, %v8349_v53  ;;  %v5149_v38 = vmul.f32 %v5146_v52, %v8372_v18  ;;  %v5150_v0 = vmul.f32 %v5146_v52, %v8369_v57 }
0x12cb   :  { %v5158_v28 = vrot.slane %v5142_v22, %v6678_v58  ;;  %v5151_v63 = vmul.f32 %v5146_v52, %v8387_v12  ;;  %v5152_v17 = vmul.f32 %v5146_v52, %v8381_v26  ;;  %v4766_v12 = vld [vmem:[#allocation2 + $0x40] sm:$0xff]  ;;  %v4764_v22 = vld [vmem:[#allocation2 + $0x4f] sm:$0xff] }
0x12cd   :  { %v8468_v5 = vadd.f32 %v5158_v28, %v5153_v51  ;;  %v8470_v47 = vadd.f32 %v5158_v28, %v5154_v50  ;;  %v8472_v61 = vadd.f32 %v5158_v28, %v5147_v31  ;;  %v8474_v33 = vadd.f32 %v5158_v28, %v5148_v25  ;;  %v4763_v51 = vld [vmem:[#allocation2 + $0x47] sm:$0xff] }
0x12ce   :  { %4747 = vrot.lane.b32.xlu1 %v4720_v42, %s6435_s27  ;;  %4745 = vrot.lane.b32.xlu0 %v4719_v32, %s6435_s27  ;;  %v8478_v53 = vadd.f32 %v5158_v28, %v5149_v38  ;;  %v8480_v57 = vadd.f32 %v5158_v28, %v5150_v0  ;;  %v8482_v18 = vadd.f32 %v5158_v28, %v5151_v63  ;;  %v6436_v0 = vmov 0.0|0.0  }
0x12cf   :  { %v8484_v26 = vadd.f32 %v5158_v28, %v5152_v17  ;;  %6334 = vmatprep.subr.bf16.mxu1 %v6436_v0  ;;  %v5269_v28 = vld [vmem:[%s8608_s2 + $0x2b] sm:$0x1]  ;;  %v6438_v63 = vmov 0   ;;  %v5536_v17 = vld [vmem:[%s8608_s2 + $0x23] ss:$0 sm:$0xff] }
0x12d0   :  { %6376 = vset.pattern.permute.xlu0 %v6438_v63 }
0x12d2   :  { %4779 = vrot.lane.b32.xlu1 %v4766_v12, %s6434_s26  ;;  %4777 = vrot.lane.b32.xlu0 %v4765_v48, %s6434_s26 }
0x12d6   :  { %4795 = vrot.lane.b32.xlu1 %v4770_v29, %s6435_s27  ;;  %4793 = vrot.lane.b32.xlu0 %v4769_v34, %s6435_s27 }
0x12da   :  { %4783 = vrot.lane.b32.xlu1 %v4768_v4, %s6434_s26  ;;  %4781 = vrot.lane.b32.xlu0 %v4767_v43, %s6434_s26 }
0x12de   :  { %4799 = vrot.lane.b32.xlu1 %v4772_v10, %s6435_s27  ;;  %4797 = vrot.lane.b32.xlu0 %v4771_v27, %s6435_s27 }
0x12e2   :  { %5272 = vperm.xlu0 %6376, %v5269_v28  }
0x1334   :  { %v4728_v54 = vpop.permute.xlu1 %4727  ;;  %v4726_v56 = vpop.permute.xlu0 %4725 }
0x1335   :  { %v4754_v14 = vsel %vm15_vm0, %v4710_v9, %v4728_v54  ;;  %v4753_v2 = vsel %vm15_vm0, %v4709_v60, %v4726_v56 }
0x1338   :  { %v4744_v44 = vpop.permute.xlu1 %4743  ;;  %v4742_v8 = vpop.permute.xlu0 %4741 }
0x1339   :  { %v4758_v35 = vsel %vm645_vm9, %v4754_v14, %v4744_v44  ;;  %v4757_v11 = vsel %vm645_vm9, %v4753_v2, %v4742_v8 }
0x133a   :  { %6127 = vmatprep.mubr.msk.f32.mxu1 %vm706_vm10, %v4757_v11 }
0x133b   :  { %6128 = vmatmul.mubr.msk.f32.vlgmr.msra.gmra.mrb[52].mxu1 %vm706_vm10, %v4758_v35 }
0x133c   :  { %v4732_v49 = vpop.permute.xlu1 %4731  ;;  %v4730_v41 = vpop.permute.xlu0 %4729 }
0x133d   :  { %v4756_v36 = vsel %vm15_vm0, %v4712_v46, %v4732_v49  ;;  %v4755_v59 = vsel %vm15_vm0, %v4711_v37, %v4730_v41 }
0x1340   :  { %v4748_v15 = vpop.permute.xlu1 %4747  ;;  %v4746_v39 = vpop.permute.xlu0 %4745 }
0x1341   :  { %v4760_v24 = vsel %vm645_vm9, %v4756_v36, %v4748_v15  ;;  %v4759_v7 = vsel %vm645_vm9, %v4755_v59, %v4746_v39 }
0x1342   :  { %6130 = vmatprep.mubr.msk.f32.mxu1 %vm706_vm10, %v4759_v7 }
0x1343   :  { %6131 = vmatmul.mubr.msk.f32.gmra.mrb[54].mxu1 %vm706_vm10, %v4760_v24 }
0x1344   :  { %v4780_v1 = vpop.permute.xlu1 %4779  ;;  %v4778_v19 = vpop.permute.xlu0 %4777 }
0x1345   :  { %v4806_v62 = vsel %vm15_vm0, %v4762_v13, %v4780_v1  ;;  %v4805_v6 = vsel %vm15_vm0, %v4761_v20, %v4778_v19 }
0x1348   :  { %v4796_v45 = vpop.permute.xlu1 %4795  ;;  %v4794_v21 = vpop.permute.xlu0 %4793 }
0x1349   :  { %v4810_v55 = vsel %vm645_vm9, %v4806_v62, %v4796_v45  ;;  %v4809_v23 = vsel %vm645_vm9, %v4805_v6, %v4794_v21 }
0x134a   :  { %6133 = vmatprep.mubr.msk.f32.mxu1 %vm706_vm10, %v4809_v23 }
0x134b   :  { %6134 = vmatmul.mubr.msk.f32.gmra.mrb[56].mxu1 %vm706_vm10, %v4810_v55 }
0x134c   :  { %v4784_v40 = vpop.permute.xlu1 %4783  ;;  %v4782_v52 = vpop.permute.xlu0 %4781 }
0x134d   :  { %v4808_v16 = vsel %vm15_vm0, %v4764_v22, %v4784_v40  ;;  %v4807_v30 = vsel %vm15_vm0, %v4763_v51, %v4782_v52 }
0x1350   :  { %v4800_v50 = vpop.permute.xlu1 %4799  ;;  %v4798_v31 = vpop.permute.xlu0 %4797 }
0x1351   :  { %v4812_v25 = vsel %vm645_vm9, %v4808_v16, %v4800_v50  ;;  %v4811_v38 = vsel %vm645_vm9, %v4807_v30, %v4798_v31 }
0x1352   :  { %6136 = vmatprep.mubr.msk.f32.mxu1 %vm706_vm10, %v4811_v38 }
0x1353   :  { %6137 = vmatmul.mubr.msk.f32.gmra.mrb[58].mxu1 %vm706_vm10, %v4812_v25 }
0x1354   :  { %6171 = vmatprep.mubr.msk.f32.mxu1 %vm6437_vm11, %v6427_v3 }
0x140e   :  { %v6129_v42 = vpop.f32.mrb[52].mxu1 }
0x140f   :  { %v8526_v32 = vadd.f32 %v6129_v42, %v5536_v17  ;;  %v4907_v12 = vpop.f32.mrb[53].mxu1 }
0x1410   :  { %v8528_v48 = vadd.f32 %v5536_v17, %v4907_v12 }
0x1411   :  { %v5170_v3 = vsel %vm15_vm0, %v8526_v32, 0.0  ;;  %v5192_v29 = vmul.f32 %v8526_v32, %v8526_v32 }
0x1412   :  { %v5169_v34 = vsel %vm15_vm0, %v8528_v48, 0.0  ;;  %v5191_v4 = vmul.f32 %v8528_v48, %v8528_v48 }
0x1413   :  { %v5200_v43 = vsel %vm15_vm0, %v5192_v29, 0.0  ;;  %v5171_v10 = vadd.f32 %v5170_v3, %v5169_v34 }
0x1414   :  { %v5199_v27 = vsel %vm15_vm0, %v5191_v4, 0.0 }
0x1415   :  { %v5201_v54 = vadd.f32 %v5200_v43, %v5199_v27 }
0x1416   :  { %v6132_v56 = vpop.f32.mrb[54].mxu1 }
0x1417   :  { %v8540_v9 = vadd.f32 %v6132_v56, %v5536_v17  ;;  %v4917_v60 = vpop.f32.mrb[55].mxu1 }
0x1418   :  { %v8542_v14 = vadd.f32 %v5536_v17, %v4917_v60 }
0x1419   :  { %v5194_v2 = vmul.f32 %v8540_v9, %v8540_v9  ;;  %v5174_v11 = vsel %vm15_vm0, %v8540_v9, 0.0 }
0x141a   :  { %v5172_v44 = vsel %vm15_vm0, %v8542_v14, 0.0  ;;  %v5193_v8 = vmul.f32 %v8542_v14, %v8542_v14 }
0x141b   :  { %v5173_v35 = vadd.f32 %v5172_v44, %v5171_v10  ;;  %v5204_v37 = vsel %vm15_vm0, %v5194_v2, 0.0 }
0x141c   :  { %v5202_v49 = vsel %vm15_vm0, %v5193_v8, 0.0 }
0x141d   :  { %v5203_v41 = vadd.f32 %v5202_v49, %v5201_v54  ;;  %v5175_v46 = vadd.f32 %v5174_v11, %v5173_v35  ;;  %v5167_v49 = vld [vmem:[%s8608_s2 + $0x27] sm:$0x1] }
0x141e   :  { %v6135_v36 = vpop.f32.mrb[56].mxu1 }
0x141f   :  { %v4933_v59 = vadd.f32 %v6135_v36, %v5536_v17  ;;  %v4927_v15 = vpop.f32.mrb[57].mxu1  ;;  %v5205_v39 = vadd.f32 %v5204_v37, %v5203_v41  ;;  %v5168_v37 = vld [vmem:[%s8608_s2 + $0x28] sm:$0x1] }
0x1420   :  { %v4928_v24 = vadd.f32 %v5536_v17, %v4927_v15 }
0x1421   :  { %v5196_v7 = vmul.f32 %v4933_v59, %v4933_v59  ;;  %v5178_v20 = vsel %vm15_vm0, %v4933_v59, 0.0 }
0x1422   :  { %v5176_v1 = vsel %vm15_vm0, %v4928_v24, 0.0  ;;  %v5195_v19 = vmul.f32 %v4928_v24, %v4928_v24 }
0x1423   :  { %v5177_v13 = vadd.f32 %v5176_v1, %v5175_v46  ;;  %v5208_v21 = vsel %vm15_vm0, %v5196_v7, 0.0 }
0x1424   :  { %v5206_v62 = vsel %vm15_vm0, %v5195_v19, 0.0 }
0x1425   :  { %v5207_v6 = vadd.f32 %v5206_v62, %v5205_v39  ;;  %v5179_v45 = vadd.f32 %v5178_v20, %v5177_v13 }
0x1426   :  { %v6138_v55 = vpop.f32.mrb[58].mxu1 }
0x1427   :  { %v4943_v23 = vadd.f32 %v6138_v55, %v5536_v17  ;;  %v4937_v40 = vpop.f32.mrb[59].mxu1  ;;  %v5209_v52 = vadd.f32 %v5208_v21, %v5207_v6 }
0x1428   :  { %v4938_v22 = vadd.f32 %v5536_v17, %v4937_v40 }
0x1429   :  { %v5198_v51 = vmul.f32 %v4943_v23, %v4943_v23  ;;  %v5182_v31 = vsel %vm15_vm0, %v4943_v23, 0.0 }
0x142a   :  { %v5180_v16 = vsel %vm15_vm0, %v4938_v22, 0.0  ;;  %v5197_v30 = vmul.f32 %v4938_v22, %v4938_v22 }
0x142b   :  { %v5181_v50 = vadd.f32 %v5180_v16, %v5179_v45  ;;  %v5212_v63 = vsel %vm15_vm0, %v5198_v51, 0.0 }
0x142c   :  { %v5210_v25 = vsel %vm15_vm0, %v5197_v30, 0.0 }
0x142d   :  { %v5183_v38 = vadd.f32 %v5182_v31, %v5181_v50  ;;  %v5211_v28 = vadd.f32 %v5210_v25, %v5209_v52 }
0x142f   :  { %v5184_v42 = vrot.slane %v5183_v38, 4  ;;  %v5213_v12 = vadd.f32 %v5212_v63, %v5211_v28 }
0x1431   :  { %v5185_v3 = vadd.f32 %v5184_v42, %v5183_v38  ;;  %v5214_v29 = vrot.slane %v5213_v12, 4 }
0x1433   :  { %v5186_v34 = vrot.slane %v5185_v3, 2  ;;  %v5215_v4 = vadd.f32 %v5214_v29, %v5213_v12 }
0x1435   :  { %v5187_v17 = vadd.f32 %v5186_v34, %v5185_v3  ;;  %v5216_v43 = vrot.slane %v5215_v4, 2 }
0x1437   :  { %v5188_v10 = vrot.slane %v5187_v17, 1  ;;  %v5217_v27 = vadd.f32 %v5216_v43, %v5215_v4 }
0x1439   :  { %v5189_v54 = vadd.f32 %v5188_v10, %v5187_v17  ;;  %v5218_v56 = vrot.slane %v5217_v27, 1 }
0x143b   :  { %v5190_v60 = vmul.f32 0.015625, %v5189_v54  ;;  %v5219_v2 = vadd.f32 %v5218_v56, %v5217_v27 }
0x143d   :  { %v5220_v44 = vmul.f32 0.015625, %v5219_v2  ;;  %v5221_v8 = vmul.f32 %v5190_v60, %v5190_v60 }
0x143f   :  { %v5222_v35 = vsub.f32 %v5220_v44, %v5221_v8 }
0x1441   :  { %v5223_v11 = vadd.f32 1e-05, %v5222_v35 }
0x1443   :  { %6401 = vrsqrt.f32 %v5223_v11 }
0x144d   :  { %v6402_v41 = vpop.eup %6401 }
0x144e   :  { %v5225_v46 = vmul.f32 %v6402_v41, %v5167_v49 }
0x1450   :  { %v5226_v36 = vmul.f32 %v5225_v46, %v5190_v60  ;;  %v5231_v15 = vrot.slane %v5225_v46, %v6678_v58 }
0x1452   :  { %v5227_v39 = vsub.f32 %v5168_v37, %v5226_v36  ;;  %v5238_v7 = vmul.f32 %v5231_v15, %v4938_v22  ;;  %v5239_v1 = vmul.f32 %v5231_v15, %v4943_v23  ;;  %v5232_v19 = vmul.f32 %v5231_v15, %v8528_v48 }
0x1453   :  { %v5233_v13 = vmul.f32 %v5231_v15, %v8526_v32  ;;  %v5234_v20 = vmul.f32 %v5231_v15, %v8542_v14  ;;  %v5235_v62 = vmul.f32 %v5231_v15, %v8540_v9  ;;  %v5236_v6 = vmul.f32 %v5231_v15, %v4928_v24 }
0x1454   :  { %v5243_v45 = vrot.slane %v5227_v39, %v6678_v58  ;;  %v5237_v21 = vmul.f32 %v5231_v15, %v4933_v59 }
0x1456   :  { %v5250_v55 = vadd.f32 %v5243_v45, %v5238_v7  ;;  %v5251_v40 = vadd.f32 %v5243_v45, %v5239_v1  ;;  %v5244_v52 = vadd.f32 %v5243_v45, %v5232_v19  ;;  %v5245_v51 = vadd.f32 %v5243_v45, %v5233_v13 }
0x1457   :  { %v5246_v16 = vadd.f32 %v5243_v45, %v5234_v20  ;;  %v5247_v30 = vadd.f32 %v5243_v45, %v5235_v62  ;;  %v5248_v22 = vadd.f32 %v5243_v45, %v5236_v6  ;;  %v5249_v23 = vadd.f32 %v5243_v45, %v5237_v21 }
0x1458   :  { %v5258_v48 = vadd.f32 %v5250_v55, %v8468_v5  ;;  %v5259_v32 = vadd.f32 %v5251_v40, %v8470_v47  ;;  %v5252_v14 = vadd.f32 %v5244_v52, %v8472_v61  ;;  %v5253_v9 = vadd.f32 %v5245_v51, %v8474_v33 }
0x1459   :  { %v5254_v24 = vadd.f32 %v5246_v16, %v8478_v53  ;;  %v5255_v58 = vadd.f32 %v5247_v30, %v8480_v57  ;;  %v5256_v59 = vadd.f32 %v5248_v22, %v8482_v18  ;;  %v5257_v50 = vadd.f32 %v5249_v23, %v8484_v26  ;;  %v5268_v57 = vld [vmem:[%s8607_s1 + $0x288] sm:$0x1]  ;;  %v5273_v18 = vpop.permute.xlu0 %5272 }
0x145a   :  { %v5266_v31 = vmax.f32 %v5258_v48, 0.0  ;;  %v5267_v25 = vmax.f32 %v5259_v32, 0.0  ;;  %v5260_v38 = vmax.f32 %v5252_v14, 0.0  ;;  %v5261_v28 = vmax.f32 %v5253_v9, 0.0 }
0x145b   :  { %v5262_v5 = vmax.f32 %v5254_v24, 0.0  ;;  %v5263_v47 = vmax.f32 %v5255_v58, 0.0  ;;  %v5264_v61 = vmax.f32 %v5256_v59, 0.0  ;;  %v5265_v63 = vmax.f32 %v5257_v50, 0.0 }
0x145c   :  { %v6347_v33 = vpack.c.bf16 %v5267_v25, %v5266_v31  ;;  %v6335_v42 = vpack.c.bf16 %v5261_v28, %v5260_v38 }
0x145d   :  { %v6339_v53 = vpack.c.bf16 %v5263_v47, %v5262_v5  ;;  %v6343_v12 = vpack.c.bf16 %v5265_v63, %v5264_v61 }
0x145e   :  { %6337 = vmatpush3.bf16.xpose.msk.msra.mxu1 %vm6336_vm12, %v6335_v42 }
0x145f   :  { %6338 = vmatprep.subr.bf16.mxu1 %v6436_v0 }
0x1466   :  { %6341 = vmatpush3.bf16.xpose.msk.msra.mxu1 %vm6336_vm12, %v6339_v53 }
0x1467   :  { %6342 = vmatprep.subr.bf16.mxu1 %v6436_v0 }
0x146e   :  { %6345 = vmatpush3.bf16.xpose.msk.msra.mxu1 %vm6336_vm12, %v6343_v12 }
0x146f   :  { %6346 = vmatprep.subr.bf16.mxu1 %v6436_v0 }
0x1476   :  { %6349 = vmatpush3.bf16.xpose.msk.msra.mxu1 %vm6336_vm12, %v6347_v33 }
0x147d   :  { %6172 = vmatmul.mubr.msk.f32.vlgmr.msra.gmra.mrb[60].mxu1 %vm15_vm0, %v5268_v57 }
0x1550   :  { %v5368_v26 = vpop.f32.mrb[60].mxu1 }
0x1551   :  { %v5369_v3 = vadd.f32 %v5368_v26, %v5273_v18  ;;  %v6173_v29 = vpop.f32.mrb[61].mxu1 }
0x1553   :  { %5375 = vrot.lane.b32.xlu1 %v5369_v3, %s6439_s6  ;;  %5373 = vst.msk [vmem:[#allocation3] sm:$0x1] %vm5372_vm13, %v5369_v3 }
0x15c5   :  { %v5376_v34 = vpop.permute.xlu1 %5375 }
0x15c6   :  { %5379 = vst.msk [vmem:[#allocation3 + $0x1] sm:$0x1] %vm5372_vm13, %v5376_v34 }
0x15c7   :  { %6414 = shalt.err (!%p6411_p4)
}
0x15c8   :  { %s6415_s11 = scalar_lea.hbm %s8609_s3, 32 }
0x15c9   :  { %p6416_p5 = scmp.ne.s32.totalorder %s8609_s3, %s6415_s11  ;;  %p6419_p6 = scmp.lt.u32.totalorder %s6415_s11, %s8609_s3 }
0x15cb   :  { %p6421_p7 = pnand %p6419_p6, %p6416_p5 }
0x15cd   :  { %6424 = shalt.err (!%p6421_p7)
}
0x15ce   :  { %5391 = dma.vmem_to_hbm [thread:$0]  %s5386_s8, 32, %s8609_s3, [#allocation4], %s6434_s26, %s6434_s26, %s6429_s29  }
0x15cf   :  { %6425 = dma.done.wait [#allocation4], 32  }
0x15d0   :  { %6426 = vsyncadd [#allocation4], 4294967264 }
0x15d1   :  { %5395 = vsyncpa [#allocation4], 1 }

</bundles_post_ra>
